<compile_context>
chip_gen: v7x
topology: tpu7x:2x2x1
jax: 0.10.0
libtpu: 0.0.40
codegen_flags: <defaults>
</compile_context>

<pallas_src>
import functools

import jax
import jax.numpy as jnp
from jax.experimental import pallas as pl
from jax.experimental.pallas import tpu as pltpu

_VMEM = pl.BlockSpec(memory_space=pltpu.MemorySpace.VMEM)


def _round_up(x, m):
    return (x + m - 1) // m * m


# ----------------------------------------------------------------------------
# Gridded matmul kernels: out = act(A @ B + bias [+ residual])
# ----------------------------------------------------------------------------
def _mm_kernel(x_ref, w_ref, b_ref, o_ref, acc_ref, *, relu):
    @pl.when(pl.program_id(2) == 0)
    def _init():
        acc_ref[...] = jnp.zeros_like(acc_ref)

    acc_ref[...] += jnp.dot(x_ref[...], w_ref[...],
                            preferred_element_type=jnp.float32)

    @pl.when(pl.program_id(2) == pl.num_programs(2) - 1)
    def _fin():
        out = acc_ref[...] + b_ref[...]
        if relu:
            out = jnp.maximum(out, 0.0)
        o_ref[...] = out.astype(o_ref.dtype)


def _mm_res_kernel(x_ref, w_ref, b_ref, r_ref, o_ref, acc_ref, *, relu):
    @pl.when(pl.program_id(2) == 0)
    def _init():
        acc_ref[...] = jnp.zeros_like(acc_ref)

    acc_ref[...] += jnp.dot(x_ref[...], w_ref[...],
                            preferred_element_type=jnp.float32)

    @pl.when(pl.program_id(2) == pl.num_programs(2) - 1)
    def _fin():
        out = acc_ref[...] + b_ref[...] + r_ref[...].astype(jnp.float32)
        if relu:
            out = jnp.maximum(out, 0.0)
        o_ref[...] = out.astype(o_ref.dtype)


def matmul_bias(x, w, b, *, residual=None, relu=False, out_dtype=jnp.bfloat16):
    """x:(M,K) bf16, w:(K,N) bf16, b:(N,) f32, residual:(M,N) bf16 or None -> (M,N) out_dtype.

    N must be a multiple of 128 (callers keep channels lane-padded); M and K are padded
    internally to the chosen tile sizes so every store is lane/sublane aligned.
    """
    M, K = x.shape
    Kw, N = w.shape
    assert K == Kw and N % 128 == 0

    tm = min(256, _round_up(M, 16))
    Mp = _round_up(M, tm)
    tn = min(N, 512)
    Kp = _round_up(K, 128)
    tk = next(c for c in (512, 384, 256, 128) if Kp % c == 0)

    xq = jnp.pad(x, ((0, Mp - M), (0, Kp - K))) if (Mp != M or Kp != K) else x
    wq = jnp.pad(w, ((0, Kp - K), (0, 0))) if Kp != K else w
    b2 = b.reshape(1, N).astype(jnp.float32)

    x_spec = pl.BlockSpec((tm, tk), lambda i, j, k: (i, k))
    w_spec = pl.BlockSpec((tk, tn), lambda i, j, k: (k, j))
    b_spec = pl.BlockSpec((1, tn), lambda i, j, k: (0, j))
    o_spec = pl.BlockSpec((tm, tn), lambda i, j, k: (i, j))

    if residual is None:
        kernel = functools.partial(_mm_kernel, relu=relu)
        in_specs = [x_spec, w_spec, b_spec]
        args = (xq, wq, b2)
    else:
        rq = jnp.pad(residual, ((0, Mp - M), (0, 0))) if Mp != M else residual
        kernel = functools.partial(_mm_res_kernel, relu=relu)
        in_specs = [x_spec, w_spec, b_spec,
                    pl.BlockSpec((tm, tn), lambda i, j, k: (i, j))]
        args = (xq, wq, b2, rq)

    out = pl.pallas_call(
        kernel,
        out_shape=jax.ShapeDtypeStruct((Mp, N), out_dtype),
        grid_spec=pltpu.PrefetchScalarGridSpec(
            num_scalar_prefetch=0,
            grid=(Mp // tm, N // tn, Kp // tk),
            in_specs=in_specs,
            out_specs=o_spec,
            scratch_shapes=[pltpu.VMEM((tm, tn), jnp.float32)]),
        compiler_params=pltpu.CompilerParams(
            dimension_semantics=("parallel", "parallel", "arbitrary")),
    )(*args)
    return out[:M] if Mp != M else out


# ----------------------------------------------------------------------------
# Fused head kernel: spatial mean -> ReLU(f@W1+b1) -> ReLU(.@W2+b2) -> frame mean
# ----------------------------------------------------------------------------
def _head_kernel(x_ref, w1_ref, b1_ref, w2_ref, b2_ref, o_ref):
    f = jnp.mean(x_ref[...].astype(jnp.float32), axis=1)          # (F, 512) avg pool
    h = jnp.dot(f, w1_ref[...], preferred_element_type=jnp.float32) + b1_ref[...]
    h = jnp.maximum(h, 0.0)
    h = jnp.dot(h, w2_ref[...], preferred_element_type=jnp.float32) + b2_ref[...]
    h = jnp.maximum(h, 0.0)
    o_ref[...] = jnp.mean(h, axis=0, keepdims=True)                # mean over frames


def head(x, hp):
    """x: (F, OH*OW, 512) bf16 -> (1, 128) f32. Matches avgpool+flatten+MLP+stack().mean(0)."""
    return pl.pallas_call(
        _head_kernel,
        out_shape=jax.ShapeDtypeStruct((1, 128), jnp.float32),
        in_specs=[_VMEM] * 5,
        out_specs=_VMEM,
    )(x, hp["w1"], hp["b1"], hp["w2"], hp["b2"])


# ----------------------------------------------------------------------------
# NHWC conv application (weights pre-folded/pre-padded), maxpool
# ----------------------------------------------------------------------------
def conv_apply(x, cp, *, kh, kw, stride, padding, relu, residual=None):
    """x: (B,H,W,Cin) bf16 (channels already lane-padded, pad channels exactly zero).
    cp: {"wm": (kh*kw*Cin, OCp) bf16, "bias": (OCp,) f32}. Returns (B,OH,OW,OCp) bf16."""
    B, H, W, Cin = x.shape
    wm, bias = cp["wm"], cp["bias"]
    assert wm.shape[0] == kh * kw * Cin
    OCp = wm.shape[1]

    if kh == 1 and kw == 1 and padding == 0:
        xs = x if stride == 1 else x[:, ::stride, ::stride, :]
        OH, OW = xs.shape[1], xs.shape[2]
        patches = xs.reshape(B * OH * OW, Cin)
    else:
        xp = jnp.pad(x, ((0, 0), (padding, padding), (padding, padding), (0, 0)))
        OH = (H + 2 * padding - kh) // stride + 1
        OW = (W + 2 * padding - kw) // stride + 1
        cols = [xp[:, i:i + stride * (OH - 1) + 1:stride,
                   j:j + stride * (OW - 1) + 1:stride, :]
                for i in range(kh) for j in range(kw)]
        patches = jnp.concatenate(cols, axis=-1).reshape(B * OH * OW, kh * kw * Cin)

    res = None if residual is None else residual.reshape(B * OH * OW, OCp)
    out = matmul_bias(patches, wm, bias, residual=res, relu=relu)
    return out.reshape(B, OH, OW, OCp)


def maxpool3x3_s2_p1(x):
    """3x3 / stride 2 / pad 1 max pool in NHWC — pure VPU maximum chain (XLA fuses it)."""
    B, H, W, C = x.shape
    xp = jnp.pad(x, ((0, 0), (1, 1), (1, 1), (0, 0)), constant_values=-jnp.inf)
    OH = (H + 2 - 3) // 2 + 1
    OW = (W + 2 - 3) // 2 + 1
    out = None
    for i in range(3):
        for j in range(3):
            s = xp[:, i:i + 2 * (OH - 1) + 1:2, j:j + 2 * (OW - 1) + 1:2, :]
            out = s if out is None else jnp.maximum(out, s)
    return out


# ----------------------------------------------------------------------------
# ResNet18 backbone (eval mode) + head
# ----------------------------------------------------------------------------
def basic_block(x, bp, *, stride):
    out = conv_apply(x, bp["conv1"], kh=3, kw=3, stride=stride, padding=1, relu=True)
    if "dconv" in bp:
        identity = conv_apply(x, bp["dconv"], kh=1, kw=1, stride=stride, padding=0, relu=False)
    else:
        identity = x
    # conv2 + BN + residual add + ReLU fused into one Pallas matmul epilogue.
    return conv_apply(out, bp["conv2"], kh=3, kw=3, stride=1, padding=1, relu=True,
                      residual=identity)


def modified_res18_forward(frames, pp):
    # frames: (F, H, W, 3); PyTorch does per-frame permute(2,0,1).unsqueeze(0) -> batched conv.
    # We keep NHWC end-to-end, so no layout transposes are needed at all.
    x = frames.astype(jnp.bfloat16)
    x = conv_apply(x, pp["conv1"], kh=7, kw=7, stride=2, padding=3, relu=True)
    x = maxpool3x3_s2_p1(x)
    for li, layer in enumerate(("layer1", "layer2", "layer3", "layer4")):
        b0, b1 = pp[layer]
        x = basic_block(x, b0, stride=(1 if li == 0 else 2))
        x = basic_block(x, b1, stride=1)
    F_, OH, OW, C = x.shape                          # C == 512 (already lane-aligned)
    return head(x.reshape(F_, OH * OW, C), pp["head"])   # (1, 128) f32


# ----------------------------------------------------------------------------
# One-time parameter preparation (BN folding, pad, reshape, bf16 cast) — outside jit
# ----------------------------------------------------------------------------
def _prep_conv(w, bnp, in_cp):
    """PyTorch-layout conv weight (OC,IC,KH,KW) + eval BN -> matmul-ready weight/bias."""
    scale = bnp["gamma"] * jax.lax.rsqrt(bnp["var"] + 1e-5)
    wf = w * scale[:, None, None, None]
    bf = bnp["beta"] - bnp["mean"] * scale
    OC, IC, KH, KW = w.shape
    OCp = _round_up(OC, 128)
    wt = jnp.transpose(wf, (2, 3, 1, 0))                       # (KH,KW,IC,OC)
    wt = jnp.pad(wt, ((0, 0), (0, 0), (0, in_cp - IC), (0, OCp - OC)))
    return dict(wm=wt.reshape(KH * KW * in_cp, OCp).astype(jnp.bfloat16),
                bias=jnp.pad(bf, (0, OCp - OC)).astype(jnp.float32))


def prepare_params(params):
    bb = params["backbone"]
    pp = dict(conv1=_prep_conv(bb["conv1"], bb["bn1"], in_cp=3))
    in_c = 64
    for li, layer in enumerate(("layer1", "layer2", "layer3", "layer4")):
        out_c = 64 * (2 ** li)
        blocks = []
        for bp in bb[layer]:
            pb = dict(
                conv1=_prep_conv(bp["conv1"], bp["bn1"], in_cp=_round_up(in_c, 128)),
                conv2=_prep_conv(bp["conv2"], bp["bn2"], in_cp=_round_up(out_c, 128)),
            )
            if "dconv" in bp:
                pb["dconv"] = _prep_conv(bp["dconv"], bp["dbn"], in_cp=_round_up(in_c, 128))
            blocks.append(pb)
            in_c = out_c
        pp[layer] = blocks
    hp = params["head"]
    pp["head"] = dict(w1=hp["w1"].astype(jnp.float32), b1=hp["b1"].reshape(1, -1).astype(jnp.float32),
                      w2=hp["w2"].astype(jnp.float32), b2=hp["b2"].reshape(1, -1).astype(jnp.float32))
    return pp


# ----------------------------------------------------------------------------
# Deterministic synthetic parameter init (matching ResNet18 + 2 linear shapes)
# ----------------------------------------------------------------------------
def init_params(key):
    keys = iter(jax.random.split(key, 256))

    def conv_w(oc, ic, kh, kw):
        return jax.random.normal(next(keys), (oc, ic, kh, kw), jnp.float32) * 0.05

    def bn(c):
        return dict(
            gamma=1.0 + 0.1 * jax.random.normal(next(keys), (c,), jnp.float32),
            beta=0.1 * jax.random.normal(next(keys), (c,), jnp.float32),
            mean=0.1 * jax.random.normal(next(keys), (c,), jnp.float32),
            var=jnp.abs(1.0 + 0.1 * jax.random.normal(next(keys), (c,), jnp.float32)),
        )

    def make_layer(in_c, out_c, downsample):
        block1 = dict(conv1=conv_w(out_c, in_c, 3, 3), bn1=bn(out_c),
                      conv2=conv_w(out_c, out_c, 3, 3), bn2=bn(out_c))
        if downsample:
            block1["dconv"] = conv_w(out_c, in_c, 1, 1)
            block1["dbn"] = bn(out_c)
        block2 = dict(conv1=conv_w(out_c, out_c, 3, 3), bn1=bn(out_c),
                      conv2=conv_w(out_c, out_c, 3, 3), bn2=bn(out_c))
        return [block1, block2]

    backbone = dict(
        conv1=conv_w(64, 3, 7, 7), bn1=bn(64),
        layer1=make_layer(64, 64, downsample=False),
        layer2=make_layer(64, 128, downsample=True),
        layer3=make_layer(128, 256, downsample=True),
        layer4=make_layer(256, 512, downsample=True),
    )
    head_p = dict(
        w1=jax.random.normal(next(keys), (512, 256), jnp.float32) * 0.05,
        b1=0.01 * jax.random.normal(next(keys), (256,), jnp.float32),
        w2=jax.random.normal(next(keys), (256, 128), jnp.float32) * 0.05,
        b2=0.01 * jax.random.normal(next(keys), (128,), jnp.float32),
    )
    return dict(backbone=backbone, head=head_p)


if __name__ == "__main__":
    key = jax.random.PRNGKey(0)
    pkey, xkey = jax.random.split(key)
    params = init_params(pkey)
    prepared = jax.tree_util.tree_map(jnp.asarray, prepare_params(params))  # one-time prep
    # 4 frames of 32x32 RGB (smallest spatial size that survives ResNet18's /32 downsample)
    frames = jax.random.normal(xkey, (4, 32, 32, 3), jnp.float32)
    fwd = jax.jit(modified_res18_forward)
    out = jax.block_until_ready(fwd(frames, prepared))
    assert out.shape == (1, 128) and out.dtype == jnp.float32
    assert bool(jnp.all(jnp.isfinite(out)))
    print("KERNEL_OK")
</pallas_src>

<mosaic_0001>
module attributes {stable_mosaic.version = 11 : i64} {
  func.func @_mm_kernel(%arg0: i32, %arg1: i32, %arg2: i32, %arg3: memref<256x256xbf16, #tpu.memory_space<vmem>>, %arg4: memref<256x128xbf16, #tpu.memory_space<vmem>>, %arg5: memref<1x128xf32, #tpu.memory_space<vmem>>, %arg6: memref<256x128xbf16, #tpu.memory_space<vmem>>, %arg7: memref<256x128xf32, #tpu.memory_space<vmem>>) attributes {dimension_semantics = [#tpu.dimension_semantics<parallel>, #tpu.dimension_semantics<parallel>, #tpu.dimension_semantics<arbitrary>], iteration_bounds = array<i64: 4, 1, 1>, scalar_prefetch = 0 : i64, scratch_operands = 1 : i64, tpu.core_type = #tpu.core_type<tc>, window_params = [{transform_indices = @transform_0, window_bounds = array<i64: 256, 256>}, {transform_indices = @transform_1, window_bounds = array<i64: 256, 128>}, {transform_indices = @transform_2, window_bounds = array<i64: 1, 128>}, {transform_indices = @transform_3, window_bounds = array<i64: 256, 128>}]} {
    %c0_i32 = arith.constant 0 : i32
    %0 = arith.cmpi eq, %arg2, %c0_i32 : i32
    %1 = arith.extui %0 : i1 to i32
    %c0_i32_0 = arith.constant 0 : i32
    %2 = arith.cmpi ne, %1, %c0_i32_0 : i32
    scf.if %2 {
      %cst_10 = arith.constant 0.000000e+00 : f32
      %12 = vector.broadcast %cst_10 : f32 to vector<256x128xf32>
      %c0_11 = arith.constant 0 : index
      %c0_12 = arith.constant 0 : index
      %13 = vector.load %arg7[%c0_11, %c0_12] : memref<256x128xf32, #tpu.memory_space<vmem>>, vector<256x128xf32>
      tpu.vector_store %arg7[%c0_11, %c0_12], %12 {strides = array<i32>} : memref<256x128xf32, #tpu.memory_space<vmem>>, vector<256x128xf32>,
    } else {
    }
    %c0 = arith.constant 0 : index
    %c0_1 = arith.constant 0 : index
    %3 = vector.load %arg7[%c0, %c0_1] : memref<256x128xf32, #tpu.memory_space<vmem>>, vector<256x128xf32>
    %c0_2 = arith.constant 0 : index
    %c0_3 = arith.constant 0 : index
    %4 = vector.load %arg3[%c0_2, %c0_3] : memref<256x256xbf16, #tpu.memory_space<vmem>>, vector<256x256xbf16>
    %c0_4 = arith.constant 0 : index
    %c0_5 = arith.constant 0 : index
    %5 = vector.load %arg4[%c0_4, %c0_5] : memref<256x128xbf16, #tpu.memory_space<vmem>>, vector<256x128xbf16>
    %cst = arith.constant dense<0.000000e+00> : vector<256x128xf32>
    %6 = tpu.matmul %4, %5, %cst {dimension_numbers = #tpu.dot_dimension_numbers<[1], [0], [0], [1], [0, 0, 1, 1], [], []>} : vector<256x256xbf16>, vector<256x128xbf16>, vector<256x128xf32> -> vector<256x128xf32>
    %7 = arith.addf %3, %6 : vector<256x128xf32>
    %c0_6 = arith.constant 0 : index
    %c0_7 = arith.constant 0 : index
    %8 = vector.load %arg7[%c0_6, %c0_7] : memref<256x128xf32, #tpu.memory_space<vmem>>, vector<256x128xf32>
    tpu.vector_store %arg7[%c0_6, %c0_7], %7 {strides = array<i32>} : memref<256x128xf32, #tpu.memory_space<vmem>>, vector<256x128xf32>,
    %c0_i32_8 = arith.constant 0 : i32
    %9 = arith.cmpi eq, %arg2, %c0_i32_8 : i32
    %10 = arith.extui %9 : i1 to i32
    %c0_i32_9 = arith.constant 0 : i32
    %11 = arith.cmpi ne, %10, %c0_i32_9 : i32
    scf.if %11 {
      %c0_10 = arith.constant 0 : index
      %c0_11 = arith.constant 0 : index
      %12 = vector.load %arg7[%c0_10, %c0_11] : memref<256x128xf32, #tpu.memory_space<vmem>>, vector<256x128xf32>
      %c0_12 = arith.constant 0 : index
      %c0_13 = arith.constant 0 : index
      %13 = vector.load %arg5[%c0_12, %c0_13] : memref<1x128xf32, #tpu.memory_space<vmem>>, vector<1x128xf32>
      %14 = vector.broadcast %13 : vector<1x128xf32> to vector<256x128xf32>
      %15 = arith.addf %12, %14 : vector<256x128xf32>
      %cst_14 = arith.constant 0.000000e+00 : f32
      %16 = vector.broadcast %cst_14 : f32 to vector<256x128xf32>
      %17 = arith.maximumf %15, %16 : vector<256x128xf32>
      %18 = arith.truncf %17 : vector<256x128xf32> to vector<256x128xbf16>
      %c0_15 = arith.constant 0 : index
      %c0_16 = arith.constant 0 : index
      %19 = vector.load %arg6[%c0_15, %c0_16] : memref<256x128xbf16, #tpu.memory_space<vmem>>, vector<256x128xbf16>
      tpu.vector_store %arg6[%c0_15, %c0_16], %18 {strides = array<i32>} : memref<256x128xbf16, #tpu.memory_space<vmem>>, vector<256x128xbf16>,
    } else {
    }
    return
  }
  func.func @transform_0(%arg0: i32, %arg1: i32, %arg2: i32) -> (i32, i32) {
    %c0_i32 = arith.constant 0 : i32
    return %arg0, %arg2 : i32, i32
  }
  func.func @transform_1(%arg0: i32, %arg1: i32, %arg2: i32) -> (i32, i32) {
    %c0_i32 = arith.constant 0 : i32
    return %arg2, %arg1 : i32, i32
  }
  func.func @transform_2(%arg0: i32, %arg1: i32, %arg2: i32) -> (i32, i32) {
    %c0_i32 = arith.constant 0 : i32
    %c0_i32_0 = arith.constant 0 : i32
    return %c0_i32, %arg1 : i32, i32
  }
  func.func @transform_3(%arg0: i32, %arg1: i32, %arg2: i32) -> (i32, i32) {
    %c0_i32 = arith.constant 0 : i32
    return %arg0, %arg1 : i32, i32
  }
}

module attributes {stable_mosaic.version = 11 : i64} {
  func.func @_mm_kernel(%arg0: i32, %arg1: i32, %arg2: i32, %arg3: memref<256x384xbf16, #tpu.memory_space<vmem>>, %arg4: memref<384x128xbf16, #tpu.memory_space<vmem>>, %arg5: memref<1x128xf32, #tpu.memory_space<vmem>>, %arg6: memref<256x128xbf16, #tpu.memory_space<vmem>>, %arg7: memref<256x128xf32, #tpu.memory_space<vmem>>) attributes {dimension_semantics = [#tpu.dimension_semantics<parallel>, #tpu.dimension_semantics<parallel>, #tpu.dimension_semantics<arbitrary>], iteration_bounds = array<i64: 1, 1, 3>, scalar_prefetch = 0 : i64, scratch_operands = 1 : i64, tpu.core_type = #tpu.core_type<tc>, window_params = [{transform_indices = @transform_0, window_bounds = array<i64: 256, 384>}, {transform_indices = @transform_1, window_bounds = array<i64: 384, 128>}, {transform_indices = @transform_2, window_bounds = array<i64: 1, 128>}, {transform_indices = @transform_3, window_bounds = array<i64: 256, 128>}]} {
    %c0_i32 = arith.constant 0 : i32
    %0 = arith.cmpi eq, %arg2, %c0_i32 : i32
    %1 = arith.extui %0 : i1 to i32
    %c0_i32_0 = arith.constant 0 : i32
    %2 = arith.cmpi ne, %1, %c0_i32_0 : i32
    scf.if %2 {
      %cst_9 = arith.constant 0.000000e+00 : f32
      %12 = vector.broadcast %cst_9 : f32 to vector<256x128xf32>
      %c0_10 = arith.constant 0 : index
      %c0_11 = arith.constant 0 : index
      %13 = vector.load %arg7[%c0_10, %c0_11] : memref<256x128xf32, #tpu.memory_space<vmem>>, vector<256x128xf32>
      tpu.vector_store %arg7[%c0_10, %c0_11], %12 {strides = array<i32>} : memref<256x128xf32, #tpu.memory_space<vmem>>, vector<256x128xf32>,
    } else {
    }
    %c0 = arith.constant 0 : index
    %c0_1 = arith.constant 0 : index
    %3 = vector.load %arg7[%c0, %c0_1] : memref<256x128xf32, #tpu.memory_space<vmem>>, vector<256x128xf32>
    %c0_2 = arith.constant 0 : index
    %c0_3 = arith.constant 0 : index
    %4 = vector.load %arg3[%c0_2, %c0_3] : memref<256x384xbf16, #tpu.memory_space<vmem>>, vector<256x384xbf16>
    %c0_4 = arith.constant 0 : index
    %c0_5 = arith.constant 0 : index
    %5 = vector.load %arg4[%c0_4, %c0_5] : memref<384x128xbf16, #tpu.memory_space<vmem>>, vector<384x128xbf16>
    %cst = arith.constant dense<0.000000e+00> : vector<256x128xf32>
    %6 = tpu.matmul %4, %5, %cst {dimension_numbers = #tpu.dot_dimension_numbers<[1], [0], [0], [1], [0, 0, 1, 1], [], []>} : vector<256x384xbf16>, vector<384x128xbf16>, vector<256x128xf32> -> vector<256x128xf32>
    %7 = arith.addf %3, %6 : vector<256x128xf32>
    %c0_6 = arith.constant 0 : index
    %c0_7 = arith.constant 0 : index
    %8 = vector.load %arg7[%c0_6, %c0_7] : memref<256x128xf32, #tpu.memory_space<vmem>>, vector<256x128xf32>
    tpu.vector_store %arg7[%c0_6, %c0_7], %7 {strides = array<i32>} : memref<256x128xf32, #tpu.memory_space<vmem>>, vector<256x128xf32>,
    %c2_i32 = arith.constant 2 : i32
    %9 = arith.cmpi eq, %arg2, %c2_i32 : i32
    %10 = arith.extui %9 : i1 to i32
    %c0_i32_8 = arith.constant 0 : i32
    %11 = arith.cmpi ne, %10, %c0_i32_8 : i32
    scf.if %11 {
      %c0_9 = arith.constant 0 : index
      %c0_10 = arith.constant 0 : index
      %12 = vector.load %arg7[%c0_9, %c0_10] : memref<256x128xf32, #tpu.memory_space<vmem>>, vector<256x128xf32>
      %c0_11 = arith.constant 0 : index
      %c0_12 = arith.constant 0 : index
      %13 = vector.load %arg5[%c0_11, %c0_12] : memref<1x128xf32, #tpu.memory_space<vmem>>, vector<1x128xf32>
      %14 = vector.broadcast %13 : vector<1x128xf32> to vector<256x128xf32>
      %15 = arith.addf %12, %14 : vector<256x128xf32>
      %cst_13 = arith.constant 0.000000e+00 : f32
      %16 = vector.broadcast %cst_13 : f32 to vector<256x128xf32>
      %17 = arith.maximumf %15, %16 : vector<256x128xf32>
      %18 = arith.truncf %17 : vector<256x128xf32> to vector<256x128xbf16>
      %c0_14 = arith.constant 0 : index
      %c0_15 = arith.constant 0 : index
      %19 = vector.load %arg6[%c0_14, %c0_15] : memref<256x128xbf16, #tpu.memory_space<vmem>>, vector<256x128xbf16>
      tpu.vector_store %arg6[%c0_14, %c0_15], %18 {strides = array<i32>} : memref<256x128xbf16, #tpu.memory_space<vmem>>, vector<256x128xbf16>,
    } else {
    }
    return
  }
  func.func @transform_0(%arg0: i32, %arg1: i32, %arg2: i32) -> (i32, i32) {
    %c0_i32 = arith.constant 0 : i32
    return %arg0, %arg2 : i32, i32
  }
  func.func @transform_1(%arg0: i32, %arg1: i32, %arg2: i32) -> (i32, i32) {
    %c0_i32 = arith.constant 0 : i32
    return %arg2, %arg1 : i32, i32
  }
  func.func @transform_2(%arg0: i32, %arg1: i32, %arg2: i32) -> (i32, i32) {
    %c0_i32 = arith.constant 0 : i32
    %c0_i32_0 = arith.constant 0 : i32
    return %c0_i32, %arg1 : i32, i32
  }
  func.func @transform_3(%arg0: i32, %arg1: i32, %arg2: i32) -> (i32, i32) {
    %c0_i32 = arith.constant 0 : i32
    return %arg0, %arg1 : i32, i32
  }
}

module attributes {stable_mosaic.version = 11 : i64} {
  func.func @_mm_res_kernel(%arg0: i32, %arg1: i32, %arg2: i32, %arg3: memref<256x384xbf16, #tpu.memory_space<vmem>>, %arg4: memref<384x128xbf16, #tpu.memory_space<vmem>>, %arg5: memref<1x128xf32, #tpu.memory_space<vmem>>, %arg6: memref<256x128xbf16, #tpu.memory_space<vmem>>, %arg7: memref<256x128xbf16, #tpu.memory_space<vmem>>, %arg8: memref<256x128xf32, #tpu.memory_space<vmem>>) attributes {dimension_semantics = [#tpu.dimension_semantics<parallel>, #tpu.dimension_semantics<parallel>, #tpu.dimension_semantics<arbitrary>], iteration_bounds = array<i64: 1, 1, 3>, scalar_prefetch = 0 : i64, scratch_operands = 1 : i64, tpu.core_type = #tpu.core_type<tc>, window_params = [{transform_indices = @transform_0, window_bounds = array<i64: 256, 384>}, {transform_indices = @transform_1, window_bounds = array<i64: 384, 128>}, {transform_indices = @transform_2, window_bounds = array<i64: 1, 128>}, {transform_indices = @transform_3, window_bounds = array<i64: 256, 128>}, {transform_indices = @transform_4, window_bounds = array<i64: 256, 128>}]} {
    %c0_i32 = arith.constant 0 : i32
    %0 = arith.cmpi eq, %arg2, %c0_i32 : i32
    %1 = arith.extui %0 : i1 to i32
    %c0_i32_0 = arith.constant 0 : i32
    %2 = arith.cmpi ne, %1, %c0_i32_0 : i32
    scf.if %2 {
      %cst_9 = arith.constant 0.000000e+00 : f32
      %12 = vector.broadcast %cst_9 : f32 to vector<256x128xf32>
      %c0_10 = arith.constant 0 : index
      %c0_11 = arith.constant 0 : index
      %13 = vector.load %arg8[%c0_10, %c0_11] : memref<256x128xf32, #tpu.memory_space<vmem>>, vector<256x128xf32>
      tpu.vector_store %arg8[%c0_10, %c0_11], %12 {strides = array<i32>} : memref<256x128xf32, #tpu.memory_space<vmem>>, vector<256x128xf32>,
    } else {
    }
    %c0 = arith.constant 0 : index
    %c0_1 = arith.constant 0 : index
    %3 = vector.load %arg8[%c0, %c0_1] : memref<256x128xf32, #tpu.memory_space<vmem>>, vector<256x128xf32>
    %c0_2 = arith.constant 0 : index
    %c0_3 = arith.constant 0 : index
    %4 = vector.load %arg3[%c0_2, %c0_3] : memref<256x384xbf16, #tpu.memory_space<vmem>>, vector<256x384xbf16>
    %c0_4 = arith.constant 0 : index
    %c0_5 = arith.constant 0 : index
    %5 = vector.load %arg4[%c0_4, %c0_5] : memref<384x128xbf16, #tpu.memory_space<vmem>>, vector<384x128xbf16>
    %cst = arith.constant dense<0.000000e+00> : vector<256x128xf32>
    %6 = tpu.matmul %4, %5, %cst {dimension_numbers = #tpu.dot_dimension_numbers<[1], [0], [0], [1], [0, 0, 1, 1], [], []>} : vector<256x384xbf16>, vector<384x128xbf16>, vector<256x128xf32> -> vector<256x128xf32>
    %7 = arith.addf %3, %6 : vector<256x128xf32>
    %c0_6 = arith.constant 0 : index
    %c0_7 = arith.constant 0 : index
    %8 = vector.load %arg8[%c0_6, %c0_7] : memref<256x128xf32, #tpu.memory_space<vmem>>, vector<256x128xf32>
    tpu.vector_store %arg8[%c0_6, %c0_7], %7 {strides = array<i32>} : memref<256x128xf32, #tpu.memory_space<vmem>>, vector<256x128xf32>,
    %c2_i32 = arith.constant 2 : i32
    %9 = arith.cmpi eq, %arg2, %c2_i32 : i32
    %10 = arith.extui %9 : i1 to i32
    %c0_i32_8 = arith.constant 0 : i32
    %11 = arith.cmpi ne, %10, %c0_i32_8 : i32
    scf.if %11 {
      %c0_9 = arith.constant 0 : index
      %c0_10 = arith.constant 0 : index
      %12 = vector.load %arg8[%c0_9, %c0_10] : memref<256x128xf32, #tpu.memory_space<vmem>>, vector<256x128xf32>
      %c0_11 = arith.constant 0 : index
      %c0_12 = arith.constant 0 : index
      %13 = vector.load %arg5[%c0_11, %c0_12] : memref<1x128xf32, #tpu.memory_space<vmem>>, vector<1x128xf32>
      %14 = vector.broadcast %13 : vector<1x128xf32> to vector<256x128xf32>
      %15 = arith.addf %12, %14 : vector<256x128xf32>
      %c0_13 = arith.constant 0 : index
      %c0_14 = arith.constant 0 : index
      %16 = vector.load %arg6[%c0_13, %c0_14] : memref<256x128xbf16, #tpu.memory_space<vmem>>, vector<256x128xbf16>
      %17 = arith.extf %16 : vector<256x128xbf16> to vector<256x128xf32>
      %18 = arith.addf %15, %17 : vector<256x128xf32>
      %cst_15 = arith.constant 0.000000e+00 : f32
      %19 = vector.broadcast %cst_15 : f32 to vector<256x128xf32>
      %20 = arith.maximumf %18, %19 : vector<256x128xf32>
      %21 = arith.truncf %20 : vector<256x128xf32> to vector<256x128xbf16>
      %c0_16 = arith.constant 0 : index
      %c0_17 = arith.constant 0 : index
      %22 = vector.load %arg7[%c0_16, %c0_17] : memref<256x128xbf16, #tpu.memory_space<vmem>>, vector<256x128xbf16>
      tpu.vector_store %arg7[%c0_16, %c0_17], %21 {strides = array<i32>} : memref<256x128xbf16, #tpu.memory_space<vmem>>, vector<256x128xbf16>,
    } else {
    }
    return
  }
  func.func @transform_0(%arg0: i32, %arg1: i32, %arg2: i32) -> (i32, i32) {
    %c0_i32 = arith.constant 0 : i32
    return %arg0, %arg2 : i32, i32
  }
  func.func @transform_1(%arg0: i32, %arg1: i32, %arg2: i32) -> (i32, i32) {
    %c0_i32 = arith.constant 0 : i32
    return %arg2, %arg1 : i32, i32
  }
  func.func @transform_2(%arg0: i32, %arg1: i32, %arg2: i32) -> (i32, i32) {
    %c0_i32 = arith.constant 0 : i32
    %c0_i32_0 = arith.constant 0 : i32
    return %c0_i32, %arg1 : i32, i32
  }
  func.func @transform_3(%arg0: i32, %arg1: i32, %arg2: i32) -> (i32, i32) {
    %c0_i32 = arith.constant 0 : i32
    return %arg0, %arg1 : i32, i32
  }
  func.func @transform_4(%arg0: i32, %arg1: i32, %arg2: i32) -> (i32, i32) {
    %c0_i32 = arith.constant 0 : i32
    return %arg0, %arg1 : i32, i32
  }
}

module attributes {stable_mosaic.version = 11 : i64} {
  func.func @_mm_kernel(%arg0: i32, %arg1: i32, %arg2: i32, %arg3: memref<64x384xbf16, #tpu.memory_space<vmem>>, %arg4: memref<384x128xbf16, #tpu.memory_space<vmem>>, %arg5: memref<1x128xf32, #tpu.memory_space<vmem>>, %arg6: memref<64x128xbf16, #tpu.memory_space<vmem>>, %arg7: memref<64x128xf32, #tpu.memory_space<vmem>>) attributes {dimension_semantics = [#tpu.dimension_semantics<parallel>, #tpu.dimension_semantics<parallel>, #tpu.dimension_semantics<arbitrary>], iteration_bounds = array<i64: 1, 1, 3>, scalar_prefetch = 0 : i64, scratch_operands = 1 : i64, tpu.core_type = #tpu.core_type<tc>, window_params = [{transform_indices = @transform_0, window_bounds = array<i64: 64, 384>}, {transform_indices = @transform_1, window_bounds = array<i64: 384, 128>}, {transform_indices = @transform_2, window_bounds = array<i64: 1, 128>}, {transform_indices = @transform_3, window_bounds = array<i64: 64, 128>}]} {
    %c0_i32 = arith.constant 0 : i32
    %0 = arith.cmpi eq, %arg2, %c0_i32 : i32
    %1 = arith.extui %0 : i1 to i32
    %c0_i32_0 = arith.constant 0 : i32
    %2 = arith.cmpi ne, %1, %c0_i32_0 : i32
    scf.if %2 {
      %cst_9 = arith.constant 0.000000e+00 : f32
      %12 = vector.broadcast %cst_9 : f32 to vector<64x128xf32>
      %c0_10 = arith.constant 0 : index
      %c0_11 = arith.constant 0 : index
      %13 = vector.load %arg7[%c0_10, %c0_11] : memref<64x128xf32, #tpu.memory_space<vmem>>, vector<64x128xf32>
      tpu.vector_store %arg7[%c0_10, %c0_11], %12 {strides = array<i32>} : memref<64x128xf32, #tpu.memory_space<vmem>>, vector<64x128xf32>,
    } else {
    }
    %c0 = arith.constant 0 : index
    %c0_1 = arith.constant 0 : index
    %3 = vector.load %arg7[%c0, %c0_1] : memref<64x128xf32, #tpu.memory_space<vmem>>, vector<64x128xf32>
    %c0_2 = arith.constant 0 : index
    %c0_3 = arith.constant 0 : index
    %4 = vector.load %arg3[%c0_2, %c0_3] : memref<64x384xbf16, #tpu.memory_space<vmem>>, vector<64x384xbf16>
    %c0_4 = arith.constant 0 : index
    %c0_5 = arith.constant 0 : index
    %5 = vector.load %arg4[%c0_4, %c0_5] : memref<384x128xbf16, #tpu.memory_space<vmem>>, vector<384x128xbf16>
    %cst = arith.constant dense<0.000000e+00> : vector<64x128xf32>
    %6 = tpu.matmul %4, %5, %cst {dimension_numbers = #tpu.dot_dimension_numbers<[1], [0], [0], [1], [0, 0, 1, 1], [], []>} : vector<64x384xbf16>, vector<384x128xbf16>, vector<64x128xf32> -> vector<64x128xf32>
    %7 = arith.addf %3, %6 : vector<64x128xf32>
    %c0_6 = arith.constant 0 : index
    %c0_7 = arith.constant 0 : index
    %8 = vector.load %arg7[%c0_6, %c0_7] : memref<64x128xf32, #tpu.memory_space<vmem>>, vector<64x128xf32>
    tpu.vector_store %arg7[%c0_6, %c0_7], %7 {strides = array<i32>} : memref<64x128xf32, #tpu.memory_space<vmem>>, vector<64x128xf32>,
    %c2_i32 = arith.constant 2 : i32
    %9 = arith.cmpi eq, %arg2, %c2_i32 : i32
    %10 = arith.extui %9 : i1 to i32
    %c0_i32_8 = arith.constant 0 : i32
    %11 = arith.cmpi ne, %10, %c0_i32_8 : i32
    scf.if %11 {
      %c0_9 = arith.constant 0 : index
      %c0_10 = arith.constant 0 : index
      %12 = vector.load %arg7[%c0_9, %c0_10] : memref<64x128xf32, #tpu.memory_space<vmem>>, vector<64x128xf32>
      %c0_11 = arith.constant 0 : index
      %c0_12 = arith.constant 0 : index
      %13 = vector.load %arg5[%c0_11, %c0_12] : memref<1x128xf32, #tpu.memory_space<vmem>>, vector<1x128xf32>
      %14 = vector.broadcast %13 : vector<1x128xf32> to vector<64x128xf32>
      %15 = arith.addf %12, %14 : vector<64x128xf32>
      %cst_13 = arith.constant 0.000000e+00 : f32
      %16 = vector.broadcast %cst_13 : f32 to vector<64x128xf32>
      %17 = arith.maximumf %15, %16 : vector<64x128xf32>
      %18 = arith.truncf %17 : vector<64x128xf32> to vector<64x128xbf16>
      %c0_14 = arith.constant 0 : index
      %c0_15 = arith.constant 0 : index
      %19 = vector.load %arg6[%c0_14, %c0_15] : memref<64x128xbf16, #tpu.memory_space<vmem>>, vector<64x128xbf16>
      tpu.vector_store %arg6[%c0_14, %c0_15], %18 {strides = array<i32>} : memref<64x128xbf16, #tpu.memory_space<vmem>>, vector<64x128xbf16>,
    } else {
    }
    return
  }
  func.func @transform_0(%arg0: i32, %arg1: i32, %arg2: i32) -> (i32, i32) {
    %c0_i32 = arith.constant 0 : i32
    return %arg0, %arg2 : i32, i32
  }
  func.func @transform_1(%arg0: i32, %arg1: i32, %arg2: i32) -> (i32, i32) {
    %c0_i32 = arith.constant 0 : i32
    return %arg2, %arg1 : i32, i32
  }
  func.func @transform_2(%arg0: i32, %arg1: i32, %arg2: i32) -> (i32, i32) {
    %c0_i32 = arith.constant 0 : i32
    %c0_i32_0 = arith.constant 0 : i32
    return %c0_i32, %arg1 : i32, i32
  }
  func.func @transform_3(%arg0: i32, %arg1: i32, %arg2: i32) -> (i32, i32) {
    %c0_i32 = arith.constant 0 : i32
    return %arg0, %arg1 : i32, i32
  }
}

module attributes {stable_mosaic.version = 11 : i64} {
  func.func @_mm_res_kernel(%arg0: i32, %arg1: i32, %arg2: i32, %arg3: memref<64x384xbf16, #tpu.memory_space<vmem>>, %arg4: memref<384x128xbf16, #tpu.memory_space<vmem>>, %arg5: memref<1x128xf32, #tpu.memory_space<vmem>>, %arg6: memref<64x128xbf16, #tpu.memory_space<vmem>>, %arg7: memref<64x128xbf16, #tpu.memory_space<vmem>>, %arg8: memref<64x128xf32, #tpu.memory_space<vmem>>) attributes {dimension_semantics = [#tpu.dimension_semantics<parallel>, #tpu.dimension_semantics<parallel>, #tpu.dimension_semantics<arbitrary>], iteration_bounds = array<i64: 1, 1, 3>, scalar_prefetch = 0 : i64, scratch_operands = 1 : i64, tpu.core_type = #tpu.core_type<tc>, window_params = [{transform_indices = @transform_0, window_bounds = array<i64: 64, 384>}, {transform_indices = @transform_1, window_bounds = array<i64: 384, 128>}, {transform_indices = @transform_2, window_bounds = array<i64: 1, 128>}, {transform_indices = @transform_3, window_bounds = array<i64: 64, 128>}, {transform_indices = @transform_4, window_bounds = array<i64: 64, 128>}]} {
    %c0_i32 = arith.constant 0 : i32
    %0 = arith.cmpi eq, %arg2, %c0_i32 : i32
    %1 = arith.extui %0 : i1 to i32
    %c0_i32_0 = arith.constant 0 : i32
    %2 = arith.cmpi ne, %1, %c0_i32_0 : i32
    scf.if %2 {
      %cst_9 = arith.constant 0.000000e+00 : f32
      %12 = vector.broadcast %cst_9 : f32 to vector<64x128xf32>
      %c0_10 = arith.constant 0 : index
      %c0_11 = arith.constant 0 : index
      %13 = vector.load %arg8[%c0_10, %c0_11] : memref<64x128xf32, #tpu.memory_space<vmem>>, vector<64x128xf32>
      tpu.vector_store %arg8[%c0_10, %c0_11], %12 {strides = array<i32>} : memref<64x128xf32, #tpu.memory_space<vmem>>, vector<64x128xf32>,
    } else {
    }
    %c0 = arith.constant 0 : index
    %c0_1 = arith.constant 0 : index
    %3 = vector.load %arg8[%c0, %c0_1] : memref<64x128xf32, #tpu.memory_space<vmem>>, vector<64x128xf32>
    %c0_2 = arith.constant 0 : index
    %c0_3 = arith.constant 0 : index
    %4 = vector.load %arg3[%c0_2, %c0_3] : memref<64x384xbf16, #tpu.memory_space<vmem>>, vector<64x384xbf16>
    %c0_4 = arith.constant 0 : index
    %c0_5 = arith.constant 0 : index
    %5 = vector.load %arg4[%c0_4, %c0_5] : memref<384x128xbf16, #tpu.memory_space<vmem>>, vector<384x128xbf16>
    %cst = arith.constant dense<0.000000e+00> : vector<64x128xf32>
    %6 = tpu.matmul %4, %5, %cst {dimension_numbers = #tpu.dot_dimension_numbers<[1], [0], [0], [1], [0, 0, 1, 1], [], []>} : vector<64x384xbf16>, vector<384x128xbf16>, vector<64x128xf32> -> vector<64x128xf32>
    %7 = arith.addf %3, %6 : vector<64x128xf32>
    %c0_6 = arith.constant 0 : index
    %c0_7 = arith.constant 0 : index
    %8 = vector.load %arg8[%c0_6, %c0_7] : memref<64x128xf32, #tpu.memory_space<vmem>>, vector<64x128xf32>
    tpu.vector_store %arg8[%c0_6, %c0_7], %7 {strides = array<i32>} : memref<64x128xf32, #tpu.memory_space<vmem>>, vector<64x128xf32>,
    %c2_i32 = arith.constant 2 : i32
    %9 = arith.cmpi eq, %arg2, %c2_i32 : i32
    %10 = arith.extui %9 : i1 to i32
    %c0_i32_8 = arith.constant 0 : i32
    %11 = arith.cmpi ne, %10, %c0_i32_8 : i32
    scf.if %11 {
      %c0_9 = arith.constant 0 : index
      %c0_10 = arith.constant 0 : index
      %12 = vector.load %arg8[%c0_9, %c0_10] : memref<64x128xf32, #tpu.memory_space<vmem>>, vector<64x128xf32>
      %c0_11 = arith.constant 0 : index
      %c0_12 = arith.constant 0 : index
      %13 = vector.load %arg5[%c0_11, %c0_12] : memref<1x128xf32, #tpu.memory_space<vmem>>, vector<1x128xf32>
      %14 = vector.broadcast %13 : vector<1x128xf32> to vector<64x128xf32>
      %15 = arith.addf %12, %14 : vector<64x128xf32>
      %c0_13 = arith.constant 0 : index
      %c0_14 = arith.constant 0 : index
      %16 = vector.load %arg6[%c0_13, %c0_14] : memref<64x128xbf16, #tpu.memory_space<vmem>>, vector<64x128xbf16>
      %17 = arith.extf %16 : vector<64x128xbf16> to vector<64x128xf32>
      %18 = arith.addf %15, %17 : vector<64x128xf32>
      %cst_15 = arith.constant 0.000000e+00 : f32
      %19 = vector.broadcast %cst_15 : f32 to vector<64x128xf32>
      %20 = arith.maximumf %18, %19 : vector<64x128xf32>
      %21 = arith.truncf %20 : vector<64x128xf32> to vector<64x128xbf16>
      %c0_16 = arith.constant 0 : index
      %c0_17 = arith.constant 0 : index
      %22 = vector.load %arg7[%c0_16, %c0_17] : memref<64x128xbf16, #tpu.memory_space<vmem>>, vector<64x128xbf16>
      tpu.vector_store %arg7[%c0_16, %c0_17], %21 {strides = array<i32>} : memref<64x128xbf16, #tpu.memory_space<vmem>>, vector<64x128xbf16>,
    } else {
    }
    return
  }
  func.func @transform_0(%arg0: i32, %arg1: i32, %arg2: i32) -> (i32, i32) {
    %c0_i32 = arith.constant 0 : i32
    return %arg0, %arg2 : i32, i32
  }
  func.func @transform_1(%arg0: i32, %arg1: i32, %arg2: i32) -> (i32, i32) {
    %c0_i32 = arith.constant 0 : i32
    return %arg2, %arg1 : i32, i32
  }
  func.func @transform_2(%arg0: i32, %arg1: i32, %arg2: i32) -> (i32, i32) {
    %c0_i32 = arith.constant 0 : i32
    %c0_i32_0 = arith.constant 0 : i32
    return %c0_i32, %arg1 : i32, i32
  }
  func.func @transform_3(%arg0: i32, %arg1: i32, %arg2: i32) -> (i32, i32) {
    %c0_i32 = arith.constant 0 : i32
    return %arg0, %arg1 : i32, i32
  }
  func.func @transform_4(%arg0: i32, %arg1: i32, %arg2: i32) -> (i32, i32) {
    %c0_i32 = arith.constant 0 : i32
    return %arg0, %arg1 : i32, i32
  }
}

module attributes {stable_mosaic.version = 11 : i64} {
  func.func @_mm_kernel(%arg0: i32, %arg1: i32, %arg2: i32, %arg3: memref<64x128xbf16, #tpu.memory_space<vmem>>, %arg4: memref<128x128xbf16, #tpu.memory_space<vmem>>, %arg5: memref<1x128xf32, #tpu.memory_space<vmem>>, %arg6: memref<64x128xbf16, #tpu.memory_space<vmem>>, %arg7: memref<64x128xf32, #tpu.memory_space<vmem>>) attributes {dimension_semantics = [#tpu.dimension_semantics<parallel>, #tpu.dimension_semantics<parallel>, #tpu.dimension_semantics<arbitrary>], iteration_bounds = array<i64: 1, 1, 1>, scalar_prefetch = 0 : i64, scratch_operands = 1 : i64, tpu.core_type = #tpu.core_type<tc>, window_params = [{transform_indices = @transform_0, window_bounds = array<i64: 64, 128>}, {transform_indices = @transform_1, window_bounds = array<i64: 128, 128>}, {transform_indices = @transform_2, window_bounds = array<i64: 1, 128>}, {transform_indices = @transform_3, window_bounds = array<i64: 64, 128>}]} {
    %c0_i32 = arith.constant 0 : i32
    %0 = arith.cmpi eq, %arg2, %c0_i32 : i32
    %1 = arith.extui %0 : i1 to i32
    %c0_i32_0 = arith.constant 0 : i32
    %2 = arith.cmpi ne, %1, %c0_i32_0 : i32
    scf.if %2 {
      %cst_10 = arith.constant 0.000000e+00 : f32
      %12 = vector.broadcast %cst_10 : f32 to vector<64x128xf32>
      %c0_11 = arith.constant 0 : index
      %c0_12 = arith.constant 0 : index
      %13 = vector.load %arg7[%c0_11, %c0_12] : memref<64x128xf32, #tpu.memory_space<vmem>>, vector<64x128xf32>
      tpu.vector_store %arg7[%c0_11, %c0_12], %12 {strides = array<i32>} : memref<64x128xf32, #tpu.memory_space<vmem>>, vector<64x128xf32>,
    } else {
    }
    %c0 = arith.constant 0 : index
    %c0_1 = arith.constant 0 : index
    %3 = vector.load %arg7[%c0, %c0_1] : memref<64x128xf32, #tpu.memory_space<vmem>>, vector<64x128xf32>
    %c0_2 = arith.constant 0 : index
    %c0_3 = arith.constant 0 : index
    %4 = vector.load %arg3[%c0_2, %c0_3] : memref<64x128xbf16, #tpu.memory_space<vmem>>, vector<64x128xbf16>
    %c0_4 = arith.constant 0 : index
    %c0_5 = arith.constant 0 : index
    %5 = vector.load %arg4[%c0_4, %c0_5] : memref<128x128xbf16, #tpu.memory_space<vmem>>, vector<128x128xbf16>
    %cst = arith.constant dense<0.000000e+00> : vector<64x128xf32>
    %6 = tpu.matmul %4, %5, %cst {dimension_numbers = #tpu.dot_dimension_numbers<[1], [0], [0], [1], [0, 0, 1, 1], [], []>} : vector<64x128xbf16>, vector<128x128xbf16>, vector<64x128xf32> -> vector<64x128xf32>
    %7 = arith.addf %3, %6 : vector<64x128xf32>
    %c0_6 = arith.constant 0 : index
    %c0_7 = arith.constant 0 : index
    %8 = vector.load %arg7[%c0_6, %c0_7] : memref<64x128xf32, #tpu.memory_space<vmem>>, vector<64x128xf32>
    tpu.vector_store %arg7[%c0_6, %c0_7], %7 {strides = array<i32>} : memref<64x128xf32, #tpu.memory_space<vmem>>, vector<64x128xf32>,
    %c0_i32_8 = arith.constant 0 : i32
    %9 = arith.cmpi eq, %arg2, %c0_i32_8 : i32
    %10 = arith.extui %9 : i1 to i32
    %c0_i32_9 = arith.constant 0 : i32
    %11 = arith.cmpi ne, %10, %c0_i32_9 : i32
    scf.if %11 {
      %c0_10 = arith.constant 0 : index
      %c0_11 = arith.constant 0 : index
      %12 = vector.load %arg7[%c0_10, %c0_11] : memref<64x128xf32, #tpu.memory_space<vmem>>, vector<64x128xf32>
      %c0_12 = arith.constant 0 : index
      %c0_13 = arith.constant 0 : index
      %13 = vector.load %arg5[%c0_12, %c0_13] : memref<1x128xf32, #tpu.memory_space<vmem>>, vector<1x128xf32>
      %14 = vector.broadcast %13 : vector<1x128xf32> to vector<64x128xf32>
      %15 = arith.addf %12, %14 : vector<64x128xf32>
      %16 = arith.truncf %15 : vector<64x128xf32> to vector<64x128xbf16>
      %c0_14 = arith.constant 0 : index
      %c0_15 = arith.constant 0 : index
      %17 = vector.load %arg6[%c0_14, %c0_15] : memref<64x128xbf16, #tpu.memory_space<vmem>>, vector<64x128xbf16>
      tpu.vector_store %arg6[%c0_14, %c0_15], %16 {strides = array<i32>} : memref<64x128xbf16, #tpu.memory_space<vmem>>, vector<64x128xbf16>,
    } else {
    }
    return
  }
  func.func @transform_0(%arg0: i32, %arg1: i32, %arg2: i32) -> (i32, i32) {
    %c0_i32 = arith.constant 0 : i32
    return %arg0, %arg2 : i32, i32
  }
  func.func @transform_1(%arg0: i32, %arg1: i32, %arg2: i32) -> (i32, i32) {
    %c0_i32 = arith.constant 0 : i32
    return %arg2, %arg1 : i32, i32
  }
  func.func @transform_2(%arg0: i32, %arg1: i32, %arg2: i32) -> (i32, i32) {
    %c0_i32 = arith.constant 0 : i32
    %c0_i32_0 = arith.constant 0 : i32
    return %c0_i32, %arg1 : i32, i32
  }
  func.func @transform_3(%arg0: i32, %arg1: i32, %arg2: i32) -> (i32, i32) {
    %c0_i32 = arith.constant 0 : i32
    return %arg0, %arg1 : i32, i32
  }
}

module attributes {stable_mosaic.version = 11 : i64} {
  func.func @_mm_kernel(%arg0: i32, %arg1: i32, %arg2: i32, %arg3: memref<16x384xbf16, #tpu.memory_space<vmem>>, %arg4: memref<384x256xbf16, #tpu.memory_space<vmem>>, %arg5: memref<1x256xf32, #tpu.memory_space<vmem>>, %arg6: memref<16x256xbf16, #tpu.memory_space<vmem>>, %arg7: memref<16x256xf32, #tpu.memory_space<vmem>>) attributes {dimension_semantics = [#tpu.dimension_semantics<parallel>, #tpu.dimension_semantics<parallel>, #tpu.dimension_semantics<arbitrary>], iteration_bounds = array<i64: 1, 1, 3>, scalar_prefetch = 0 : i64, scratch_operands = 1 : i64, tpu.core_type = #tpu.core_type<tc>, window_params = [{transform_indices = @transform_0, window_bounds = array<i64: 16, 384>}, {transform_indices = @transform_1, window_bounds = array<i64: 384, 256>}, {transform_indices = @transform_2, window_bounds = array<i64: 1, 256>}, {transform_indices = @transform_3, window_bounds = array<i64: 16, 256>}]} {
    %c0_i32 = arith.constant 0 : i32
    %0 = arith.cmpi eq, %arg2, %c0_i32 : i32
    %1 = arith.extui %0 : i1 to i32
    %c0_i32_0 = arith.constant 0 : i32
    %2 = arith.cmpi ne, %1, %c0_i32_0 : i32
    scf.if %2 {
      %cst_9 = arith.constant 0.000000e+00 : f32
      %12 = vector.broadcast %cst_9 : f32 to vector<16x256xf32>
      %c0_10 = arith.constant 0 : index
      %c0_11 = arith.constant 0 : index
      %13 = vector.load %arg7[%c0_10, %c0_11] : memref<16x256xf32, #tpu.memory_space<vmem>>, vector<16x256xf32>
      tpu.vector_store %arg7[%c0_10, %c0_11], %12 {strides = array<i32>} : memref<16x256xf32, #tpu.memory_space<vmem>>, vector<16x256xf32>,
    } else {
    }
    %c0 = arith.constant 0 : index
    %c0_1 = arith.constant 0 : index
    %3 = vector.load %arg7[%c0, %c0_1] : memref<16x256xf32, #tpu.memory_space<vmem>>, vector<16x256xf32>
    %c0_2 = arith.constant 0 : index
    %c0_3 = arith.constant 0 : index
    %4 = vector.load %arg3[%c0_2, %c0_3] : memref<16x384xbf16, #tpu.memory_space<vmem>>, vector<16x384xbf16>
    %c0_4 = arith.constant 0 : index
    %c0_5 = arith.constant 0 : index
    %5 = vector.load %arg4[%c0_4, %c0_5] : memref<384x256xbf16, #tpu.memory_space<vmem>>, vector<384x256xbf16>
    %cst = arith.constant dense<0.000000e+00> : vector<16x256xf32>
    %6 = tpu.matmul %4, %5, %cst {dimension_numbers = #tpu.dot_dimension_numbers<[1], [0], [0], [1], [0, 0, 1, 1], [], []>} : vector<16x384xbf16>, vector<384x256xbf16>, vector<16x256xf32> -> vector<16x256xf32>
    %7 = arith.addf %3, %6 : vector<16x256xf32>
    %c0_6 = arith.constant 0 : index
    %c0_7 = arith.constant 0 : index
    %8 = vector.load %arg7[%c0_6, %c0_7] : memref<16x256xf32, #tpu.memory_space<vmem>>, vector<16x256xf32>
    tpu.vector_store %arg7[%c0_6, %c0_7], %7 {strides = array<i32>} : memref<16x256xf32, #tpu.memory_space<vmem>>, vector<16x256xf32>,
    %c2_i32 = arith.constant 2 : i32
    %9 = arith.cmpi eq, %arg2, %c2_i32 : i32
    %10 = arith.extui %9 : i1 to i32
    %c0_i32_8 = arith.constant 0 : i32
    %11 = arith.cmpi ne, %10, %c0_i32_8 : i32
    scf.if %11 {
      %c0_9 = arith.constant 0 : index
      %c0_10 = arith.constant 0 : index
      %12 = vector.load %arg7[%c0_9, %c0_10] : memref<16x256xf32, #tpu.memory_space<vmem>>, vector<16x256xf32>
      %c0_11 = arith.constant 0 : index
      %c0_12 = arith.constant 0 : index
      %13 = vector.load %arg5[%c0_11, %c0_12] : memref<1x256xf32, #tpu.memory_space<vmem>>, vector<1x256xf32>
      %14 = vector.broadcast %13 : vector<1x256xf32> to vector<16x256xf32>
      %15 = arith.addf %12, %14 : vector<16x256xf32>
      %cst_13 = arith.constant 0.000000e+00 : f32
      %16 = vector.broadcast %cst_13 : f32 to vector<16x256xf32>
      %17 = arith.maximumf %15, %16 : vector<16x256xf32>
      %18 = arith.truncf %17 : vector<16x256xf32> to vector<16x256xbf16>
      %c0_14 = arith.constant 0 : index
      %c0_15 = arith.constant 0 : index
      %19 = vector.load %arg6[%c0_14, %c0_15] : memref<16x256xbf16, #tpu.memory_space<vmem>>, vector<16x256xbf16>
      tpu.vector_store %arg6[%c0_14, %c0_15], %18 {strides = array<i32>} : memref<16x256xbf16, #tpu.memory_space<vmem>>, vector<16x256xbf16>,
    } else {
    }
    return
  }
  func.func @transform_0(%arg0: i32, %arg1: i32, %arg2: i32) -> (i32, i32) {
    %c0_i32 = arith.constant 0 : i32
    return %arg0, %arg2 : i32, i32
  }
  func.func @transform_1(%arg0: i32, %arg1: i32, %arg2: i32) -> (i32, i32) {
    %c0_i32 = arith.constant 0 : i32
    return %arg2, %arg1 : i32, i32
  }
  func.func @transform_2(%arg0: i32, %arg1: i32, %arg2: i32) -> (i32, i32) {
    %c0_i32 = arith.constant 0 : i32
    %c0_i32_0 = arith.constant 0 : i32
    return %c0_i32, %arg1 : i32, i32
  }
  func.func @transform_3(%arg0: i32, %arg1: i32, %arg2: i32) -> (i32, i32) {
    %c0_i32 = arith.constant 0 : i32
    return %arg0, %arg1 : i32, i32
  }
}

module attributes {stable_mosaic.version = 11 : i64} {
  func.func @_mm_kernel(%arg0: i32, %arg1: i32, %arg2: i32, %arg3: memref<16x128xbf16, #tpu.memory_space<vmem>>, %arg4: memref<128x256xbf16, #tpu.memory_space<vmem>>, %arg5: memref<1x256xf32, #tpu.memory_space<vmem>>, %arg6: memref<16x256xbf16, #tpu.memory_space<vmem>>, %arg7: memref<16x256xf32, #tpu.memory_space<vmem>>) attributes {dimension_semantics = [#tpu.dimension_semantics<parallel>, #tpu.dimension_semantics<parallel>, #tpu.dimension_semantics<arbitrary>], iteration_bounds = array<i64: 1, 1, 1>, scalar_prefetch = 0 : i64, scratch_operands = 1 : i64, tpu.core_type = #tpu.core_type<tc>, window_params = [{transform_indices = @transform_0, window_bounds = array<i64: 16, 128>}, {transform_indices = @transform_1, window_bounds = array<i64: 128, 256>}, {transform_indices = @transform_2, window_bounds = array<i64: 1, 256>}, {transform_indices = @transform_3, window_bounds = array<i64: 16, 256>}]} {
    %c0_i32 = arith.constant 0 : i32
    %0 = arith.cmpi eq, %arg2, %c0_i32 : i32
    %1 = arith.extui %0 : i1 to i32
    %c0_i32_0 = arith.constant 0 : i32
    %2 = arith.cmpi ne, %1, %c0_i32_0 : i32
    scf.if %2 {
      %cst_10 = arith.constant 0.000000e+00 : f32
      %12 = vector.broadcast %cst_10 : f32 to vector<16x256xf32>
      %c0_11 = arith.constant 0 : index
      %c0_12 = arith.constant 0 : index
      %13 = vector.load %arg7[%c0_11, %c0_12] : memref<16x256xf32, #tpu.memory_space<vmem>>, vector<16x256xf32>
      tpu.vector_store %arg7[%c0_11, %c0_12], %12 {strides = array<i32>} : memref<16x256xf32, #tpu.memory_space<vmem>>, vector<16x256xf32>,
    } else {
    }
    %c0 = arith.constant 0 : index
    %c0_1 = arith.constant 0 : index
    %3 = vector.load %arg7[%c0, %c0_1] : memref<16x256xf32, #tpu.memory_space<vmem>>, vector<16x256xf32>
    %c0_2 = arith.constant 0 : index
    %c0_3 = arith.constant 0 : index
    %4 = vector.load %arg3[%c0_2, %c0_3] : memref<16x128xbf16, #tpu.memory_space<vmem>>, vector<16x128xbf16>
    %c0_4 = arith.constant 0 : index
    %c0_5 = arith.constant 0 : index
    %5 = vector.load %arg4[%c0_4, %c0_5] : memref<128x256xbf16, #tpu.memory_space<vmem>>, vector<128x256xbf16>
    %cst = arith.constant dense<0.000000e+00> : vector<16x256xf32>
    %6 = tpu.matmul %4, %5, %cst {dimension_numbers = #tpu.dot_dimension_numbers<[1], [0], [0], [1], [0, 0, 1, 1], [], []>} : vector<16x128xbf16>, vector<128x256xbf16>, vector<16x256xf32> -> vector<16x256xf32>
    %7 = arith.addf %3, %6 : vector<16x256xf32>
    %c0_6 = arith.constant 0 : index
    %c0_7 = arith.constant 0 : index
    %8 = vector.load %arg7[%c0_6, %c0_7] : memref<16x256xf32, #tpu.memory_space<vmem>>, vector<16x256xf32>
    tpu.vector_store %arg7[%c0_6, %c0_7], %7 {strides = array<i32>} : memref<16x256xf32, #tpu.memory_space<vmem>>, vector<16x256xf32>,
    %c0_i32_8 = arith.constant 0 : i32
    %9 = arith.cmpi eq, %arg2, %c0_i32_8 : i32
    %10 = arith.extui %9 : i1 to i32
    %c0_i32_9 = arith.constant 0 : i32
    %11 = arith.cmpi ne, %10, %c0_i32_9 : i32
    scf.if %11 {
      %c0_10 = arith.constant 0 : index
      %c0_11 = arith.constant 0 : index
      %12 = vector.load %arg7[%c0_10, %c0_11] : memref<16x256xf32, #tpu.memory_space<vmem>>, vector<16x256xf32>
      %c0_12 = arith.constant 0 : index
      %c0_13 = arith.constant 0 : index
      %13 = vector.load %arg5[%c0_12, %c0_13] : memref<1x256xf32, #tpu.memory_space<vmem>>, vector<1x256xf32>
      %14 = vector.broadcast %13 : vector<1x256xf32> to vector<16x256xf32>
      %15 = arith.addf %12, %14 : vector<16x256xf32>
      %16 = arith.truncf %15 : vector<16x256xf32> to vector<16x256xbf16>
      %c0_14 = arith.constant 0 : index
      %c0_15 = arith.constant 0 : index
      %17 = vector.load %arg6[%c0_14, %c0_15] : memref<16x256xbf16, #tpu.memory_space<vmem>>, vector<16x256xbf16>
      tpu.vector_store %arg6[%c0_14, %c0_15], %16 {strides = array<i32>} : memref<16x256xbf16, #tpu.memory_space<vmem>>, vector<16x256xbf16>,
    } else {
    }
    return
  }
  func.func @transform_0(%arg0: i32, %arg1: i32, %arg2: i32) -> (i32, i32) {
    %c0_i32 = arith.constant 0 : i32
    return %arg0, %arg2 : i32, i32
  }
  func.func @transform_1(%arg0: i32, %arg1: i32, %arg2: i32) -> (i32, i32) {
    %c0_i32 = arith.constant 0 : i32
    return %arg2, %arg1 : i32, i32
  }
  func.func @transform_2(%arg0: i32, %arg1: i32, %arg2: i32) -> (i32, i32) {
    %c0_i32 = arith.constant 0 : i32
    %c0_i32_0 = arith.constant 0 : i32
    return %c0_i32, %arg1 : i32, i32
  }
  func.func @transform_3(%arg0: i32, %arg1: i32, %arg2: i32) -> (i32, i32) {
    %c0_i32 = arith.constant 0 : i32
    return %arg0, %arg1 : i32, i32
  }
}

module attributes {stable_mosaic.version = 11 : i64} {
  func.func @_mm_res_kernel(%arg0: i32, %arg1: i32, %arg2: i32, %arg3: memref<16x384xbf16, #tpu.memory_space<vmem>>, %arg4: memref<384x256xbf16, #tpu.memory_space<vmem>>, %arg5: memref<1x256xf32, #tpu.memory_space<vmem>>, %arg6: memref<16x256xbf16, #tpu.memory_space<vmem>>, %arg7: memref<16x256xbf16, #tpu.memory_space<vmem>>, %arg8: memref<16x256xf32, #tpu.memory_space<vmem>>) attributes {dimension_semantics = [#tpu.dimension_semantics<parallel>, #tpu.dimension_semantics<parallel>, #tpu.dimension_semantics<arbitrary>], iteration_bounds = array<i64: 1, 1, 6>, scalar_prefetch = 0 : i64, scratch_operands = 1 : i64, tpu.core_type = #tpu.core_type<tc>, window_params = [{transform_indices = @transform_0, window_bounds = array<i64: 16, 384>}, {transform_indices = @transform_1, window_bounds = array<i64: 384, 256>}, {transform_indices = @transform_2, window_bounds = array<i64: 1, 256>}, {transform_indices = @transform_3, window_bounds = array<i64: 16, 256>}, {transform_indices = @transform_4, window_bounds = array<i64: 16, 256>}]} {
    %c0_i32 = arith.constant 0 : i32
    %0 = arith.cmpi eq, %arg2, %c0_i32 : i32
    %1 = arith.extui %0 : i1 to i32
    %c0_i32_0 = arith.constant 0 : i32
    %2 = arith.cmpi ne, %1, %c0_i32_0 : i32
    scf.if %2 {
      %cst_9 = arith.constant 0.000000e+00 : f32
      %12 = vector.broadcast %cst_9 : f32 to vector<16x256xf32>
      %c0_10 = arith.constant 0 : index
      %c0_11 = arith.constant 0 : index
      %13 = vector.load %arg8[%c0_10, %c0_11] : memref<16x256xf32, #tpu.memory_space<vmem>>, vector<16x256xf32>
      tpu.vector_store %arg8[%c0_10, %c0_11], %12 {strides = array<i32>} : memref<16x256xf32, #tpu.memory_space<vmem>>, vector<16x256xf32>,
    } else {
    }
    %c0 = arith.constant 0 : index
    %c0_1 = arith.constant 0 : index
    %3 = vector.load %arg8[%c0, %c0_1] : memref<16x256xf32, #tpu.memory_space<vmem>>, vector<16x256xf32>
    %c0_2 = arith.constant 0 : index
    %c0_3 = arith.constant 0 : index
    %4 = vector.load %arg3[%c0_2, %c0_3] : memref<16x384xbf16, #tpu.memory_space<vmem>>, vector<16x384xbf16>
    %c0_4 = arith.constant 0 : index
    %c0_5 = arith.constant 0 : index
    %5 = vector.load %arg4[%c0_4, %c0_5] : memref<384x256xbf16, #tpu.memory_space<vmem>>, vector<384x256xbf16>
    %cst = arith.constant dense<0.000000e+00> : vector<16x256xf32>
    %6 = tpu.matmul %4, %5, %cst {dimension_numbers = #tpu.dot_dimension_numbers<[1], [0], [0], [1], [0, 0, 1, 1], [], []>} : vector<16x384xbf16>, vector<384x256xbf16>, vector<16x256xf32> -> vector<16x256xf32>
    %7 = arith.addf %3, %6 : vector<16x256xf32>
    %c0_6 = arith.constant 0 : index
    %c0_7 = arith.constant 0 : index
    %8 = vector.load %arg8[%c0_6, %c0_7] : memref<16x256xf32, #tpu.memory_space<vmem>>, vector<16x256xf32>
    tpu.vector_store %arg8[%c0_6, %c0_7], %7 {strides = array<i32>} : memref<16x256xf32, #tpu.memory_space<vmem>>, vector<16x256xf32>,
    %c5_i32 = arith.constant 5 : i32
    %9 = arith.cmpi eq, %arg2, %c5_i32 : i32
    %10 = arith.extui %9 : i1 to i32
    %c0_i32_8 = arith.constant 0 : i32
    %11 = arith.cmpi ne, %10, %c0_i32_8 : i32
    scf.if %11 {
      %c0_9 = arith.constant 0 : index
      %c0_10 = arith.constant 0 : index
      %12 = vector.load %arg8[%c0_9, %c0_10] : memref<16x256xf32, #tpu.memory_space<vmem>>, vector<16x256xf32>
      %c0_11 = arith.constant 0 : index
      %c0_12 = arith.constant 0 : index
      %13 = vector.load %arg5[%c0_11, %c0_12] : memref<1x256xf32, #tpu.memory_space<vmem>>, vector<1x256xf32>
      %14 = vector.broadcast %13 : vector<1x256xf32> to vector<16x256xf32>
      %15 = arith.addf %12, %14 : vector<16x256xf32>
      %c0_13 = arith.constant 0 : index
      %c0_14 = arith.constant 0 : index
      %16 = vector.load %arg6[%c0_13, %c0_14] : memref<16x256xbf16, #tpu.memory_space<vmem>>, vector<16x256xbf16>
      %17 = arith.extf %16 : vector<16x256xbf16> to vector<16x256xf32>
      %18 = arith.addf %15, %17 : vector<16x256xf32>
      %cst_15 = arith.constant 0.000000e+00 : f32
      %19 = vector.broadcast %cst_15 : f32 to vector<16x256xf32>
      %20 = arith.maximumf %18, %19 : vector<16x256xf32>
      %21 = arith.truncf %20 : vector<16x256xf32> to vector<16x256xbf16>
      %c0_16 = arith.constant 0 : index
      %c0_17 = arith.constant 0 : index
      %22 = vector.load %arg7[%c0_16, %c0_17] : memref<16x256xbf16, #tpu.memory_space<vmem>>, vector<16x256xbf16>
      tpu.vector_store %arg7[%c0_16, %c0_17], %21 {strides = array<i32>} : memref<16x256xbf16, #tpu.memory_space<vmem>>, vector<16x256xbf16>,
    } else {
    }
    return
  }
  func.func @transform_0(%arg0: i32, %arg1: i32, %arg2: i32) -> (i32, i32) {
    %c0_i32 = arith.constant 0 : i32
    return %arg0, %arg2 : i32, i32
  }
  func.func @transform_1(%arg0: i32, %arg1: i32, %arg2: i32) -> (i32, i32) {
    %c0_i32 = arith.constant 0 : i32
    return %arg2, %arg1 : i32, i32
  }
  func.func @transform_2(%arg0: i32, %arg1: i32, %arg2: i32) -> (i32, i32) {
    %c0_i32 = arith.constant 0 : i32
    %c0_i32_0 = arith.constant 0 : i32
    return %c0_i32, %arg1 : i32, i32
  }
  func.func @transform_3(%arg0: i32, %arg1: i32, %arg2: i32) -> (i32, i32) {
    %c0_i32 = arith.constant 0 : i32
    return %arg0, %arg1 : i32, i32
  }
  func.func @transform_4(%arg0: i32, %arg1: i32, %arg2: i32) -> (i32, i32) {
    %c0_i32 = arith.constant 0 : i32
    return %arg0, %arg1 : i32, i32
  }
}

module attributes {stable_mosaic.version = 11 : i64} {
  func.func @_mm_kernel(%arg0: i32, %arg1: i32, %arg2: i32, %arg3: memref<16x384xbf16, #tpu.memory_space<vmem>>, %arg4: memref<384x256xbf16, #tpu.memory_space<vmem>>, %arg5: memref<1x256xf32, #tpu.memory_space<vmem>>, %arg6: memref<16x256xbf16, #tpu.memory_space<vmem>>, %arg7: memref<16x256xf32, #tpu.memory_space<vmem>>) attributes {dimension_semantics = [#tpu.dimension_semantics<parallel>, #tpu.dimension_semantics<parallel>, #tpu.dimension_semantics<arbitrary>], iteration_bounds = array<i64: 1, 1, 6>, scalar_prefetch = 0 : i64, scratch_operands = 1 : i64, tpu.core_type = #tpu.core_type<tc>, window_params = [{transform_indices = @transform_0, window_bounds = array<i64: 16, 384>}, {transform_indices = @transform_1, window_bounds = array<i64: 384, 256>}, {transform_indices = @transform_2, window_bounds = array<i64: 1, 256>}, {transform_indices = @transform_3, window_bounds = array<i64: 16, 256>}]} {
    %c0_i32 = arith.constant 0 : i32
    %0 = arith.cmpi eq, %arg2, %c0_i32 : i32
    %1 = arith.extui %0 : i1 to i32
    %c0_i32_0 = arith.constant 0 : i32
    %2 = arith.cmpi ne, %1, %c0_i32_0 : i32
    scf.if %2 {
      %cst_9 = arith.constant 0.000000e+00 : f32
      %12 = vector.broadcast %cst_9 : f32 to vector<16x256xf32>
      %c0_10 = arith.constant 0 : index
      %c0_11 = arith.constant 0 : index
      %13 = vector.load %arg7[%c0_10, %c0_11] : memref<16x256xf32, #tpu.memory_space<vmem>>, vector<16x256xf32>
      tpu.vector_store %arg7[%c0_10, %c0_11], %12 {strides = array<i32>} : memref<16x256xf32, #tpu.memory_space<vmem>>, vector<16x256xf32>,
    } else {
    }
    %c0 = arith.constant 0 : index
    %c0_1 = arith.constant 0 : index
    %3 = vector.load %arg7[%c0, %c0_1] : memref<16x256xf32, #tpu.memory_space<vmem>>, vector<16x256xf32>
    %c0_2 = arith.constant 0 : index
    %c0_3 = arith.constant 0 : index
    %4 = vector.load %arg3[%c0_2, %c0_3] : memref<16x384xbf16, #tpu.memory_space<vmem>>, vector<16x384xbf16>
    %c0_4 = arith.constant 0 : index
    %c0_5 = arith.constant 0 : index
    %5 = vector.load %arg4[%c0_4, %c0_5] : memref<384x256xbf16, #tpu.memory_space<vmem>>, vector<384x256xbf16>
    %cst = arith.constant dense<0.000000e+00> : vector<16x256xf32>
    %6 = tpu.matmul %4, %5, %cst {dimension_numbers = #tpu.dot_dimension_numbers<[1], [0], [0], [1], [0, 0, 1, 1], [], []>} : vector<16x384xbf16>, vector<384x256xbf16>, vector<16x256xf32> -> vector<16x256xf32>
    %7 = arith.addf %3, %6 : vector<16x256xf32>
    %c0_6 = arith.constant 0 : index
    %c0_7 = arith.constant 0 : index
    %8 = vector.load %arg7[%c0_6, %c0_7] : memref<16x256xf32, #tpu.memory_space<vmem>>, vector<16x256xf32>
    tpu.vector_store %arg7[%c0_6, %c0_7], %7 {strides = array<i32>} : memref<16x256xf32, #tpu.memory_space<vmem>>, vector<16x256xf32>,
    %c5_i32 = arith.constant 5 : i32
    %9 = arith.cmpi eq, %arg2, %c5_i32 : i32
    %10 = arith.extui %9 : i1 to i32
    %c0_i32_8 = arith.constant 0 : i32
    %11 = arith.cmpi ne, %10, %c0_i32_8 : i32
    scf.if %11 {
      %c0_9 = arith.constant 0 : index
      %c0_10 = arith.constant 0 : index
      %12 = vector.load %arg7[%c0_9, %c0_10] : memref<16x256xf32, #tpu.memory_space<vmem>>, vector<16x256xf32>
      %c0_11 = arith.constant 0 : index
      %c0_12 = arith.constant 0 : index
      %13 = vector.load %arg5[%c0_11, %c0_12] : memref<1x256xf32, #tpu.memory_space<vmem>>, vector<1x256xf32>
      %14 = vector.broadcast %13 : vector<1x256xf32> to vector<16x256xf32>
      %15 = arith.addf %12, %14 : vector<16x256xf32>
      %cst_13 = arith.constant 0.000000e+00 : f32
      %16 = vector.broadcast %cst_13 : f32 to vector<16x256xf32>
      %17 = arith.maximumf %15, %16 : vector<16x256xf32>
      %18 = arith.truncf %17 : vector<16x256xf32> to vector<16x256xbf16>
      %c0_14 = arith.constant 0 : index
      %c0_15 = arith.constant 0 : index
      %19 = vector.load %arg6[%c0_14, %c0_15] : memref<16x256xbf16, #tpu.memory_space<vmem>>, vector<16x256xbf16>
      tpu.vector_store %arg6[%c0_14, %c0_15], %18 {strides = array<i32>} : memref<16x256xbf16, #tpu.memory_space<vmem>>, vector<16x256xbf16>,
    } else {
    }
    return
  }
  func.func @transform_0(%arg0: i32, %arg1: i32, %arg2: i32) -> (i32, i32) {
    %c0_i32 = arith.constant 0 : i32
    return %arg0, %arg2 : i32, i32
  }
  func.func @transform_1(%arg0: i32, %arg1: i32, %arg2: i32) -> (i32, i32) {
    %c0_i32 = arith.constant 0 : i32
    return %arg2, %arg1 : i32, i32
  }
  func.func @transform_2(%arg0: i32, %arg1: i32, %arg2: i32) -> (i32, i32) {
    %c0_i32 = arith.constant 0 : i32
    %c0_i32_0 = arith.constant 0 : i32
    return %c0_i32, %arg1 : i32, i32
  }
  func.func @transform_3(%arg0: i32, %arg1: i32, %arg2: i32) -> (i32, i32) {
    %c0_i32 = arith.constant 0 : i32
    return %arg0, %arg1 : i32, i32
  }
}

module attributes {stable_mosaic.version = 11 : i64} {
  func.func @_mm_kernel(%arg0: i32, %arg1: i32, %arg2: i32, %arg3: memref<16x384xbf16, #tpu.memory_space<vmem>>, %arg4: memref<384x512xbf16, #tpu.memory_space<vmem>>, %arg5: memref<1x512xf32, #tpu.memory_space<vmem>>, %arg6: memref<16x512xbf16, #tpu.memory_space<vmem>>, %arg7: memref<16x512xf32, #tpu.memory_space<vmem>>) attributes {dimension_semantics = [#tpu.dimension_semantics<parallel>, #tpu.dimension_semantics<parallel>, #tpu.dimension_semantics<arbitrary>], iteration_bounds = array<i64: 1, 1, 6>, scalar_prefetch = 0 : i64, scratch_operands = 1 : i64, tpu.core_type = #tpu.core_type<tc>, window_params = [{transform_indices = @transform_0, window_bounds = array<i64: 16, 384>}, {transform_indices = @transform_1, window_bounds = array<i64: 384, 512>}, {transform_indices = @transform_2, window_bounds = array<i64: 1, 512>}, {transform_indices = @transform_3, window_bounds = array<i64: 16, 512>}]} {
    %c0_i32 = arith.constant 0 : i32
    %0 = arith.cmpi eq, %arg2, %c0_i32 : i32
    %1 = arith.extui %0 : i1 to i32
    %c0_i32_0 = arith.constant 0 : i32
    %2 = arith.cmpi ne, %1, %c0_i32_0 : i32
    scf.if %2 {
      %cst_9 = arith.constant 0.000000e+00 : f32
      %12 = vector.broadcast %cst_9 : f32 to vector<16x512xf32>
      %c0_10 = arith.constant 0 : index
      %c0_11 = arith.constant 0 : index
      %13 = vector.load %arg7[%c0_10, %c0_11] : memref<16x512xf32, #tpu.memory_space<vmem>>, vector<16x512xf32>
      tpu.vector_store %arg7[%c0_10, %c0_11], %12 {strides = array<i32>} : memref<16x512xf32, #tpu.memory_space<vmem>>, vector<16x512xf32>,
    } else {
    }
    %c0 = arith.constant 0 : index
    %c0_1 = arith.constant 0 : index
    %3 = vector.load %arg7[%c0, %c0_1] : memref<16x512xf32, #tpu.memory_space<vmem>>, vector<16x512xf32>
    %c0_2 = arith.constant 0 : index
    %c0_3 = arith.constant 0 : index
    %4 = vector.load %arg3[%c0_2, %c0_3] : memref<16x384xbf16, #tpu.memory_space<vmem>>, vector<16x384xbf16>
    %c0_4 = arith.constant 0 : index
    %c0_5 = arith.constant 0 : index
    %5 = vector.load %arg4[%c0_4, %c0_5] : memref<384x512xbf16, #tpu.memory_space<vmem>>, vector<384x512xbf16>
    %cst = arith.constant dense<0.000000e+00> : vector<16x512xf32>
    %6 = tpu.matmul %4, %5, %cst {dimension_numbers = #tpu.dot_dimension_numbers<[1], [0], [0], [1], [0, 0, 1, 1], [], []>} : vector<16x384xbf16>, vector<384x512xbf16>, vector<16x512xf32> -> vector<16x512xf32>
    %7 = arith.addf %3, %6 : vector<16x512xf32>
    %c0_6 = arith.constant 0 : index
    %c0_7 = arith.constant 0 : index
    %8 = vector.load %arg7[%c0_6, %c0_7] : memref<16x512xf32, #tpu.memory_space<vmem>>, vector<16x512xf32>
    tpu.vector_store %arg7[%c0_6, %c0_7], %7 {strides = array<i32>} : memref<16x512xf32, #tpu.memory_space<vmem>>, vector<16x512xf32>,
    %c5_i32 = arith.constant 5 : i32
    %9 = arith.cmpi eq, %arg2, %c5_i32 : i32
    %10 = arith.extui %9 : i1 to i32
    %c0_i32_8 = arith.constant 0 : i32
    %11 = arith.cmpi ne, %10, %c0_i32_8 : i32
    scf.if %11 {
      %c0_9 = arith.constant 0 : index
      %c0_10 = arith.constant 0 : index
      %12 = vector.load %arg7[%c0_9, %c0_10] : memref<16x512xf32, #tpu.memory_space<vmem>>, vector<16x512xf32>
      %c0_11 = arith.constant 0 : index
      %c0_12 = arith.constant 0 : index
      %13 = vector.load %arg5[%c0_11, %c0_12] : memref<1x512xf32, #tpu.memory_space<vmem>>, vector<1x512xf32>
      %14 = vector.broadcast %13 : vector<1x512xf32> to vector<16x512xf32>
      %15 = arith.addf %12, %14 : vector<16x512xf32>
      %cst_13 = arith.constant 0.000000e+00 : f32
      %16 = vector.broadcast %cst_13 : f32 to vector<16x512xf32>
      %17 = arith.maximumf %15, %16 : vector<16x512xf32>
      %18 = arith.truncf %17 : vector<16x512xf32> to vector<16x512xbf16>
      %c0_14 = arith.constant 0 : index
      %c0_15 = arith.constant 0 : index
      %19 = vector.load %arg6[%c0_14, %c0_15] : memref<16x512xbf16, #tpu.memory_space<vmem>>, vector<16x512xbf16>
      tpu.vector_store %arg6[%c0_14, %c0_15], %18 {strides = array<i32>} : memref<16x512xbf16, #tpu.memory_space<vmem>>, vector<16x512xbf16>,
    } else {
    }
    return
  }
  func.func @transform_0(%arg0: i32, %arg1: i32, %arg2: i32) -> (i32, i32) {
    %c0_i32 = arith.constant 0 : i32
    return %arg0, %arg2 : i32, i32
  }
  func.func @transform_1(%arg0: i32, %arg1: i32, %arg2: i32) -> (i32, i32) {
    %c0_i32 = arith.constant 0 : i32
    return %arg2, %arg1 : i32, i32
  }
  func.func @transform_2(%arg0: i32, %arg1: i32, %arg2: i32) -> (i32, i32) {
    %c0_i32 = arith.constant 0 : i32
    %c0_i32_0 = arith.constant 0 : i32
    return %c0_i32, %arg1 : i32, i32
  }
  func.func @transform_3(%arg0: i32, %arg1: i32, %arg2: i32) -> (i32, i32) {
    %c0_i32 = arith.constant 0 : i32
    return %arg0, %arg1 : i32, i32
  }
}

module attributes {stable_mosaic.version = 11 : i64} {
  func.func @_mm_kernel(%arg0: i32, %arg1: i32, %arg2: i32, %arg3: memref<16x256xbf16, #tpu.memory_space<vmem>>, %arg4: memref<256x512xbf16, #tpu.memory_space<vmem>>, %arg5: memref<1x512xf32, #tpu.memory_space<vmem>>, %arg6: memref<16x512xbf16, #tpu.memory_space<vmem>>, %arg7: memref<16x512xf32, #tpu.memory_space<vmem>>) attributes {dimension_semantics = [#tpu.dimension_semantics<parallel>, #tpu.dimension_semantics<parallel>, #tpu.dimension_semantics<arbitrary>], iteration_bounds = array<i64: 1, 1, 1>, scalar_prefetch = 0 : i64, scratch_operands = 1 : i64, tpu.core_type = #tpu.core_type<tc>, window_params = [{transform_indices = @transform_0, window_bounds = array<i64: 16, 256>}, {transform_indices = @transform_1, window_bounds = array<i64: 256, 512>}, {transform_indices = @transform_2, window_bounds = array<i64: 1, 512>}, {transform_indices = @transform_3, window_bounds = array<i64: 16, 512>}]} {
    %c0_i32 = arith.constant 0 : i32
    %0 = arith.cmpi eq, %arg2, %c0_i32 : i32
    %1 = arith.extui %0 : i1 to i32
    %c0_i32_0 = arith.constant 0 : i32
    %2 = arith.cmpi ne, %1, %c0_i32_0 : i32
    scf.if %2 {
      %cst_10 = arith.constant 0.000000e+00 : f32
      %12 = vector.broadcast %cst_10 : f32 to vector<16x512xf32>
      %c0_11 = arith.constant 0 : index
      %c0_12 = arith.constant 0 : index
      %13 = vector.load %arg7[%c0_11, %c0_12] : memref<16x512xf32, #tpu.memory_space<vmem>>, vector<16x512xf32>
      tpu.vector_store %arg7[%c0_11, %c0_12], %12 {strides = array<i32>} : memref<16x512xf32, #tpu.memory_space<vmem>>, vector<16x512xf32>,
    } else {
    }
    %c0 = arith.constant 0 : index
    %c0_1 = arith.constant 0 : index
    %3 = vector.load %arg7[%c0, %c0_1] : memref<16x512xf32, #tpu.memory_space<vmem>>, vector<16x512xf32>
    %c0_2 = arith.constant 0 : index
    %c0_3 = arith.constant 0 : index
    %4 = vector.load %arg3[%c0_2, %c0_3] : memref<16x256xbf16, #tpu.memory_space<vmem>>, vector<16x256xbf16>
    %c0_4 = arith.constant 0 : index
    %c0_5 = arith.constant 0 : index
    %5 = vector.load %arg4[%c0_4, %c0_5] : memref<256x512xbf16, #tpu.memory_space<vmem>>, vector<256x512xbf16>
    %cst = arith.constant dense<0.000000e+00> : vector<16x512xf32>
    %6 = tpu.matmul %4, %5, %cst {dimension_numbers = #tpu.dot_dimension_numbers<[1], [0], [0], [1], [0, 0, 1, 1], [], []>} : vector<16x256xbf16>, vector<256x512xbf16>, vector<16x512xf32> -> vector<16x512xf32>
    %7 = arith.addf %3, %6 : vector<16x512xf32>
    %c0_6 = arith.constant 0 : index
    %c0_7 = arith.constant 0 : index
    %8 = vector.load %arg7[%c0_6, %c0_7] : memref<16x512xf32, #tpu.memory_space<vmem>>, vector<16x512xf32>
    tpu.vector_store %arg7[%c0_6, %c0_7], %7 {strides = array<i32>} : memref<16x512xf32, #tpu.memory_space<vmem>>, vector<16x512xf32>,
    %c0_i32_8 = arith.constant 0 : i32
    %9 = arith.cmpi eq, %arg2, %c0_i32_8 : i32
    %10 = arith.extui %9 : i1 to i32
    %c0_i32_9 = arith.constant 0 : i32
    %11 = arith.cmpi ne, %10, %c0_i32_9 : i32
    scf.if %11 {
      %c0_10 = arith.constant 0 : index
      %c0_11 = arith.constant 0 : index
      %12 = vector.load %arg7[%c0_10, %c0_11] : memref<16x512xf32, #tpu.memory_space<vmem>>, vector<16x512xf32>
      %c0_12 = arith.constant 0 : index
      %c0_13 = arith.constant 0 : index
      %13 = vector.load %arg5[%c0_12, %c0_13] : memref<1x512xf32, #tpu.memory_space<vmem>>, vector<1x512xf32>
      %14 = vector.broadcast %13 : vector<1x512xf32> to vector<16x512xf32>
      %15 = arith.addf %12, %14 : vector<16x512xf32>
      %16 = arith.truncf %15 : vector<16x512xf32> to vector<16x512xbf16>
      %c0_14 = arith.constant 0 : index
      %c0_15 = arith.constant 0 : index
      %17 = vector.load %arg6[%c0_14, %c0_15] : memref<16x512xbf16, #tpu.memory_space<vmem>>, vector<16x512xbf16>
      tpu.vector_store %arg6[%c0_14, %c0_15], %16 {strides = array<i32>} : memref<16x512xbf16, #tpu.memory_space<vmem>>, vector<16x512xbf16>,
    } else {
    }
    return
  }
  func.func @transform_0(%arg0: i32, %arg1: i32, %arg2: i32) -> (i32, i32) {
    %c0_i32 = arith.constant 0 : i32
    return %arg0, %arg2 : i32, i32
  }
  func.func @transform_1(%arg0: i32, %arg1: i32, %arg2: i32) -> (i32, i32) {
    %c0_i32 = arith.constant 0 : i32
    return %arg2, %arg1 : i32, i32
  }
  func.func @transform_2(%arg0: i32, %arg1: i32, %arg2: i32) -> (i32, i32) {
    %c0_i32 = arith.constant 0 : i32
    %c0_i32_0 = arith.constant 0 : i32
    return %c0_i32, %arg1 : i32, i32
  }
  func.func @transform_3(%arg0: i32, %arg1: i32, %arg2: i32) -> (i32, i32) {
    %c0_i32 = arith.constant 0 : i32
    return %arg0, %arg1 : i32, i32
  }
}

module attributes {stable_mosaic.version = 11 : i64} {
  func.func @_mm_res_kernel(%arg0: i32, %arg1: i32, %arg2: i32, %arg3: memref<16x512xbf16, #tpu.memory_space<vmem>>, %arg4: memref<512x512xbf16, #tpu.memory_space<vmem>>, %arg5: memref<1x512xf32, #tpu.memory_space<vmem>>, %arg6: memref<16x512xbf16, #tpu.memory_space<vmem>>, %arg7: memref<16x512xbf16, #tpu.memory_space<vmem>>, %arg8: memref<16x512xf32, #tpu.memory_space<vmem>>) attributes {dimension_semantics = [#tpu.dimension_semantics<parallel>, #tpu.dimension_semantics<parallel>, #tpu.dimension_semantics<arbitrary>], iteration_bounds = array<i64: 1, 1, 9>, scalar_prefetch = 0 : i64, scratch_operands = 1 : i64, tpu.core_type = #tpu.core_type<tc>, window_params = [{transform_indices = @transform_0, window_bounds = array<i64: 16, 512>}, {transform_indices = @transform_1, window_bounds = array<i64: 512, 512>}, {transform_indices = @transform_2, window_bounds = array<i64: 1, 512>}, {transform_indices = @transform_3, window_bounds = array<i64: 16, 512>}, {transform_indices = @transform_4, window_bounds = array<i64: 16, 512>}]} {
    %c0_i32 = arith.constant 0 : i32
    %0 = arith.cmpi eq, %arg2, %c0_i32 : i32
    %1 = arith.extui %0 : i1 to i32
    %c0_i32_0 = arith.constant 0 : i32
    %2 = arith.cmpi ne, %1, %c0_i32_0 : i32
    scf.if %2 {
      %cst_9 = arith.constant 0.000000e+00 : f32
      %12 = vector.broadcast %cst_9 : f32 to vector<16x512xf32>
      %c0_10 = arith.constant 0 : index
      %c0_11 = arith.constant 0 : index
      %13 = vector.load %arg8[%c0_10, %c0_11] : memref<16x512xf32, #tpu.memory_space<vmem>>, vector<16x512xf32>
      tpu.vector_store %arg8[%c0_10, %c0_11], %12 {strides = array<i32>} : memref<16x512xf32, #tpu.memory_space<vmem>>, vector<16x512xf32>,
    } else {
    }
    %c0 = arith.constant 0 : index
    %c0_1 = arith.constant 0 : index
    %3 = vector.load %arg8[%c0, %c0_1] : memref<16x512xf32, #tpu.memory_space<vmem>>, vector<16x512xf32>
    %c0_2 = arith.constant 0 : index
    %c0_3 = arith.constant 0 : index
    %4 = vector.load %arg3[%c0_2, %c0_3] : memref<16x512xbf16, #tpu.memory_space<vmem>>, vector<16x512xbf16>
    %c0_4 = arith.constant 0 : index
    %c0_5 = arith.constant 0 : index
    %5 = vector.load %arg4[%c0_4, %c0_5] : memref<512x512xbf16, #tpu.memory_space<vmem>>, vector<512x512xbf16>
    %cst = arith.constant dense<0.000000e+00> : vector<16x512xf32>
    %6 = tpu.matmul %4, %5, %cst {dimension_numbers = #tpu.dot_dimension_numbers<[1], [0], [0], [1], [0, 0, 1, 1], [], []>} : vector<16x512xbf16>, vector<512x512xbf16>, vector<16x512xf32> -> vector<16x512xf32>
    %7 = arith.addf %3, %6 : vector<16x512xf32>
    %c0_6 = arith.constant 0 : index
    %c0_7 = arith.constant 0 : index
    %8 = vector.load %arg8[%c0_6, %c0_7] : memref<16x512xf32, #tpu.memory_space<vmem>>, vector<16x512xf32>
    tpu.vector_store %arg8[%c0_6, %c0_7], %7 {strides = array<i32>} : memref<16x512xf32, #tpu.memory_space<vmem>>, vector<16x512xf32>,
    %c8_i32 = arith.constant 8 : i32
    %9 = arith.cmpi eq, %arg2, %c8_i32 : i32
    %10 = arith.extui %9 : i1 to i32
    %c0_i32_8 = arith.constant 0 : i32
    %11 = arith.cmpi ne, %10, %c0_i32_8 : i32
    scf.if %11 {
      %c0_9 = arith.constant 0 : index
      %c0_10 = arith.constant 0 : index
      %12 = vector.load %arg8[%c0_9, %c0_10] : memref<16x512xf32, #tpu.memory_space<vmem>>, vector<16x512xf32>
      %c0_11 = arith.constant 0 : index
      %c0_12 = arith.constant 0 : index
      %13 = vector.load %arg5[%c0_11, %c0_12] : memref<1x512xf32, #tpu.memory_space<vmem>>, vector<1x512xf32>
      %14 = vector.broadcast %13 : vector<1x512xf32> to vector<16x512xf32>
      %15 = arith.addf %12, %14 : vector<16x512xf32>
      %c0_13 = arith.constant 0 : index
      %c0_14 = arith.constant 0 : index
      %16 = vector.load %arg6[%c0_13, %c0_14] : memref<16x512xbf16, #tpu.memory_space<vmem>>, vector<16x512xbf16>
      %17 = arith.extf %16 : vector<16x512xbf16> to vector<16x512xf32>
      %18 = arith.addf %15, %17 : vector<16x512xf32>
      %cst_15 = arith.constant 0.000000e+00 : f32
      %19 = vector.broadcast %cst_15 : f32 to vector<16x512xf32>
      %20 = arith.maximumf %18, %19 : vector<16x512xf32>
      %21 = arith.truncf %20 : vector<16x512xf32> to vector<16x512xbf16>
      %c0_16 = arith.constant 0 : index
      %c0_17 = arith.constant 0 : index
      %22 = vector.load %arg7[%c0_16, %c0_17] : memref<16x512xbf16, #tpu.memory_space<vmem>>, vector<16x512xbf16>
      tpu.vector_store %arg7[%c0_16, %c0_17], %21 {strides = array<i32>} : memref<16x512xbf16, #tpu.memory_space<vmem>>, vector<16x512xbf16>,
    } else {
    }
    return
  }
  func.func @transform_0(%arg0: i32, %arg1: i32, %arg2: i32) -> (i32, i32) {
    %c0_i32 = arith.constant 0 : i32
    return %arg0, %arg2 : i32, i32
  }
  func.func @transform_1(%arg0: i32, %arg1: i32, %arg2: i32) -> (i32, i32) {
    %c0_i32 = arith.constant 0 : i32
    return %arg2, %arg1 : i32, i32
  }
  func.func @transform_2(%arg0: i32, %arg1: i32, %arg2: i32) -> (i32, i32) {
    %c0_i32 = arith.constant 0 : i32
    %c0_i32_0 = arith.constant 0 : i32
    return %c0_i32, %arg1 : i32, i32
  }
  func.func @transform_3(%arg0: i32, %arg1: i32, %arg2: i32) -> (i32, i32) {
    %c0_i32 = arith.constant 0 : i32
    return %arg0, %arg1 : i32, i32
  }
  func.func @transform_4(%arg0: i32, %arg1: i32, %arg2: i32) -> (i32, i32) {
    %c0_i32 = arith.constant 0 : i32
    return %arg0, %arg1 : i32, i32
  }
}

module attributes {stable_mosaic.version = 11 : i64} {
  func.func @_mm_kernel(%arg0: i32, %arg1: i32, %arg2: i32, %arg3: memref<16x512xbf16, #tpu.memory_space<vmem>>, %arg4: memref<512x512xbf16, #tpu.memory_space<vmem>>, %arg5: memref<1x512xf32, #tpu.memory_space<vmem>>, %arg6: memref<16x512xbf16, #tpu.memory_space<vmem>>, %arg7: memref<16x512xf32, #tpu.memory_space<vmem>>) attributes {dimension_semantics = [#tpu.dimension_semantics<parallel>, #tpu.dimension_semantics<parallel>, #tpu.dimension_semantics<arbitrary>], iteration_bounds = array<i64: 1, 1, 9>, scalar_prefetch = 0 : i64, scratch_operands = 1 : i64, tpu.core_type = #tpu.core_type<tc>, window_params = [{transform_indices = @transform_0, window_bounds = array<i64: 16, 512>}, {transform_indices = @transform_1, window_bounds = array<i64: 512, 512>}, {transform_indices = @transform_2, window_bounds = array<i64: 1, 512>}, {transform_indices = @transform_3, window_bounds = array<i64: 16, 512>}]} {
    %c0_i32 = arith.constant 0 : i32
    %0 = arith.cmpi eq, %arg2, %c0_i32 : i32
    %1 = arith.extui %0 : i1 to i32
    %c0_i32_0 = arith.constant 0 : i32
    %2 = arith.cmpi ne, %1, %c0_i32_0 : i32
    scf.if %2 {
      %cst_9 = arith.constant 0.000000e+00 : f32
      %12 = vector.broadcast %cst_9 : f32 to vector<16x512xf32>
      %c0_10 = arith.constant 0 : index
      %c0_11 = arith.constant 0 : index
      %13 = vector.load %arg7[%c0_10, %c0_11] : memref<16x512xf32, #tpu.memory_space<vmem>>, vector<16x512xf32>
      tpu.vector_store %arg7[%c0_10, %c0_11], %12 {strides = array<i32>} : memref<16x512xf32, #tpu.memory_space<vmem>>, vector<16x512xf32>,
    } else {
    }
    %c0 = arith.constant 0 : index
    %c0_1 = arith.constant 0 : index
    %3 = vector.load %arg7[%c0, %c0_1] : memref<16x512xf32, #tpu.memory_space<vmem>>, vector<16x512xf32>
    %c0_2 = arith.constant 0 : index
    %c0_3 = arith.constant 0 : index
    %4 = vector.load %arg3[%c0_2, %c0_3] : memref<16x512xbf16, #tpu.memory_space<vmem>>, vector<16x512xbf16>
    %c0_4 = arith.constant 0 : index
    %c0_5 = arith.constant 0 : index
    %5 = vector.load %arg4[%c0_4, %c0_5] : memref<512x512xbf16, #tpu.memory_space<vmem>>, vector<512x512xbf16>
    %cst = arith.constant dense<0.000000e+00> : vector<16x512xf32>
    %6 = tpu.matmul %4, %5, %cst {dimension_numbers = #tpu.dot_dimension_numbers<[1], [0], [0], [1], [0, 0, 1, 1], [], []>} : vector<16x512xbf16>, vector<512x512xbf16>, vector<16x512xf32> -> vector<16x512xf32>
    %7 = arith.addf %3, %6 : vector<16x512xf32>
    %c0_6 = arith.constant 0 : index
    %c0_7 = arith.constant 0 : index
    %8 = vector.load %arg7[%c0_6, %c0_7] : memref<16x512xf32, #tpu.memory_space<vmem>>, vector<16x512xf32>
    tpu.vector_store %arg7[%c0_6, %c0_7], %7 {strides = array<i32>} : memref<16x512xf32, #tpu.memory_space<vmem>>, vector<16x512xf32>,
    %c8_i32 = arith.constant 8 : i32
    %9 = arith.cmpi eq, %arg2, %c8_i32 : i32
    %10 = arith.extui %9 : i1 to i32
    %c0_i32_8 = arith.constant 0 : i32
    %11 = arith.cmpi ne, %10, %c0_i32_8 : i32
    scf.if %11 {
      %c0_9 = arith.constant 0 : index
      %c0_10 = arith.constant 0 : index
      %12 = vector.load %arg7[%c0_9, %c0_10] : memref<16x512xf32, #tpu.memory_space<vmem>>, vector<16x512xf32>
      %c0_11 = arith.constant 0 : index
      %c0_12 = arith.constant 0 : index
      %13 = vector.load %arg5[%c0_11, %c0_12] : memref<1x512xf32, #tpu.memory_space<vmem>>, vector<1x512xf32>
      %14 = vector.broadcast %13 : vector<1x512xf32> to vector<16x512xf32>
      %15 = arith.addf %12, %14 : vector<16x512xf32>
      %cst_13 = arith.constant 0.000000e+00 : f32
      %16 = vector.broadcast %cst_13 : f32 to vector<16x512xf32>
      %17 = arith.maximumf %15, %16 : vector<16x512xf32>
      %18 = arith.truncf %17 : vector<16x512xf32> to vector<16x512xbf16>
      %c0_14 = arith.constant 0 : index
      %c0_15 = arith.constant 0 : index
      %19 = vector.load %arg6[%c0_14, %c0_15] : memref<16x512xbf16, #tpu.memory_space<vmem>>, vector<16x512xbf16>
      tpu.vector_store %arg6[%c0_14, %c0_15], %18 {strides = array<i32>} : memref<16x512xbf16, #tpu.memory_space<vmem>>, vector<16x512xbf16>,
    } else {
    }
    return
  }
  func.func @transform_0(%arg0: i32, %arg1: i32, %arg2: i32) -> (i32, i32) {
    %c0_i32 = arith.constant 0 : i32
    return %arg0, %arg2 : i32, i32
  }
  func.func @transform_1(%arg0: i32, %arg1: i32, %arg2: i32) -> (i32, i32) {
    %c0_i32 = arith.constant 0 : i32
    return %arg2, %arg1 : i32, i32
  }
  func.func @transform_2(%arg0: i32, %arg1: i32, %arg2: i32) -> (i32, i32) {
    %c0_i32 = arith.constant 0 : i32
    %c0_i32_0 = arith.constant 0 : i32
    return %c0_i32, %arg1 : i32, i32
  }
  func.func @transform_3(%arg0: i32, %arg1: i32, %arg2: i32) -> (i32, i32) {
    %c0_i32 = arith.constant 0 : i32
    return %arg0, %arg1 : i32, i32
  }
}

module attributes {stable_mosaic.version = 11 : i64} {
  func.func @_head_kernel(%arg0: memref<4x1x512xbf16, #tpu.memory_space<vmem>>, %arg1: memref<512x256xf32, #tpu.memory_space<vmem>>, %arg2: memref<1x256xf32, #tpu.memory_space<vmem>>, %arg3: memref<256x128xf32, #tpu.memory_space<vmem>>, %arg4: memref<1x128xf32, #tpu.memory_space<vmem>>, %arg5: memref<1x128xf32, #tpu.memory_space<vmem>>) attributes {dimension_semantics = [], scalar_prefetch = 0 : i64, scratch_operands = 0 : i64, tpu.core_type = #tpu.core_type<tc>} {
    %c0 = arith.constant 0 : index
    %c0_0 = arith.constant 0 : index
    %c0_1 = arith.constant 0 : index
    %0 = vector.load %arg0[%c0, %c0_0, %c0_1] : memref<4x1x512xbf16, #tpu.memory_space<vmem>>, vector<4x1x512xbf16>
    %1 = arith.extf %0 : vector<4x1x512xbf16> to vector<4x1x512xf32>
    %cst = arith.constant dense<0.000000e+00> : vector<4x512xf32>
    %2 = vector.multi_reduction <add>, %1, %cst [1] : vector<4x1x512xf32> to vector<4x512xf32>
    %cst_2 = arith.constant 1.000000e+00 : f32
    %3 = vector.broadcast %cst_2 : f32 to vector<4x512xf32>
    %4 = arith.divf %2, %3 : vector<4x512xf32>
    %c0_3 = arith.constant 0 : index
    %c0_4 = arith.constant 0 : index
    %5 = vector.load %arg1[%c0_3, %c0_4] : memref<512x256xf32, #tpu.memory_space<vmem>>, vector<512x256xf32>
    %cst_5 = arith.constant dense<0.000000e+00> : vector<4x256xf32>
    %6 = tpu.matmul %4, %5, %cst_5 {dimension_numbers = #tpu.dot_dimension_numbers<[1], [0], [0], [1], [0, 0, 1, 1], [], []>} : vector<4x512xf32>, vector<512x256xf32>, vector<4x256xf32> -> vector<4x256xf32>
    %c0_6 = arith.constant 0 : index
    %c0_7 = arith.constant 0 : index
    %7 = vector.load %arg2[%c0_6, %c0_7] : memref<1x256xf32, #tpu.memory_space<vmem>>, vector<1x256xf32>
    %8 = vector.broadcast %7 : vector<1x256xf32> to vector<4x256xf32>
    %9 = arith.addf %6, %8 : vector<4x256xf32>
    %cst_8 = arith.constant 0.000000e+00 : f32
    %10 = vector.broadcast %cst_8 : f32 to vector<4x256xf32>
    %11 = arith.maximumf %9, %10 : vector<4x256xf32>
    %c0_9 = arith.constant 0 : index
    %c0_10 = arith.constant 0 : index
    %12 = vector.load %arg3[%c0_9, %c0_10] : memref<256x128xf32, #tpu.memory_space<vmem>>, vector<256x128xf32>
    %cst_11 = arith.constant dense<0.000000e+00> : vector<4x128xf32>
    %13 = tpu.matmul %11, %12, %cst_11 {dimension_numbers = #tpu.dot_dimension_numbers<[1], [0], [0], [1], [0, 0, 1, 1], [], []>} : vector<4x256xf32>, vector<256x128xf32>, vector<4x128xf32> -> vector<4x128xf32>
    %c0_12 = arith.constant 0 : index
    %c0_13 = arith.constant 0 : index
    %14 = vector.load %arg4[%c0_12, %c0_13] : memref<1x128xf32, #tpu.memory_space<vmem>>, vector<1x128xf32>
    %15 = vector.broadcast %14 : vector<1x128xf32> to vector<4x128xf32>
    %16 = arith.addf %13, %15 : vector<4x128xf32>
    %cst_14 = arith.constant 0.000000e+00 : f32
    %17 = vector.broadcast %cst_14 : f32 to vector<4x128xf32>
    %18 = arith.maximumf %16, %17 : vector<4x128xf32>
    %cst_15 = arith.constant dense<0.000000e+00> : vector<128xf32>
    %19 = vector.multi_reduction <add>, %18, %cst_15 [0] : vector<4x128xf32> to vector<128xf32>
    %20 = vector.shape_cast %19 : vector<128xf32> to vector<1x128xf32>
    %cst_16 = arith.constant 4.000000e+00 : f32
    %21 = vector.broadcast %cst_16 : f32 to vector<1x128xf32>
    %22 = arith.divf %20, %21 : vector<1x128xf32>
    %c0_17 = arith.constant 0 : index
    %c0_18 = arith.constant 0 : index
    %23 = vector.load %arg5[%c0_17, %c0_18] : memref<1x128xf32, #tpu.memory_space<vmem>>, vector<1x128xf32>
    tpu.vector_store %arg5[%c0_17, %c0_18], %22 {strides = array<i32>} : memref<1x128xf32, #tpu.memory_space<vmem>>, vector<1x128xf32>,
    return
  }
}

</mosaic_0001>

<bundles_post_ra>
// kernel: modified_res18_forward.21
= control target key start
LH: loop header
LB: loop body
LE: loop exit
PB: predicated region body
PF: predicated region fallthrough
CT: control target
= control target key end

     0   :  { %s1744_s12 = smov 0   ;;  %s1746_s13 = smov 0   ;;  %s1918_s0 = inlined_call_operand.vmem [shape: bf16[1024,256], index: 0, kind: input, shape index: {}]   ;;  %s1919_s1 = inlined_call_operand.vmem [shape: bf16[256,128], index: 1, kind: input, shape index: {}]   ;;  %s1920_s2 = inlined_call_operand.vmem [shape: f32[1,128], index: 2, kind: input, shape index: {}]   ;;  %s1921_s3 = inlined_call_operand.vmem [shape: bf16[1024,128], index: 3, kind: output, shape index: {}]  }
   0x1   :  { %s1748_s14 = smov 0  }
   0x2 LB: > { %s32_s15 = sadd.s32 1, %s1718_s13  ;;  %p1267_p0 = scmp.ge.s32.totalorder %s1722_s14, 1  ;;  %s1722_s14 = sphi %s1748_s14, %s13_s14   ;;  %s1718_s13 = sphi %s1746_s13, %s1923_s13   ;;  %s1714_s12 = sphi %s1744_s12, %s1922_s12  }
   0x3   : > { %p34_p1 = scmp.ge.s32.totalorder %s32_s15, 4  ;;  %p191_p2 = scmp.lt.s32.totalorder %s1722_s14, 5 }
   0x5   : > { %s1925_s15 = smov (%p34_p1, %s32_s15), 0  ;;  %p192_p3 = pnand %p1267_p0, %p191_p2 }
   0x6   : > { %v1636_v0 = vld [vmem:[%s1919_s1 + $0x40] sm:$0xff] (!%p192_p3)   ;;  %s1268_s18 = sshll.u32 (!%p192_p3), %s1714_s12, 5  ;;  %v1638_v2 = vld [vmem:[%s1919_s1 + $0x48] sm:$0xff] (!%p192_p3)   ;;  %v1640_v4 = vld [vmem:[%s1919_s1 + $0x50] sm:$0xff] (!%p192_p3)  }
   0x7   : > { %195 = sbr.rel (%p192_p3) target bundleno = 320 (0x140), region = 32  ;;  %v1637_v1 = vld [vmem:[%s1919_s1] sm:$0xff] (!%p192_p3)   ;;  %1484 = vmatprep.subr.bf16.mxu0 (!%p192_p3), %v1636_v0  ;;  %1596 = vmatprep.subr.bf16.mxu1 (!%p192_p3), %v1636_v0  ;;  %v1639_v3 = vld [vmem:[%s1919_s1 + $0x8] sm:$0xff] (!%p192_p3)   ;;  %p236_p4 = scmp.lt.s32.totalorder (!%p192_p3), %s1268_s18, 127  ;;  %v1641_v5 = vld [vmem:[%s1919_s1 + $0x10] sm:$0xff] (!%p192_p3)  }
   0x8   : > { %1485 = vmatpush3.bf16.msra.mxu0 (!%p192_p3), %v1637_v1  ;;  %1604 = vmatpush3.bf16.msra.mxu1 (!%p192_p3), %v1637_v1  ;;  %v1642_v6 = vld [vmem:[%s1919_s1 + $0x58] sm:$0xff] (!%p192_p3)   ;;  %v1644_v8 = vld [vmem:[%s1919_s1 + $0x60] sm:$0xff] (!%p192_p3)   ;;  %v1646_v10 = vld [vmem:[%s1919_s1 + $0x68] sm:$0xff] (!%p192_p3)  }
   0x9   : > { %1486 = vmatprep.subr.bf16.mxu0 (!%p192_p3), %v1638_v2  ;;  %1597 = vmatprep.subr.bf16.mxu1 (!%p192_p3), %v1638_v2  ;;  %v1643_v7 = vld [vmem:[%s1919_s1 + $0x18] sm:$0xff] (!%p192_p3)   ;;  %v1645_v9 = vld [vmem:[%s1919_s1 + $0x20] sm:$0xff] (!%p192_p3)   ;;  %v1647_v13 = vld [vmem:[%s1919_s1 + $0x28] sm:$0xff] (!%p192_p3)  }
   0xa   : > { %v1648_v14 = vld [vmem:[%s1919_s1 + $0x70] sm:$0xff] (!%p192_p3)   ;;  %v1650_v16 = vld [vmem:[%s1919_s1 + $0x78] sm:$0xff] (!%p192_p3)   ;;  %v1853_v51 = vld [vmem:[%s1920_s2] ss:$0 sm:$0xff] (!%p192_p3) }
   0xb   : > { %v1649_v15 = vld [vmem:[%s1919_s1 + $0x30] sm:$0xff] (!%p192_p3)   ;;  %v1651_v17 = vld [vmem:[%s1919_s1 + $0x38] sm:$0xff] (!%p192_p3)  }
   0xc   : > { %1487 = vmatpush3.bf16.msra.mxu0 (!%p192_p3), %v1639_v3  ;;  %1605 = vmatpush3.bf16.msra.mxu1 (!%p192_p3), %v1639_v3 }
   0xd   : > { %1488 = vmatprep.subr.bf16.mxu0 (!%p192_p3), %v1640_v4  ;;  %1598 = vmatprep.subr.bf16.mxu1 (!%p192_p3), %v1640_v4 }
   0xe   : > { %s1927_s18 = smov (!%p236_p4, %s1268_s18), 127 }
   0xf   : > { %s1356_s6 = sshll.u32 %s1927_s18, 3  ;;  %s1272_s5 = sshll.u32 %s1927_s18, 2 }
  0x10   : > { %1489 = vmatpush3.bf16.msra.mxu0 %v1641_v5  ;;  %1606 = vmatpush3.bf16.msra.mxu1 %v1641_v5  ;;  %s1795_s11 = scalar_lea.vmem %s1918_s0, %s1356_s6  ;;  %s1863_s8 = scalar_lea.vmem %s1921_s3, %s1272_s5 }
  0x11   : > { %1490 = vmatprep.subr.bf16.mxu0 %v1642_v6  ;;  %1599 = vmatprep.subr.bf16.mxu1 %v1642_v6  ;;  %v1654_v11 = vld [vmem:[%s1795_s11 + $0x4] ss:$8 sps:$4 sm:$0xff]   ;;  %v1652_v18 = vld [vmem:[%s1795_s11] ss:$8 sps:$4 sm:$0xff]   ;;  %v1658_v20 = vld [vmem:[%s1795_s11 + $0x14] ss:$8 sps:$4 sm:$0xff]  }
  0x12   : > { %v1657_v12 = vld [vmem:[%s1795_s11 + $0x84] ss:$8 sps:$4 sm:$0xff]   ;;  %688 = vmatprep.mubr.bf16.mxu0 %v1654_v11  ;;  %v1655_v19 = vld [vmem:[%s1795_s11 + $0x80] ss:$8 sps:$4 sm:$0xff]   ;;  %v1660_v21 = vld [vmem:[%s1795_s11 + $0x94] ss:$8 sps:$4 sm:$0xff]  }
  0x13   : > { %752 = vmatprep.mubr.bf16.mxu1 %v1657_v12  ;;  %v1662_v22 = vld [vmem:[%s1795_s11 + $0x10] ss:$8 sps:$4 sm:$0xff]   ;;  %v1664_v24 = vld [vmem:[%s1795_s11 + $0x24] ss:$8 sps:$4 sm:$0xff]   ;;  %v1668_v26 = vld [vmem:[%s1795_s11 + $0x20] ss:$8 sps:$4 sm:$0xff]  }
  0x14   : > { %1491 = vmatpush3.bf16.msra.mxu0 %v1643_v7  ;;  %1607 = vmatpush3.bf16.msra.mxu1 %v1643_v7  ;;  %v1663_v23 = vld [vmem:[%s1795_s11 + $0x90] ss:$8 sps:$4 sm:$0xff]   ;;  %v1666_v25 = vld [vmem:[%s1795_s11 + $0xa4] ss:$8 sps:$4 sm:$0xff]   ;;  %v1669_v27 = vld [vmem:[%s1795_s11 + $0xa0] ss:$8 sps:$4 sm:$0xff]  }
  0x15   : > { %1492 = vmatprep.subr.bf16.mxu0 %v1644_v8  ;;  %1600 = vmatprep.subr.bf16.mxu1 %v1644_v8  ;;  %v1670_v28 = vld [vmem:[%s1795_s11 + $0x34] ss:$8 sps:$4 sm:$0xff]   ;;  %v1674_v30 = vld [vmem:[%s1795_s11 + $0x30] ss:$8 sps:$4 sm:$0xff]   ;;  %v1676_v32 = vld [vmem:[%s1795_s11 + $0x44] ss:$8 sps:$4 sm:$0xff]  }
  0x16   : > { %v1672_v29 = vld [vmem:[%s1795_s11 + $0xb4] ss:$8 sps:$4 sm:$0xff]   ;;  %v1675_v31 = vld [vmem:[%s1795_s11 + $0xb0] ss:$8 sps:$4 sm:$0xff]   ;;  %v1678_v33 = vld [vmem:[%s1795_s11 + $0xc4] ss:$8 sps:$4 sm:$0xff]  }
  0x17   : > { %v1680_v34 = vld [vmem:[%s1795_s11 + $0x40] ss:$8 sps:$4 sm:$0xff]   ;;  %v1682_v36 = vld [vmem:[%s1795_s11 + $0x54] ss:$8 sps:$4 sm:$0xff]   ;;  %v1686_v38 = vld [vmem:[%s1795_s11 + $0x50] ss:$8 sps:$4 sm:$0xff]  }
  0x18   : > { %1493 = vmatpush3.bf16.msra.mxu0 %v1645_v9  ;;  %1608 = vmatpush3.bf16.msra.mxu1 %v1645_v9  ;;  %v1681_v35 = vld [vmem:[%s1795_s11 + $0xc0] ss:$8 sps:$4 sm:$0xff]   ;;  %v1684_v37 = vld [vmem:[%s1795_s11 + $0xd4] ss:$8 sps:$4 sm:$0xff]   ;;  %v1687_v39 = vld [vmem:[%s1795_s11 + $0xd0] ss:$8 sps:$4 sm:$0xff]  }
  0x19   : > { %1494 = vmatprep.subr.bf16.mxu0 %v1646_v10  ;;  %1601 = vmatprep.subr.bf16.mxu1 %v1646_v10  ;;  %v1688_v40 = vld [vmem:[%s1795_s11 + $0x64] ss:$8 sps:$4 sm:$0xff]   ;;  %v1692_v42 = vld [vmem:[%s1795_s11 + $0x60] ss:$8 sps:$4 sm:$0xff]   ;;  %v1694_v44 = vld [vmem:[%s1795_s11 + $0x74] ss:$8 sps:$4 sm:$0xff]  }
  0x1a   : > { %v1690_v41 = vld [vmem:[%s1795_s11 + $0xe4] ss:$8 sps:$4 sm:$0xff]   ;;  %v1693_v43 = vld [vmem:[%s1795_s11 + $0xe0] ss:$8 sps:$4 sm:$0xff]   ;;  %v1696_v45 = vld [vmem:[%s1795_s11 + $0xf4] ss:$8 sps:$4 sm:$0xff]  }
  0x1b   : > { %v1698_v46 = vld [vmem:[%s1795_s11 + $0x70] ss:$8 sps:$4 sm:$0xff]  }
  0x1c   : > { %1495 = vmatpush3.bf16.msra.mxu0 %v1647_v13  ;;  %1609 = vmatpush3.bf16.msra.mxu1 %v1647_v13  ;;  %v1699_v47 = vld [vmem:[%s1795_s11 + $0xf0] ss:$8 sps:$4 sm:$0xff]  }
  0x1d   : > { %1496 = vmatprep.subr.bf16.mxu0 %v1648_v14  ;;  %1602 = vmatprep.subr.bf16.mxu1 %v1648_v14 }
  0x20   : > { %1497 = vmatpush3.bf16.msra.mxu0 %v1649_v15  ;;  %1610 = vmatpush3.bf16.msra.mxu1 %v1649_v15 }
  0x21   : > { %1498 = vmatprep.subr.bf16.mxu0 %v1650_v16  ;;  %1603 = vmatprep.subr.bf16.mxu1 %v1650_v16 }
  0x24   : > { %1499 = vmatpush3.bf16.msra.mxu0 %v1651_v17  ;;  %1611 = vmatpush3.bf16.msra.mxu1 %v1651_v17 }
  0x27   : > { %689 = vmatmul.mubr.bf16.vlgmr.msra.gmra.mrb[0].mxu0 %v1652_v18  ;;  %753 = vmatmul.mubr.bf16.vlgmr.msra.gmra.mrb[0].mxu1 %v1655_v19 }
  0x28   : > { %696 = vmatprep.mubr.bf16.mxu0 %v1658_v20  ;;  %760 = vmatprep.mubr.bf16.mxu1 %v1660_v21 }
  0x2f   : > { %697 = vmatmul.mubr.bf16.gmra.mrb[4].mxu0 %v1662_v22  ;;  %761 = vmatmul.mubr.bf16.gmra.mrb[4].mxu1 %v1663_v23 }
  0x30   : > { %704 = vmatprep.mubr.bf16.mxu0 %v1664_v24  ;;  %768 = vmatprep.mubr.bf16.mxu1 %v1666_v25 }
  0x37   : > { %705 = vmatmul.mubr.bf16.gmra.mrb[8].mxu0 %v1668_v26  ;;  %769 = vmatmul.mubr.bf16.gmra.mrb[8].mxu1 %v1669_v27 }
  0x38   : > { %712 = vmatprep.mubr.bf16.mxu0 %v1670_v28  ;;  %776 = vmatprep.mubr.bf16.mxu1 %v1672_v29 }
  0x3f   : > { %713 = vmatmul.mubr.bf16.gmra.mrb[12].mxu0 %v1674_v30  ;;  %777 = vmatmul.mubr.bf16.gmra.mrb[12].mxu1 %v1675_v31 }
  0x40   : > { %720 = vmatprep.mubr.bf16.mxu0 %v1676_v32  ;;  %784 = vmatprep.mubr.bf16.mxu1 %v1678_v33 }
  0x47   : > { %721 = vmatmul.mubr.bf16.gmra.mrb[16].mxu0 %v1680_v34  ;;  %785 = vmatmul.mubr.bf16.gmra.mrb[16].mxu1 %v1681_v35 }
  0x48   : > { %728 = vmatprep.mubr.bf16.mxu0 %v1682_v36  ;;  %792 = vmatprep.mubr.bf16.mxu1 %v1684_v37 }
  0x4f   : > { %729 = vmatmul.mubr.bf16.gmra.mrb[20].mxu0 %v1686_v38  ;;  %793 = vmatmul.mubr.bf16.gmra.mrb[20].mxu1 %v1687_v39 }
  0x50   : > { %736 = vmatprep.mubr.bf16.mxu0 %v1688_v40  ;;  %800 = vmatprep.mubr.bf16.mxu1 %v1690_v41 }
  0x57   : > { %737 = vmatmul.mubr.bf16.gmra.mrb[24].mxu0 %v1692_v42  ;;  %801 = vmatmul.mubr.bf16.gmra.mrb[24].mxu1 %v1693_v43 }
  0x58   : > { %744 = vmatprep.mubr.bf16.mxu0 %v1694_v44  ;;  %808 = vmatprep.mubr.bf16.mxu1 %v1696_v45 }
  0x5f   : > { %745 = vmatmul.mubr.bf16.gmra.mrb[28].mxu0 %v1698_v46  ;;  %809 = vmatmul.mubr.bf16.gmra.mrb[28].mxu1 %v1699_v47 }
  0xfa   : > { %v1500_v48 = vpop.f32.mrb[0].mxu0  ;;  %v1548_v49 = vpop.f32.mrb[0].mxu1 }
  0xfb   : > { %v1501_v50 = vpop.f32.mrb[1].mxu0  ;;  %v1549_v52 = vpop.f32.mrb[1].mxu1 }
  0xfc   : > { %v1502_v53 = vadd.f32 %v1501_v50, %v1500_v48  ;;  %v1550_v54 = vadd.f32 %v1549_v52, %v1548_v49  ;;  %v1503_v55 = vpop.f32.mrb[2].mxu0  ;;  %v1551_v56 = vpop.f32.mrb[2].mxu1 }
  0xfd   : > { %v1504_v57 = vpop.f32.mrb[3].mxu0  ;;  %v1552_v58 = vpop.f32.mrb[3].mxu1 }
  0xfe   : > { %v923_v59 = vadd.f32 %v1502_v53, %v1853_v51  ;;  %v939_v60 = vadd.f32 %v1550_v54, %v1853_v51  ;;  %v1505_v61 = vadd.f32 %v1504_v57, %v1503_v55  ;;  %v1553_v62 = vadd.f32 %v1552_v58, %v1551_v56 }
 0x100   : > { %v924_v63 = vadd.f32 %v1505_v61, %v1853_v51  ;;  %v940_v0 = vadd.f32 %v1553_v62, %v1853_v51  ;;  %v955_v1 = vmax.f32 %v923_v59, 0.0  ;;  %v971_v2 = vmax.f32 %v939_v60, 0.0 }
 0x102   : > { %v956_v3 = vmax.f32 %v924_v63, 0.0  ;;  %v972_v4 = vmax.f32 %v940_v0, 0.0  ;;  %v1506_v5 = vpop.f32.mrb[4].mxu0  ;;  %v1554_v6 = vpop.f32.mrb[4].mxu1 }
 0x103   : > { %v1507_v7 = vpop.f32.mrb[5].mxu0  ;;  %v1555_v8 = vpop.f32.mrb[5].mxu1 }
 0x104   : > { %v1392_v9 = vpack.c.bf16 %v956_v3, %v955_v1  ;;  %v1432_v10 = vpack.c.bf16 %v972_v4, %v971_v2  ;;  %v1508_v11 = vadd.f32 %v1507_v7, %v1506_v5  ;;  %v1556_v12 = vadd.f32 %v1555_v8, %v1554_v6  ;;  %v1509_v13 = vpop.f32.mrb[6].mxu0  ;;  %v1557_v14 = vpop.f32.mrb[6].mxu1 }
 0x105   : > { %v1510_v15 = vpop.f32.mrb[7].mxu0  ;;  %v1558_v16 = vpop.f32.mrb[7].mxu1 }
 0x106   : > { %1393 = vst [vmem:[%s1863_s8] sm:$0xff] %v1392_v9   ;;  %1476 = vst [vmem:[%s1863_s8 + $0x40] sm:$0xff] %v1432_v10   ;;  %v925_v17 = vadd.f32 %v1508_v11, %v1853_v51  ;;  %v941_v18 = vadd.f32 %v1556_v12, %v1853_v51  ;;  %v1511_v19 = vadd.f32 %v1510_v15, %v1509_v13 }
 0x107   : > { %v1559_v20 = vadd.f32 %v1558_v16, %v1557_v14 }
 0x108   : > { %v926_v21 = vadd.f32 %v1511_v19, %v1853_v51  ;;  %v957_v23 = vmax.f32 %v925_v17, 0.0  ;;  %v973_v24 = vmax.f32 %v941_v18, 0.0 }
 0x109   : > { %v942_v22 = vadd.f32 %v1559_v20, %v1853_v51 }
 0x10a   : > { %v958_v25 = vmax.f32 %v926_v21, 0.0  ;;  %v1512_v27 = vpop.f32.mrb[8].mxu0  ;;  %v1560_v28 = vpop.f32.mrb[8].mxu1 }
 0x10b   : > { %v974_v26 = vmax.f32 %v942_v22, 0.0  ;;  %v1513_v29 = vpop.f32.mrb[9].mxu0  ;;  %v1561_v30 = vpop.f32.mrb[9].mxu1 }
 0x10c   : > { %v1397_v31 = vpack.c.bf16 %v958_v25, %v957_v23  ;;  %v1514_v33 = vadd.f32 %v1513_v29, %v1512_v27  ;;  %v1562_v34 = vadd.f32 %v1561_v30, %v1560_v28  ;;  %v1515_v35 = vpop.f32.mrb[10].mxu0  ;;  %v1563_v36 = vpop.f32.mrb[10].mxu1 }
 0x10d   : > { %v1437_v32 = vpack.c.bf16 %v974_v26, %v973_v24  ;;  %v1516_v37 = vpop.f32.mrb[11].mxu0  ;;  %v1564_v38 = vpop.f32.mrb[11].mxu1 }
 0x10e   : > { %1469 = vst [vmem:[%s1863_s8 + $0x8] sm:$0xff] %v1397_v31   ;;  %v927_v39 = vadd.f32 %v1514_v33, %v1853_v51  ;;  %v943_v40 = vadd.f32 %v1562_v34, %v1853_v51  ;;  %v1517_v41 = vadd.f32 %v1516_v37, %v1515_v35  ;;  %v1565_v42 = vadd.f32 %v1564_v38, %v1563_v36 }
 0x10f   : > { %1477 = vst [vmem:[%s1863_s8 + $0x48] sm:$0xff] %v1437_v32  }
 0x110   : > { %v928_v43 = vadd.f32 %v1517_v41, %v1853_v51  ;;  %v944_v44 = vadd.f32 %v1565_v42, %v1853_v51  ;;  %v959_v45 = vmax.f32 %v927_v39, 0.0  ;;  %v975_v46 = vmax.f32 %v943_v40, 0.0 }
 0x112   : > { %v960_v47 = vmax.f32 %v928_v43, 0.0  ;;  %v976_v48 = vmax.f32 %v944_v44, 0.0  ;;  %v1518_v49 = vpop.f32.mrb[12].mxu0  ;;  %v1566_v50 = vpop.f32.mrb[12].mxu1 }
 0x113   : > { %v1519_v52 = vpop.f32.mrb[13].mxu0  ;;  %v1567_v53 = vpop.f32.mrb[13].mxu1 }
 0x114   : > { %v1402_v54 = vpack.c.bf16 %v960_v47, %v959_v45  ;;  %v1442_v55 = vpack.c.bf16 %v976_v48, %v975_v46  ;;  %v1520_v56 = vadd.f32 %v1519_v52, %v1518_v49  ;;  %v1568_v57 = vadd.f32 %v1567_v53, %v1566_v50  ;;  %v1521_v58 = vpop.f32.mrb[14].mxu0  ;;  %v1569_v59 = vpop.f32.mrb[14].mxu1 }
 0x115   : > { %v1522_v60 = vpop.f32.mrb[15].mxu0  ;;  %v1570_v61 = vpop.f32.mrb[15].mxu1 }
 0x116   : > { %1470 = vst [vmem:[%s1863_s8 + $0x10] sm:$0xff] %v1402_v54   ;;  %1478 = vst [vmem:[%s1863_s8 + $0x50] sm:$0xff] %v1442_v55   ;;  %v929_v62 = vadd.f32 %v1520_v56, %v1853_v51  ;;  %v945_v63 = vadd.f32 %v1568_v57, %v1853_v51  ;;  %v1523_v0 = vadd.f32 %v1522_v60, %v1521_v58 }
 0x117   : > { %v1571_v1 = vadd.f32 %v1570_v61, %v1569_v59 }
 0x118   : > { %v930_v2 = vadd.f32 %v1523_v0, %v1853_v51  ;;  %v961_v4 = vmax.f32 %v929_v62, 0.0  ;;  %v977_v5 = vmax.f32 %v945_v63, 0.0 }
 0x119   : > { %v946_v3 = vadd.f32 %v1571_v1, %v1853_v51 }
 0x11a   : > { %v962_v6 = vmax.f32 %v930_v2, 0.0  ;;  %v1524_v8 = vpop.f32.mrb[16].mxu0  ;;  %v1572_v9 = vpop.f32.mrb[16].mxu1 }
 0x11b   : > { %v978_v7 = vmax.f32 %v946_v3, 0.0  ;;  %v1525_v10 = vpop.f32.mrb[17].mxu0  ;;  %v1573_v11 = vpop.f32.mrb[17].mxu1 }
 0x11c   : > { %v1407_v12 = vpack.c.bf16 %v962_v6, %v961_v4  ;;  %v1526_v14 = vadd.f32 %v1525_v10, %v1524_v8  ;;  %v1574_v15 = vadd.f32 %v1573_v11, %v1572_v9  ;;  %v1527_v16 = vpop.f32.mrb[18].mxu0  ;;  %v1575_v17 = vpop.f32.mrb[18].mxu1 }
 0x11d   : > { %v1447_v13 = vpack.c.bf16 %v978_v7, %v977_v5  ;;  %v1528_v18 = vpop.f32.mrb[19].mxu0  ;;  %v1576_v19 = vpop.f32.mrb[19].mxu1 }
 0x11e   : > { %1471 = vst [vmem:[%s1863_s8 + $0x18] sm:$0xff] %v1407_v12   ;;  %v931_v20 = vadd.f32 %v1526_v14, %v1853_v51  ;;  %v947_v21 = vadd.f32 %v1574_v15, %v1853_v51  ;;  %v1529_v22 = vadd.f32 %v1528_v18, %v1527_v16  ;;  %v1577_v23 = vadd.f32 %v1576_v19, %v1575_v17 }
 0x11f   : > { %1479 = vst [vmem:[%s1863_s8 + $0x58] sm:$0xff] %v1447_v13  }
 0x120   : > { %v932_v24 = vadd.f32 %v1529_v22, %v1853_v51  ;;  %v948_v25 = vadd.f32 %v1577_v23, %v1853_v51  ;;  %v963_v26 = vmax.f32 %v931_v20, 0.0  ;;  %v979_v27 = vmax.f32 %v947_v21, 0.0 }
 0x122   : > { %v964_v28 = vmax.f32 %v932_v24, 0.0  ;;  %v980_v29 = vmax.f32 %v948_v25, 0.0  ;;  %v1530_v30 = vpop.f32.mrb[20].mxu0  ;;  %v1578_v31 = vpop.f32.mrb[20].mxu1 }
 0x123   : > { %v1531_v32 = vpop.f32.mrb[21].mxu0  ;;  %v1579_v33 = vpop.f32.mrb[21].mxu1 }
 0x124   : > { %v1412_v34 = vpack.c.bf16 %v964_v28, %v963_v26  ;;  %v1452_v35 = vpack.c.bf16 %v980_v29, %v979_v27  ;;  %v1532_v36 = vadd.f32 %v1531_v32, %v1530_v30  ;;  %v1580_v37 = vadd.f32 %v1579_v33, %v1578_v31  ;;  %v1533_v38 = vpop.f32.mrb[22].mxu0  ;;  %v1581_v39 = vpop.f32.mrb[22].mxu1 }
 0x125   : > { %v1534_v40 = vpop.f32.mrb[23].mxu0  ;;  %v1582_v41 = vpop.f32.mrb[23].mxu1 }
 0x126   : > { %1472 = vst [vmem:[%s1863_s8 + $0x20] sm:$0xff] %v1412_v34   ;;  %1480 = vst [vmem:[%s1863_s8 + $0x60] sm:$0xff] %v1452_v35   ;;  %v933_v42 = vadd.f32 %v1532_v36, %v1853_v51  ;;  %v949_v43 = vadd.f32 %v1580_v37, %v1853_v51  ;;  %v1535_v44 = vadd.f32 %v1534_v40, %v1533_v38 }
 0x127   : > { %v1583_v45 = vadd.f32 %v1582_v41, %v1581_v39 }
 0x128   : > { %v934_v46 = vadd.f32 %v1535_v44, %v1853_v51  ;;  %v965_v48 = vmax.f32 %v933_v42, 0.0  ;;  %v981_v49 = vmax.f32 %v949_v43, 0.0 }
 0x129   : > { %v950_v47 = vadd.f32 %v1583_v45, %v1853_v51 }
 0x12a   : > { %v966_v50 = vmax.f32 %v934_v46, 0.0  ;;  %v1536_v53 = vpop.f32.mrb[24].mxu0  ;;  %v1584_v54 = vpop.f32.mrb[24].mxu1 }
 0x12b   : > { %v982_v52 = vmax.f32 %v950_v47, 0.0  ;;  %v1537_v55 = vpop.f32.mrb[25].mxu0  ;;  %v1585_v56 = vpop.f32.mrb[25].mxu1 }
 0x12c   : > { %v1417_v57 = vpack.c.bf16 %v966_v50, %v965_v48  ;;  %v1538_v59 = vadd.f32 %v1537_v55, %v1536_v53  ;;  %v1586_v60 = vadd.f32 %v1585_v56, %v1584_v54  ;;  %v1539_v61 = vpop.f32.mrb[26].mxu0  ;;  %v1587_v62 = vpop.f32.mrb[26].mxu1 }
 0x12d   : > { %v1457_v58 = vpack.c.bf16 %v982_v52, %v981_v49  ;;  %v1540_v63 = vpop.f32.mrb[27].mxu0  ;;  %v1588_v0 = vpop.f32.mrb[27].mxu1 }
 0x12e   : > { %1473 = vst [vmem:[%s1863_s8 + $0x28] sm:$0xff] %v1417_v57   ;;  %v935_v1 = vadd.f32 %v1538_v59, %v1853_v51  ;;  %v951_v2 = vadd.f32 %v1586_v60, %v1853_v51  ;;  %v1541_v3 = vadd.f32 %v1540_v63, %v1539_v61  ;;  %v1589_v4 = vadd.f32 %v1588_v0, %v1587_v62 }
 0x12f   : > { %1481 = vst [vmem:[%s1863_s8 + $0x68] sm:$0xff] %v1457_v58  }
 0x130   : > { %v936_v5 = vadd.f32 %v1541_v3, %v1853_v51  ;;  %v952_v6 = vadd.f32 %v1589_v4, %v1853_v51  ;;  %v967_v7 = vmax.f32 %v935_v1, 0.0  ;;  %v983_v8 = vmax.f32 %v951_v2, 0.0 }
 0x132   : > { %v968_v9 = vmax.f32 %v936_v5, 0.0  ;;  %v984_v10 = vmax.f32 %v952_v6, 0.0  ;;  %v1542_v11 = vpop.f32.mrb[28].mxu0  ;;  %v1590_v12 = vpop.f32.mrb[28].mxu1 }
 0x133   : > { %v1543_v13 = vpop.f32.mrb[29].mxu0  ;;  %v1591_v14 = vpop.f32.mrb[29].mxu1 }
 0x134   : > { %v1422_v15 = vpack.c.bf16 %v968_v9, %v967_v7  ;;  %v1462_v16 = vpack.c.bf16 %v984_v10, %v983_v8  ;;  %v1544_v17 = vadd.f32 %v1543_v13, %v1542_v11  ;;  %v1592_v18 = vadd.f32 %v1591_v14, %v1590_v12  ;;  %v1545_v19 = vpop.f32.mrb[30].mxu0  ;;  %v1593_v20 = vpop.f32.mrb[30].mxu1 }
 0x135   : > { %v1546_v21 = vpop.f32.mrb[31].mxu0  ;;  %v1594_v22 = vpop.f32.mrb[31].mxu1 }
 0x136   : > { %1474 = vst [vmem:[%s1863_s8 + $0x30] sm:$0xff] %v1422_v15   ;;  %1482 = vst [vmem:[%s1863_s8 + $0x70] sm:$0xff] %v1462_v16   ;;  %v937_v23 = vadd.f32 %v1544_v17, %v1853_v51  ;;  %v953_v24 = vadd.f32 %v1592_v18, %v1853_v51  ;;  %v1547_v25 = vadd.f32 %v1546_v21, %v1545_v19 }
 0x137   : > { %v1595_v26 = vadd.f32 %v1594_v22, %v1593_v20 }
 0x138   : > { %v938_v27 = vadd.f32 %v1547_v25, %v1853_v51  ;;  %v969_v29 = vmax.f32 %v937_v23, 0.0  ;;  %v985_v30 = vmax.f32 %v953_v24, 0.0 }
 0x139   : > { %v954_v28 = vadd.f32 %v1595_v26, %v1853_v51 }
 0x13a   : > { %v970_v31 = vmax.f32 %v938_v27, 0.0 }
 0x13b   : > { %v986_v32 = vmax.f32 %v954_v28, 0.0 }
 0x13c   : > { %v1427_v33 = vpack.c.bf16 %v970_v31, %v969_v29 }
 0x13d   : > { %v1467_v34 = vpack.c.bf16 %v986_v32, %v985_v30 }
 0x13e   : > { %1475 = vst [vmem:[%s1863_s8 + $0x38] sm:$0xff] %v1427_v33  }
 0x13f   : > { %1483 = vst [vmem:[%s1863_s8 + $0x78] sm:$0xff] %v1467_v34  }
 0x140 PF: > { %s13_s14 = sadd.s32 1, %s1722_s14   ;;  %s1922_s12 = smov %s1718_s13 }
 0x141   : > { %p10_p5 = scmp.ge.s32.totalorder %s13_s14, 6   ;;  %s1923_s13 = smov %s1925_s15 }
 0x143   :  { %12 = sbr.rel (!%p10_p5) target bundleno = 2 (0x2), region = 76 }

// kernel: modified_res18_forward.22
= control target key start
LH: loop header
LB: loop body
LE: loop exit
PB: predicated region body
PF: predicated region fallthrough
CT: control target
= control target key end

     0   :  { %s2459_s12 = smov 0   ;;  %s2461_s13 = smov 0   ;;  %s2849_s0 = inlined_call_operand.vmem [shape: bf16[256,1152], index: 0, kind: input, shape index: {}]   ;;  %s2850_s1 = inlined_call_operand.vmem [shape: bf16[1152,128], index: 1, kind: input, shape index: {}]   ;;  %s2851_s2 = inlined_call_operand.vmem [shape: f32[1,128], index: 2, kind: input, shape index: {}]   ;;  %s2852_s3 = inlined_call_operand.vmem [shape: bf16[256,128], index: 3, kind: output, shape index: {}]  }
   0x1   :  { %s2463_s14 = smov 0   ;;  %s2465_s15 = smov 0  }
   0x2   :  { %s2467_s16 = smov 0  }
   0x3 LB: > { %s25_s17 = sadd.s32 1, %s2432_s15  ;;  %p48_p1 = scmp.ne.s32.totalorder %s2424_s13, %s2420_s12  ;;  %s2436_s16 = sphi %s2467_s16, %s13_s16   ;;  %s2432_s15 = sphi %s2465_s15, %s2856_s15   ;;  %s2428_s14 = sphi %s2463_s14, %s2855_s14   ;;  %s2424_s13 = sphi %s2461_s13, %s2854_s13   ;;  %s2420_s12 = sphi %s2459_s12, %s2853_s12  }
   0x4   : > { %p26_p0 = scmp.ge.s32.totalorder %s25_s17, 3  ;;  %p49_p2 = scmp.eq.s32.totalorder %s2436_s16, 0 }
   0x5   : > { %s41_s19 = sadd.s32 1, %s2424_s13  ;;  %p1760_p5 = scmp.ge.s32.totalorder %s2436_s16, 3 }
   0x6   : > { %s2858_s17 = smov (%p26_p0, %s25_s17), 0  ;;  %p50_p3 = por %p49_p2, %p48_p1 }
   0x7   : > { %s37_s18 = ssub.s32 %s2432_s15, %s2858_s17  ;;  %162 = sbr.rel (%p1760_p5) target bundleno = 56 (0x38), region = 20 }
   0x8   : > { %p39_p4 = scmp.eq.s32.totalorder %s37_s18, 0 }
   0xa   : > { %s2494_s20 = scalar_select %p39_p4, %s2424_s13, %s41_s19  }
   0xe   : > { %165 = sbr.rel (!%p50_p3) target bundleno = 56 (0x38), region = 24  ;;  %s167_s21 = sand.u32 (%p50_p3), 1, %s2424_s13  }
   0xf   : > { %s1939_s22 = smul.u32 (%p50_p3), 12, %s2432_s15 }
  0x10   : > { %s2267_s23 = smul.u32 (%p50_p3), 384, %s167_s21 }
  0x11   : > { %s2502_s26 = scalar_lea.vmem (%p50_p3), %s2849_s0, %s1939_s22 }
  0x12   : > { %v190_v0 = vld [vmem:[%s2502_s26] sm:$0xff] (%p50_p3)  ;;  %v194_v2 = vld [vmem:[%s2502_s26 + $0x48] sm:$0xff] (%p50_p3)  ;;  %s2507_s27 = scalar_lea.vmem (%p50_p3), [#allocation3], %s2267_s23  ;;  %v198_v4 = vld [vmem:[%s2502_s26 + $0x90] sm:$0xff] (%p50_p3) }
  0x13   : > { %v192_v1 = vld [vmem:[%s2502_s26 + $0x24] sm:$0xff] (%p50_p3)  ;;  %191 = vst [vmem:[%s2507_s27] sm:$0xff] (%p50_p3), %v190_v0  ;;  %195 = vst [vmem:[%s2507_s27 + $0x18] sm:$0xff] (%p50_p3), %v194_v2  ;;  %v196_v3 = vld [vmem:[%s2502_s26 + $0x6c] sm:$0xff] (%p50_p3) }
  0x14   : > { %193 = vst [vmem:[%s2507_s27 + $0xc] sm:$0xff] (%p50_p3), %v192_v1  ;;  %v200_v5 = vld [vmem:[%s2502_s26 + $0xb4] sm:$0xff] (%p50_p3)  ;;  %197 = vst [vmem:[%s2507_s27 + $0x24] sm:$0xff] (%p50_p3), %v196_v3  ;;  %v204_v7 = vld [vmem:[%s2502_s26 + $0xfc] sm:$0xff] (%p50_p3) }
  0x15   : > { %199 = vst [vmem:[%s2507_s27 + $0x30] sm:$0xff] %v198_v4  ;;  %201 = vst [vmem:[%s2507_s27 + $0x3c] sm:$0xff] %v200_v5  ;;  %v202_v6 = vld [vmem:[%s2502_s26 + $0xd8] sm:$0xff]  ;;  %v206_v8 = vld [vmem:[%s2502_s26 + $0x120] sm:$0xff] }
  0x16   : > { %203 = vst [vmem:[%s2507_s27 + $0x48] sm:$0xff] %v202_v6  ;;  %205 = vst [vmem:[%s2507_s27 + $0x54] sm:$0xff] %v204_v7  ;;  %v208_v9 = vld [vmem:[%s2502_s26 + $0x144] sm:$0xff]  ;;  %v212_v11 = vld [vmem:[%s2502_s26 + $0x18c] sm:$0xff] }
  0x17   : > { %207 = vst [vmem:[%s2507_s27 + $0x60] sm:$0xff] %v206_v8  ;;  %v210_v10 = vld [vmem:[%s2502_s26 + $0x168] sm:$0xff]  ;;  %209 = vst [vmem:[%s2507_s27 + $0x6c] sm:$0xff] %v208_v9  ;;  %v214_v12 = vld [vmem:[%s2502_s26 + $0x1b0] sm:$0xff] }
  0x18   : > { %211 = vst [vmem:[%s2507_s27 + $0x78] sm:$0xff] %v210_v10  ;;  %213 = vst [vmem:[%s2507_s27 + $0x84] sm:$0xff] %v212_v11  ;;  %v216_v13 = vld [vmem:[%s2502_s26 + $0x1d4] sm:$0xff]  ;;  %v220_v15 = vld [vmem:[%s2502_s26 + $0x21c] sm:$0xff] }
  0x19   : > { %v218_v14 = vld [vmem:[%s2502_s26 + $0x1f8] sm:$0xff]  ;;  %215 = vst [vmem:[%s2507_s27 + $0x90] sm:$0xff] %v214_v12  ;;  %217 = vst [vmem:[%s2507_s27 + $0x9c] sm:$0xff] %v216_v13  ;;  %v222_v16 = vld [vmem:[%s2502_s26 + $0x240] sm:$0xff] }
  0x1a   : > { %219 = vst [vmem:[%s2507_s27 + $0xa8] sm:$0xff] %v218_v14  ;;  %v224_v17 = vld [vmem:[%s2502_s26 + $0x264] sm:$0xff]  ;;  %221 = vst [vmem:[%s2507_s27 + $0xb4] sm:$0xff] %v220_v15  ;;  %v228_v19 = vld [vmem:[%s2502_s26 + $0x2ac] sm:$0xff] }
  0x1b   : > { %223 = vst [vmem:[%s2507_s27 + $0xc0] sm:$0xff] %v222_v16  ;;  %225 = vst [vmem:[%s2507_s27 + $0xcc] sm:$0xff] %v224_v17  ;;  %v226_v18 = vld [vmem:[%s2502_s26 + $0x288] sm:$0xff]  ;;  %v230_v20 = vld [vmem:[%s2502_s26 + $0x2d0] sm:$0xff] }
  0x1c   : > { %227 = vst [vmem:[%s2507_s27 + $0xd8] sm:$0xff] %v226_v18  ;;  %229 = vst [vmem:[%s2507_s27 + $0xe4] sm:$0xff] %v228_v19  ;;  %v232_v21 = vld [vmem:[%s2502_s26 + $0x2f4] sm:$0xff]  ;;  %v236_v23 = vld [vmem:[%s2502_s26 + $0x33c] sm:$0xff] }
  0x1d   : > { %231 = vst [vmem:[%s2507_s27 + $0xf0] sm:$0xff] %v230_v20  ;;  %v234_v22 = vld [vmem:[%s2502_s26 + $0x318] sm:$0xff]  ;;  %233 = vst [vmem:[%s2507_s27 + $0xfc] sm:$0xff] %v232_v21  ;;  %v238_v24 = vld [vmem:[%s2502_s26 + $0x360] sm:$0xff] }
  0x1e   : > { %235 = vst [vmem:[%s2507_s27 + $0x108] sm:$0xff] %v234_v22  ;;  %237 = vst [vmem:[%s2507_s27 + $0x114] sm:$0xff] %v236_v23  ;;  %v240_v25 = vld [vmem:[%s2502_s26 + $0x384] sm:$0xff]  ;;  %v244_v27 = vld [vmem:[%s2502_s26 + $0x3cc] sm:$0xff] }
  0x1f   : > { %v242_v26 = vld [vmem:[%s2502_s26 + $0x3a8] sm:$0xff]  ;;  %239 = vst [vmem:[%s2507_s27 + $0x120] sm:$0xff] %v238_v24  ;;  %241 = vst [vmem:[%s2507_s27 + $0x12c] sm:$0xff] %v240_v25  ;;  %v246_v28 = vld [vmem:[%s2502_s26 + $0x3f0] sm:$0xff] }
  0x20   : > { %243 = vst [vmem:[%s2507_s27 + $0x138] sm:$0xff] %v242_v26  ;;  %v248_v29 = vld [vmem:[%s2502_s26 + $0x414] sm:$0xff]  ;;  %245 = vst [vmem:[%s2507_s27 + $0x144] sm:$0xff] %v244_v27  ;;  %v252_v31 = vld [vmem:[%s2502_s26 + $0x45c] sm:$0xff] }
  0x21   : > { %247 = vst [vmem:[%s2507_s27 + $0x150] sm:$0xff] %v246_v28  ;;  %249 = vst [vmem:[%s2507_s27 + $0x15c] sm:$0xff] %v248_v29  ;;  %v250_v30 = vld [vmem:[%s2502_s26 + $0x438] sm:$0xff]  ;;  %v1762_v32 = vld [vmem:[%s2502_s26 + $0x8] sm:$0xf] }
  0x22   : > { %251 = vst [vmem:[%s2507_s27 + $0x168] sm:$0xff] %v250_v30  ;;  %253 = vst [vmem:[%s2507_s27 + $0x174] sm:$0xff] %v252_v31  ;;  %v1764_v33 = vld [vmem:[%s2502_s26 + $0x2c] sm:$0xf]  ;;  %v1766_v34 = vld [vmem:[%s2502_s26 + $0x50] sm:$0xf] }
  0x23   : > { %1763 = vst [vmem:[%s2507_s27 + $0x8] sm:$0xf] %v1762_v32  ;;  %v1768_v35 = vld [vmem:[%s2502_s26 + $0x74] sm:$0xf]  ;;  %1765 = vst [vmem:[%s2507_s27 + $0x14] sm:$0xf] %v1764_v33 }
  0x24   : > { %1767 = vst [vmem:[%s2507_s27 + $0x20] sm:$0xf] %v1766_v34  ;;  %1769 = vst [vmem:[%s2507_s27 + $0x2c] sm:$0xf] %v1768_v35  ;;  %v1770_v36 = vld [vmem:[%s2502_s26 + $0x98] sm:$0xf] }
  0x25   : > { %v1772_v37 = vld [vmem:[%s2502_s26 + $0xbc] sm:$0xf]  ;;  %v1774_v38 = vld [vmem:[%s2502_s26 + $0xe0] sm:$0xf]  ;;  %1771 = vst [vmem:[%s2507_s27 + $0x38] sm:$0xf] %v1770_v36 }
  0x26   : > { %1773 = vst [vmem:[%s2507_s27 + $0x44] sm:$0xf] %v1772_v37  ;;  %1775 = vst [vmem:[%s2507_s27 + $0x50] sm:$0xf] %v1774_v38  ;;  %v1776_v39 = vld [vmem:[%s2502_s26 + $0x104] sm:$0xf] }
  0x27   : > { %v1778_v40 = vld [vmem:[%s2502_s26 + $0x128] sm:$0xf]  ;;  %v1780_v41 = vld [vmem:[%s2502_s26 + $0x14c] sm:$0xf]  ;;  %1777 = vst [vmem:[%s2507_s27 + $0x5c] sm:$0xf] %v1776_v39 }
  0x28   : > { %1779 = vst [vmem:[%s2507_s27 + $0x68] sm:$0xf] %v1778_v40  ;;  %1781 = vst [vmem:[%s2507_s27 + $0x74] sm:$0xf] %v1780_v41  ;;  %v1782_v42 = vld [vmem:[%s2502_s26 + $0x170] sm:$0xf] }
  0x29   : > { %v1784_v43 = vld [vmem:[%s2502_s26 + $0x194] sm:$0xf]  ;;  %v1786_v44 = vld [vmem:[%s2502_s26 + $0x1b8] sm:$0xf]  ;;  %1783 = vst [vmem:[%s2507_s27 + $0x80] sm:$0xf] %v1782_v42 }
  0x2a   : > { %1785 = vst [vmem:[%s2507_s27 + $0x8c] sm:$0xf] %v1784_v43  ;;  %1787 = vst [vmem:[%s2507_s27 + $0x98] sm:$0xf] %v1786_v44  ;;  %v1788_v45 = vld [vmem:[%s2502_s26 + $0x1dc] sm:$0xf] }
  0x2b   : > { %v1790_v46 = vld [vmem:[%s2502_s26 + $0x200] sm:$0xf]  ;;  %v1792_v47 = vld [vmem:[%s2502_s26 + $0x224] sm:$0xf]  ;;  %1789 = vst [vmem:[%s2507_s27 + $0xa4] sm:$0xf] %v1788_v45 }
  0x2c   : > { %1791 = vst [vmem:[%s2507_s27 + $0xb0] sm:$0xf] %v1790_v46  ;;  %1793 = vst [vmem:[%s2507_s27 + $0xbc] sm:$0xf] %v1792_v47  ;;  %v1794_v48 = vld [vmem:[%s2502_s26 + $0x248] sm:$0xf] }
  0x2d   : > { %v1796_v49 = vld [vmem:[%s2502_s26 + $0x26c] sm:$0xf]  ;;  %v1798_v50 = vld [vmem:[%s2502_s26 + $0x290] sm:$0xf]  ;;  %1795 = vst [vmem:[%s2507_s27 + $0xc8] sm:$0xf] %v1794_v48 }
  0x2e   : > { %1797 = vst [vmem:[%s2507_s27 + $0xd4] sm:$0xf] %v1796_v49  ;;  %1799 = vst [vmem:[%s2507_s27 + $0xe0] sm:$0xf] %v1798_v50  ;;  %v1800_v51 = vld [vmem:[%s2502_s26 + $0x2b4] sm:$0xf] }
  0x2f   : > { %v1802_v52 = vld [vmem:[%s2502_s26 + $0x2d8] sm:$0xf]  ;;  %v1804_v53 = vld [vmem:[%s2502_s26 + $0x2fc] sm:$0xf]  ;;  %1801 = vst [vmem:[%s2507_s27 + $0xec] sm:$0xf] %v1800_v51 }
  0x30   : > { %1803 = vst [vmem:[%s2507_s27 + $0xf8] sm:$0xf] %v1802_v52  ;;  %1805 = vst [vmem:[%s2507_s27 + $0x104] sm:$0xf] %v1804_v53  ;;  %v1806_v54 = vld [vmem:[%s2502_s26 + $0x320] sm:$0xf] }
  0x31   : > { %v1808_v55 = vld [vmem:[%s2502_s26 + $0x344] sm:$0xf]  ;;  %v1810_v56 = vld [vmem:[%s2502_s26 + $0x368] sm:$0xf]  ;;  %1807 = vst [vmem:[%s2507_s27 + $0x110] sm:$0xf] %v1806_v54 }
  0x32   : > { %1809 = vst [vmem:[%s2507_s27 + $0x11c] sm:$0xf] %v1808_v55  ;;  %1811 = vst [vmem:[%s2507_s27 + $0x128] sm:$0xf] %v1810_v56  ;;  %v1812_v57 = vld [vmem:[%s2502_s26 + $0x38c] sm:$0xf] }
  0x33   : > { %v1814_v58 = vld [vmem:[%s2502_s26 + $0x3b0] sm:$0xf]  ;;  %v1816_v59 = vld [vmem:[%s2502_s26 + $0x3d4] sm:$0xf]  ;;  %1813 = vst [vmem:[%s2507_s27 + $0x134] sm:$0xf] %v1812_v57 }
  0x34   : > { %1815 = vst [vmem:[%s2507_s27 + $0x140] sm:$0xf] %v1814_v58  ;;  %1817 = vst [vmem:[%s2507_s27 + $0x14c] sm:$0xf] %v1816_v59  ;;  %v1818_v60 = vld [vmem:[%s2502_s26 + $0x3f8] sm:$0xf] }
  0x35   : > { %v1820_v61 = vld [vmem:[%s2502_s26 + $0x41c] sm:$0xf]  ;;  %v1822_v62 = vld [vmem:[%s2502_s26 + $0x440] sm:$0xf]  ;;  %1819 = vst [vmem:[%s2507_s27 + $0x158] sm:$0xf] %v1818_v60 }
  0x36   : > { %1821 = vst [vmem:[%s2507_s27 + $0x164] sm:$0xf] %v1820_v61  ;;  %1823 = vst [vmem:[%s2507_s27 + $0x170] sm:$0xf] %v1822_v62  ;;  %v1824_v63 = vld [vmem:[%s2502_s26 + $0x464] sm:$0xf] }
  0x37   : > { %1825 = vst [vmem:[%s2507_s27 + $0x17c] sm:$0xf] %v1824_v63 }
  0x38 PF: > { %p1826_p6 = scmp.ge.s32.totalorder %s2436_s16, 1  ;;  %p341_p7 = scmp.lt.s32.totalorder %s2436_s16, 4 }
  0x3a   : > { %p342_p8 = pnand %p1826_p6, %p341_p7 }
  0x3b   : > { %s348_s28 = sand.u32 (!%p342_p8), 1, %s2420_s12   ;;  %s387_s29 = smul.u32 (!%p342_p8), 48, %s2428_s14 }
  0x3c   : > { %345 = sbr.rel (%p342_p8) target bundleno = 448 (0x1c0), region = 54  ;;  %p1828_p10 = scmp.ne.s32.totalorder (!%p342_p8), %s2428_s14, 0 }
  0x3d   : > { %s2268_s30 = smul.u32 (!%p342_p8), 384, %s348_s28  ;;  %p388_p9 = scmp.lt.s32.totalorder (!%p342_p8), %s387_s29, 143 }
  0x3f   : > { %s2643_s8 = scalar_lea.vmem (!%p342_p8), [#allocation3], %s2268_s30 }
  0x43   : > { %s2860_s29 = smov (!%p388_p9, %s387_s29), 143  ;;  %412 = sbr.rel (%p1828_p10) target bundleno = 85 (0x55), region = 62 }
  0x44   : > { %s1827_s4 = sshll.u32 %s2860_s29, 2  ;;  %v2438_v0 = vmov (!%p1828_p10), 0.0  }
  0x45   : > { %s2641_s7 = scalar_lea.vmem %s2850_s1, %s1827_s4  ;;  %413 = vst [vmem:[#allocation2] sm:$0xff] (!%p1828_p10), %v2438_v0  ;;  %414 = vst [vmem:[#allocation2 + $0x8] sm:$0xff] (!%p1828_p10), %v2438_v0 }
  0x46   : > { %415 = vst [vmem:[#allocation2 + $0x10] sm:$0xff] (!%p1828_p10), %v2438_v0  ;;  %416 = vst [vmem:[#allocation2 + $0x18] sm:$0xff] (!%p1828_p10), %v2438_v0 }
  0x47   : > { %417 = vst [vmem:[#allocation2 + $0x20] sm:$0xff] (!%p1828_p10), %v2438_v0  ;;  %418 = vst [vmem:[#allocation2 + $0x28] sm:$0xff] (!%p1828_p10), %v2438_v0 }
  0x48   : > { %419 = vst [vmem:[#allocation2 + $0x30] sm:$0xff] (!%p1828_p10), %v2438_v0  ;;  %420 = vst [vmem:[#allocation2 + $0x38] sm:$0xff] (!%p1828_p10), %v2438_v0 }
  0x49   : > { %421 = vst [vmem:[#allocation2 + $0x40] sm:$0xff] (!%p1828_p10), %v2438_v0  ;;  %422 = vst [vmem:[#allocation2 + $0x48] sm:$0xff] (!%p1828_p10), %v2438_v0 }
  0x4a   : > { %423 = vst [vmem:[#allocation2 + $0x50] sm:$0xff] %v2438_v0  ;;  %424 = vst [vmem:[#allocation2 + $0x58] sm:$0xff] %v2438_v0 }
  0x4b   : > { %425 = vst [vmem:[#allocation2 + $0x60] sm:$0xff] %v2438_v0  ;;  %426 = vst [vmem:[#allocation2 + $0x68] sm:$0xff] %v2438_v0 }
  0x4c   : > { %427 = vst [vmem:[#allocation2 + $0x70] sm:$0xff] %v2438_v0  ;;  %428 = vst [vmem:[#allocation2 + $0x78] sm:$0xff] %v2438_v0 }
  0x4d   : > { %429 = vst [vmem:[#allocation2 + $0x80] sm:$0xff] %v2438_v0  ;;  %430 = vst [vmem:[#allocation2 + $0x88] sm:$0xff] %v2438_v0 }
  0x4e   : > { %431 = vst [vmem:[#allocation2 + $0x90] sm:$0xff] %v2438_v0  ;;  %432 = vst [vmem:[#allocation2 + $0x98] sm:$0xff] %v2438_v0 }
  0x4f   : > { %433 = vst [vmem:[#allocation2 + $0xa0] sm:$0xff] %v2438_v0  ;;  %434 = vst [vmem:[#allocation2 + $0xa8] sm:$0xff] %v2438_v0 }
  0x50   : > { %435 = vst [vmem:[#allocation2 + $0xb0] sm:$0xff] %v2438_v0  ;;  %436 = vst [vmem:[#allocation2 + $0xb8] sm:$0xff] %v2438_v0 }
  0x51   : > { %437 = vst [vmem:[#allocation2 + $0xc0] sm:$0xff] %v2438_v0  ;;  %438 = vst [vmem:[#allocation2 + $0xc8] sm:$0xff] %v2438_v0 }
  0x52   : > { %439 = vst [vmem:[#allocation2 + $0xd0] sm:$0xff] %v2438_v0  ;;  %440 = vst [vmem:[#allocation2 + $0xd8] sm:$0xff] %v2438_v0 }
  0x53   : > { %441 = vst [vmem:[#allocation2 + $0xe0] sm:$0xff] %v2438_v0  ;;  %442 = vst [vmem:[#allocation2 + $0xe8] sm:$0xff] %v2438_v0 }
  0x54   : > { %443 = vst [vmem:[#allocation2 + $0xf0] sm:$0xff] %v2438_v0  ;;  %444 = vst [vmem:[#allocation2 + $0xf8] sm:$0xff] %v2438_v0 }
  0x55 PF: > { %v2310_v1 = vld [vmem:[%s2641_s7 + $0x40] sm:$0xff]   ;;  %v2312_v3 = vld [vmem:[%s2641_s7 + $0x48] sm:$0xff]   ;;  %v2314_v5 = vld [vmem:[%s2641_s7 + $0x50] sm:$0xff]   ;;  %p1901_p11 = scmp.ne.s32.totalorder %s2428_s14, 2 }
  0x56   : > { %v2311_v2 = vld [vmem:[%s2641_s7] sm:$0xff]   ;;  %2067 = vmatprep.subr.bf16.mxu0 %v2310_v1  ;;  %2251 = vmatprep.subr.bf16.mxu1 %v2310_v1  ;;  %v2313_v4 = vld [vmem:[%s2641_s7 + $0x8] sm:$0xff]   ;;  %v2315_v6 = vld [vmem:[%s2641_s7 + $0x10] sm:$0xff]  }
  0x57   : > { %2068 = vmatpush3.bf16.msra.mxu0 %v2311_v2  ;;  %2259 = vmatpush3.bf16.msra.mxu1 %v2311_v2  ;;  %v2316_v7 = vld [vmem:[%s2641_s7 + $0x58] sm:$0xff]   ;;  %v2318_v9 = vld [vmem:[%s2641_s7 + $0x60] sm:$0xff]   ;;  %v2320_v11 = vld [vmem:[%s2641_s7 + $0x68] sm:$0xff]  }
  0x58   : > { %2069 = vmatprep.subr.bf16.mxu0 %v2312_v3  ;;  %2252 = vmatprep.subr.bf16.mxu1 %v2312_v3  ;;  %v2317_v8 = vld [vmem:[%s2641_s7 + $0x18] sm:$0xff]   ;;  %v2319_v10 = vld [vmem:[%s2641_s7 + $0x20] sm:$0xff]   ;;  %v2321_v14 = vld [vmem:[%s2641_s7 + $0x28] sm:$0xff]  }
  0x59   : > { %v2328_v12 = vld [vmem:[%s2643_s8 + $0x4] ss:$12 sps:$4 sm:$0xff]   ;;  %v2324_v17 = vld [vmem:[%s2641_s7 + $0x78] sm:$0xff]   ;;  %v2326_v20 = vld [vmem:[%s2643_s8] ss:$12 sps:$4 sm:$0xff]  }
  0x5a   : > { %v2331_v13 = vld [vmem:[%s2643_s8 + $0x124] ss:$12 sps:$4 sm:$0xff]   ;;  %1021 = vmatprep.mubr.bf16.mxu0 %v2328_v12  ;;  %v2325_v18 = vld [vmem:[%s2641_s7 + $0x38] sm:$0xff]   ;;  %v2329_v21 = vld [vmem:[%s2643_s8 + $0x120] ss:$12 sps:$4 sm:$0xff]  }
  0x5b   : > { %2070 = vmatpush3.bf16.msra.mxu0 %v2313_v4  ;;  %2260 = vmatpush3.bf16.msra.mxu1 %v2313_v4  ;;  %v2322_v15 = vld [vmem:[%s2641_s7 + $0x70] sm:$0xff]   ;;  %v2332_v19 = vld [vmem:[%s2641_s7 + $0x80] sm:$0xff]   ;;  %v2334_v22 = vld [vmem:[%s2643_s8 + $0x1c] ss:$12 sps:$4 sm:$0xff]  }
  0x5c   : > { %2071 = vmatprep.subr.bf16.mxu0 %v2314_v5  ;;  %2253 = vmatprep.subr.bf16.mxu1 %v2314_v5  ;;  %v2323_v16 = vld [vmem:[%s2641_s7 + $0x30] sm:$0xff]   ;;  %v2333_v23 = vld [vmem:[%s2641_s7 + $0x88] sm:$0xff]   ;;  %v2338_v25 = vld [vmem:[%s2643_s8 + $0x18] ss:$12 sps:$4 sm:$0xff]  }
  0x5d   : > { %1117 = vmatprep.mubr.bf16.mxu1 %v2331_v13  ;;  %v2336_v24 = vld [vmem:[%s2643_s8 + $0x13c] ss:$12 sps:$4 sm:$0xff]   ;;  %v2340_v26 = vld [vmem:[%s2641_s7 + $0x90] sm:$0xff]   ;;  %v2339_v27 = vld [vmem:[%s2643_s8 + $0x138] ss:$12 sps:$4 sm:$0xff]  }
  0x5e   : > { %v2341_v28 = vld [vmem:[%s2641_s7 + $0x98] sm:$0xff]   ;;  %v2342_v29 = vld [vmem:[%s2643_s8 + $0x34] ss:$12 sps:$4 sm:$0xff]   ;;  %v2349_v34 = vld [vmem:[%s2641_s7 + $0xa8] sm:$0xff]  }
  0x5f   : > { %2072 = vmatpush3.bf16.msra.mxu0 %v2315_v6  ;;  %2261 = vmatpush3.bf16.msra.mxu1 %v2315_v6  ;;  %v2344_v30 = vld [vmem:[%s2643_s8 + $0x154] ss:$12 sps:$4 sm:$0xff]   ;;  %v2346_v32 = vld [vmem:[%s2643_s8 + $0x30] ss:$12 sps:$4 sm:$0xff]   ;;  %v2350_v35 = vld [vmem:[%s2643_s8 + $0x4c] ss:$12 sps:$4 sm:$0xff]  }
  0x60   : > { %2073 = vmatprep.subr.bf16.mxu0 %v2316_v7  ;;  %2254 = vmatprep.subr.bf16.mxu1 %v2316_v7  ;;  %v2348_v31 = vld [vmem:[%s2641_s7 + $0xa0] sm:$0xff]   ;;  %v2347_v33 = vld [vmem:[%s2643_s8 + $0x150] ss:$12 sps:$4 sm:$0xff]   ;;  %v2352_v36 = vld [vmem:[%s2643_s8 + $0x16c] ss:$12 sps:$4 sm:$0xff]  }
  0x61   : > { %v2356_v37 = vld [vmem:[%s2641_s7 + $0xb0] sm:$0xff]   ;;  %v2357_v41 = vld [vmem:[%s2641_s7 + $0xb8] sm:$0xff]   ;;  %v2361_v43 = vld [vmem:[%s2643_s8 + $0x60] ss:$12 sps:$4 sm:$0xff]  }
  0x62   : > { %v2354_v38 = vld [vmem:[%s2643_s8 + $0x48] ss:$12 sps:$4 sm:$0xff]   ;;  %v2358_v40 = vld [vmem:[%s2643_s8 + $0x64] ss:$12 sps:$4 sm:$0xff]   ;;  %v2362_v44 = vld [vmem:[%s2643_s8 + $0x20] ss:$12 sps:$4 sm:$0xff]  }
  0x63   : > { %2074 = vmatpush3.bf16.msra.mxu0 %v2317_v8  ;;  %2262 = vmatpush3.bf16.msra.mxu1 %v2317_v8  ;;  %v2355_v39 = vld [vmem:[%s2643_s8 + $0x168] ss:$12 sps:$4 sm:$0xff]   ;;  %v2365_v46 = vld [vmem:[%s2643_s8 + $0x38] ss:$12 sps:$4 sm:$0xff]   ;;  %v2367_v48 = vld [vmem:[%s2643_s8 + $0x50] ss:$12 sps:$4 sm:$0xff]  }
  0x64   : > { %2075 = vmatprep.subr.bf16.mxu0 %v2318_v9  ;;  %2255 = vmatprep.subr.bf16.mxu1 %v2318_v9  ;;  %v2360_v42 = vld [vmem:[%s2643_s8 + $0x8] ss:$12 sps:$4 sm:$0xff]   ;;  %v2366_v47 = vld [vmem:[%s2643_s8 + $0x78] ss:$12 sps:$4 sm:$0xff]   ;;  %v2371_v51 = vld [vmem:[%s2643_s8 + $0x90] ss:$12 sps:$4 sm:$0xff]  }
  0x65   : > { %v2363_v45 = vld [vmem:[%s2643_s8 + $0x7c] ss:$12 sps:$4 sm:$0xff]   ;;  %v2368_v49 = vld [vmem:[%s2643_s8 + $0x94] ss:$12 sps:$4 sm:$0xff]   ;;  %v2373_v53 = vld [vmem:[%s2643_s8 + $0xac] ss:$12 sps:$4 sm:$0xff]  }
  0x66   : > { %v2370_v50 = vld [vmem:[%s2643_s8 + $0x68] ss:$12 sps:$4 sm:$0xff]   ;;  %v2372_v52 = vld [vmem:[%s2643_s8 + $0x80] ss:$12 sps:$4 sm:$0xff]   ;;  %v2375_v54 = vld [vmem:[%s2643_s8 + $0x98] ss:$12 sps:$4 sm:$0xff]  }
  0x67   : > { %2076 = vmatpush3.bf16.msra.mxu0 %v2319_v10  ;;  %2263 = vmatpush3.bf16.msra.mxu1 %v2319_v10  ;;  %v2376_v55 = vld [vmem:[%s2643_s8 + $0xa8] ss:$12 sps:$4 sm:$0xff]   ;;  %v2377_v56 = vld [vmem:[%s2643_s8 + $0xb0] ss:$12 sps:$4 sm:$0xff]   ;;  %v2381_v59 = vld [vmem:[%s2643_s8 + $0xc0] ss:$12 sps:$4 sm:$0xff]  }
  0x68   : > { %2077 = vmatprep.subr.bf16.mxu0 %v2320_v11  ;;  %2256 = vmatprep.subr.bf16.mxu1 %v2320_v11  ;;  %v2378_v57 = vld [vmem:[%s2643_s8 + $0xc4] ss:$12 sps:$4 sm:$0xff]   ;;  %v2380_v58 = vld [vmem:[%s2643_s8 + $0xc8] ss:$12 sps:$4 sm:$0xff]   ;;  %v2382_v60 = vld [vmem:[%s2643_s8 + $0xe0] ss:$12 sps:$4 sm:$0xff]  }
  0x69   : > { %v2383_v61 = vld [vmem:[%s2643_s8 + $0xdc] ss:$12 sps:$4 sm:$0xff]   ;;  %v2385_v62 = vld [vmem:[%s2643_s8 + $0xf8] ss:$12 sps:$4 sm:$0xff]   ;;  %v2388_v1 = vld [vmem:[%s2643_s8 + $0xf4] ss:$12 sps:$4 sm:$0xff]  }
  0x6a   : > { %v2386_v63 = vld [vmem:[%s2643_s8 + $0xd8] ss:$12 sps:$4 sm:$0xff]   ;;  %v2387_v0 = vld [vmem:[%s2643_s8 + $0x110] ss:$12 sps:$4 sm:$0xff]   ;;  %v2390_v2 = vld [vmem:[%s2643_s8 + $0x128] ss:$12 sps:$4 sm:$0xff]  }
  0x6b   : > { %2078 = vmatpush3.bf16.msra.mxu0 %v2321_v14  ;;  %2264 = vmatpush3.bf16.msra.mxu1 %v2321_v14  ;;  %v2391_v3 = vld [vmem:[%s2643_s8 + $0xf0] ss:$12 sps:$4 sm:$0xff]   ;;  %v2392_v4 = vld [vmem:[%s2643_s8 + $0x140] ss:$12 sps:$4 sm:$0xff]   ;;  %v2395_v6 = vld [vmem:[%s2643_s8 + $0x158] ss:$12 sps:$4 sm:$0xff]  }
  0x6c   : > { %2079 = vmatprep.subr.bf16.mxu0 %v2322_v15  ;;  %2257 = vmatprep.subr.bf16.mxu1 %v2322_v15  ;;  %v2393_v5 = vld [vmem:[%s2643_s8 + $0x10c] ss:$12 sps:$4 sm:$0xff]   ;;  %v2396_v7 = vld [vmem:[%s2643_s8 + $0x108] ss:$12 sps:$4 sm:$0xff]   ;;  %v2397_v8 = vld [vmem:[%s2643_s8 + $0x170] ss:$12 sps:$4 sm:$0xff]  }
  0x6f   : > { %2080 = vmatpush3.bf16.msra.mxu0 %v2323_v16  ;;  %2265 = vmatpush3.bf16.msra.mxu1 %v2323_v16 }
  0x70   : > { %2081 = vmatprep.subr.bf16.mxu0 %v2324_v17  ;;  %2258 = vmatprep.subr.bf16.mxu1 %v2324_v17 }
  0x73   : > { %2082 = vmatpush3.bf16.msra.mxu0 %v2325_v18  ;;  %2266 = vmatpush3.bf16.msra.mxu1 %v2325_v18 }
  0x74   : > { %2203 = vmatprep.subr.bf16.mxu1 %v2332_v19 }
  0x76   : > { %1022 = vmatmul.mubr.bf16.vlgmr.msra.gmra.mrb[0].mxu0 %v2326_v20  ;;  %1118 = vmatmul.mubr.bf16.vlgmr.msra.gmra.mrb[0].mxu1 %v2329_v21 }
  0x77   : > { %2204 = vmatpush3.bf16.msra.mxu1 %v2332_v19  ;;  %1029 = vmatprep.mubr.bf16.mxu0 %v2334_v22 }
  0x78   : > { %2205 = vmatprep.subr.bf16.mxu1 %v2333_v23  ;;  %1125 = vmatprep.mubr.bf16.mxu1 %v2336_v24 }
  0x7b   : > { %2206 = vmatpush3.bf16.msra.mxu1 %v2333_v23 }
  0x7c   : > { %2207 = vmatprep.subr.bf16.mxu1 %v2340_v26 }
  0x7e   : > { %1030 = vmatmul.mubr.bf16.gmra.mrb[4].mxu0 %v2338_v25  ;;  %1126 = vmatmul.mubr.bf16.gmra.mrb[4].mxu1 %v2339_v27 }
  0x7f   : > { %2208 = vmatpush3.bf16.msra.mxu1 %v2340_v26  ;;  %1037 = vmatprep.mubr.bf16.mxu0 %v2342_v29 }
  0x80   : > { %2209 = vmatprep.subr.bf16.mxu1 %v2341_v28  ;;  %1133 = vmatprep.mubr.bf16.mxu1 %v2344_v30 }
  0x83   : > { %2210 = vmatpush3.bf16.msra.mxu1 %v2341_v28 }
  0x84   : > { %2211 = vmatprep.subr.bf16.mxu1 %v2348_v31 }
  0x86   : > { %1038 = vmatmul.mubr.bf16.gmra.mrb[8].mxu0 %v2346_v32  ;;  %1134 = vmatmul.mubr.bf16.gmra.mrb[8].mxu1 %v2347_v33 }
  0x87   : > { %2212 = vmatpush3.bf16.msra.mxu1 %v2348_v31  ;;  %1045 = vmatprep.mubr.bf16.mxu0 %v2350_v35 }
  0x88   : > { %2213 = vmatprep.subr.bf16.mxu1 %v2349_v34  ;;  %1141 = vmatprep.mubr.bf16.mxu1 %v2352_v36 }
  0x8b   : > { %2214 = vmatpush3.bf16.msra.mxu1 %v2349_v34 }
  0x8c   : > { %2215 = vmatprep.subr.bf16.mxu1 %v2356_v37 }
  0x8e   : > { %1046 = vmatmul.mubr.bf16.gmra.mrb[12].mxu0 %v2354_v38  ;;  %1142 = vmatmul.mubr.bf16.gmra.mrb[12].mxu1 %v2355_v39 }
  0x8f   : > { %2216 = vmatpush3.bf16.msra.mxu1 %v2356_v37  ;;  %1053 = vmatprep.mubr.bf16.mxu0 %v2358_v40 }
  0x90   : > { %2217 = vmatprep.subr.bf16.mxu1 %v2357_v41  ;;  %2219 = vmatprep.mubr.bf16.mxu1 %v2360_v42 }
  0x93   : > { %2218 = vmatpush3.bf16.msra.mxu1 %v2357_v41 }
  0x96   : > { %1054 = vmatmul.mubr.bf16.gmra.mrb[16].mxu0 %v2361_v43  ;;  %2220 = vmatmul.mubr.bf16.vlgmr.msra.gmra.mrb[16].mxu1 %v2362_v44 }
  0x97   : > { %1061 = vmatprep.mubr.bf16.mxu0 %v2363_v45  ;;  %2223 = vmatprep.mubr.bf16.mxu1 %v2365_v46 }
  0x9e   : > { %1062 = vmatmul.mubr.bf16.gmra.mrb[20].mxu0 %v2366_v47  ;;  %2224 = vmatmul.mubr.bf16.gmra.mrb[20].mxu1 %v2367_v48 }
  0x9f   : > { %1069 = vmatprep.mubr.bf16.mxu0 %v2368_v49  ;;  %2227 = vmatprep.mubr.bf16.mxu1 %v2370_v50 }
  0xa6   : > { %1070 = vmatmul.mubr.bf16.gmra.mrb[24].mxu0 %v2371_v51  ;;  %2228 = vmatmul.mubr.bf16.gmra.mrb[24].mxu1 %v2372_v52 }
  0xa7   : > { %1077 = vmatprep.mubr.bf16.mxu0 %v2373_v53  ;;  %2231 = vmatprep.mubr.bf16.mxu1 %v2375_v54 }
  0xae   : > { %1078 = vmatmul.mubr.bf16.gmra.mrb[28].mxu0 %v2376_v55  ;;  %2232 = vmatmul.mubr.bf16.gmra.mrb[28].mxu1 %v2377_v56 }
  0xaf   : > { %1085 = vmatprep.mubr.bf16.mxu0 %v2378_v57  ;;  %2235 = vmatprep.mubr.bf16.mxu1 %v2380_v58  ;;  %v447_v58 = vld [vmem:[#allocation2 + $0x10] sm:$0xff] }
  0xb6   : > { %1086 = vmatmul.mubr.bf16.gmra.mrb[32].mxu0 %v2381_v59  ;;  %2236 = vmatmul.mubr.bf16.gmra.mrb[32].mxu1 %v2382_v60 }
  0xb7   : > { %1093 = vmatprep.mubr.bf16.mxu0 %v2383_v61  ;;  %2239 = vmatprep.mubr.bf16.mxu1 %v2385_v62  ;;  %v445_v62 = vld [vmem:[#allocation2] sm:$0xff] }
  0xbe   : > { %1094 = vmatmul.mubr.bf16.gmra.mrb[36].mxu0 %v2386_v63  ;;  %2240 = vmatmul.mubr.bf16.gmra.mrb[36].mxu1 %v2387_v0 }
  0xbf   : > { %1101 = vmatprep.mubr.bf16.mxu0 %v2388_v1  ;;  %2243 = vmatprep.mubr.bf16.mxu1 %v2390_v2 }
  0xc6   : > { %1102 = vmatmul.mubr.bf16.gmra.mrb[40].mxu0 %v2391_v3  ;;  %2244 = vmatmul.mubr.bf16.gmra.mrb[40].mxu1 %v2392_v4  ;;  %v448_v3 = vld [vmem:[#allocation2 + $0x18] sm:$0xff] }
  0xc7   : > { %1109 = vmatprep.mubr.bf16.mxu0 %v2393_v5  ;;  %2247 = vmatprep.mubr.bf16.mxu1 %v2395_v6 }
  0xce   : > { %1110 = vmatmul.mubr.bf16.gmra.mrb[44].mxu0 %v2396_v7  ;;  %2248 = vmatmul.mubr.bf16.gmra.mrb[44].mxu1 %v2397_v8  ;;  %v446_v8 = vld [vmem:[#allocation2 + $0x8] sm:$0xff] }
 0x149   : > { %v2083_v9 = vpop.f32.mrb[0].mxu0  ;;  %v2155_v10 = vpop.f32.mrb[0].mxu1 }
 0x14a   : > { %v2084_v11 = vpop.f32.mrb[1].mxu0  ;;  %v2156_v12 = vpop.f32.mrb[1].mxu1 }
 0x14b   : > { %v2085_v13 = vadd.f32 %v2084_v11, %v2083_v9  ;;  %v2718_v14 = vadd.f32 %v2156_v12, %v2155_v10  ;;  %v2086_v15 = vpop.f32.mrb[2].mxu0  ;;  %v2158_v16 = vpop.f32.mrb[2].mxu1 }
 0x14c   : > { %v2087_v17 = vpop.f32.mrb[3].mxu0  ;;  %v2159_v18 = vpop.f32.mrb[3].mxu1 }
 0x14d   : > { %v2088_v19 = vadd.f32 %v2087_v17, %v2086_v15  ;;  %v2720_v20 = vadd.f32 %v2159_v18, %v2158_v16  ;;  %v451_v18 = vld [vmem:[#allocation2 + $0x30] sm:$0xff] }
 0x151   : > { %v2089_v21 = vpop.f32.mrb[4].mxu0  ;;  %v2161_v22 = vpop.f32.mrb[4].mxu1 }
 0x152   : > { %v2090_v23 = vpop.f32.mrb[5].mxu0  ;;  %v2162_v24 = vpop.f32.mrb[5].mxu1 }
 0x153   : > { %v2091_v25 = vadd.f32 %v2090_v23, %v2089_v21  ;;  %v2722_v26 = vadd.f32 %v2162_v24, %v2161_v22  ;;  %v2092_v27 = vpop.f32.mrb[6].mxu0  ;;  %v2164_v28 = vpop.f32.mrb[6].mxu1  ;;  %v449_v23 = vld [vmem:[#allocation2 + $0x20] sm:$0xff] }
 0x154   : > { %v2093_v29 = vpop.f32.mrb[7].mxu0  ;;  %v2165_v30 = vpop.f32.mrb[7].mxu1 }
 0x155   : > { %v2094_v31 = vadd.f32 %v2093_v29, %v2092_v27  ;;  %v2724_v32 = vadd.f32 %v2165_v30, %v2164_v28  ;;  %v452_v29 = vld [vmem:[#allocation2 + $0x38] sm:$0xff] }
 0x159   : > { %v2095_v33 = vpop.f32.mrb[8].mxu0  ;;  %v2167_v34 = vpop.f32.mrb[8].mxu1 }
 0x15a   : > { %v2096_v35 = vpop.f32.mrb[9].mxu0  ;;  %v2168_v36 = vpop.f32.mrb[9].mxu1 }
 0x15b   : > { %v2097_v37 = vadd.f32 %v2096_v35, %v2095_v33  ;;  %v2726_v38 = vadd.f32 %v2168_v36, %v2167_v34  ;;  %v2098_v39 = vpop.f32.mrb[10].mxu0  ;;  %v2170_v40 = vpop.f32.mrb[10].mxu1  ;;  %v450_v34 = vld [vmem:[#allocation2 + $0x28] sm:$0xff] }
 0x15c   : > { %v2099_v41 = vpop.f32.mrb[11].mxu0  ;;  %v2171_v42 = vpop.f32.mrb[11].mxu1 }
 0x15d   : > { %v2100_v43 = vadd.f32 %v2099_v41, %v2098_v39  ;;  %v2728_v44 = vadd.f32 %v2171_v42, %v2170_v40 }
 0x161   : > { %v2101_v45 = vpop.f32.mrb[12].mxu0  ;;  %v2173_v46 = vpop.f32.mrb[12].mxu1 }
 0x162   : > { %v2102_v47 = vpop.f32.mrb[13].mxu0  ;;  %v2174_v48 = vpop.f32.mrb[13].mxu1 }
 0x163   : > { %v2103_v49 = vadd.f32 %v2102_v47, %v2101_v45  ;;  %v2730_v50 = vadd.f32 %v2174_v48, %v2173_v46  ;;  %v2104_v51 = vpop.f32.mrb[14].mxu0  ;;  %v2176_v52 = vpop.f32.mrb[14].mxu1  ;;  %v455_v46 = vld [vmem:[#allocation2 + $0x50] sm:$0xff] }
 0x164   : > { %v2105_v53 = vpop.f32.mrb[15].mxu0  ;;  %v2177_v54 = vpop.f32.mrb[15].mxu1 }
 0x165   : > { %v2106_v55 = vadd.f32 %v2105_v53, %v2104_v51  ;;  %v2732_v56 = vadd.f32 %v2177_v54, %v2176_v52 }
 0x169   : > { %v2107_v57 = vpop.f32.mrb[16].mxu0  ;;  %v2221_v59 = vpop.f32.mrb[16].mxu1 }
 0x16a   : > { %v1193_v60 = vadd.f32 %v2221_v59, %v2091_v25  ;;  %v2108_v61 = vpop.f32.mrb[17].mxu0  ;;  %v1184_v63 = vpop.f32.mrb[17].mxu1 }
 0x16b   : > { %v2109_v0 = vadd.f32 %v2108_v61, %v2107_v57  ;;  %v1185_v1 = vadd.f32 %v2085_v13, %v1184_v63  ;;  %v2110_v2 = vpop.f32.mrb[18].mxu0  ;;  %v2222_v4 = vpop.f32.mrb[18].mxu1 }
 0x16c   : > { %v1313_v5 = vadd.f32 %v1193_v60, %v447_v58  ;;  %v1196_v6 = vadd.f32 %v2222_v4, %v2094_v31  ;;  %v2111_v7 = vpop.f32.mrb[19].mxu0  ;;  %v1187_v9 = vpop.f32.mrb[19].mxu1  ;;  %v454_v60 = vld [vmem:[#allocation2 + $0x48] sm:$0xff] }
 0x16d   : > { %v1311_v10 = vadd.f32 %v1185_v1, %v445_v62  ;;  %v2112_v11 = vadd.f32 %v2111_v7, %v2110_v2  ;;  %v1188_v12 = vadd.f32 %v2088_v19, %v1187_v9 }
 0x16e   : > { %1345 = vst [vmem:[#allocation2 + $0x10] sm:$0xff] %v1313_v5  ;;  %v1314_v15 = vadd.f32 %v1196_v6, %v448_v3  ;;  %v457_v6 = vld [vmem:[#allocation2 + $0x60] sm:$0xff] }
 0x16f   : > { %1343 = vst [vmem:[#allocation2] sm:$0xff] %v1311_v10  ;;  %v1312_v16 = vadd.f32 %v1188_v12, %v446_v8 }
 0x170   : > { %1346 = vst [vmem:[#allocation2 + $0x18] sm:$0xff] %v1314_v15  ;;  %v459_v15 = vld [vmem:[#allocation2 + $0x70] sm:$0xff] }
 0x171   : > { %1344 = vst [vmem:[#allocation2 + $0x8] sm:$0xff] %v1312_v16  ;;  %v2113_v17 = vpop.f32.mrb[20].mxu0  ;;  %v2225_v13 = vpop.f32.mrb[20].mxu1 }
 0x172   : > { %v1209_v21 = vadd.f32 %v2225_v13, %v2103_v49  ;;  %v2114_v22 = vpop.f32.mrb[21].mxu0  ;;  %v1200_v24 = vpop.f32.mrb[21].mxu1  ;;  %v453_v49 = vld [vmem:[#allocation2 + $0x40] sm:$0xff] }
 0x173   : > { %v2115_v25 = vadd.f32 %v2114_v22, %v2113_v17  ;;  %v1201_v27 = vadd.f32 %v2097_v37, %v1200_v24  ;;  %v2116_v28 = vpop.f32.mrb[22].mxu0  ;;  %v2226_v30 = vpop.f32.mrb[22].mxu1  ;;  %v458_v17 = vld [vmem:[#allocation2 + $0x68] sm:$0xff] }
 0x174   : > { %v1317_v31 = vadd.f32 %v1209_v21, %v451_v18  ;;  %v1212_v19 = vadd.f32 %v2226_v30, %v2106_v55  ;;  %v2117_v33 = vpop.f32.mrb[23].mxu0  ;;  %v1203_v35 = vpop.f32.mrb[23].mxu1  ;;  %v456_v55 = vld [vmem:[#allocation2 + $0x58] sm:$0xff] }
 0x175   : > { %v1315_v36 = vadd.f32 %v1201_v27, %v449_v23  ;;  %v2118_v39 = vadd.f32 %v2117_v33, %v2116_v28  ;;  %v1204_v40 = vadd.f32 %v2100_v43, %v1203_v35  ;;  %v460_v23 = vld [vmem:[#allocation2 + $0x78] sm:$0xff] }
 0x176   : > { %1349 = vst [vmem:[#allocation2 + $0x30] sm:$0xff] %v1317_v31  ;;  %v1318_v41 = vadd.f32 %v1212_v19, %v452_v29 }
 0x177   : > { %1347 = vst [vmem:[#allocation2 + $0x20] sm:$0xff] %v1315_v36  ;;  %v1316_v42 = vadd.f32 %v1204_v40, %v450_v34  ;;  %v461_v36 = vld [vmem:[#allocation2 + $0x80] sm:$0xff] }
 0x178   : > { %1350 = vst [vmem:[#allocation2 + $0x38] sm:$0xff] %v1318_v41 }
 0x179   : > { %1348 = vst [vmem:[#allocation2 + $0x28] sm:$0xff] %v1316_v42  ;;  %v2119_v45 = vpop.f32.mrb[24].mxu0  ;;  %v2229_v37 = vpop.f32.mrb[24].mxu1 }
 0x17a   : > { %v1225_v47 = vadd.f32 %v2229_v37, %v2115_v25  ;;  %v2120_v48 = vpop.f32.mrb[25].mxu0  ;;  %v1216_v51 = vpop.f32.mrb[25].mxu1 }
 0x17b   : > { %v2121_v52 = vadd.f32 %v2120_v48, %v2119_v45  ;;  %v1217_v53 = vadd.f32 %v2109_v0, %v1216_v51  ;;  %v2122_v54 = vpop.f32.mrb[26].mxu0  ;;  %v2230_v57 = vpop.f32.mrb[26].mxu1  ;;  %v462_v45 = vld [vmem:[#allocation2 + $0x88] sm:$0xff] }
 0x17c   : > { %v1321_v58 = vadd.f32 %v1225_v47, %v455_v46  ;;  %v1228_v43 = vadd.f32 %v2230_v57, %v2118_v39  ;;  %v2123_v59 = vpop.f32.mrb[27].mxu0  ;;  %v1219_v61 = vpop.f32.mrb[27].mxu1  ;;  %v463_v57 = vld [vmem:[#allocation2 + $0x90] sm:$0xff] }
 0x17d   : > { %v1319_v62 = vadd.f32 %v1217_v53, %v453_v49  ;;  %v2124_v63 = vadd.f32 %v2123_v59, %v2122_v54  ;;  %v1220_v1 = vadd.f32 %v2112_v11, %v1219_v61  ;;  %v464_v61 = vld [vmem:[#allocation2 + $0x98] sm:$0xff] }
 0x17e   : > { %1353 = vst [vmem:[#allocation2 + $0x50] sm:$0xff] %v1321_v58  ;;  %v1322_v2 = vadd.f32 %v1228_v43, %v456_v55 }
 0x17f   : > { %1351 = vst [vmem:[#allocation2 + $0x40] sm:$0xff] %v1319_v62  ;;  %v1320_v3 = vadd.f32 %v1220_v1, %v454_v60 }
 0x180   : > { %1354 = vst [vmem:[#allocation2 + $0x58] sm:$0xff] %v1322_v2 }
 0x181   : > { %1352 = vst [vmem:[#allocation2 + $0x48] sm:$0xff] %v1320_v3  ;;  %v2125_v4 = vpop.f32.mrb[28].mxu0  ;;  %v2233_v5 = vpop.f32.mrb[28].mxu1  ;;  %v471_v3 = vld [vmem:[#allocation2 + $0xd0] sm:$0xff] }
 0x182   : > { %v2126_v0 = vpop.f32.mrb[29].mxu0  ;;  %v1232_v7 = vpop.f32.mrb[29].mxu1 }
 0x183   : > { %v2127_v8 = vadd.f32 %v2126_v0, %v2125_v4  ;;  %v1233_v9 = vadd.f32 %v2121_v52, %v1232_v7  ;;  %v2128_v10 = vpop.f32.mrb[30].mxu0  ;;  %v2234_v12 = vpop.f32.mrb[30].mxu1 }
 0x184   : > { %v2129_v16 = vpop.f32.mrb[31].mxu0  ;;  %v1235_v18 = vpop.f32.mrb[31].mxu1 }
 0x185   : > { %v1241_v11 = vadd.f32 %v2233_v5, %v2127_v8  ;;  %v1323_v13 = vadd.f32 %v1233_v9, %v457_v6  ;;  %v2130_v21 = vadd.f32 %v2129_v16, %v2128_v10  ;;  %v1236_v22 = vadd.f32 %v2124_v63, %v1235_v18  ;;  %v469_v6 = vld [vmem:[#allocation2 + $0xc0] sm:$0xff] }
 0x187   : > { %v1325_v24 = vadd.f32 %v1241_v11, %v459_v15  ;;  %1355 = vst [vmem:[#allocation2 + $0x60] sm:$0xff] %v1323_v13  ;;  %v1244_v25 = vadd.f32 %v2234_v12, %v2130_v21  ;;  %v1324_v27 = vadd.f32 %v1236_v22, %v458_v17  ;;  %v472_v12 = vld [vmem:[#allocation2 + $0xd8] sm:$0xff]  ;;  %v465_v17 = vld [vmem:[#allocation2 + $0xa0] sm:$0xff]  ;;  %v470_v13 = vld [vmem:[#allocation2 + $0xc8] sm:$0xff] }
 0x189   : > { %1357 = vst [vmem:[#allocation2 + $0x70] sm:$0xff] %v1325_v24  ;;  %v1326_v28 = vadd.f32 %v1244_v25, %v460_v23  ;;  %1356 = vst [vmem:[#allocation2 + $0x68] sm:$0xff] %v1324_v27  ;;  %v2131_v29 = vpop.f32.mrb[32].mxu0  ;;  %v2237_v30 = vpop.f32.mrb[32].mxu1  ;;  %v466_v27 = vld [vmem:[#allocation2 + $0xa8] sm:$0xff] }
 0x18a   : > { %v2132_v31 = vpop.f32.mrb[33].mxu0  ;;  %v1248_v19 = vpop.f32.mrb[33].mxu1 }
 0x18b   : > { %1358 = vst [vmem:[#allocation2 + $0x78] sm:$0xff] %v1326_v28  ;;  %v2133_v33 = vadd.f32 %v2132_v31, %v2131_v29  ;;  %v2134_v34 = vpop.f32.mrb[34].mxu0  ;;  %v2238_v35 = vpop.f32.mrb[34].mxu1  ;;  %v475_v31 = vld [vmem:[#allocation2 + $0xf0] sm:$0xff] }
 0x18c   : > { %v2135_v39 = vpop.f32.mrb[35].mxu0  ;;  %v1251_v40 = vpop.f32.mrb[35].mxu1 }
 0x18d   : > { %v1249_v41 = vadd.f32 %v2133_v33, %v1248_v19  ;;  %v2136_v42 = vadd.f32 %v2135_v39, %v2134_v34 }
 0x18f   : > { %v1327_v46 = vadd.f32 %v1249_v41, %v461_v36  ;;  %v1252_v37 = vadd.f32 %v2136_v42, %v1251_v40  ;;  %v476_v41 = vld [vmem:[#allocation2 + $0xf8] sm:$0xff] }
 0x191   : > { %1359 = vst [vmem:[#allocation2 + $0x80] sm:$0xff] %v1327_v46  ;;  %v1328_v47 = vadd.f32 %v1252_v37, %v462_v45  ;;  %v2137_v48 = vpop.f32.mrb[36].mxu0  ;;  %v2734_v49 = vpop.f32.mrb[36].mxu1  ;;  %v467_v46 = vld [vmem:[#allocation2 + $0xb0] sm:$0xff] }
 0x192   : > { %v2138_v51 = vpop.f32.mrb[37].mxu0  ;;  %v1264_v52 = vpop.f32.mrb[37].mxu1 }
 0x193   : > { %1360 = vst [vmem:[#allocation2 + $0x88] sm:$0xff] %v1328_v47  ;;  %v2139_v53 = vadd.f32 %v2138_v51, %v2137_v48  ;;  %v2140_v54 = vpop.f32.mrb[38].mxu0  ;;  %v2736_v55 = vpop.f32.mrb[38].mxu1  ;;  %v474_v48 = vld [vmem:[#allocation2 + $0xe8] sm:$0xff] }
 0x194   : > { %v2141_v58 = vpop.f32.mrb[39].mxu0  ;;  %v1267_v43 = vpop.f32.mrb[39].mxu1 }
 0x195   : > { %v1257_v59 = vadd.f32 %v2237_v30, %v2139_v53  ;;  %v2142_v60 = vadd.f32 %v2141_v58, %v2140_v54  ;;  %v468_v58 = vld [vmem:[#allocation2 + $0xb8] sm:$0xff] }
 0x197   : > { %v1329_v62 = vadd.f32 %v1257_v59, %v463_v57  ;;  %v1260_v63 = vadd.f32 %v2238_v35, %v2142_v60  ;;  %v473_v35 = vld [vmem:[#allocation2 + $0xe0] sm:$0xff]  ;;  %v1380_v60 = vld [vmem:[#allocation2 + $0x8] sm:$0xff] (!%p1901_p11) }
 0x199   : > { %1361 = vst [vmem:[#allocation2 + $0x90] sm:$0xff] %v1329_v62  ;;  %v1330_v1 = vadd.f32 %v1260_v63, %v464_v61  ;;  %v2143_v2 = vpop.f32.mrb[40].mxu0  ;;  %v2245_v4 = vpop.f32.mrb[40].mxu1  ;;  %v1381_v62 = vld [vmem:[#allocation2 + $0x10] sm:$0xff] (!%p1901_p11)  ;;  %v1382_v63 = vld [vmem:[#allocation2 + $0x18] sm:$0xff] (!%p1901_p11) }
 0x19a   : > { %v1289_v5 = vadd.f32 %v2245_v4, %v2722_v26  ;;  %v2144_v0 = vpop.f32.mrb[41].mxu0  ;;  %v1280_v7 = vpop.f32.mrb[41].mxu1  ;;  %v1384_v4 = vld [vmem:[#allocation2 + $0x28] sm:$0xff] (!%p1901_p11) }
 0x19b   : > { %1362 = vst [vmem:[#allocation2 + $0x98] sm:$0xff] %v1330_v1  ;;  %v2145_v8 = vadd.f32 %v2144_v0, %v2143_v2  ;;  %v1281_v9 = vadd.f32 %v2718_v14, %v1280_v7  ;;  %v2146_v10 = vpop.f32.mrb[42].mxu0  ;;  %v2246_v15 = vpop.f32.mrb[42].mxu1  ;;  %v1383_v1 = vld [vmem:[#allocation2 + $0x20] sm:$0xff] (!%p1901_p11)  ;;  %v1385_v0 = vld [vmem:[#allocation2 + $0x30] sm:$0xff] (!%p1901_p11) }
 0x19c   : > { %v1337_v16 = vadd.f32 %v1289_v5, %v471_v3  ;;  %v1292_v18 = vadd.f32 %v2246_v15, %v2724_v32  ;;  %v2147_v11 = vpop.f32.mrb[43].mxu0  ;;  %v1283_v21 = vpop.f32.mrb[43].mxu1  ;;  %v1388_v15 = vld [vmem:[#allocation2 + $0x48] sm:$0xff] (!%p1901_p11) }
 0x19d   : > { %v1265_v22 = vadd.f32 %v2145_v8, %v1264_v52  ;;  %v1335_v23 = vadd.f32 %v1281_v9, %v469_v6  ;;  %v2148_v26 = vadd.f32 %v2147_v11, %v2146_v10  ;;  %v1284_v24 = vadd.f32 %v2720_v20, %v1283_v21  ;;  %v1386_v6 = vld [vmem:[#allocation2 + $0x38] sm:$0xff] (!%p1901_p11) }
 0x19e   : > { %1369 = vst [vmem:[#allocation2 + $0xd0] sm:$0xff] %v1337_v16  ;;  %v1338_v25 = vadd.f32 %v1292_v18, %v472_v12  ;;  %v1387_v12 = vld [vmem:[#allocation2 + $0x40] sm:$0xff] (!%p1901_p11)  ;;  %v1389_v16 = vld [vmem:[#allocation2 + $0x50] sm:$0xff] (!%p1901_p11)  ;;  %v1390_v21 = vld [vmem:[#allocation2 + $0x58] sm:$0xff] (!%p1901_p11) }
 0x19f   : > { %v1331_v28 = vadd.f32 %v1265_v22, %v465_v17  ;;  %1367 = vst [vmem:[#allocation2 + $0xc0] sm:$0xff] %v1335_v23  ;;  %v1268_v14 = vadd.f32 %v2148_v26, %v1267_v43  ;;  %v1336_v29 = vadd.f32 %v1284_v24, %v470_v13  ;;  %v1391_v22 = vld [vmem:[#allocation2 + $0x60] sm:$0xff] (!%p1901_p11) }
 0x1a0   : > { %1370 = vst [vmem:[#allocation2 + $0xd8] sm:$0xff] %v1338_v25 }
 0x1a1   : > { %1363 = vst [vmem:[#allocation2 + $0xa0] sm:$0xff] %v1331_v28  ;;  %v1332_v30 = vadd.f32 %v1268_v14, %v466_v27  ;;  %1368 = vst [vmem:[#allocation2 + $0xc8] sm:$0xff] %v1336_v29  ;;  %v2149_v32 = vpop.f32.mrb[44].mxu0  ;;  %v2249_v19 = vpop.f32.mrb[44].mxu1  ;;  %v1392_v27 = vld [vmem:[#allocation2 + $0x68] sm:$0xff] (!%p1901_p11) }
 0x1a2   : > { %v1305_v33 = vadd.f32 %v2249_v19, %v2730_v50  ;;  %v2150_v34 = vpop.f32.mrb[45].mxu0  ;;  %v1296_v36 = vpop.f32.mrb[45].mxu1 }
 0x1a3   : > { %1364 = vst [vmem:[#allocation2 + $0xa8] sm:$0xff] %v1332_v30  ;;  %v2151_v20 = vadd.f32 %v2150_v34, %v2149_v32  ;;  %v1297_v39 = vadd.f32 %v2726_v38, %v1296_v36  ;;  %v2152_v40 = vpop.f32.mrb[46].mxu0  ;;  %v2250_v42 = vpop.f32.mrb[46].mxu1  ;;  %v1393_v32 = vld [vmem:[#allocation2 + $0x70] sm:$0xff] (!%p1901_p11)  ;;  %v1395_v36 = vld [vmem:[#allocation2 + $0x80] sm:$0xff] (!%p1901_p11) }
 0x1a4   : > { %v1341_v45 = vadd.f32 %v1305_v33, %v475_v31  ;;  %v1308_v37 = vadd.f32 %v2250_v42, %v2732_v56  ;;  %v2153_v47 = vpop.f32.mrb[47].mxu0  ;;  %v1299_v51 = vpop.f32.mrb[47].mxu1  ;;  %v1394_v31 = vld [vmem:[#allocation2 + $0x78] sm:$0xff] (!%p1901_p11) }
 0x1a5   : > { %v1273_v52 = vadd.f32 %v2734_v49, %v2151_v20  ;;  %v1339_v50 = vadd.f32 %v1297_v39, %v473_v35  ;;  %v2154_v53 = vadd.f32 %v2153_v47, %v2152_v40  ;;  %v1300_v54 = vadd.f32 %v2728_v44, %v1299_v51  ;;  %1378 = sbr.rel (%p1901_p11) target bundleno = 448 (0x1c0), region = 66  ;;  %v1379_v49 = vld [vmem:[#allocation2] sm:$0xff] (!%p1901_p11)  ;;  %v1396_v20 = vld [vmem:[#allocation2 + $0x88] sm:$0xff] (!%p1901_p11)  ;;  %v1398_v51 = vld [vmem:[#allocation2 + $0x98] sm:$0xff] (!%p1901_p11) }
 0x1a6   : > { %1373 = vst [vmem:[#allocation2 + $0xf0] sm:$0xff] %v1341_v45  ;;  %v1342_v57 = vadd.f32 %v1308_v37, %v476_v41  ;;  %v2752_v44 = vld [vmem:[%s2851_s2] ss:$0 sm:$0xff] (!%p1901_p11)  ;;  %v1397_v45 = vld [vmem:[#allocation2 + $0x90] sm:$0xff] (!%p1901_p11) }
 0x1a7   : > { %v1333_v38 = vadd.f32 %v1273_v52, %v467_v46  ;;  %1371 = vst [vmem:[#allocation2 + $0xe0] sm:$0xff] %v1339_v50  ;;  %v1276_v43 = vadd.f32 %v2736_v55, %v2154_v53  ;;  %v1340_v59 = vadd.f32 %v1300_v54, %v474_v48  ;;  %v1418_v61 = vadd.f32 (!%p1901_p11), %v2752_v44, %v1379_v49 }
 0x1a8   : > { %1374 = vst [vmem:[#allocation2 + $0xf8] sm:$0xff] %v1342_v57  ;;  %v1419_v55 = vadd.f32 (!%p1901_p11), %v2752_v44, %v1380_v60  ;;  %v1420_v2 = vadd.f32 (!%p1901_p11), %v2752_v44, %v1381_v62  ;;  %v1421_v3 = vadd.f32 (!%p1901_p11), %v2752_v44, %v1382_v63  ;;  %v1422_v5 = vadd.f32 (!%p1901_p11), %v2752_v44, %v1383_v1  ;;  %v1399_v57 = vld [vmem:[#allocation2 + $0xa0] sm:$0xff] (!%p1901_p11) }
 0x1a9   : > { %1365 = vst [vmem:[#allocation2 + $0xb0] sm:$0xff] %v1333_v38  ;;  %v1334_v56 = vadd.f32 %v1276_v43, %v468_v58  ;;  %1372 = vst [vmem:[#allocation2 + $0xe8] sm:$0xff] %v1340_v59  ;;  %v1450_v7 = vmax.f32 (!%p1901_p11), %v1418_v61, 0.0  ;;  %v1423_v9 = vadd.f32 (!%p1901_p11), %v2752_v44, %v1384_v4  ;;  %v1424_v10 = vadd.f32 (!%p1901_p11), %v2752_v44, %v1385_v0  ;;  %v1403_v1 = vld [vmem:[#allocation2 + $0xc0] sm:$0xff] (!%p1901_p11) }
 0x1aa   : > { %v1451_v8 = vmax.f32 (!%p1901_p11), %v1419_v55, 0.0  ;;  %v1452_v17 = vmax.f32 (!%p1901_p11), %v1420_v2, 0.0  ;;  %v1453_v18 = vmax.f32 (!%p1901_p11), %v1421_v3, 0.0  ;;  %v1454_v11 = vmax.f32 (!%p1901_p11), %v1422_v5, 0.0  ;;  %v1400_v58 = vld [vmem:[#allocation2 + $0xa8] sm:$0xff] (!%p1901_p11) }
 0x1ab   : > { %1366 = vst [vmem:[#allocation2 + $0xb8] sm:$0xff] %v1334_v56  ;;  %v1425_v13 = vadd.f32 (!%p1901_p11), %v2752_v44, %v1386_v6  ;;  %v1455_v26 = vmax.f32 (!%p1901_p11), %v1423_v9, 0.0  ;;  %v1456_v24 = vmax.f32 (!%p1901_p11), %v1424_v10, 0.0  ;;  %v1426_v25 = vadd.f32 (!%p1901_p11), %v2752_v44, %v1387_v12  ;;  %v1404_v2 = vld [vmem:[#allocation2 + $0xc8] sm:$0xff] (!%p1901_p11)  ;;  %v1405_v6 = vld [vmem:[#allocation2 + $0xd0] sm:$0xff] (!%p1901_p11)  ;;  %v1406_v12 = vld [vmem:[#allocation2 + $0xd8] sm:$0xff] (!%p1901_p11) }
 0x1ac   : > { %v1975_v23 = vpack.c.bf16 %v1451_v8, %v1450_v7  ;;  %v1980_v28 = vpack.c.bf16 %v1453_v18, %v1452_v17  ;;  %v1427_v29 = vadd.f32 %v2752_v44, %v1388_v15  ;;  %v1428_v30 = vadd.f32 %v2752_v44, %v1389_v16 }
 0x1ad   : > { %v1457_v14 = vmax.f32 %v1425_v13, 0.0  ;;  %v1985_v19 = vpack.c.bf16 %v1455_v26, %v1454_v11  ;;  %v1458_v33 = vmax.f32 %v1426_v25, 0.0  ;;  %v1429_v34 = vadd.f32 %v2752_v44, %v1390_v21 }
 0x1ae   : > { %1976 = vst [vmem:[%s2852_s3] sm:$0xff] %v1975_v23   ;;  %v1430_v35 = vadd.f32 %v2752_v44, %v1391_v22  ;;  %2052 = vst [vmem:[%s2852_s3 + $0x8] sm:$0xff] %v1980_v28   ;;  %v1459_v40 = vmax.f32 %v1427_v29, 0.0  ;;  %v1460_v41 = vmax.f32 %v1428_v30, 0.0  ;;  %v1431_v42 = vadd.f32 %v2752_v44, %v1392_v27  ;;  %v1407_v11 = vld [vmem:[#allocation2 + $0xe0] sm:$0xff] }
 0x1af   : > { %v1990_v39 = vpack.c.bf16 %v1457_v14, %v1456_v24  ;;  %2053 = vst [vmem:[%s2852_s3 + $0x10] sm:$0xff] %v1985_v19   ;;  %v1461_v46 = vmax.f32 %v1429_v34, 0.0  ;;  %v1432_v47 = vadd.f32 %v2752_v44, %v1393_v32  ;;  %v1433_v48 = vadd.f32 %v2752_v44, %v1394_v31  ;;  %v1409_v24 = vld [vmem:[#allocation2 + $0xf0] sm:$0xff]  ;;  %v1410_v25 = vld [vmem:[#allocation2 + $0xf8] sm:$0xff] }
 0x1b0   : > { %v1462_v37 = vmax.f32 %v1430_v35, 0.0  ;;  %v1995_v52 = vpack.c.bf16 %v1459_v40, %v1458_v33  ;;  %v1463_v50 = vmax.f32 %v1431_v42, 0.0  ;;  %v1434_v53 = vadd.f32 %v2752_v44, %v1395_v36  ;;  %v1401_v49 = vld [vmem:[#allocation2 + $0xb0] sm:$0xff]  ;;  %v1408_v13 = vld [vmem:[#allocation2 + $0xe8] sm:$0xff] }
 0x1b1   : > { %2054 = vst [vmem:[%s2852_s3 + $0x18] sm:$0xff] %v1990_v39   ;;  %v1435_v54 = vadd.f32 %v2752_v44, %v1396_v20  ;;  %v2000_v38 = vpack.c.bf16 %v1461_v46, %v1460_v41  ;;  %v1464_v43 = vmax.f32 %v1432_v47, 0.0  ;;  %v1465_v59 = vmax.f32 %v1433_v48, 0.0 }
 0x1b2   : > { %v1436_v56 = vadd.f32 %v2752_v44, %v1397_v45  ;;  %v1402_v60 = vld [vmem:[#allocation2 + $0xb8] sm:$0xff]  ;;  %2055 = vst [vmem:[%s2852_s3 + $0x20] sm:$0xff] %v1995_v52   ;;  %v2005_v61 = vpack.c.bf16 %v1463_v50, %v1462_v37  ;;  %v1466_v55 = vmax.f32 %v1434_v53, 0.0  ;;  %v1437_v63 = vadd.f32 %v2752_v44, %v1398_v51 }
 0x1b3   : > { %v1467_v62 = vmax.f32 %v1435_v54, 0.0  ;;  %2056 = vst [vmem:[%s2852_s3 + $0x28] sm:$0xff] %v2000_v38   ;;  %v2010_v3 = vpack.c.bf16 %v1465_v59, %v1464_v43  ;;  %v1438_v5 = vadd.f32 %v2752_v44, %v1399_v57  ;;  %v1439_v0 = vadd.f32 %v2752_v44, %v1400_v58 }
 0x1b4   : > { %v1468_v4 = vmax.f32 %v1436_v56, 0.0  ;;  %2057 = vst [vmem:[%s2852_s3 + $0x30] sm:$0xff] %v2005_v61   ;;  %v1469_v8 = vmax.f32 %v1437_v63, 0.0  ;;  %v1440_v9 = vadd.f32 %v2752_v44, %v1401_v49  ;;  %v1441_v10 = vadd.f32 %v2752_v44, %v1402_v60 }
 0x1b5   : > { %v2015_v7 = vpack.c.bf16 %v1467_v62, %v1466_v55  ;;  %2058 = vst [vmem:[%s2852_s3 + $0x38] sm:$0xff] %v2010_v3   ;;  %v1470_v15 = vmax.f32 %v1438_v5, 0.0  ;;  %v1471_v16 = vmax.f32 %v1439_v0, 0.0  ;;  %v1442_v17 = vadd.f32 %v2752_v44, %v1403_v1 }
 0x1b6   : > { %v1443_v18 = vadd.f32 %v2752_v44, %v1404_v2  ;;  %v2020_v21 = vpack.c.bf16 %v1469_v8, %v1468_v4  ;;  %v1472_v22 = vmax.f32 %v1440_v9, 0.0  ;;  %v1473_v23 = vmax.f32 %v1441_v10, 0.0 }
 0x1b7   : > { %2059 = vst [vmem:[%s2852_s3 + $0x40] sm:$0xff] %v2015_v7   ;;  %v1444_v26 = vadd.f32 %v2752_v44, %v1405_v6  ;;  %v2025_v27 = vpack.c.bf16 %v1471_v16, %v1470_v15  ;;  %v1474_v28 = vmax.f32 %v1442_v17, 0.0  ;;  %v1445_v29 = vadd.f32 %v2752_v44, %v1406_v12 }
 0x1b8   : > { %v1475_v14 = vmax.f32 %v1443_v18, 0.0  ;;  %2060 = vst [vmem:[%s2852_s3 + $0x48] sm:$0xff] %v2020_v21   ;;  %v2030_v30 = vpack.c.bf16 %v1473_v23, %v1472_v22  ;;  %v1446_v31 = vadd.f32 %v2752_v44, %v1407_v11  ;;  %v1447_v19 = vadd.f32 %v2752_v44, %v1408_v13 }
 0x1b9   : > { %v1476_v32 = vmax.f32 %v1444_v26, 0.0  ;;  %2061 = vst [vmem:[%s2852_s3 + $0x50] sm:$0xff] %v2025_v27   ;;  %v1477_v34 = vmax.f32 %v1445_v29, 0.0  ;;  %v1448_v35 = vadd.f32 %v2752_v44, %v1409_v24  ;;  %v1449_v36 = vadd.f32 %v2752_v44, %v1410_v25 }
 0x1ba   : > { %v2035_v33 = vpack.c.bf16 %v1475_v14, %v1474_v28  ;;  %2062 = vst [vmem:[%s2852_s3 + $0x58] sm:$0xff] %v2030_v30   ;;  %v1478_v20 = vmax.f32 %v1446_v31, 0.0  ;;  %v1479_v39 = vmax.f32 %v1447_v19, 0.0 }
 0x1bb   : > { %v2040_v40 = vpack.c.bf16 %v1477_v34, %v1476_v32  ;;  %v1480_v41 = vmax.f32 %v1448_v35, 0.0  ;;  %v1481_v42 = vmax.f32 %v1449_v36, 0.0 }
 0x1bc   : > { %2063 = vst [vmem:[%s2852_s3 + $0x60] sm:$0xff] %v2035_v33   ;;  %v2045_v45 = vpack.c.bf16 %v1479_v39, %v1478_v20 }
 0x1bd   : > { %2064 = vst [vmem:[%s2852_s3 + $0x68] sm:$0xff] %v2040_v40   ;;  %v2050_v46 = vpack.c.bf16 %v1481_v42, %v1480_v41 }
 0x1be   : > { %2065 = vst [vmem:[%s2852_s3 + $0x70] sm:$0xff] %v2045_v45  }
 0x1bf   : > { %2066 = vst [vmem:[%s2852_s3 + $0x78] sm:$0xff] %v2050_v46  }
 0x1c0 PF: > { %s13_s16 = sadd.s32 1, %s2436_s16   ;;  %s2853_s12 = smov %s2424_s13 }
 0x1c1   : > { %p10_p12 = scmp.ge.s32.totalorder %s13_s16, 5   ;;  %s2854_s13 = smov %s2494_s20 }
 0x1c2   : > { %s2855_s14 = smov %s2432_s15  ;;  %s2856_s15 = smov %s2858_s17 }
 0x1c3   :  { %12 = sbr.rel (!%p10_p12) target bundleno = 3 (0x3), region = 113 }

// kernel: modified_res18_forward.23
= control target key start
LH: loop header
LB: loop body
LE: loop exit
PB: predicated region body
PF: predicated region fallthrough
CT: control target
= control target key end

     0   :  { %s2718_s15 = smov 0   ;;  %s2720_s16 = smov 0   ;;  %s3156_s0 = inlined_call_operand.vmem [shape: bf16[256,1152], index: 0, kind: input, shape index: {}]   ;;  %s3157_s1 = inlined_call_operand.vmem [shape: bf16[1152,128], index: 1, kind: input, shape index: {}]   ;;  %s3158_s2 = inlined_call_operand.vmem [shape: f32[1,128], index: 2, kind: input, shape index: {}]   ;;  %s3159_s3 = inlined_call_operand.vmem [shape: bf16[256,128], index: 3, kind: input, shape index: {}]   ;;  %s3160_s4 = inlined_call_operand.vmem [shape: bf16[256,128], index: 4, kind: output, shape index: {}]  }
   0x1   :  { %s2722_s17 = smov 0   ;;  %s2724_s18 = smov 0  }
   0x2   :  { %s2726_s19 = smov 0  }
   0x3 LB: > { %s26_s20 = sadd.s32 1, %s2686_s18  ;;  %p49_p1 = scmp.ne.s32.totalorder %s2678_s16, %s2674_s15  ;;  %s2690_s19 = sphi %s2726_s19, %s14_s19   ;;  %s2686_s18 = sphi %s2724_s18, %s3164_s18   ;;  %s2682_s17 = sphi %s2722_s17, %s3163_s17   ;;  %s2678_s16 = sphi %s2720_s16, %s3162_s16   ;;  %s2674_s15 = sphi %s2718_s15, %s3161_s15  }
   0x4   : > { %p27_p0 = scmp.ge.s32.totalorder %s26_s20, 3  ;;  %p50_p2 = scmp.eq.s32.totalorder %s2690_s19, 0 }
   0x5   : > { %s42_s22 = sadd.s32 1, %s2678_s16  ;;  %p1935_p5 = scmp.ge.s32.totalorder %s2690_s19, 3 }
   0x6   : > { %s3166_s20 = smov (%p27_p0, %s26_s20), 0  ;;  %p51_p3 = por %p50_p2, %p49_p1 }
   0x7   : > { %s38_s21 = ssub.s32 %s2686_s18, %s3166_s20  ;;  %203 = sbr.rel (%p1935_p5) target bundleno = 56 (0x38), region = 24 }
   0x8   : > { %p40_p4 = scmp.eq.s32.totalorder %s38_s21, 0 }
   0xa   : > { %s2753_s23 = scalar_select %p40_p4, %s2678_s16, %s42_s22  }
   0xe   : > { %206 = sbr.rel (!%p51_p3) target bundleno = 56 (0x38), region = 28  ;;  %s208_s24 = sand.u32 (%p51_p3), 1, %s2678_s16  }
   0xf   : > { %s2114_s25 = smul.u32 (%p51_p3), 12, %s2686_s18 }
  0x10   : > { %s2521_s26 = smul.u32 (%p51_p3), 384, %s208_s24 }
  0x11   : > { %s2761_s29 = scalar_lea.vmem (%p51_p3), %s3156_s0, %s2114_s25 }
  0x12   : > { %v231_v0 = vld [vmem:[%s2761_s29] sm:$0xff] (%p51_p3)  ;;  %v235_v2 = vld [vmem:[%s2761_s29 + $0x48] sm:$0xff] (%p51_p3)  ;;  %s2766_s30 = scalar_lea.vmem (%p51_p3), [#allocation3], %s2521_s26  ;;  %v239_v4 = vld [vmem:[%s2761_s29 + $0x90] sm:$0xff] (%p51_p3) }
  0x13   : > { %v233_v1 = vld [vmem:[%s2761_s29 + $0x24] sm:$0xff] (%p51_p3)  ;;  %232 = vst [vmem:[%s2766_s30] sm:$0xff] (%p51_p3), %v231_v0  ;;  %236 = vst [vmem:[%s2766_s30 + $0x18] sm:$0xff] (%p51_p3), %v235_v2  ;;  %v237_v3 = vld [vmem:[%s2761_s29 + $0x6c] sm:$0xff] (%p51_p3) }
  0x14   : > { %234 = vst [vmem:[%s2766_s30 + $0xc] sm:$0xff] (%p51_p3), %v233_v1  ;;  %v241_v5 = vld [vmem:[%s2761_s29 + $0xb4] sm:$0xff] (%p51_p3)  ;;  %238 = vst [vmem:[%s2766_s30 + $0x24] sm:$0xff] (%p51_p3), %v237_v3  ;;  %v245_v7 = vld [vmem:[%s2761_s29 + $0xfc] sm:$0xff] (%p51_p3) }
  0x15   : > { %240 = vst [vmem:[%s2766_s30 + $0x30] sm:$0xff] %v239_v4  ;;  %242 = vst [vmem:[%s2766_s30 + $0x3c] sm:$0xff] %v241_v5  ;;  %v243_v6 = vld [vmem:[%s2761_s29 + $0xd8] sm:$0xff]  ;;  %v247_v8 = vld [vmem:[%s2761_s29 + $0x120] sm:$0xff] }
  0x16   : > { %244 = vst [vmem:[%s2766_s30 + $0x48] sm:$0xff] %v243_v6  ;;  %246 = vst [vmem:[%s2766_s30 + $0x54] sm:$0xff] %v245_v7  ;;  %v249_v9 = vld [vmem:[%s2761_s29 + $0x144] sm:$0xff]  ;;  %v253_v11 = vld [vmem:[%s2761_s29 + $0x18c] sm:$0xff] }
  0x17   : > { %248 = vst [vmem:[%s2766_s30 + $0x60] sm:$0xff] %v247_v8  ;;  %v251_v10 = vld [vmem:[%s2761_s29 + $0x168] sm:$0xff]  ;;  %250 = vst [vmem:[%s2766_s30 + $0x6c] sm:$0xff] %v249_v9  ;;  %v255_v12 = vld [vmem:[%s2761_s29 + $0x1b0] sm:$0xff] }
  0x18   : > { %252 = vst [vmem:[%s2766_s30 + $0x78] sm:$0xff] %v251_v10  ;;  %254 = vst [vmem:[%s2766_s30 + $0x84] sm:$0xff] %v253_v11  ;;  %v257_v13 = vld [vmem:[%s2761_s29 + $0x1d4] sm:$0xff]  ;;  %v261_v15 = vld [vmem:[%s2761_s29 + $0x21c] sm:$0xff] }
  0x19   : > { %v259_v14 = vld [vmem:[%s2761_s29 + $0x1f8] sm:$0xff]  ;;  %256 = vst [vmem:[%s2766_s30 + $0x90] sm:$0xff] %v255_v12  ;;  %258 = vst [vmem:[%s2766_s30 + $0x9c] sm:$0xff] %v257_v13  ;;  %v263_v16 = vld [vmem:[%s2761_s29 + $0x240] sm:$0xff] }
  0x1a   : > { %260 = vst [vmem:[%s2766_s30 + $0xa8] sm:$0xff] %v259_v14  ;;  %v265_v17 = vld [vmem:[%s2761_s29 + $0x264] sm:$0xff]  ;;  %262 = vst [vmem:[%s2766_s30 + $0xb4] sm:$0xff] %v261_v15  ;;  %v269_v19 = vld [vmem:[%s2761_s29 + $0x2ac] sm:$0xff] }
  0x1b   : > { %264 = vst [vmem:[%s2766_s30 + $0xc0] sm:$0xff] %v263_v16  ;;  %266 = vst [vmem:[%s2766_s30 + $0xcc] sm:$0xff] %v265_v17  ;;  %v267_v18 = vld [vmem:[%s2761_s29 + $0x288] sm:$0xff]  ;;  %v271_v20 = vld [vmem:[%s2761_s29 + $0x2d0] sm:$0xff] }
  0x1c   : > { %268 = vst [vmem:[%s2766_s30 + $0xd8] sm:$0xff] %v267_v18  ;;  %270 = vst [vmem:[%s2766_s30 + $0xe4] sm:$0xff] %v269_v19  ;;  %v273_v21 = vld [vmem:[%s2761_s29 + $0x2f4] sm:$0xff]  ;;  %v277_v23 = vld [vmem:[%s2761_s29 + $0x33c] sm:$0xff] }
  0x1d   : > { %272 = vst [vmem:[%s2766_s30 + $0xf0] sm:$0xff] %v271_v20  ;;  %v275_v22 = vld [vmem:[%s2761_s29 + $0x318] sm:$0xff]  ;;  %274 = vst [vmem:[%s2766_s30 + $0xfc] sm:$0xff] %v273_v21  ;;  %v279_v24 = vld [vmem:[%s2761_s29 + $0x360] sm:$0xff] }
  0x1e   : > { %276 = vst [vmem:[%s2766_s30 + $0x108] sm:$0xff] %v275_v22  ;;  %278 = vst [vmem:[%s2766_s30 + $0x114] sm:$0xff] %v277_v23  ;;  %v281_v25 = vld [vmem:[%s2761_s29 + $0x384] sm:$0xff]  ;;  %v285_v27 = vld [vmem:[%s2761_s29 + $0x3cc] sm:$0xff] }
  0x1f   : > { %v283_v26 = vld [vmem:[%s2761_s29 + $0x3a8] sm:$0xff]  ;;  %280 = vst [vmem:[%s2766_s30 + $0x120] sm:$0xff] %v279_v24  ;;  %282 = vst [vmem:[%s2766_s30 + $0x12c] sm:$0xff] %v281_v25  ;;  %v287_v28 = vld [vmem:[%s2761_s29 + $0x3f0] sm:$0xff] }
  0x20   : > { %284 = vst [vmem:[%s2766_s30 + $0x138] sm:$0xff] %v283_v26  ;;  %v289_v29 = vld [vmem:[%s2761_s29 + $0x414] sm:$0xff]  ;;  %286 = vst [vmem:[%s2766_s30 + $0x144] sm:$0xff] %v285_v27  ;;  %v293_v31 = vld [vmem:[%s2761_s29 + $0x45c] sm:$0xff] }
  0x21   : > { %288 = vst [vmem:[%s2766_s30 + $0x150] sm:$0xff] %v287_v28  ;;  %290 = vst [vmem:[%s2766_s30 + $0x15c] sm:$0xff] %v289_v29  ;;  %v291_v30 = vld [vmem:[%s2761_s29 + $0x438] sm:$0xff]  ;;  %v1937_v32 = vld [vmem:[%s2761_s29 + $0x8] sm:$0xf] }
  0x22   : > { %292 = vst [vmem:[%s2766_s30 + $0x168] sm:$0xff] %v291_v30  ;;  %294 = vst [vmem:[%s2766_s30 + $0x174] sm:$0xff] %v293_v31  ;;  %v1939_v33 = vld [vmem:[%s2761_s29 + $0x2c] sm:$0xf]  ;;  %v1941_v34 = vld [vmem:[%s2761_s29 + $0x50] sm:$0xf] }
  0x23   : > { %1938 = vst [vmem:[%s2766_s30 + $0x8] sm:$0xf] %v1937_v32  ;;  %v1943_v35 = vld [vmem:[%s2761_s29 + $0x74] sm:$0xf]  ;;  %1940 = vst [vmem:[%s2766_s30 + $0x14] sm:$0xf] %v1939_v33 }
  0x24   : > { %1942 = vst [vmem:[%s2766_s30 + $0x20] sm:$0xf] %v1941_v34  ;;  %1944 = vst [vmem:[%s2766_s30 + $0x2c] sm:$0xf] %v1943_v35  ;;  %v1945_v36 = vld [vmem:[%s2761_s29 + $0x98] sm:$0xf] }
  0x25   : > { %v1947_v37 = vld [vmem:[%s2761_s29 + $0xbc] sm:$0xf]  ;;  %v1949_v38 = vld [vmem:[%s2761_s29 + $0xe0] sm:$0xf]  ;;  %1946 = vst [vmem:[%s2766_s30 + $0x38] sm:$0xf] %v1945_v36 }
  0x26   : > { %1948 = vst [vmem:[%s2766_s30 + $0x44] sm:$0xf] %v1947_v37  ;;  %1950 = vst [vmem:[%s2766_s30 + $0x50] sm:$0xf] %v1949_v38  ;;  %v1951_v39 = vld [vmem:[%s2761_s29 + $0x104] sm:$0xf] }
  0x27   : > { %v1953_v40 = vld [vmem:[%s2761_s29 + $0x128] sm:$0xf]  ;;  %v1955_v41 = vld [vmem:[%s2761_s29 + $0x14c] sm:$0xf]  ;;  %1952 = vst [vmem:[%s2766_s30 + $0x5c] sm:$0xf] %v1951_v39 }
  0x28   : > { %1954 = vst [vmem:[%s2766_s30 + $0x68] sm:$0xf] %v1953_v40  ;;  %1956 = vst [vmem:[%s2766_s30 + $0x74] sm:$0xf] %v1955_v41  ;;  %v1957_v42 = vld [vmem:[%s2761_s29 + $0x170] sm:$0xf] }
  0x29   : > { %v1959_v43 = vld [vmem:[%s2761_s29 + $0x194] sm:$0xf]  ;;  %v1961_v44 = vld [vmem:[%s2761_s29 + $0x1b8] sm:$0xf]  ;;  %1958 = vst [vmem:[%s2766_s30 + $0x80] sm:$0xf] %v1957_v42 }
  0x2a   : > { %1960 = vst [vmem:[%s2766_s30 + $0x8c] sm:$0xf] %v1959_v43  ;;  %1962 = vst [vmem:[%s2766_s30 + $0x98] sm:$0xf] %v1961_v44  ;;  %v1963_v45 = vld [vmem:[%s2761_s29 + $0x1dc] sm:$0xf] }
  0x2b   : > { %v1965_v46 = vld [vmem:[%s2761_s29 + $0x200] sm:$0xf]  ;;  %v1967_v47 = vld [vmem:[%s2761_s29 + $0x224] sm:$0xf]  ;;  %1964 = vst [vmem:[%s2766_s30 + $0xa4] sm:$0xf] %v1963_v45 }
  0x2c   : > { %1966 = vst [vmem:[%s2766_s30 + $0xb0] sm:$0xf] %v1965_v46  ;;  %1968 = vst [vmem:[%s2766_s30 + $0xbc] sm:$0xf] %v1967_v47  ;;  %v1969_v48 = vld [vmem:[%s2761_s29 + $0x248] sm:$0xf] }
  0x2d   : > { %v1971_v49 = vld [vmem:[%s2761_s29 + $0x26c] sm:$0xf]  ;;  %v1973_v50 = vld [vmem:[%s2761_s29 + $0x290] sm:$0xf]  ;;  %1970 = vst [vmem:[%s2766_s30 + $0xc8] sm:$0xf] %v1969_v48 }
  0x2e   : > { %1972 = vst [vmem:[%s2766_s30 + $0xd4] sm:$0xf] %v1971_v49  ;;  %1974 = vst [vmem:[%s2766_s30 + $0xe0] sm:$0xf] %v1973_v50  ;;  %v1975_v51 = vld [vmem:[%s2761_s29 + $0x2b4] sm:$0xf] }
  0x2f   : > { %v1977_v52 = vld [vmem:[%s2761_s29 + $0x2d8] sm:$0xf]  ;;  %v1979_v53 = vld [vmem:[%s2761_s29 + $0x2fc] sm:$0xf]  ;;  %1976 = vst [vmem:[%s2766_s30 + $0xec] sm:$0xf] %v1975_v51 }
  0x30   : > { %1978 = vst [vmem:[%s2766_s30 + $0xf8] sm:$0xf] %v1977_v52  ;;  %1980 = vst [vmem:[%s2766_s30 + $0x104] sm:$0xf] %v1979_v53  ;;  %v1981_v54 = vld [vmem:[%s2761_s29 + $0x320] sm:$0xf] }
  0x31   : > { %v1983_v55 = vld [vmem:[%s2761_s29 + $0x344] sm:$0xf]  ;;  %v1985_v56 = vld [vmem:[%s2761_s29 + $0x368] sm:$0xf]  ;;  %1982 = vst [vmem:[%s2766_s30 + $0x110] sm:$0xf] %v1981_v54 }
  0x32   : > { %1984 = vst [vmem:[%s2766_s30 + $0x11c] sm:$0xf] %v1983_v55  ;;  %1986 = vst [vmem:[%s2766_s30 + $0x128] sm:$0xf] %v1985_v56  ;;  %v1987_v57 = vld [vmem:[%s2761_s29 + $0x38c] sm:$0xf] }
  0x33   : > { %v1989_v58 = vld [vmem:[%s2761_s29 + $0x3b0] sm:$0xf]  ;;  %v1991_v59 = vld [vmem:[%s2761_s29 + $0x3d4] sm:$0xf]  ;;  %1988 = vst [vmem:[%s2766_s30 + $0x134] sm:$0xf] %v1987_v57 }
  0x34   : > { %1990 = vst [vmem:[%s2766_s30 + $0x140] sm:$0xf] %v1989_v58  ;;  %1992 = vst [vmem:[%s2766_s30 + $0x14c] sm:$0xf] %v1991_v59  ;;  %v1993_v60 = vld [vmem:[%s2761_s29 + $0x3f8] sm:$0xf] }
  0x35   : > { %v1995_v61 = vld [vmem:[%s2761_s29 + $0x41c] sm:$0xf]  ;;  %v1997_v62 = vld [vmem:[%s2761_s29 + $0x440] sm:$0xf]  ;;  %1994 = vst [vmem:[%s2766_s30 + $0x158] sm:$0xf] %v1993_v60 }
  0x36   : > { %1996 = vst [vmem:[%s2766_s30 + $0x164] sm:$0xf] %v1995_v61  ;;  %1998 = vst [vmem:[%s2766_s30 + $0x170] sm:$0xf] %v1997_v62  ;;  %v1999_v63 = vld [vmem:[%s2761_s29 + $0x464] sm:$0xf] }
  0x37   : > { %2000 = vst [vmem:[%s2766_s30 + $0x17c] sm:$0xf] %v1999_v63 }
  0x38 PF: > { %p2001_p6 = scmp.ge.s32.totalorder %s2690_s19, 1  ;;  %p382_p7 = scmp.lt.s32.totalorder %s2690_s19, 4 }
  0x3a   : > { %p383_p8 = pnand %p2001_p6, %p382_p7 }
  0x3b   : > { %s389_s5 = sand.u32 (!%p383_p8), 1, %s2674_s15   ;;  %s438_s6 = smul.u32 (!%p383_p8), 48, %s2682_s17 }
  0x3c   : > { %386 = sbr.rel (%p383_p8) target bundleno = 464 (0x1d0), region = 58  ;;  %p2003_p10 = scmp.ne.s32.totalorder (!%p383_p8), %s2682_s17, 0 }
  0x3d   : > { %s2522_s7 = smul.u32 (!%p383_p8), 384, %s389_s5  ;;  %p439_p9 = scmp.lt.s32.totalorder (!%p383_p8), %s438_s6, 143 }
  0x3f   : > { %s2902_s12 = scalar_lea.vmem (!%p383_p8), [#allocation3], %s2522_s7 }
  0x43   : > { %s3168_s6 = smov (!%p439_p9, %s438_s6), 143  ;;  %472 = sbr.rel (%p2003_p10) target bundleno = 85 (0x55), region = 66 }
  0x44   : > { %s2002_s8 = sshll.u32 %s3168_s6, 2  ;;  %v2692_v0 = vmov (!%p2003_p10), 0.0  }
  0x45   : > { %s2900_s11 = scalar_lea.vmem %s3157_s1, %s2002_s8  ;;  %473 = vst [vmem:[#allocation2] sm:$0xff] (!%p2003_p10), %v2692_v0  ;;  %474 = vst [vmem:[#allocation2 + $0x8] sm:$0xff] (!%p2003_p10), %v2692_v0 }
  0x46   : > { %475 = vst [vmem:[#allocation2 + $0x10] sm:$0xff] (!%p2003_p10), %v2692_v0  ;;  %476 = vst [vmem:[#allocation2 + $0x18] sm:$0xff] (!%p2003_p10), %v2692_v0 }
  0x47   : > { %477 = vst [vmem:[#allocation2 + $0x20] sm:$0xff] (!%p2003_p10), %v2692_v0  ;;  %478 = vst [vmem:[#allocation2 + $0x28] sm:$0xff] (!%p2003_p10), %v2692_v0 }
  0x48   : > { %479 = vst [vmem:[#allocation2 + $0x30] sm:$0xff] (!%p2003_p10), %v2692_v0  ;;  %480 = vst [vmem:[#allocation2 + $0x38] sm:$0xff] (!%p2003_p10), %v2692_v0 }
  0x49   : > { %481 = vst [vmem:[#allocation2 + $0x40] sm:$0xff] (!%p2003_p10), %v2692_v0  ;;  %482 = vst [vmem:[#allocation2 + $0x48] sm:$0xff] (!%p2003_p10), %v2692_v0 }
  0x4a   : > { %483 = vst [vmem:[#allocation2 + $0x50] sm:$0xff] %v2692_v0  ;;  %484 = vst [vmem:[#allocation2 + $0x58] sm:$0xff] %v2692_v0 }
  0x4b   : > { %485 = vst [vmem:[#allocation2 + $0x60] sm:$0xff] %v2692_v0  ;;  %486 = vst [vmem:[#allocation2 + $0x68] sm:$0xff] %v2692_v0 }
  0x4c   : > { %487 = vst [vmem:[#allocation2 + $0x70] sm:$0xff] %v2692_v0  ;;  %488 = vst [vmem:[#allocation2 + $0x78] sm:$0xff] %v2692_v0 }
  0x4d   : > { %489 = vst [vmem:[#allocation2 + $0x80] sm:$0xff] %v2692_v0  ;;  %490 = vst [vmem:[#allocation2 + $0x88] sm:$0xff] %v2692_v0 }
  0x4e   : > { %491 = vst [vmem:[#allocation2 + $0x90] sm:$0xff] %v2692_v0  ;;  %492 = vst [vmem:[#allocation2 + $0x98] sm:$0xff] %v2692_v0 }
  0x4f   : > { %493 = vst [vmem:[#allocation2 + $0xa0] sm:$0xff] %v2692_v0  ;;  %494 = vst [vmem:[#allocation2 + $0xa8] sm:$0xff] %v2692_v0 }
  0x50   : > { %495 = vst [vmem:[#allocation2 + $0xb0] sm:$0xff] %v2692_v0  ;;  %496 = vst [vmem:[#allocation2 + $0xb8] sm:$0xff] %v2692_v0 }
  0x51   : > { %497 = vst [vmem:[#allocation2 + $0xc0] sm:$0xff] %v2692_v0  ;;  %498 = vst [vmem:[#allocation2 + $0xc8] sm:$0xff] %v2692_v0 }
  0x52   : > { %499 = vst [vmem:[#allocation2 + $0xd0] sm:$0xff] %v2692_v0  ;;  %500 = vst [vmem:[#allocation2 + $0xd8] sm:$0xff] %v2692_v0 }
  0x53   : > { %501 = vst [vmem:[#allocation2 + $0xe0] sm:$0xff] %v2692_v0  ;;  %502 = vst [vmem:[#allocation2 + $0xe8] sm:$0xff] %v2692_v0 }
  0x54   : > { %503 = vst [vmem:[#allocation2 + $0xf0] sm:$0xff] %v2692_v0  ;;  %504 = vst [vmem:[#allocation2 + $0xf8] sm:$0xff] %v2692_v0 }
  0x55 PF: > { %v2564_v1 = vld [vmem:[%s2900_s11 + $0x40] sm:$0xff]   ;;  %v2566_v3 = vld [vmem:[%s2900_s11 + $0x48] sm:$0xff]   ;;  %v2568_v5 = vld [vmem:[%s2900_s11 + $0x50] sm:$0xff]   ;;  %p2076_p11 = scmp.ne.s32.totalorder %s2682_s17, 2 }
  0x56   : > { %v2565_v2 = vld [vmem:[%s2900_s11] sm:$0xff]   ;;  %2321 = vmatprep.subr.bf16.mxu0 %v2564_v1  ;;  %2505 = vmatprep.subr.bf16.mxu1 %v2564_v1  ;;  %v2567_v4 = vld [vmem:[%s2900_s11 + $0x8] sm:$0xff]   ;;  %v2569_v6 = vld [vmem:[%s2900_s11 + $0x10] sm:$0xff]  }
  0x57   : > { %2322 = vmatpush3.bf16.msra.mxu0 %v2565_v2  ;;  %2513 = vmatpush3.bf16.msra.mxu1 %v2565_v2  ;;  %v2570_v7 = vld [vmem:[%s2900_s11 + $0x58] sm:$0xff]   ;;  %v2572_v9 = vld [vmem:[%s2900_s11 + $0x60] sm:$0xff]   ;;  %v2574_v11 = vld [vmem:[%s2900_s11 + $0x68] sm:$0xff]  }
  0x58   : > { %2323 = vmatprep.subr.bf16.mxu0 %v2566_v3  ;;  %2506 = vmatprep.subr.bf16.mxu1 %v2566_v3  ;;  %v2571_v8 = vld [vmem:[%s2900_s11 + $0x18] sm:$0xff]   ;;  %v2573_v10 = vld [vmem:[%s2900_s11 + $0x20] sm:$0xff]   ;;  %v2575_v14 = vld [vmem:[%s2900_s11 + $0x28] sm:$0xff]  }
  0x59   : > { %v2582_v12 = vld [vmem:[%s2902_s12 + $0x4] ss:$12 sps:$4 sm:$0xff]   ;;  %v2578_v17 = vld [vmem:[%s2900_s11 + $0x78] sm:$0xff]   ;;  %v2580_v20 = vld [vmem:[%s2902_s12] ss:$12 sps:$4 sm:$0xff]  }
  0x5a   : > { %v2585_v13 = vld [vmem:[%s2902_s12 + $0x124] ss:$12 sps:$4 sm:$0xff]   ;;  %1081 = vmatprep.mubr.bf16.mxu0 %v2582_v12  ;;  %v2579_v18 = vld [vmem:[%s2900_s11 + $0x38] sm:$0xff]   ;;  %v2583_v21 = vld [vmem:[%s2902_s12 + $0x120] ss:$12 sps:$4 sm:$0xff]  }
  0x5b   : > { %2324 = vmatpush3.bf16.msra.mxu0 %v2567_v4  ;;  %2514 = vmatpush3.bf16.msra.mxu1 %v2567_v4  ;;  %v2576_v15 = vld [vmem:[%s2900_s11 + $0x70] sm:$0xff]   ;;  %v2586_v19 = vld [vmem:[%s2900_s11 + $0x80] sm:$0xff]   ;;  %v2588_v22 = vld [vmem:[%s2902_s12 + $0x1c] ss:$12 sps:$4 sm:$0xff]  }
  0x5c   : > { %2325 = vmatprep.subr.bf16.mxu0 %v2568_v5  ;;  %2507 = vmatprep.subr.bf16.mxu1 %v2568_v5  ;;  %v2577_v16 = vld [vmem:[%s2900_s11 + $0x30] sm:$0xff]   ;;  %v2587_v23 = vld [vmem:[%s2900_s11 + $0x88] sm:$0xff]   ;;  %v2592_v25 = vld [vmem:[%s2902_s12 + $0x18] ss:$12 sps:$4 sm:$0xff]  }
  0x5d   : > { %1177 = vmatprep.mubr.bf16.mxu1 %v2585_v13  ;;  %v2590_v24 = vld [vmem:[%s2902_s12 + $0x13c] ss:$12 sps:$4 sm:$0xff]   ;;  %v2594_v26 = vld [vmem:[%s2900_s11 + $0x90] sm:$0xff]   ;;  %v2593_v27 = vld [vmem:[%s2902_s12 + $0x138] ss:$12 sps:$4 sm:$0xff]  }
  0x5e   : > { %v2595_v28 = vld [vmem:[%s2900_s11 + $0x98] sm:$0xff]   ;;  %v2596_v29 = vld [vmem:[%s2902_s12 + $0x34] ss:$12 sps:$4 sm:$0xff]   ;;  %v2603_v34 = vld [vmem:[%s2900_s11 + $0xa8] sm:$0xff]  }
  0x5f   : > { %2326 = vmatpush3.bf16.msra.mxu0 %v2569_v6  ;;  %2515 = vmatpush3.bf16.msra.mxu1 %v2569_v6  ;;  %v2598_v30 = vld [vmem:[%s2902_s12 + $0x154] ss:$12 sps:$4 sm:$0xff]   ;;  %v2600_v32 = vld [vmem:[%s2902_s12 + $0x30] ss:$12 sps:$4 sm:$0xff]   ;;  %v2604_v35 = vld [vmem:[%s2902_s12 + $0x4c] ss:$12 sps:$4 sm:$0xff]  }
  0x60   : > { %2327 = vmatprep.subr.bf16.mxu0 %v2570_v7  ;;  %2508 = vmatprep.subr.bf16.mxu1 %v2570_v7  ;;  %v2602_v31 = vld [vmem:[%s2900_s11 + $0xa0] sm:$0xff]   ;;  %v2601_v33 = vld [vmem:[%s2902_s12 + $0x150] ss:$12 sps:$4 sm:$0xff]   ;;  %v2606_v36 = vld [vmem:[%s2902_s12 + $0x16c] ss:$12 sps:$4 sm:$0xff]  }
  0x61   : > { %v2610_v37 = vld [vmem:[%s2900_s11 + $0xb0] sm:$0xff]   ;;  %v2611_v41 = vld [vmem:[%s2900_s11 + $0xb8] sm:$0xff]   ;;  %v2615_v43 = vld [vmem:[%s2902_s12 + $0x60] ss:$12 sps:$4 sm:$0xff]  }
  0x62   : > { %v2608_v38 = vld [vmem:[%s2902_s12 + $0x48] ss:$12 sps:$4 sm:$0xff]   ;;  %v2612_v40 = vld [vmem:[%s2902_s12 + $0x64] ss:$12 sps:$4 sm:$0xff]   ;;  %v2616_v44 = vld [vmem:[%s2902_s12 + $0x20] ss:$12 sps:$4 sm:$0xff]  }
  0x63   : > { %2328 = vmatpush3.bf16.msra.mxu0 %v2571_v8  ;;  %2516 = vmatpush3.bf16.msra.mxu1 %v2571_v8  ;;  %v2609_v39 = vld [vmem:[%s2902_s12 + $0x168] ss:$12 sps:$4 sm:$0xff]   ;;  %v2619_v46 = vld [vmem:[%s2902_s12 + $0x38] ss:$12 sps:$4 sm:$0xff]   ;;  %v2621_v48 = vld [vmem:[%s2902_s12 + $0x50] ss:$12 sps:$4 sm:$0xff]  }
  0x64   : > { %2329 = vmatprep.subr.bf16.mxu0 %v2572_v9  ;;  %2509 = vmatprep.subr.bf16.mxu1 %v2572_v9  ;;  %v2614_v42 = vld [vmem:[%s2902_s12 + $0x8] ss:$12 sps:$4 sm:$0xff]   ;;  %v2620_v47 = vld [vmem:[%s2902_s12 + $0x78] ss:$12 sps:$4 sm:$0xff]   ;;  %v2625_v51 = vld [vmem:[%s2902_s12 + $0x90] ss:$12 sps:$4 sm:$0xff]  }
  0x65   : > { %v2617_v45 = vld [vmem:[%s2902_s12 + $0x7c] ss:$12 sps:$4 sm:$0xff]   ;;  %v2622_v49 = vld [vmem:[%s2902_s12 + $0x94] ss:$12 sps:$4 sm:$0xff]   ;;  %v2627_v53 = vld [vmem:[%s2902_s12 + $0xac] ss:$12 sps:$4 sm:$0xff]  }
  0x66   : > { %v2624_v50 = vld [vmem:[%s2902_s12 + $0x68] ss:$12 sps:$4 sm:$0xff]   ;;  %v2626_v52 = vld [vmem:[%s2902_s12 + $0x80] ss:$12 sps:$4 sm:$0xff]   ;;  %v2629_v54 = vld [vmem:[%s2902_s12 + $0x98] ss:$12 sps:$4 sm:$0xff]  }
  0x67   : > { %2330 = vmatpush3.bf16.msra.mxu0 %v2573_v10  ;;  %2517 = vmatpush3.bf16.msra.mxu1 %v2573_v10  ;;  %v2630_v55 = vld [vmem:[%s2902_s12 + $0xa8] ss:$12 sps:$4 sm:$0xff]   ;;  %v2631_v56 = vld [vmem:[%s2902_s12 + $0xb0] ss:$12 sps:$4 sm:$0xff]   ;;  %v2635_v59 = vld [vmem:[%s2902_s12 + $0xc0] ss:$12 sps:$4 sm:$0xff]  }
  0x68   : > { %2331 = vmatprep.subr.bf16.mxu0 %v2574_v11  ;;  %2510 = vmatprep.subr.bf16.mxu1 %v2574_v11  ;;  %v2632_v57 = vld [vmem:[%s2902_s12 + $0xc4] ss:$12 sps:$4 sm:$0xff]   ;;  %v2634_v58 = vld [vmem:[%s2902_s12 + $0xc8] ss:$12 sps:$4 sm:$0xff]   ;;  %v2636_v60 = vld [vmem:[%s2902_s12 + $0xe0] ss:$12 sps:$4 sm:$0xff]  }
  0x69   : > { %v2637_v61 = vld [vmem:[%s2902_s12 + $0xdc] ss:$12 sps:$4 sm:$0xff]   ;;  %v2639_v62 = vld [vmem:[%s2902_s12 + $0xf8] ss:$12 sps:$4 sm:$0xff]   ;;  %v2642_v1 = vld [vmem:[%s2902_s12 + $0xf4] ss:$12 sps:$4 sm:$0xff]  }
  0x6a   : > { %v2640_v63 = vld [vmem:[%s2902_s12 + $0xd8] ss:$12 sps:$4 sm:$0xff]   ;;  %v2641_v0 = vld [vmem:[%s2902_s12 + $0x110] ss:$12 sps:$4 sm:$0xff]   ;;  %v2644_v2 = vld [vmem:[%s2902_s12 + $0x128] ss:$12 sps:$4 sm:$0xff]  }
  0x6b   : > { %2332 = vmatpush3.bf16.msra.mxu0 %v2575_v14  ;;  %2518 = vmatpush3.bf16.msra.mxu1 %v2575_v14  ;;  %v2645_v3 = vld [vmem:[%s2902_s12 + $0xf0] ss:$12 sps:$4 sm:$0xff]   ;;  %v2646_v4 = vld [vmem:[%s2902_s12 + $0x140] ss:$12 sps:$4 sm:$0xff]   ;;  %v2649_v6 = vld [vmem:[%s2902_s12 + $0x158] ss:$12 sps:$4 sm:$0xff]  }
  0x6c   : > { %2333 = vmatprep.subr.bf16.mxu0 %v2576_v15  ;;  %2511 = vmatprep.subr.bf16.mxu1 %v2576_v15  ;;  %v2647_v5 = vld [vmem:[%s2902_s12 + $0x10c] ss:$12 sps:$4 sm:$0xff]   ;;  %v2650_v7 = vld [vmem:[%s2902_s12 + $0x108] ss:$12 sps:$4 sm:$0xff]   ;;  %v2651_v8 = vld [vmem:[%s2902_s12 + $0x170] ss:$12 sps:$4 sm:$0xff]  }
  0x6f   : > { %2334 = vmatpush3.bf16.msra.mxu0 %v2577_v16  ;;  %2519 = vmatpush3.bf16.msra.mxu1 %v2577_v16 }
  0x70   : > { %2335 = vmatprep.subr.bf16.mxu0 %v2578_v17  ;;  %2512 = vmatprep.subr.bf16.mxu1 %v2578_v17 }
  0x73   : > { %2336 = vmatpush3.bf16.msra.mxu0 %v2579_v18  ;;  %2520 = vmatpush3.bf16.msra.mxu1 %v2579_v18 }
  0x74   : > { %2457 = vmatprep.subr.bf16.mxu1 %v2586_v19 }
  0x76   : > { %1082 = vmatmul.mubr.bf16.vlgmr.msra.gmra.mrb[0].mxu0 %v2580_v20  ;;  %1178 = vmatmul.mubr.bf16.vlgmr.msra.gmra.mrb[0].mxu1 %v2583_v21 }
  0x77   : > { %2458 = vmatpush3.bf16.msra.mxu1 %v2586_v19  ;;  %1089 = vmatprep.mubr.bf16.mxu0 %v2588_v22 }
  0x78   : > { %2459 = vmatprep.subr.bf16.mxu1 %v2587_v23  ;;  %1185 = vmatprep.mubr.bf16.mxu1 %v2590_v24 }
  0x7b   : > { %2460 = vmatpush3.bf16.msra.mxu1 %v2587_v23 }
  0x7c   : > { %2461 = vmatprep.subr.bf16.mxu1 %v2594_v26 }
  0x7e   : > { %1090 = vmatmul.mubr.bf16.gmra.mrb[4].mxu0 %v2592_v25  ;;  %1186 = vmatmul.mubr.bf16.gmra.mrb[4].mxu1 %v2593_v27 }
  0x7f   : > { %2462 = vmatpush3.bf16.msra.mxu1 %v2594_v26  ;;  %1097 = vmatprep.mubr.bf16.mxu0 %v2596_v29 }
  0x80   : > { %2463 = vmatprep.subr.bf16.mxu1 %v2595_v28  ;;  %1193 = vmatprep.mubr.bf16.mxu1 %v2598_v30 }
  0x83   : > { %2464 = vmatpush3.bf16.msra.mxu1 %v2595_v28 }
  0x84   : > { %2465 = vmatprep.subr.bf16.mxu1 %v2602_v31 }
  0x86   : > { %1098 = vmatmul.mubr.bf16.gmra.mrb[8].mxu0 %v2600_v32  ;;  %1194 = vmatmul.mubr.bf16.gmra.mrb[8].mxu1 %v2601_v33 }
  0x87   : > { %2466 = vmatpush3.bf16.msra.mxu1 %v2602_v31  ;;  %1105 = vmatprep.mubr.bf16.mxu0 %v2604_v35 }
  0x88   : > { %2467 = vmatprep.subr.bf16.mxu1 %v2603_v34  ;;  %1201 = vmatprep.mubr.bf16.mxu1 %v2606_v36 }
  0x8b   : > { %2468 = vmatpush3.bf16.msra.mxu1 %v2603_v34 }
  0x8c   : > { %2469 = vmatprep.subr.bf16.mxu1 %v2610_v37 }
  0x8e   : > { %1106 = vmatmul.mubr.bf16.gmra.mrb[12].mxu0 %v2608_v38  ;;  %1202 = vmatmul.mubr.bf16.gmra.mrb[12].mxu1 %v2609_v39 }
  0x8f   : > { %2470 = vmatpush3.bf16.msra.mxu1 %v2610_v37  ;;  %1113 = vmatprep.mubr.bf16.mxu0 %v2612_v40 }
  0x90   : > { %2471 = vmatprep.subr.bf16.mxu1 %v2611_v41  ;;  %2473 = vmatprep.mubr.bf16.mxu1 %v2614_v42 }
  0x93   : > { %2472 = vmatpush3.bf16.msra.mxu1 %v2611_v41 }
  0x96   : > { %1114 = vmatmul.mubr.bf16.gmra.mrb[16].mxu0 %v2615_v43  ;;  %2474 = vmatmul.mubr.bf16.vlgmr.msra.gmra.mrb[16].mxu1 %v2616_v44 }
  0x97   : > { %1121 = vmatprep.mubr.bf16.mxu0 %v2617_v45  ;;  %2477 = vmatprep.mubr.bf16.mxu1 %v2619_v46 }
  0x9e   : > { %1122 = vmatmul.mubr.bf16.gmra.mrb[20].mxu0 %v2620_v47  ;;  %2478 = vmatmul.mubr.bf16.gmra.mrb[20].mxu1 %v2621_v48 }
  0x9f   : > { %1129 = vmatprep.mubr.bf16.mxu0 %v2622_v49  ;;  %2481 = vmatprep.mubr.bf16.mxu1 %v2624_v50 }
  0xa6   : > { %1130 = vmatmul.mubr.bf16.gmra.mrb[24].mxu0 %v2625_v51  ;;  %2482 = vmatmul.mubr.bf16.gmra.mrb[24].mxu1 %v2626_v52 }
  0xa7   : > { %1137 = vmatprep.mubr.bf16.mxu0 %v2627_v53  ;;  %2485 = vmatprep.mubr.bf16.mxu1 %v2629_v54 }
  0xae   : > { %1138 = vmatmul.mubr.bf16.gmra.mrb[28].mxu0 %v2630_v55  ;;  %2486 = vmatmul.mubr.bf16.gmra.mrb[28].mxu1 %v2631_v56 }
  0xaf   : > { %1145 = vmatprep.mubr.bf16.mxu0 %v2632_v57  ;;  %2489 = vmatprep.mubr.bf16.mxu1 %v2634_v58  ;;  %v507_v58 = vld [vmem:[#allocation2 + $0x10] sm:$0xff] }
  0xb6   : > { %1146 = vmatmul.mubr.bf16.gmra.mrb[32].mxu0 %v2635_v59  ;;  %2490 = vmatmul.mubr.bf16.gmra.mrb[32].mxu1 %v2636_v60 }
  0xb7   : > { %1153 = vmatprep.mubr.bf16.mxu0 %v2637_v61  ;;  %2493 = vmatprep.mubr.bf16.mxu1 %v2639_v62  ;;  %v505_v62 = vld [vmem:[#allocation2] sm:$0xff] }
  0xbe   : > { %1154 = vmatmul.mubr.bf16.gmra.mrb[36].mxu0 %v2640_v63  ;;  %2494 = vmatmul.mubr.bf16.gmra.mrb[36].mxu1 %v2641_v0 }
  0xbf   : > { %1161 = vmatprep.mubr.bf16.mxu0 %v2642_v1  ;;  %2497 = vmatprep.mubr.bf16.mxu1 %v2644_v2 }
  0xc6   : > { %1162 = vmatmul.mubr.bf16.gmra.mrb[40].mxu0 %v2645_v3  ;;  %2498 = vmatmul.mubr.bf16.gmra.mrb[40].mxu1 %v2646_v4  ;;  %v508_v3 = vld [vmem:[#allocation2 + $0x18] sm:$0xff] }
  0xc7   : > { %1169 = vmatprep.mubr.bf16.mxu0 %v2647_v5  ;;  %2501 = vmatprep.mubr.bf16.mxu1 %v2649_v6 }
  0xce   : > { %1170 = vmatmul.mubr.bf16.gmra.mrb[44].mxu0 %v2650_v7  ;;  %2502 = vmatmul.mubr.bf16.gmra.mrb[44].mxu1 %v2651_v8  ;;  %v506_v8 = vld [vmem:[#allocation2 + $0x8] sm:$0xff] }
 0x149   : > { %v2337_v9 = vpop.f32.mrb[0].mxu0  ;;  %v2409_v10 = vpop.f32.mrb[0].mxu1 }
 0x14a   : > { %v2338_v11 = vpop.f32.mrb[1].mxu0  ;;  %v2410_v12 = vpop.f32.mrb[1].mxu1 }
 0x14b   : > { %v2339_v13 = vadd.f32 %v2338_v11, %v2337_v9  ;;  %v2977_v14 = vadd.f32 %v2410_v12, %v2409_v10  ;;  %v2340_v15 = vpop.f32.mrb[2].mxu0  ;;  %v2412_v16 = vpop.f32.mrb[2].mxu1 }
 0x14c   : > { %v2341_v17 = vpop.f32.mrb[3].mxu0  ;;  %v2413_v18 = vpop.f32.mrb[3].mxu1 }
 0x14d   : > { %v2342_v19 = vadd.f32 %v2341_v17, %v2340_v15  ;;  %v2979_v20 = vadd.f32 %v2413_v18, %v2412_v16  ;;  %v511_v18 = vld [vmem:[#allocation2 + $0x30] sm:$0xff] }
 0x151   : > { %v2343_v21 = vpop.f32.mrb[4].mxu0  ;;  %v2415_v22 = vpop.f32.mrb[4].mxu1 }
 0x152   : > { %v2344_v23 = vpop.f32.mrb[5].mxu0  ;;  %v2416_v24 = vpop.f32.mrb[5].mxu1 }
 0x153   : > { %v2345_v25 = vadd.f32 %v2344_v23, %v2343_v21  ;;  %v2981_v26 = vadd.f32 %v2416_v24, %v2415_v22  ;;  %v2346_v27 = vpop.f32.mrb[6].mxu0  ;;  %v2418_v28 = vpop.f32.mrb[6].mxu1  ;;  %v509_v23 = vld [vmem:[#allocation2 + $0x20] sm:$0xff] }
 0x154   : > { %v2347_v29 = vpop.f32.mrb[7].mxu0  ;;  %v2419_v30 = vpop.f32.mrb[7].mxu1 }
 0x155   : > { %v2348_v31 = vadd.f32 %v2347_v29, %v2346_v27  ;;  %v2983_v32 = vadd.f32 %v2419_v30, %v2418_v28  ;;  %v512_v29 = vld [vmem:[#allocation2 + $0x38] sm:$0xff] }
 0x159   : > { %v2349_v33 = vpop.f32.mrb[8].mxu0  ;;  %v2421_v34 = vpop.f32.mrb[8].mxu1 }
 0x15a   : > { %v2350_v35 = vpop.f32.mrb[9].mxu0  ;;  %v2422_v36 = vpop.f32.mrb[9].mxu1 }
 0x15b   : > { %v2351_v37 = vadd.f32 %v2350_v35, %v2349_v33  ;;  %v2985_v38 = vadd.f32 %v2422_v36, %v2421_v34  ;;  %v2352_v39 = vpop.f32.mrb[10].mxu0  ;;  %v2424_v40 = vpop.f32.mrb[10].mxu1  ;;  %v510_v34 = vld [vmem:[#allocation2 + $0x28] sm:$0xff] }
 0x15c   : > { %v2353_v41 = vpop.f32.mrb[11].mxu0  ;;  %v2425_v42 = vpop.f32.mrb[11].mxu1 }
 0x15d   : > { %v2354_v43 = vadd.f32 %v2353_v41, %v2352_v39  ;;  %v2987_v44 = vadd.f32 %v2425_v42, %v2424_v40 }
 0x161   : > { %v2355_v45 = vpop.f32.mrb[12].mxu0  ;;  %v2427_v46 = vpop.f32.mrb[12].mxu1 }
 0x162   : > { %v2356_v47 = vpop.f32.mrb[13].mxu0  ;;  %v2428_v48 = vpop.f32.mrb[13].mxu1 }
 0x163   : > { %v2357_v49 = vadd.f32 %v2356_v47, %v2355_v45  ;;  %v2989_v50 = vadd.f32 %v2428_v48, %v2427_v46  ;;  %v2358_v51 = vpop.f32.mrb[14].mxu0  ;;  %v2430_v52 = vpop.f32.mrb[14].mxu1  ;;  %v515_v46 = vld [vmem:[#allocation2 + $0x50] sm:$0xff] }
 0x164   : > { %v2359_v53 = vpop.f32.mrb[15].mxu0  ;;  %v2431_v54 = vpop.f32.mrb[15].mxu1 }
 0x165   : > { %v2360_v55 = vadd.f32 %v2359_v53, %v2358_v51  ;;  %v2991_v56 = vadd.f32 %v2431_v54, %v2430_v52 }
 0x169   : > { %v2361_v57 = vpop.f32.mrb[16].mxu0  ;;  %v2475_v59 = vpop.f32.mrb[16].mxu1 }
 0x16a   : > { %v1253_v60 = vadd.f32 %v2475_v59, %v2345_v25  ;;  %v2362_v61 = vpop.f32.mrb[17].mxu0  ;;  %v1244_v63 = vpop.f32.mrb[17].mxu1 }
 0x16b   : > { %v2363_v0 = vadd.f32 %v2362_v61, %v2361_v57  ;;  %v1245_v1 = vadd.f32 %v2339_v13, %v1244_v63  ;;  %v2364_v2 = vpop.f32.mrb[18].mxu0  ;;  %v2476_v4 = vpop.f32.mrb[18].mxu1 }
 0x16c   : > { %v1373_v5 = vadd.f32 %v1253_v60, %v507_v58  ;;  %v1256_v6 = vadd.f32 %v2476_v4, %v2348_v31  ;;  %v2365_v7 = vpop.f32.mrb[19].mxu0  ;;  %v1247_v9 = vpop.f32.mrb[19].mxu1  ;;  %v514_v60 = vld [vmem:[#allocation2 + $0x48] sm:$0xff] }
 0x16d   : > { %v1371_v10 = vadd.f32 %v1245_v1, %v505_v62  ;;  %v2366_v11 = vadd.f32 %v2365_v7, %v2364_v2  ;;  %v1248_v12 = vadd.f32 %v2342_v19, %v1247_v9 }
 0x16e   : > { %1405 = vst [vmem:[#allocation2 + $0x10] sm:$0xff] %v1373_v5  ;;  %v1374_v15 = vadd.f32 %v1256_v6, %v508_v3  ;;  %v517_v6 = vld [vmem:[#allocation2 + $0x60] sm:$0xff] }
 0x16f   : > { %1403 = vst [vmem:[#allocation2] sm:$0xff] %v1371_v10  ;;  %v1372_v16 = vadd.f32 %v1248_v12, %v506_v8 }
 0x170   : > { %1406 = vst [vmem:[#allocation2 + $0x18] sm:$0xff] %v1374_v15  ;;  %v519_v15 = vld [vmem:[#allocation2 + $0x70] sm:$0xff] }
 0x171   : > { %1404 = vst [vmem:[#allocation2 + $0x8] sm:$0xff] %v1372_v16  ;;  %v2367_v17 = vpop.f32.mrb[20].mxu0  ;;  %v2479_v13 = vpop.f32.mrb[20].mxu1 }
 0x172   : > { %v1269_v21 = vadd.f32 %v2479_v13, %v2357_v49  ;;  %v2368_v22 = vpop.f32.mrb[21].mxu0  ;;  %v1260_v24 = vpop.f32.mrb[21].mxu1  ;;  %v513_v49 = vld [vmem:[#allocation2 + $0x40] sm:$0xff] }
 0x173   : > { %v2369_v25 = vadd.f32 %v2368_v22, %v2367_v17  ;;  %v1261_v27 = vadd.f32 %v2351_v37, %v1260_v24  ;;  %v2370_v28 = vpop.f32.mrb[22].mxu0  ;;  %v2480_v30 = vpop.f32.mrb[22].mxu1  ;;  %v518_v17 = vld [vmem:[#allocation2 + $0x68] sm:$0xff] }
 0x174   : > { %v1377_v31 = vadd.f32 %v1269_v21, %v511_v18  ;;  %v1272_v19 = vadd.f32 %v2480_v30, %v2360_v55  ;;  %v2371_v33 = vpop.f32.mrb[23].mxu0  ;;  %v1263_v35 = vpop.f32.mrb[23].mxu1  ;;  %v516_v55 = vld [vmem:[#allocation2 + $0x58] sm:$0xff] }
 0x175   : > { %v1375_v36 = vadd.f32 %v1261_v27, %v509_v23  ;;  %v2372_v39 = vadd.f32 %v2371_v33, %v2370_v28  ;;  %v1264_v40 = vadd.f32 %v2354_v43, %v1263_v35  ;;  %v520_v23 = vld [vmem:[#allocation2 + $0x78] sm:$0xff] }
 0x176   : > { %1409 = vst [vmem:[#allocation2 + $0x30] sm:$0xff] %v1377_v31  ;;  %v1378_v41 = vadd.f32 %v1272_v19, %v512_v29 }
 0x177   : > { %1407 = vst [vmem:[#allocation2 + $0x20] sm:$0xff] %v1375_v36  ;;  %v1376_v42 = vadd.f32 %v1264_v40, %v510_v34  ;;  %v521_v36 = vld [vmem:[#allocation2 + $0x80] sm:$0xff] }
 0x178   : > { %1410 = vst [vmem:[#allocation2 + $0x38] sm:$0xff] %v1378_v41 }
 0x179   : > { %1408 = vst [vmem:[#allocation2 + $0x28] sm:$0xff] %v1376_v42  ;;  %v2373_v45 = vpop.f32.mrb[24].mxu0  ;;  %v2483_v37 = vpop.f32.mrb[24].mxu1 }
 0x17a   : > { %v1285_v47 = vadd.f32 %v2483_v37, %v2369_v25  ;;  %v2374_v48 = vpop.f32.mrb[25].mxu0  ;;  %v1276_v51 = vpop.f32.mrb[25].mxu1 }
 0x17b   : > { %v2375_v52 = vadd.f32 %v2374_v48, %v2373_v45  ;;  %v1277_v53 = vadd.f32 %v2363_v0, %v1276_v51  ;;  %v2376_v54 = vpop.f32.mrb[26].mxu0  ;;  %v2484_v57 = vpop.f32.mrb[26].mxu1  ;;  %v522_v45 = vld [vmem:[#allocation2 + $0x88] sm:$0xff] }
 0x17c   : > { %v1381_v58 = vadd.f32 %v1285_v47, %v515_v46  ;;  %v1288_v43 = vadd.f32 %v2484_v57, %v2372_v39  ;;  %v2377_v59 = vpop.f32.mrb[27].mxu0  ;;  %v1279_v61 = vpop.f32.mrb[27].mxu1  ;;  %v523_v57 = vld [vmem:[#allocation2 + $0x90] sm:$0xff] }
 0x17d   : > { %v1379_v62 = vadd.f32 %v1277_v53, %v513_v49  ;;  %v2378_v63 = vadd.f32 %v2377_v59, %v2376_v54  ;;  %v1280_v1 = vadd.f32 %v2366_v11, %v1279_v61  ;;  %v524_v61 = vld [vmem:[#allocation2 + $0x98] sm:$0xff] }
 0x17e   : > { %1413 = vst [vmem:[#allocation2 + $0x50] sm:$0xff] %v1381_v58  ;;  %v1382_v2 = vadd.f32 %v1288_v43, %v516_v55 }
 0x17f   : > { %1411 = vst [vmem:[#allocation2 + $0x40] sm:$0xff] %v1379_v62  ;;  %v1380_v3 = vadd.f32 %v1280_v1, %v514_v60 }
 0x180   : > { %1414 = vst [vmem:[#allocation2 + $0x58] sm:$0xff] %v1382_v2 }
 0x181   : > { %1412 = vst [vmem:[#allocation2 + $0x48] sm:$0xff] %v1380_v3  ;;  %v2379_v4 = vpop.f32.mrb[28].mxu0  ;;  %v2487_v5 = vpop.f32.mrb[28].mxu1  ;;  %v531_v3 = vld [vmem:[#allocation2 + $0xd0] sm:$0xff] }
 0x182   : > { %v2380_v0 = vpop.f32.mrb[29].mxu0  ;;  %v1292_v7 = vpop.f32.mrb[29].mxu1 }
 0x183   : > { %v2381_v8 = vadd.f32 %v2380_v0, %v2379_v4  ;;  %v1293_v9 = vadd.f32 %v2375_v52, %v1292_v7  ;;  %v2382_v10 = vpop.f32.mrb[30].mxu0  ;;  %v2488_v12 = vpop.f32.mrb[30].mxu1 }
 0x184   : > { %v2383_v16 = vpop.f32.mrb[31].mxu0  ;;  %v1295_v18 = vpop.f32.mrb[31].mxu1 }
 0x185   : > { %v1301_v11 = vadd.f32 %v2487_v5, %v2381_v8  ;;  %v1383_v13 = vadd.f32 %v1293_v9, %v517_v6  ;;  %v2384_v21 = vadd.f32 %v2383_v16, %v2382_v10  ;;  %v1296_v22 = vadd.f32 %v2378_v63, %v1295_v18  ;;  %v529_v6 = vld [vmem:[#allocation2 + $0xc0] sm:$0xff] }
 0x187   : > { %v1385_v24 = vadd.f32 %v1301_v11, %v519_v15  ;;  %1415 = vst [vmem:[#allocation2 + $0x60] sm:$0xff] %v1383_v13  ;;  %v1304_v25 = vadd.f32 %v2488_v12, %v2384_v21  ;;  %v1384_v27 = vadd.f32 %v1296_v22, %v518_v17  ;;  %v532_v12 = vld [vmem:[#allocation2 + $0xd8] sm:$0xff]  ;;  %v525_v17 = vld [vmem:[#allocation2 + $0xa0] sm:$0xff]  ;;  %v530_v13 = vld [vmem:[#allocation2 + $0xc8] sm:$0xff] }
 0x189   : > { %1417 = vst [vmem:[#allocation2 + $0x70] sm:$0xff] %v1385_v24  ;;  %v1386_v28 = vadd.f32 %v1304_v25, %v520_v23  ;;  %1416 = vst [vmem:[#allocation2 + $0x68] sm:$0xff] %v1384_v27  ;;  %v2385_v29 = vpop.f32.mrb[32].mxu0  ;;  %v2491_v30 = vpop.f32.mrb[32].mxu1  ;;  %v526_v27 = vld [vmem:[#allocation2 + $0xa8] sm:$0xff] }
 0x18a   : > { %v2386_v31 = vpop.f32.mrb[33].mxu0  ;;  %v1308_v19 = vpop.f32.mrb[33].mxu1 }
 0x18b   : > { %1418 = vst [vmem:[#allocation2 + $0x78] sm:$0xff] %v1386_v28  ;;  %v2387_v33 = vadd.f32 %v2386_v31, %v2385_v29  ;;  %v2388_v34 = vpop.f32.mrb[34].mxu0  ;;  %v2492_v35 = vpop.f32.mrb[34].mxu1  ;;  %v535_v31 = vld [vmem:[#allocation2 + $0xf0] sm:$0xff] }
 0x18c   : > { %v2389_v39 = vpop.f32.mrb[35].mxu0  ;;  %v1311_v40 = vpop.f32.mrb[35].mxu1 }
 0x18d   : > { %v1309_v41 = vadd.f32 %v2387_v33, %v1308_v19  ;;  %v2390_v42 = vadd.f32 %v2389_v39, %v2388_v34 }
 0x18f   : > { %v1387_v46 = vadd.f32 %v1309_v41, %v521_v36  ;;  %v1312_v37 = vadd.f32 %v2390_v42, %v1311_v40  ;;  %v536_v41 = vld [vmem:[#allocation2 + $0xf8] sm:$0xff] }
 0x191   : > { %1419 = vst [vmem:[#allocation2 + $0x80] sm:$0xff] %v1387_v46  ;;  %v1388_v47 = vadd.f32 %v1312_v37, %v522_v45  ;;  %v2391_v48 = vpop.f32.mrb[36].mxu0  ;;  %v2993_v49 = vpop.f32.mrb[36].mxu1  ;;  %v527_v46 = vld [vmem:[#allocation2 + $0xb0] sm:$0xff] }
 0x192   : > { %v2392_v51 = vpop.f32.mrb[37].mxu0  ;;  %v1324_v52 = vpop.f32.mrb[37].mxu1 }
 0x193   : > { %1420 = vst [vmem:[#allocation2 + $0x88] sm:$0xff] %v1388_v47  ;;  %v2393_v53 = vadd.f32 %v2392_v51, %v2391_v48  ;;  %v2394_v54 = vpop.f32.mrb[38].mxu0  ;;  %v2995_v55 = vpop.f32.mrb[38].mxu1  ;;  %v534_v48 = vld [vmem:[#allocation2 + $0xe8] sm:$0xff] }
 0x194   : > { %v2395_v58 = vpop.f32.mrb[39].mxu0  ;;  %v1327_v43 = vpop.f32.mrb[39].mxu1 }
 0x195   : > { %v1317_v59 = vadd.f32 %v2491_v30, %v2393_v53  ;;  %v2396_v60 = vadd.f32 %v2395_v58, %v2394_v54  ;;  %v528_v58 = vld [vmem:[#allocation2 + $0xb8] sm:$0xff] }
 0x197   : > { %v1389_v62 = vadd.f32 %v1317_v59, %v523_v57  ;;  %v1320_v63 = vadd.f32 %v2492_v35, %v2396_v60  ;;  %v533_v35 = vld [vmem:[#allocation2 + $0xe0] sm:$0xff]  ;;  %v1440_v60 = vld [vmem:[#allocation2 + $0x8] sm:$0xff] (!%p2076_p11) }
 0x199   : > { %1421 = vst [vmem:[#allocation2 + $0x90] sm:$0xff] %v1389_v62  ;;  %v1390_v1 = vadd.f32 %v1320_v63, %v524_v61  ;;  %v2397_v2 = vpop.f32.mrb[40].mxu0  ;;  %v2499_v4 = vpop.f32.mrb[40].mxu1  ;;  %v2148_v62 = vld [vmem:[%s3159_s3] sm:$0xff] (!%p2076_p11)   ;;  %v1441_v63 = vld [vmem:[#allocation2 + $0x10] sm:$0xff] (!%p2076_p11) }
 0x19a   : > { %v1349_v5 = vadd.f32 %v2499_v4, %v2981_v26  ;;  %v2398_v0 = vpop.f32.mrb[41].mxu0  ;;  %v1340_v7 = vpop.f32.mrb[41].mxu1 }
 0x19b   : > { %1422 = vst [vmem:[#allocation2 + $0x98] sm:$0xff] %v1390_v1  ;;  %v2399_v8 = vadd.f32 %v2398_v0, %v2397_v2  ;;  %v1341_v9 = vadd.f32 %v2977_v14, %v1340_v7  ;;  %v2400_v10 = vpop.f32.mrb[42].mxu0  ;;  %v2500_v15 = vpop.f32.mrb[42].mxu1  ;;  %v1442_v1 = vld [vmem:[#allocation2 + $0x18] sm:$0xff] (!%p2076_p11)  ;;  %v2149_v2 = vunpack.c.l.bf16 (!%p2076_p11), %v2148_v62  ;;  %v2291_v0 = vld [vmem:[%s3159_s3 + $0x8] sm:$0xff] (!%p2076_p11)  }
 0x19c   : > { %v1397_v16 = vadd.f32 %v1349_v5, %v531_v3  ;;  %v1352_v18 = vadd.f32 %v2500_v15, %v2983_v32  ;;  %v2401_v11 = vpop.f32.mrb[43].mxu0  ;;  %v1343_v21 = vpop.f32.mrb[43].mxu1  ;;  %v2150_v3 = vunpack.c.h.bf16 (!%p2076_p11), %v2148_v62  ;;  %v1444_v7 = vld [vmem:[#allocation2 + $0x28] sm:$0xff] (!%p2076_p11)  ;;  %v2292_v15 = vld [vmem:[%s3159_s3 + $0x10] sm:$0xff] (!%p2076_p11)  }
 0x19d   : > { %v1325_v22 = vadd.f32 %v2399_v8, %v1324_v52  ;;  %v1395_v23 = vadd.f32 %v1341_v9, %v529_v6  ;;  %v2402_v26 = vadd.f32 %v2401_v11, %v2400_v10  ;;  %v1344_v24 = vadd.f32 %v2979_v20, %v1343_v21  ;;  %v1443_v6 = vld [vmem:[#allocation2 + $0x20] sm:$0xff] (!%p2076_p11)  ;;  %v1453_v62 = vld [vmem:[#allocation2 + $0x70] sm:$0xff] (!%p2076_p11) }
 0x19e   : > { %1429 = vst [vmem:[#allocation2 + $0xd0] sm:$0xff] %v1397_v16  ;;  %v1398_v25 = vadd.f32 %v1352_v18, %v532_v12  ;;  %v2153_v8 = vunpack.c.l.bf16 (!%p2076_p11), %v2291_v0  ;;  %v2154_v9 = vunpack.c.h.bf16 (!%p2076_p11), %v2291_v0  ;;  %v1445_v16 = vld [vmem:[#allocation2 + $0x30] sm:$0xff] (!%p2076_p11)  ;;  %v2158_v21 = vunpack.c.h.bf16 (!%p2076_p11), %v2292_v15 }
 0x19f   : > { %v1391_v28 = vadd.f32 %v1325_v22, %v525_v17  ;;  %1427 = vst [vmem:[#allocation2 + $0xc0] sm:$0xff] %v1395_v23  ;;  %v1328_v14 = vadd.f32 %v2402_v26, %v1327_v43  ;;  %v1396_v29 = vadd.f32 %v1344_v24, %v530_v13  ;;  %v1446_v17 = vld [vmem:[#allocation2 + $0x38] sm:$0xff] (!%p2076_p11)  ;;  %v2157_v13 = vunpack.c.l.bf16 (!%p2076_p11), %v2292_v15 }
 0x1a0   : > { %1430 = vst [vmem:[#allocation2 + $0xd8] sm:$0xff] %v1398_v25  ;;  %v2293_v22 = vld [vmem:[%s3159_s3 + $0x18] sm:$0xff] (!%p2076_p11)  }
 0x1a1   : > { %1423 = vst [vmem:[#allocation2 + $0xa0] sm:$0xff] %v1391_v28  ;;  %v1392_v30 = vadd.f32 %v1328_v14, %v526_v27  ;;  %1428 = vst [vmem:[#allocation2 + $0xc8] sm:$0xff] %v1396_v29  ;;  %v2403_v32 = vpop.f32.mrb[44].mxu0  ;;  %v2503_v19 = vpop.f32.mrb[44].mxu1  ;;  %v1447_v27 = vld [vmem:[#allocation2 + $0x40] sm:$0xff] (!%p2076_p11) }
 0x1a2   : > { %v1365_v33 = vadd.f32 %v2503_v19, %v2989_v50  ;;  %v2404_v34 = vpop.f32.mrb[45].mxu0  ;;  %v1356_v36 = vpop.f32.mrb[45].mxu1 }
 0x1a3   : > { %1424 = vst [vmem:[#allocation2 + $0xa8] sm:$0xff] %v1392_v30  ;;  %v2405_v20 = vadd.f32 %v2404_v34, %v2403_v32  ;;  %v1357_v39 = vadd.f32 %v2985_v38, %v1356_v36  ;;  %v2406_v40 = vpop.f32.mrb[46].mxu0  ;;  %v2504_v42 = vpop.f32.mrb[46].mxu1  ;;  %v1448_v32 = vld [vmem:[#allocation2 + $0x48] sm:$0xff] (!%p2076_p11)  ;;  %v2162_v34 = vunpack.c.h.bf16 (!%p2076_p11), %v2293_v22  ;;  %v1449_v36 = vld [vmem:[#allocation2 + $0x50] sm:$0xff] (!%p2076_p11) }
 0x1a4   : > { %v1401_v45 = vadd.f32 %v1365_v33, %v535_v31  ;;  %v1368_v37 = vadd.f32 %v2504_v42, %v2991_v56  ;;  %v2407_v47 = vpop.f32.mrb[47].mxu0  ;;  %v1359_v51 = vpop.f32.mrb[47].mxu1  ;;  %v2161_v33 = vunpack.c.l.bf16 (!%p2076_p11), %v2293_v22  ;;  %v1450_v42 = vld [vmem:[#allocation2 + $0x58] sm:$0xff] (!%p2076_p11) }
 0x1a5   : > { %v1333_v52 = vadd.f32 %v2993_v49, %v2405_v20  ;;  %v1399_v50 = vadd.f32 %v1357_v39, %v533_v35  ;;  %v2408_v53 = vadd.f32 %v2407_v47, %v2406_v40  ;;  %v1360_v54 = vadd.f32 %v2987_v44, %v1359_v51  ;;  %1438 = sbr.rel (%p2076_p11) target bundleno = 464 (0x1d0), region = 70  ;;  %v1439_v49 = vld [vmem:[#allocation2] sm:$0xff] (!%p2076_p11) }
 0x1a6   : > { %1433 = vst [vmem:[#allocation2 + $0xf0] sm:$0xff] %v1401_v45  ;;  %v1402_v57 = vadd.f32 %v1368_v37, %v536_v41  ;;  %v3011_v44 = vld [vmem:[%s3158_s2] ss:$0 sm:$0xff] (!%p2076_p11)  ;;  %v2295_v45 = vld [vmem:[%s3159_s3 + $0x28] sm:$0xff] (!%p2076_p11)  }
 0x1a7   : > { %v1393_v38 = vadd.f32 %v1333_v52, %v527_v46  ;;  %1431 = vst [vmem:[#allocation2 + $0xe0] sm:$0xff] %v1399_v50  ;;  %v1336_v43 = vadd.f32 %v2995_v55, %v2408_v53  ;;  %v1400_v59 = vadd.f32 %v1360_v54, %v534_v48  ;;  %v1478_v61 = vadd.f32 (!%p2076_p11), %v3011_v44, %v1439_v49  ;;  %v2294_v35 = vld [vmem:[%s3159_s3 + $0x20] sm:$0xff] (!%p2076_p11)  }
 0x1a8   : > { %1434 = vst [vmem:[#allocation2 + $0xf8] sm:$0xff] %v1402_v57  ;;  %v1479_v55 = vadd.f32 (!%p2076_p11), %v3011_v44, %v1440_v60  ;;  %v1480_v4 = vadd.f32 (!%p2076_p11), %v3011_v44, %v1441_v63  ;;  %v1481_v5 = vadd.f32 (!%p2076_p11), %v3011_v44, %v1442_v1  ;;  %v1482_v10 = vadd.f32 (!%p2076_p11), %v3011_v44, %v1443_v6  ;;  %v1451_v51 = vld [vmem:[#allocation2 + $0x60] sm:$0xff] (!%p2076_p11)  ;;  %v1452_v57 = vld [vmem:[#allocation2 + $0x68] sm:$0xff] (!%p2076_p11)  ;;  %v1454_v63 = vld [vmem:[#allocation2 + $0x78] sm:$0xff] (!%p2076_p11) }
 0x1a9   : > { %1425 = vst [vmem:[#allocation2 + $0xb0] sm:$0xff] %v1393_v38  ;;  %v1394_v56 = vadd.f32 %v1336_v43, %v528_v58  ;;  %1432 = vst [vmem:[#allocation2 + $0xe8] sm:$0xff] %v1400_v59  ;;  %v1483_v12 = vadd.f32 (!%p2076_p11), %v3011_v44, %v1444_v7  ;;  %v1574_v18 = vadd.f32 (!%p2076_p11), %v2149_v2, %v1478_v61  ;;  %v2165_v50 = vunpack.c.l.bf16 (!%p2076_p11), %v2294_v35  ;;  %v2296_v58 = vld [vmem:[%s3159_s3 + $0x30] sm:$0xff] (!%p2076_p11)  }
 0x1aa   : > { %v1575_v11 = vadd.f32 (!%p2076_p11), %v2150_v3, %v1479_v55  ;;  %v1576_v23 = vadd.f32 (!%p2076_p11), %v2153_v8, %v1480_v4  ;;  %v1577_v26 = vadd.f32 (!%p2076_p11), %v2154_v9, %v1481_v5  ;;  %v1484_v24 = vadd.f32 (!%p2076_p11), %v3011_v44, %v1445_v16  ;;  %v2297_v5 = vld [vmem:[%s3159_s3 + $0x38] sm:$0xff] (!%p2076_p11)   ;;  %v1455_v9 = vld [vmem:[#allocation2 + $0x80] sm:$0xff] (!%p2076_p11) }
 0x1ab   : > { %1426 = vst [vmem:[#allocation2 + $0xb8] sm:$0xff] %v1394_v56  ;;  %v1485_v25 = vadd.f32 (!%p2076_p11), %v3011_v44, %v1446_v17  ;;  %v1606_v28 = vmax.f32 (!%p2076_p11), %v1574_v18, 0.0  ;;  %v1578_v29 = vadd.f32 (!%p2076_p11), %v2157_v13, %v1482_v10  ;;  %v1579_v30 = vadd.f32 (!%p2076_p11), %v2158_v21, %v1483_v12  ;;  %v1456_v10 = vld [vmem:[#allocation2 + $0x88] sm:$0xff] (!%p2076_p11)  ;;  %v2298_v18 = vld [vmem:[%s3159_s3 + $0x40] sm:$0xff] (!%p2076_p11)  }
 0x1ac   : > { %v1607_v14 = vmax.f32 %v1575_v11, 0.0  ;;  %v1608_v31 = vmax.f32 %v1576_v23, 0.0  ;;  %v1609_v19 = vmax.f32 %v1577_v26, 0.0  ;;  %v1486_v41 = vadd.f32 %v3011_v44, %v1447_v27  ;;  %v1457_v23 = vld [vmem:[#allocation2 + $0x90] sm:$0xff]  ;;  %v1458_v26 = vld [vmem:[#allocation2 + $0x98] sm:$0xff] }
 0x1ad   : > { %v1610_v39 = vmax.f32 %v1578_v29, 0.0  ;;  %v1611_v40 = vmax.f32 %v1579_v30, 0.0  ;;  %v1580_v37 = vadd.f32 %v2161_v33, %v1484_v24  ;;  %v1581_v47 = vadd.f32 %v2162_v34, %v1485_v25 }
 0x1ae   : > { %v2214_v20 = vpack.c.bf16 %v1607_v14, %v1606_v28  ;;  %v2219_v46 = vpack.c.bf16 %v1609_v19, %v1608_v31  ;;  %v1487_v48 = vadd.f32 %v3011_v44, %v1448_v32  ;;  %v2166_v53 = vunpack.c.h.bf16 %v2294_v35  ;;  %v2299_v14 = vld [vmem:[%s3159_s3 + $0x48] sm:$0xff]   ;;  %v1459_v19 = vld [vmem:[#allocation2 + $0xa0] sm:$0xff] }
 0x1af   : > { %v2224_v52 = vpack.c.bf16 %v1611_v40, %v1610_v39  ;;  %v1488_v54 = vadd.f32 %v3011_v44, %v1449_v36  ;;  %v1612_v38 = vmax.f32 %v1580_v37, 0.0  ;;  %v1613_v43 = vmax.f32 %v1581_v47, 0.0  ;;  %v2300_v39 = vld [vmem:[%s3159_s3 + $0x50] sm:$0xff]  }
 0x1b0   : > { %2215 = vst [vmem:[%s3160_s4] sm:$0xff] %v2214_v20   ;;  %2306 = vst [vmem:[%s3160_s4 + $0x8] sm:$0xff] %v2219_v46   ;;  %v1489_v59 = vadd.f32 %v3011_v44, %v1450_v42  ;;  %v2169_v56 = vunpack.c.l.bf16 %v2295_v45  ;;  %v1582_v49 = vadd.f32 %v2165_v50, %v1486_v41  ;;  %v1583_v60 = vadd.f32 %v2166_v53, %v1487_v48  ;;  %v1460_v20 = vld [vmem:[#allocation2 + $0xa8] sm:$0xff] }
 0x1b1   : > { %2307 = vst [vmem:[%s3160_s4 + $0x10] sm:$0xff] %v2224_v52   ;;  %v2170_v61 = vunpack.c.h.bf16 %v2295_v45  ;;  %v1490_v55 = vadd.f32 %v3011_v44, %v1451_v51  ;;  %v2229_v1 = vpack.c.bf16 %v1613_v43, %v1612_v38  ;;  %v1491_v3 = vadd.f32 %v3011_v44, %v1452_v57  ;;  %v1461_v51 = vld [vmem:[#allocation2 + $0xb0] sm:$0xff] }
 0x1b2   : > { %v1584_v2 = vadd.f32 %v2169_v56, %v1488_v54  ;;  %v2173_v4 = vunpack.c.l.bf16 %v2296_v58  ;;  %v1614_v0 = vmax.f32 %v1582_v49, 0.0  ;;  %v1615_v6 = vmax.f32 %v1583_v60, 0.0  ;;  %v1462_v52 = vld [vmem:[#allocation2 + $0xb8] sm:$0xff]  ;;  %v1463_v49 = vld [vmem:[#allocation2 + $0xc0] sm:$0xff]  ;;  %v1464_v60 = vld [vmem:[#allocation2 + $0xc8] sm:$0xff] }
 0x1b3   : > { %v1585_v7 = vadd.f32 %v2170_v61, %v1489_v59  ;;  %v2174_v8 = vunpack.c.h.bf16 %v2296_v58  ;;  %2308 = vst [vmem:[%s3160_s4 + $0x18] sm:$0xff] %v2229_v1   ;;  %v1492_v16 = vadd.f32 %v3011_v44, %v1453_v62  ;;  %v1493_v17 = vadd.f32 %v3011_v44, %v1454_v63  ;;  %v2301_v58 = vld [vmem:[%s3159_s3 + $0x58] sm:$0xff]   ;;  %v2302_v1 = vld [vmem:[%s3159_s3 + $0x60] sm:$0xff]  }
 0x1b4   : > { %v1616_v12 = vmax.f32 %v1584_v2, 0.0  ;;  %v1586_v15 = vadd.f32 %v2173_v4, %v1490_v55  ;;  %v2234_v11 = vpack.c.bf16 %v1615_v6, %v1614_v0  ;;  %v2177_v22 = vunpack.c.l.bf16 %v2297_v5  ;;  %v1465_v0 = vld [vmem:[#allocation2 + $0xd0] sm:$0xff]  ;;  %v1466_v6 = vld [vmem:[#allocation2 + $0xd8] sm:$0xff] }
 0x1b5   : > { %v1617_v13 = vmax.f32 %v1585_v7, 0.0  ;;  %v1587_v21 = vadd.f32 %v2174_v8, %v1491_v3  ;;  %v2178_v25 = vunpack.c.h.bf16 %v2297_v5  ;;  %v1494_v27 = vadd.f32 %v3011_v44, %v1455_v9 }
 0x1b6   : > { %v1618_v24 = vmax.f32 %v1586_v15, 0.0  ;;  %v1495_v28 = vadd.f32 %v3011_v44, %v1456_v10  ;;  %2309 = vst [vmem:[%s3160_s4 + $0x20] sm:$0xff] %v2234_v11   ;;  %v1588_v32 = vadd.f32 %v2177_v22, %v1492_v16  ;;  %v2181_v31 = vunpack.c.l.bf16 %v2298_v18  ;;  %v1467_v11 = vld [vmem:[#allocation2 + $0xe0] sm:$0xff] }
 0x1b7   : > { %v2239_v29 = vpack.c.bf16 %v1617_v13, %v1616_v12  ;;  %v1619_v30 = vmax.f32 %v1587_v21, 0.0  ;;  %v1589_v33 = vadd.f32 %v2178_v25, %v1493_v17  ;;  %v2182_v34 = vunpack.c.h.bf16 %v2298_v18  ;;  %v2303_v12 = vld [vmem:[%s3159_s3 + $0x68] sm:$0xff]  }
 0x1b8   : > { %v1496_v35 = vadd.f32 %v3011_v44, %v1457_v23  ;;  %v1497_v36 = vadd.f32 %v3011_v44, %v1458_v26  ;;  %v1620_v41 = vmax.f32 %v1588_v32, 0.0  ;;  %v1590_v42 = vadd.f32 %v2181_v31, %v1494_v27  ;;  %v1468_v26 = vld [vmem:[#allocation2 + $0xe8] sm:$0xff] }
 0x1b9   : > { %2310 = vst [vmem:[%s3160_s4 + $0x28] sm:$0xff] %v2239_v29   ;;  %v2244_v40 = vpack.c.bf16 %v1619_v30, %v1618_v24  ;;  %v2185_v45 = vunpack.c.l.bf16 %v2299_v14  ;;  %v1621_v46 = vmax.f32 %v1589_v33, 0.0  ;;  %v1591_v37 = vadd.f32 %v2182_v34, %v1495_v28  ;;  %v2304_v24 = vld [vmem:[%s3159_s3 + $0x70] sm:$0xff]   ;;  %v1470_v33 = vld [vmem:[#allocation2 + $0xf8] sm:$0xff] }
 0x1ba   : > { %v2186_v47 = vunpack.c.h.bf16 %v2299_v14  ;;  %v1498_v48 = vadd.f32 %v3011_v44, %v1459_v19  ;;  %v1622_v50 = vmax.f32 %v1590_v42, 0.0  ;;  %v1499_v54 = vadd.f32 %v3011_v44, %v1460_v20  ;;  %v1469_v19 = vld [vmem:[#allocation2 + $0xf0] sm:$0xff] }
 0x1bb   : > { %2311 = vst [vmem:[%s3160_s4 + $0x30] sm:$0xff] %v2244_v40   ;;  %v1592_v53 = vadd.f32 %v2185_v45, %v1496_v35  ;;  %v2189_v57 = vunpack.c.l.bf16 %v2300_v39  ;;  %v2249_v38 = vpack.c.bf16 %v1621_v46, %v1620_v41  ;;  %v1623_v43 = vmax.f32 %v1591_v37, 0.0 }
 0x1bc   : > { %v1593_v59 = vadd.f32 %v2186_v47, %v1497_v36  ;;  %v2190_v56 = vunpack.c.h.bf16 %v2300_v39  ;;  %v1500_v62 = vadd.f32 %v3011_v44, %v1461_v51  ;;  %v1501_v63 = vadd.f32 %v3011_v44, %v1462_v52  ;;  %v2305_v39 = vld [vmem:[%s3159_s3 + $0x78] sm:$0xff]  }
 0x1bd   : > { %v1624_v61 = vmax.f32 %v1592_v53, 0.0  ;;  %v1594_v55 = vadd.f32 %v2189_v57, %v1498_v48  ;;  %2312 = vst [vmem:[%s3160_s4 + $0x38] sm:$0xff] %v2249_v38   ;;  %v2254_v2 = vpack.c.bf16 %v1623_v43, %v1622_v50  ;;  %v2193_v5 = vunpack.c.l.bf16 %v2301_v58 }
 0x1be   : > { %v1625_v3 = vmax.f32 %v1593_v59, 0.0  ;;  %v1595_v4 = vadd.f32 %v2190_v56, %v1499_v54  ;;  %v2194_v8 = vunpack.c.h.bf16 %v2301_v58  ;;  %v1502_v9 = vadd.f32 %v3011_v44, %v1463_v49 }
 0x1bf   : > { %v1626_v7 = vmax.f32 %v1594_v55, 0.0  ;;  %v1503_v10 = vadd.f32 %v3011_v44, %v1464_v60  ;;  %2313 = vst [vmem:[%s3160_s4 + $0x40] sm:$0xff] %v2254_v2   ;;  %v1596_v17 = vadd.f32 %v2193_v5, %v1500_v62  ;;  %v2197_v18 = vunpack.c.l.bf16 %v2302_v1 }
 0x1c0   : > { %v2259_v15 = vpack.c.bf16 %v1625_v3, %v1624_v61  ;;  %v1627_v16 = vmax.f32 %v1595_v4, 0.0  ;;  %v1597_v13 = vadd.f32 %v2194_v8, %v1501_v63  ;;  %v2198_v21 = vunpack.c.h.bf16 %v2302_v1 }
 0x1c1   : > { %v1504_v22 = vadd.f32 %v3011_v44, %v1465_v0  ;;  %v1505_v23 = vadd.f32 %v3011_v44, %v1466_v6  ;;  %v1628_v27 = vmax.f32 %v1596_v17, 0.0  ;;  %v1598_v28 = vadd.f32 %v2197_v18, %v1502_v9 }
 0x1c2   : > { %2314 = vst [vmem:[%s3160_s4 + $0x48] sm:$0xff] %v2259_v15   ;;  %v2264_v25 = vpack.c.bf16 %v1627_v16, %v1626_v7  ;;  %v2201_v14 = vunpack.c.l.bf16 %v2303_v12  ;;  %v1629_v29 = vmax.f32 %v1597_v13, 0.0  ;;  %v1599_v30 = vadd.f32 %v2198_v21, %v1503_v10 }
 0x1c3   : > { %v2202_v32 = vunpack.c.h.bf16 %v2303_v12  ;;  %v1506_v31 = vadd.f32 %v3011_v44, %v1467_v11  ;;  %v1630_v34 = vmax.f32 %v1598_v28, 0.0  ;;  %v1507_v36 = vadd.f32 %v3011_v44, %v1468_v26 }
 0x1c4   : > { %2315 = vst [vmem:[%s3160_s4 + $0x50] sm:$0xff] %v2264_v25   ;;  %v1600_v35 = vadd.f32 %v2201_v14, %v1504_v22  ;;  %v2205_v20 = vunpack.c.l.bf16 %v2304_v24  ;;  %v2269_v40 = vpack.c.bf16 %v1629_v29, %v1628_v27  ;;  %v1631_v41 = vmax.f32 %v1599_v30, 0.0 }
 0x1c5   : > { %v1601_v42 = vadd.f32 %v2202_v32, %v1505_v23  ;;  %v2206_v45 = vunpack.c.h.bf16 %v2304_v24  ;;  %v1508_v47 = vadd.f32 %v3011_v44, %v1469_v19  ;;  %v1509_v48 = vadd.f32 %v3011_v44, %v1470_v33 }
 0x1c6   : > { %v1632_v46 = vmax.f32 %v1600_v35, 0.0  ;;  %v1602_v37 = vadd.f32 %v2205_v20, %v1506_v31  ;;  %2316 = vst [vmem:[%s3160_s4 + $0x58] sm:$0xff] %v2269_v40   ;;  %v2274_v51 = vpack.c.bf16 %v1631_v41, %v1630_v34  ;;  %v2209_v53 = vunpack.c.l.bf16 %v2305_v39 }
 0x1c7   : > { %v1633_v52 = vmax.f32 %v1601_v42, 0.0  ;;  %v1603_v50 = vadd.f32 %v2206_v45, %v1507_v36  ;;  %v2210_v57 = vunpack.c.h.bf16 %v2305_v39 }
 0x1c8   : > { %v1634_v54 = vmax.f32 %v1602_v37, 0.0  ;;  %2317 = vst [vmem:[%s3160_s4 + $0x60] sm:$0xff] %v2274_v51   ;;  %v1604_v43 = vadd.f32 %v2209_v53, %v1508_v47 }
 0x1c9   : > { %v2279_v58 = vpack.c.bf16 %v1633_v52, %v1632_v46  ;;  %v1635_v38 = vmax.f32 %v1603_v50, 0.0  ;;  %v1605_v59 = vadd.f32 %v2210_v57, %v1509_v48 }
 0x1ca   : > { %v1636_v56 = vmax.f32 %v1604_v43, 0.0 }
 0x1cb   : > { %2318 = vst [vmem:[%s3160_s4 + $0x68] sm:$0xff] %v2279_v58   ;;  %v2284_v44 = vpack.c.bf16 %v1635_v38, %v1634_v54  ;;  %v1637_v49 = vmax.f32 %v1605_v59, 0.0 }
 0x1cd   : > { %2319 = vst [vmem:[%s3160_s4 + $0x70] sm:$0xff] %v2284_v44   ;;  %v2289_v60 = vpack.c.bf16 %v1637_v49, %v1636_v56 }
 0x1cf   : > { %2320 = vst [vmem:[%s3160_s4 + $0x78] sm:$0xff] %v2289_v60  }
 0x1d0 PF: > { %s14_s19 = sadd.s32 1, %s2690_s19   ;;  %s3161_s15 = smov %s2678_s16 }
 0x1d1   : > { %p11_p12 = scmp.ge.s32.totalorder %s14_s19, 5   ;;  %s3162_s16 = smov %s2753_s23 }
 0x1d2   : > { %s3163_s17 = smov %s2686_s18  ;;  %s3164_s18 = smov %s3166_s20 }
 0x1d3   :  { %13 = sbr.rel (!%p11_p12) target bundleno = 3 (0x3), region = 120 }

// kernel: modified_res18_forward.26
= control target key start
LH: loop header
LB: loop body
LE: loop exit
PB: predicated region body
PF: predicated region fallthrough
CT: control target
= control target key end

     0   :  { %s1267_s12 = smov 0   ;;  %s1269_s13 = smov 0   ;;  %s1407_s0 = inlined_call_operand.vmem [shape: bf16[64,1152], index: 0, kind: input, shape index: {}]   ;;  %s1408_s1 = inlined_call_operand.vmem [shape: bf16[1152,128], index: 1, kind: input, shape index: {}]   ;;  %s1409_s2 = inlined_call_operand.vmem [shape: f32[1,128], index: 2, kind: input, shape index: {}]   ;;  %s1410_s3 = inlined_call_operand.vmem [shape: bf16[64,128], index: 3, kind: output, shape index: {}]  }
   0x1   :  { %s1271_s14 = smov 0   ;;  %s1273_s15 = smov 0  }
   0x2   :  { %s1275_s16 = smov 0  }
   0x3 LB: > { %s25_s17 = sadd.s32 1, %s1240_s15  ;;  %p48_p1 = scmp.ne.s32.totalorder %s1232_s13, %s1228_s12  ;;  %s1244_s16 = sphi %s1275_s16, %s13_s16   ;;  %s1240_s15 = sphi %s1273_s15, %s1414_s15   ;;  %s1236_s14 = sphi %s1271_s14, %s1413_s14   ;;  %s1232_s13 = sphi %s1269_s13, %s1412_s13   ;;  %s1228_s12 = sphi %s1267_s12, %s1411_s12  }
   0x4   : > { %p26_p0 = scmp.ge.s32.totalorder %s25_s17, 3  ;;  %p49_p2 = scmp.eq.s32.totalorder %s1244_s16, 0 }
   0x5   : > { %s41_s19 = sadd.s32 1, %s1232_s13  ;;  %p944_p5 = scmp.ge.s32.totalorder %s1244_s16, 3 }
   0x6   : > { %s1416_s17 = smov (%p26_p0, %s25_s17), 0  ;;  %p50_p3 = por %p49_p2, %p48_p1 }
   0x7   : > { %s37_s18 = ssub.s32 %s1240_s15, %s1416_s17  ;;  %162 = sbr.rel (%p944_p5) target bundleno = 28 (0x1c), region = 20 }
   0x8   : > { %p39_p4 = scmp.eq.s32.totalorder %s37_s18, 0 }
   0xa   : > { %s1302_s20 = scalar_select %p39_p4, %s1232_s13, %s41_s19  }
   0xe   : > { %165 = sbr.rel (!%p50_p3) target bundleno = 28 (0x1c), region = 24  ;;  %s167_s21 = sand.u32 (%p50_p3), 1, %s1232_s13  }
   0xf   : > { %s1015_s22 = smul.u32 (%p50_p3), 12, %s1240_s15 }
  0x10   : > { %s1123_s23 = smul.u32 (%p50_p3), 96, %s167_s21 }
  0x11   : > { %s1310_s26 = scalar_lea.vmem (%p50_p3), %s1407_s0, %s1015_s22 }
  0x12   : > { %v190_v0 = vld [vmem:[%s1310_s26] sm:$0xff] (%p50_p3)  ;;  %v194_v2 = vld [vmem:[%s1310_s26 + $0x48] sm:$0xff] (%p50_p3)  ;;  %s169_s27 = scalar_lea.vmem (%p50_p3), [#allocation3], %s1123_s23  ;;  %v198_v4 = vld [vmem:[%s1310_s26 + $0x90] sm:$0xff] (%p50_p3) }
  0x13   : > { %v192_v1 = vld [vmem:[%s1310_s26 + $0x24] sm:$0xff] (%p50_p3)  ;;  %191 = vst [vmem:[%s169_s27] sm:$0xff] (%p50_p3), %v190_v0  ;;  %195 = vst [vmem:[%s169_s27 + $0x18] sm:$0xff] (%p50_p3), %v194_v2  ;;  %v196_v3 = vld [vmem:[%s1310_s26 + $0x6c] sm:$0xff] (%p50_p3) }
  0x14   : > { %193 = vst [vmem:[%s169_s27 + $0xc] sm:$0xff] (%p50_p3), %v192_v1  ;;  %v200_v5 = vld [vmem:[%s1310_s26 + $0xb4] sm:$0xff] (%p50_p3)  ;;  %197 = vst [vmem:[%s169_s27 + $0x24] sm:$0xff] (%p50_p3), %v196_v3  ;;  %v204_v7 = vld [vmem:[%s1310_s26 + $0xfc] sm:$0xff] (%p50_p3) }
  0x15   : > { %199 = vst [vmem:[%s169_s27 + $0x30] sm:$0xff] %v198_v4  ;;  %201 = vst [vmem:[%s169_s27 + $0x3c] sm:$0xff] %v200_v5  ;;  %v202_v6 = vld [vmem:[%s1310_s26 + $0xd8] sm:$0xff]  ;;  %v946_v8 = vld [vmem:[%s1310_s26 + $0x8] sm:$0xf] }
  0x16   : > { %203 = vst [vmem:[%s169_s27 + $0x48] sm:$0xff] %v202_v6  ;;  %205 = vst [vmem:[%s169_s27 + $0x54] sm:$0xff] %v204_v7  ;;  %v948_v9 = vld [vmem:[%s1310_s26 + $0x2c] sm:$0xf]  ;;  %v950_v10 = vld [vmem:[%s1310_s26 + $0x50] sm:$0xf] }
  0x17   : > { %947 = vst [vmem:[%s169_s27 + $0x8] sm:$0xf] %v946_v8  ;;  %v952_v11 = vld [vmem:[%s1310_s26 + $0x74] sm:$0xf]  ;;  %949 = vst [vmem:[%s169_s27 + $0x14] sm:$0xf] %v948_v9 }
  0x18   : > { %951 = vst [vmem:[%s169_s27 + $0x20] sm:$0xf] %v950_v10  ;;  %953 = vst [vmem:[%s169_s27 + $0x2c] sm:$0xf] %v952_v11  ;;  %v954_v12 = vld [vmem:[%s1310_s26 + $0x98] sm:$0xf] }
  0x19   : > { %v956_v13 = vld [vmem:[%s1310_s26 + $0xbc] sm:$0xf]  ;;  %v958_v14 = vld [vmem:[%s1310_s26 + $0xe0] sm:$0xf]  ;;  %955 = vst [vmem:[%s169_s27 + $0x38] sm:$0xf] %v954_v12 }
  0x1a   : > { %957 = vst [vmem:[%s169_s27 + $0x44] sm:$0xf] %v956_v13  ;;  %959 = vst [vmem:[%s169_s27 + $0x50] sm:$0xf] %v958_v14  ;;  %v960_v15 = vld [vmem:[%s1310_s26 + $0x104] sm:$0xf] }
  0x1b   : > { %961 = vst [vmem:[%s169_s27 + $0x5c] sm:$0xf] %v960_v15 }
  0x1c PF: > { %p962_p6 = scmp.ge.s32.totalorder %s1244_s16, 1  ;;  %p245_p7 = scmp.lt.s32.totalorder %s1244_s16, 4 }
  0x1e   : > { %p246_p8 = pnand %p962_p6, %p245_p7 }
  0x1f   : > { %s252_s28 = sand.u32 (!%p246_p8), 1, %s1228_s12   ;;  %s291_s29 = smul.u32 (!%p246_p8), 48, %s1236_s14 }
  0x20   : > { %249 = sbr.rel (%p246_p8) target bundleno = 339 (0x153), region = 54  ;;  %p964_p10 = scmp.ne.s32.totalorder (!%p246_p8), %s1236_s14, 0 }
  0x21   : > { %s1124_s30 = smul.u32 (!%p246_p8), 96, %s252_s28  ;;  %p292_p9 = scmp.lt.s32.totalorder (!%p246_p8), %s291_s29, 143 }
  0x23   : > { %s1337_s8 = scalar_lea.vmem (!%p246_p8), [#allocation3], %s1124_s30 }
  0x27   : > { %s1418_s29 = smov (!%p292_p9, %s291_s29), 143  ;;  %316 = sbr.rel (%p964_p10) target bundleno = 46 (0x2e), region = 62 }
  0x28   : > { %s963_s4 = sshll.u32 %s1418_s29, 2  ;;  %v1246_v16 = vmov (!%p964_p10), 0.0  }
  0x29   : > { %s1335_s7 = scalar_lea.vmem %s1408_s1, %s963_s4  ;;  %317 = vst [vmem:[#allocation2] sm:$0xff] (!%p964_p10), %v1246_v16  ;;  %318 = vst [vmem:[#allocation2 + $0x8] sm:$0xff] (!%p964_p10), %v1246_v16 }
  0x2a   : > { %319 = vst [vmem:[#allocation2 + $0x10] sm:$0xff] (!%p964_p10), %v1246_v16  ;;  %320 = vst [vmem:[#allocation2 + $0x18] sm:$0xff] (!%p964_p10), %v1246_v16 }
  0x2b   : > { %321 = vst [vmem:[#allocation2 + $0x20] sm:$0xff] (!%p964_p10), %v1246_v16  ;;  %322 = vst [vmem:[#allocation2 + $0x28] sm:$0xff] (!%p964_p10), %v1246_v16 }
  0x2c   : > { %323 = vst [vmem:[#allocation2 + $0x30] sm:$0xff] (!%p964_p10), %v1246_v16  ;;  %324 = vst [vmem:[#allocation2 + $0x38] sm:$0xff] (!%p964_p10), %v1246_v16 }
  0x2e PF: > { %v1166_v17 = vld [vmem:[%s1335_s7 + $0x40] sm:$0xff]   ;;  %v1169_v20 = vld [vmem:[%s1335_s7 + $0x48] sm:$0xff]   ;;  %v1172_v23 = vld [vmem:[%s1335_s7 + $0x50] sm:$0xff]   ;;  %p1001_p11 = scmp.ne.s32.totalorder %s1236_s14, 2 }
  0x2f   : > { %v1167_v18 = vld [vmem:[%s1335_s7] sm:$0xff]   ;;  %1047 = vmatprep.subr.bf16.mxu0 %v1166_v17  ;;  %v1170_v21 = vld [vmem:[%s1335_s7 + $0x8] sm:$0xff]   ;;  %v1173_v24 = vld [vmem:[%s1335_s7 + $0x10] sm:$0xff]  }
  0x30   : > { %v1168_v19 = vld [vmem:[%s1335_s7 + $0x80] sm:$0xff]   ;;  %1048 = vmatpush3.bf16.msra.mxu0 %v1167_v18  ;;  %v1171_v22 = vld [vmem:[%s1335_s7 + $0x88] sm:$0xff]   ;;  %v1174_v25 = vld [vmem:[%s1335_s7 + $0x90] sm:$0xff]  }
  0x31   : > { %1099 = vmatprep.subr.bf16.mxu1 %v1168_v19  ;;  %1049 = vmatprep.subr.bf16.mxu0 %v1169_v20  ;;  %v1175_v26 = vld [vmem:[%s1335_s7 + $0x58] sm:$0xff]   ;;  %v1178_v29 = vld [vmem:[%s1335_s7 + $0x60] sm:$0xff]   ;;  %v1181_v32 = vld [vmem:[%s1335_s7 + $0x68] sm:$0xff]  }
  0x32   : > { %1100 = vmatpush3.bf16.msra.mxu1 %v1168_v19  ;;  %v1176_v27 = vld [vmem:[%s1335_s7 + $0x18] sm:$0xff]   ;;  %v1180_v30 = vld [vmem:[%s1335_s7 + $0xa0] sm:$0xff]   ;;  %v1183_v33 = vld [vmem:[%s1335_s7 + $0xa8] sm:$0xff]  }
  0x33   : > { %1101 = vmatprep.subr.bf16.mxu1 %v1171_v22  ;;  %v1177_v28 = vld [vmem:[%s1335_s7 + $0x98] sm:$0xff]   ;;  %v1179_v31 = vld [vmem:[%s1335_s7 + $0x20] sm:$0xff]   ;;  %v1182_v34 = vld [vmem:[%s1335_s7 + $0x28] sm:$0xff]  }
  0x34   : > { %1050 = vmatpush3.bf16.msra.mxu0 %v1170_v21  ;;  %v1184_v35 = vld [vmem:[%s1335_s7 + $0x70] sm:$0xff]   ;;  %v1187_v38 = vld [vmem:[%s1335_s7 + $0x78] sm:$0xff]   ;;  %v1190_v43 = vld [vmem:[%s1337_s8] ss:$12 sps:$4 sm:$0xff]  }
  0x35   : > { %1051 = vmatprep.subr.bf16.mxu0 %v1172_v23  ;;  %v1185_v36 = vld [vmem:[%s1335_s7 + $0x30] sm:$0xff]   ;;  %v1189_v39 = vld [vmem:[%s1335_s7 + $0xb8] sm:$0xff]   ;;  %v1194_v45 = vld [vmem:[%s1337_s8 + $0x20] ss:$12 sps:$4 sm:$0xff]  }
  0x36   : > { %1102 = vmatpush3.bf16.msra.mxu1 %v1171_v22  ;;  %v1186_v37 = vld [vmem:[%s1335_s7 + $0xb0] sm:$0xff]   ;;  %v1188_v42 = vld [vmem:[%s1335_s7 + $0x38] sm:$0xff]   ;;  %v325_v59 = vld [vmem:[#allocation2] sm:$0xff] }
  0x37   : > { %1103 = vmatprep.subr.bf16.mxu1 %v1174_v25  ;;  %v1192_v40 = vld [vmem:[%s1337_s8 + $0x4] ss:$12 sps:$4 sm:$0xff]   ;;  %v1193_v41 = vld [vmem:[%s1337_s8 + $0x8] ss:$12 sps:$4 sm:$0xff]   ;;  %v1203_v51 = vld [vmem:[%s1337_s8 + $0x4c] ss:$12 sps:$4 sm:$0xff]  }
  0x38   : > { %1052 = vmatpush3.bf16.msra.mxu0 %v1173_v24  ;;  %637 = vmatprep.mubr.bf16.mxu0 %v1192_v40  ;;  %v1195_v44 = vld [vmem:[%s1337_s8 + $0x1c] ss:$12 sps:$4 sm:$0xff]   ;;  %v1201_v46 = vld [vmem:[%s1337_s8 + $0x38] ss:$12 sps:$4 sm:$0xff]   ;;  %v1198_v48 = vld [vmem:[%s1337_s8 + $0x34] ss:$12 sps:$4 sm:$0xff]  }
  0x39   : > { %1053 = vmatprep.subr.bf16.mxu0 %v1175_v26  ;;  %1115 = vmatprep.mubr.bf16.mxu1 %v1193_v41  ;;  %v1197_v47 = vld [vmem:[%s1337_s8 + $0x18] ss:$12 sps:$4 sm:$0xff]   ;;  %v1202_v49 = vld [vmem:[%s1337_s8 + $0x50] ss:$12 sps:$4 sm:$0xff]   ;;  %v1205_v52 = vld [vmem:[%s1337_s8 + $0x48] ss:$12 sps:$4 sm:$0xff]  }
  0x3a   : > { %1104 = vmatpush3.bf16.msra.mxu1 %v1174_v25  ;;  %v1200_v50 = vld [vmem:[%s1337_s8 + $0x30] ss:$12 sps:$4 sm:$0xff]   ;;  %v326_v0 = vld [vmem:[#allocation2 + $0x8] sm:$0xff]  ;;  %v329_v26 = vld [vmem:[#allocation2 + $0x20] sm:$0xff] }
  0x3b   : > { %1105 = vmatprep.subr.bf16.mxu1 %v1177_v28  ;;  %v327_v10 = vld [vmem:[#allocation2 + $0x10] sm:$0xff]  ;;  %v328_v16 = vld [vmem:[#allocation2 + $0x18] sm:$0xff] }
  0x3c   : > { %1054 = vmatpush3.bf16.msra.mxu0 %v1176_v27  ;;  %v332_v41 = vld [vmem:[#allocation2 + $0x38] sm:$0xff] }
  0x3d   : > { %1055 = vmatprep.subr.bf16.mxu0 %v1178_v29  ;;  %v330_v29 = vld [vmem:[#allocation2 + $0x28] sm:$0xff] }
  0x3e   : > { %1106 = vmatpush3.bf16.msra.mxu1 %v1177_v28 }
  0x3f   : > { %1107 = vmatprep.subr.bf16.mxu1 %v1180_v30 }
  0x40   : > { %1056 = vmatpush3.bf16.msra.mxu0 %v1179_v31 }
  0x41   : > { %1057 = vmatprep.subr.bf16.mxu0 %v1181_v32 }
  0x42   : > { %1108 = vmatpush3.bf16.msra.mxu1 %v1180_v30 }
  0x43   : > { %1109 = vmatprep.subr.bf16.mxu1 %v1183_v33 }
  0x44   : > { %1058 = vmatpush3.bf16.msra.mxu0 %v1182_v34 }
  0x45   : > { %1059 = vmatprep.subr.bf16.mxu0 %v1184_v35 }
  0x46   : > { %1110 = vmatpush3.bf16.msra.mxu1 %v1183_v33 }
  0x47   : > { %1111 = vmatprep.subr.bf16.mxu1 %v1186_v37 }
  0x48   : > { %1060 = vmatpush3.bf16.msra.mxu0 %v1185_v36 }
  0x49   : > { %1061 = vmatprep.subr.bf16.mxu0 %v1187_v38 }
  0x4a   : > { %1112 = vmatpush3.bf16.msra.mxu1 %v1186_v37  ;;  %v331_v37 = vld [vmem:[#allocation2 + $0x30] sm:$0xff] }
  0x4b   : > { %1113 = vmatprep.subr.bf16.mxu1 %v1189_v39 }
  0x4c   : > { %1062 = vmatpush3.bf16.msra.mxu0 %v1188_v42 }
  0x4e   : > { %1114 = vmatpush3.bf16.msra.mxu1 %v1189_v39 }
  0x4f   : > { %638 = vmatmul.mubr.bf16.vlgmr.msra.gmra.mrb[0].mxu0 %v1190_v43 }
  0x50   : > { %645 = vmatprep.mubr.bf16.mxu0 %v1195_v44 }
  0x51   : > { %1116 = vmatmul.mubr.bf16.vlgmr.msra.gmra.mrb[0].mxu1 %v1194_v45 }
  0x52   : > { %1119 = vmatprep.mubr.bf16.mxu1 %v1201_v46 }
  0x57   : > { %646 = vmatmul.mubr.bf16.gmra.mrb[4].mxu0 %v1197_v47  ;;  %v1002_v47 = vld [vmem:[%s1409_s2] ss:$0 sm:$0xff] (!%p1001_p11) }
  0x58   : > { %653 = vmatprep.mubr.bf16.mxu0 %v1198_v48 }
  0x59   : > { %1120 = vmatmul.mubr.bf16.gmra.mrb[4].mxu1 %v1202_v49 }
  0x5f   : > { %654 = vmatmul.mubr.bf16.gmra.mrb[8].mxu0 %v1200_v50 }
  0x60   : > { %661 = vmatprep.mubr.bf16.mxu0 %v1203_v51 }
  0x67   : > { %662 = vmatmul.mubr.bf16.gmra.mrb[12].mxu0 %v1205_v52 }
 0x122   : > { %v1063_v53 = vpop.f32.mrb[0].mxu0 }
 0x123   : > { %v1064_v54 = vpop.f32.mrb[1].mxu0 }
 0x124   : > { %v1065_v55 = vadd.f32 %v1064_v54, %v1063_v53  ;;  %v1066_v56 = vpop.f32.mrb[2].mxu0  ;;  %v1117_v57 = vpop.f32.mrb[0].mxu1 }
 0x125   : > { %v1067_v58 = vpop.f32.mrb[3].mxu0  ;;  %v704_v60 = vpop.f32.mrb[1].mxu1 }
 0x126   : > { %v1068_v61 = vadd.f32 %v1067_v58, %v1066_v56  ;;  %v705_v62 = vadd.f32 %v1065_v55, %v704_v60  ;;  %v1118_v63 = vpop.f32.mrb[2].mxu1 }
 0x127   : > { %v707_v1 = vpop.f32.mrb[3].mxu1 }
 0x128   : > { %v735_v2 = vadd.f32 %v705_v62, %v325_v59  ;;  %v708_v3 = vadd.f32 %v1068_v61, %v707_v1 }
 0x12a   : > { %743 = vst [vmem:[#allocation2] sm:$0xff] %v735_v2  ;;  %v736_v4 = vadd.f32 %v708_v3, %v326_v0  ;;  %v1069_v5 = vpop.f32.mrb[4].mxu0 }
 0x12b   : > { %v1070_v6 = vpop.f32.mrb[5].mxu0 }
 0x12c   : > { %744 = vst [vmem:[#allocation2 + $0x8] sm:$0xff] %v736_v4  ;;  %v1071_v7 = vadd.f32 %v1070_v6, %v1069_v5  ;;  %v1072_v8 = vpop.f32.mrb[6].mxu0  ;;  %v1121_v9 = vpop.f32.mrb[4].mxu1 }
 0x12d   : > { %v1073_v11 = vpop.f32.mrb[7].mxu0  ;;  %v720_v12 = vpop.f32.mrb[5].mxu1 }
 0x12e   : > { %v713_v13 = vadd.f32 %v1117_v57, %v1071_v7  ;;  %v1074_v14 = vadd.f32 %v1073_v11, %v1072_v8  ;;  %v1122_v15 = vpop.f32.mrb[6].mxu1 }
 0x12f   : > { %v723_v17 = vpop.f32.mrb[7].mxu1 }
 0x130   : > { %v737_v18 = vadd.f32 %v713_v13, %v327_v10  ;;  %v716_v19 = vadd.f32 %v1118_v63, %v1074_v14 }
 0x131   : > { %v755_v45 = vld [vmem:[#allocation2] sm:$0xff] (!%p1001_p11) }
 0x132   : > { %745 = vst [vmem:[#allocation2 + $0x10] sm:$0xff] %v737_v18  ;;  %v738_v20 = vadd.f32 %v716_v19, %v328_v16  ;;  %v1075_v21 = vpop.f32.mrb[8].mxu0  ;;  %v770_v48 = vadd.f32 (!%p1001_p11), %v1002_v47, %v755_v45 }
 0x133   : > { %v1076_v22 = vpop.f32.mrb[9].mxu0  ;;  %v756_v46 = vld [vmem:[#allocation2 + $0x8] sm:$0xff] (!%p1001_p11) }
 0x134   : > { %746 = vst [vmem:[#allocation2 + $0x18] sm:$0xff] %v738_v20  ;;  %v1077_v23 = vadd.f32 %v1076_v22, %v1075_v21  ;;  %v1078_v24 = vpop.f32.mrb[10].mxu0  ;;  %v771_v49 = vadd.f32 (!%p1001_p11), %v1002_v47, %v756_v46  ;;  %v778_v59 = vmax.f32 (!%p1001_p11), %v770_v48, 0.0 }
 0x135   : > { %v1079_v25 = vpop.f32.mrb[11].mxu0 }
 0x136   : > { %v1080_v27 = vadd.f32 %v1079_v25, %v1078_v24  ;;  %v721_v28 = vadd.f32 %v1077_v23, %v720_v12  ;;  %v779_v60 = vmax.f32 (!%p1001_p11), %v771_v49, 0.0 }
 0x138   : > { %v739_v30 = vadd.f32 %v721_v28, %v329_v26  ;;  %v724_v31 = vadd.f32 %v1080_v27, %v723_v17  ;;  %v1027_v3 = vpack.c.bf16 (!%p1001_p11), %v779_v60, %v778_v59 }
 0x139   : > { %v757_v50 = vld [vmem:[#allocation2 + $0x10] sm:$0xff] (!%p1001_p11) }
 0x13a   : > { %747 = vst [vmem:[#allocation2 + $0x20] sm:$0xff] %v739_v30  ;;  %v740_v32 = vadd.f32 %v724_v31, %v330_v29  ;;  %v1081_v33 = vpop.f32.mrb[12].mxu0  ;;  %v772_v53 = vadd.f32 (!%p1001_p11), %v1002_v47, %v757_v50  ;;  %1028 = vst [vmem:[%s1410_s3] sm:$0xff] (!%p1001_p11), %v1027_v3  }
 0x13b   : > { %v1082_v34 = vpop.f32.mrb[13].mxu0  ;;  %v758_v51 = vld [vmem:[#allocation2 + $0x18] sm:$0xff] (!%p1001_p11) }
 0x13c   : > { %748 = vst [vmem:[#allocation2 + $0x28] sm:$0xff] %v740_v32  ;;  %v1083_v35 = vadd.f32 %v1082_v34, %v1081_v33  ;;  %v1084_v36 = vpop.f32.mrb[14].mxu0  ;;  %v773_v54 = vadd.f32 (!%p1001_p11), %v1002_v47, %v758_v51  ;;  %v780_v63 = vmax.f32 (!%p1001_p11), %v772_v53, 0.0 }
 0x13d   : > { %v1085_v38 = vpop.f32.mrb[15].mxu0 }
 0x13e   : > { %v729_v39 = vadd.f32 %v1121_v9, %v1083_v35  ;;  %v1086_v40 = vadd.f32 %v1085_v38, %v1084_v36  ;;  %754 = sbr.rel (%p1001_p11) target bundleno = 339 (0x153), region = 66  ;;  %v781_v0 = vmax.f32 (!%p1001_p11), %v773_v54, 0.0 }
 0x140   : > { %v741_v42 = vadd.f32 %v729_v39, %v331_v37  ;;  %v732_v43 = vadd.f32 %v1122_v15, %v1086_v40  ;;  %v1032_v6 = vpack.c.bf16 (!%p1001_p11), %v781_v0, %v780_v63 }
 0x141   : > { %v759_v52 = vld [vmem:[#allocation2 + $0x20] sm:$0xff] (!%p1001_p11) }
 0x142   : > { %749 = vst [vmem:[#allocation2 + $0x30] sm:$0xff] %v741_v42  ;;  %v742_v44 = vadd.f32 %v732_v43, %v332_v41  ;;  %v774_v56 = vadd.f32 (!%p1001_p11), %v1002_v47, %v759_v52  ;;  %1044 = vst [vmem:[%s1410_s3 + $0x8] sm:$0xff] (!%p1001_p11), %v1032_v6  }
 0x143   : > { %v760_v55 = vld [vmem:[#allocation2 + $0x28] sm:$0xff] (!%p1001_p11) }
 0x144   : > { %750 = vst [vmem:[#allocation2 + $0x38] sm:$0xff] %v742_v44  ;;  %v775_v61 = vadd.f32 (!%p1001_p11), %v1002_v47, %v760_v55  ;;  %v782_v1 = vmax.f32 (!%p1001_p11), %v774_v56, 0.0 }
 0x146   : > { %v783_v4 = vmax.f32 %v775_v61, 0.0 }
 0x148   : > { %v1037_v8 = vpack.c.bf16 %v783_v4, %v782_v1 }
 0x149   : > { %v761_v57 = vld [vmem:[#allocation2 + $0x30] sm:$0xff] }
 0x14a   : > { %v776_v62 = vadd.f32 %v1002_v47, %v761_v57  ;;  %1045 = vst [vmem:[%s1410_s3 + $0x10] sm:$0xff] %v1037_v8  }
 0x14b   : > { %v762_v58 = vld [vmem:[#allocation2 + $0x38] sm:$0xff] }
 0x14c   : > { %v777_v2 = vadd.f32 %v1002_v47, %v762_v58  ;;  %v784_v5 = vmax.f32 %v776_v62, 0.0 }
 0x14e   : > { %v785_v7 = vmax.f32 %v777_v2, 0.0 }
 0x150   : > { %v1042_v9 = vpack.c.bf16 %v785_v7, %v784_v5 }
 0x152   : > { %1046 = vst [vmem:[%s1410_s3 + $0x18] sm:$0xff] %v1042_v9  }
 0x153 PF: > { %s13_s16 = sadd.s32 1, %s1244_s16   ;;  %s1411_s12 = smov %s1232_s13 }
 0x154   : > { %p10_p12 = scmp.ge.s32.totalorder %s13_s16, 5   ;;  %s1412_s13 = smov %s1302_s20 }
 0x155   : > { %s1413_s14 = smov %s1240_s15  ;;  %s1414_s15 = smov %s1416_s17 }
 0x156   :  { %12 = sbr.rel (!%p10_p12) target bundleno = 3 (0x3), region = 113 }

// kernel: modified_res18_forward.27
= control target key start
LH: loop header
LB: loop body
LE: loop exit
PB: predicated region body
PF: predicated region fallthrough
CT: control target
= control target key end

     0   :  { %s469_s1 = inlined_call_operand.vmem [shape: bf16[128,128], index: 1, kind: input, shape index: {}]   ;;  %s470_s0 = inlined_call_operand.vmem [shape: bf16[64,128], index: 0, kind: input, shape index: {}]   ;;  %s471_s2 = inlined_call_operand.vmem [shape: f32[1,128], index: 2, kind: input, shape index: {}]   ;;  %s472_s3 = inlined_call_operand.vmem [shape: bf16[64,128], index: 3, kind: output, shape index: {}]  }
   0x1   :  { %v386_v0 = vld [vmem:[%s469_s1] sm:$0xff]   ;;  %v387_v1 = vld [vmem:[%s469_s1 + $0x8] sm:$0xff]   ;;  %v388_v2 = vld [vmem:[%s469_s1 + $0x10] sm:$0xff]  }
   0x2   :  { %346 = vmatprep.subr.bf16.mxu0 %v386_v0  ;;  %370 = vmatprep.subr.bf16.mxu1 %v386_v0  ;;  %v389_v3 = vld [vmem:[%s469_s1 + $0x18] sm:$0xff]   ;;  %v394_v4 = vld [vmem:[%s470_s0] sm:$0xff]   ;;  %v395_v5 = vld [vmem:[%s470_s0 + $0x10] sm:$0xff]  }
   0x3   :  { %347 = vmatpush3.bf16.msra.mxu0 %v386_v0  ;;  %378 = vmatpush3.bf16.msra.mxu1 %v386_v0  ;;  %v390_v6 = vld [vmem:[%s469_s1 + $0x20] sm:$0xff]   ;;  %v391_v7 = vld [vmem:[%s469_s1 + $0x28] sm:$0xff]   ;;  %v392_v8 = vld [vmem:[%s469_s1 + $0x30] sm:$0xff]  }
   0x4   :  { %348 = vmatprep.subr.bf16.mxu0 %v387_v1  ;;  %371 = vmatprep.subr.bf16.mxu1 %v387_v1  ;;  %v393_v9 = vld [vmem:[%s469_s1 + $0x38] sm:$0xff]   ;;  %v396_v10 = vld [vmem:[%s470_s0 + $0x8] sm:$0xff]   ;;  %v294_v13 = vld [vmem:[%s471_s2] ss:$0 sm:$0xff] }
   0x5   :  { %362 = vmatprep.mubr.bf16.mxu0 %v394_v4  ;;  %366 = vmatprep.mubr.bf16.mxu1 %v395_v5  ;;  %v397_v11 = vld [vmem:[%s470_s0 + $0x18] sm:$0xff]  }
   0x7   :  { %349 = vmatpush3.bf16.msra.mxu0 %v387_v1  ;;  %379 = vmatpush3.bf16.msra.mxu1 %v387_v1 }
   0x8   :  { %350 = vmatprep.subr.bf16.mxu0 %v388_v2  ;;  %372 = vmatprep.subr.bf16.mxu1 %v388_v2 }
   0xb   :  { %351 = vmatpush3.bf16.msra.mxu0 %v388_v2  ;;  %380 = vmatpush3.bf16.msra.mxu1 %v388_v2 }
   0xc   :  { %352 = vmatprep.subr.bf16.mxu0 %v389_v3  ;;  %373 = vmatprep.subr.bf16.mxu1 %v389_v3 }
   0xf   :  { %353 = vmatpush3.bf16.msra.mxu0 %v389_v3  ;;  %381 = vmatpush3.bf16.msra.mxu1 %v389_v3 }
  0x10   :  { %354 = vmatprep.subr.bf16.mxu0 %v390_v6  ;;  %374 = vmatprep.subr.bf16.mxu1 %v390_v6 }
  0x13   :  { %355 = vmatpush3.bf16.msra.mxu0 %v390_v6  ;;  %382 = vmatpush3.bf16.msra.mxu1 %v390_v6 }
  0x14   :  { %356 = vmatprep.subr.bf16.mxu0 %v391_v7  ;;  %375 = vmatprep.subr.bf16.mxu1 %v391_v7 }
  0x17   :  { %357 = vmatpush3.bf16.msra.mxu0 %v391_v7  ;;  %383 = vmatpush3.bf16.msra.mxu1 %v391_v7 }
  0x18   :  { %358 = vmatprep.subr.bf16.mxu0 %v392_v8  ;;  %376 = vmatprep.subr.bf16.mxu1 %v392_v8 }
  0x1b   :  { %359 = vmatpush3.bf16.msra.mxu0 %v392_v8  ;;  %384 = vmatpush3.bf16.msra.mxu1 %v392_v8 }
  0x1c   :  { %360 = vmatprep.subr.bf16.mxu0 %v393_v9  ;;  %377 = vmatprep.subr.bf16.mxu1 %v393_v9 }
  0x1f   :  { %361 = vmatpush3.bf16.msra.mxu0 %v393_v9  ;;  %385 = vmatpush3.bf16.msra.mxu1 %v393_v9 }
  0x22   :  { %363 = vmatmul.mubr.bf16.vlgmr.msra.gmra.mrb[0].mxu0 %v396_v10  ;;  %367 = vmatmul.mubr.bf16.vlgmr.msra.gmra.mrb[0].mxu1 %v397_v11 }
  0xf5   :  { %v364_v12 = vpop.f32.mrb[0].mxu0  ;;  %v368_v14 = vpop.f32.mrb[0].mxu1 }
  0xf6   :  { %v165_v15 = vpop.f32.mrb[1].mxu0  ;;  %v181_v16 = vpop.f32.mrb[1].mxu1  ;;  %v232_v19 = vadd.f32 %v364_v12, %v294_v13  ;;  %v236_v20 = vadd.f32 %v368_v14, %v294_v13 }
  0xf7   :  { %v365_v17 = vpop.f32.mrb[2].mxu0  ;;  %v369_v18 = vpop.f32.mrb[2].mxu1  ;;  %v230_v25 = vadd.f32 %v294_v13, %v165_v15  ;;  %v234_v26 = vadd.f32 %v294_v13, %v181_v16 }
  0xf8   :  { %v233_v21 = vadd.f32 %v365_v17, %v294_v13  ;;  %v237_v22 = vadd.f32 %v369_v18, %v294_v13  ;;  %v168_v23 = vpop.f32.mrb[3].mxu0  ;;  %v184_v24 = vpop.f32.mrb[3].mxu1 }
  0xf9   :  { %v231_v27 = vadd.f32 %v294_v13, %v168_v23  ;;  %v235_v28 = vadd.f32 %v294_v13, %v184_v24 }
  0xfa   :  { %v319_v29 = vpack.c.bf16 %v233_v21, %v232_v19  ;;  %v329_v30 = vpack.c.bf16 %v237_v22, %v236_v20 }
  0xfb   :  { %v314_v31 = vpack.c.bf16 %v231_v27, %v230_v25  ;;  %v324_v32 = vpack.c.bf16 %v235_v28, %v234_v26 }
  0xfc   :  { %331 = vst [vmem:[%s472_s3 + $0x8] sm:$0xff] %v319_v29   ;;  %333 = vst [vmem:[%s472_s3 + $0x18] sm:$0xff] %v329_v30  }
  0xfd   :  { %315 = vst [vmem:[%s472_s3] sm:$0xff] %v314_v31   ;;  %332 = vst [vmem:[%s472_s3 + $0x10] sm:$0xff] %v324_v32  }

// kernel: modified_res18_forward.28
= control target key start
LH: loop header
LB: loop body
LE: loop exit
PB: predicated region body
PF: predicated region fallthrough
CT: control target
= control target key end

     0   :  { %s1394_s15 = smov 0   ;;  %s1396_s16 = smov 0   ;;  %s1546_s0 = inlined_call_operand.vmem [shape: bf16[64,1152], index: 0, kind: input, shape index: {}]   ;;  %s1547_s1 = inlined_call_operand.vmem [shape: bf16[1152,128], index: 1, kind: input, shape index: {}]   ;;  %s1548_s2 = inlined_call_operand.vmem [shape: f32[1,128], index: 2, kind: input, shape index: {}]   ;;  %s1549_s3 = inlined_call_operand.vmem [shape: bf16[64,128], index: 3, kind: input, shape index: {}]   ;;  %s1550_s4 = inlined_call_operand.vmem [shape: bf16[64,128], index: 4, kind: output, shape index: {}]  }
   0x1   :  { %s1398_s17 = smov 0   ;;  %s1400_s18 = smov 0  }
   0x2   :  { %s1402_s19 = smov 0  }
   0x3 LB: > { %s26_s20 = sadd.s32 1, %s1362_s18  ;;  %p49_p1 = scmp.ne.s32.totalorder %s1354_s16, %s1350_s15  ;;  %s1366_s19 = sphi %s1402_s19, %s14_s19   ;;  %s1362_s18 = sphi %s1400_s18, %s1554_s18   ;;  %s1358_s17 = sphi %s1398_s17, %s1553_s17   ;;  %s1354_s16 = sphi %s1396_s16, %s1552_s16   ;;  %s1350_s15 = sphi %s1394_s15, %s1551_s15  }
   0x4   : > { %p27_p0 = scmp.ge.s32.totalorder %s26_s20, 3  ;;  %p50_p2 = scmp.eq.s32.totalorder %s1366_s19, 0 }
   0x5   : > { %s42_s22 = sadd.s32 1, %s1354_s16  ;;  %p1047_p5 = scmp.ge.s32.totalorder %s1366_s19, 3 }
   0x6   : > { %s1556_s20 = smov (%p27_p0, %s26_s20), 0  ;;  %p51_p3 = por %p50_p2, %p49_p1 }
   0x7   : > { %s38_s21 = ssub.s32 %s1362_s18, %s1556_s20  ;;  %203 = sbr.rel (%p1047_p5) target bundleno = 28 (0x1c), region = 24 }
   0x8   : > { %p40_p4 = scmp.eq.s32.totalorder %s38_s21, 0 }
   0xa   : > { %s1429_s23 = scalar_select %p40_p4, %s1354_s16, %s42_s22  }
   0xe   : > { %206 = sbr.rel (!%p51_p3) target bundleno = 28 (0x1c), region = 28  ;;  %s208_s24 = sand.u32 (%p51_p3), 1, %s1354_s16  }
   0xf   : > { %s1118_s25 = smul.u32 (%p51_p3), 12, %s1362_s18 }
  0x10   : > { %s1245_s26 = smul.u32 (%p51_p3), 96, %s208_s24 }
  0x11   : > { %s1437_s29 = scalar_lea.vmem (%p51_p3), %s1546_s0, %s1118_s25 }
  0x12   : > { %v231_v0 = vld [vmem:[%s1437_s29] sm:$0xff] (%p51_p3)  ;;  %v235_v2 = vld [vmem:[%s1437_s29 + $0x48] sm:$0xff] (%p51_p3)  ;;  %s210_s30 = scalar_lea.vmem (%p51_p3), [#allocation3], %s1245_s26  ;;  %v239_v4 = vld [vmem:[%s1437_s29 + $0x90] sm:$0xff] (%p51_p3) }
  0x13   : > { %v233_v1 = vld [vmem:[%s1437_s29 + $0x24] sm:$0xff] (%p51_p3)  ;;  %232 = vst [vmem:[%s210_s30] sm:$0xff] (%p51_p3), %v231_v0  ;;  %236 = vst [vmem:[%s210_s30 + $0x18] sm:$0xff] (%p51_p3), %v235_v2  ;;  %v237_v3 = vld [vmem:[%s1437_s29 + $0x6c] sm:$0xff] (%p51_p3) }
  0x14   : > { %234 = vst [vmem:[%s210_s30 + $0xc] sm:$0xff] (%p51_p3), %v233_v1  ;;  %v241_v5 = vld [vmem:[%s1437_s29 + $0xb4] sm:$0xff] (%p51_p3)  ;;  %238 = vst [vmem:[%s210_s30 + $0x24] sm:$0xff] (%p51_p3), %v237_v3  ;;  %v245_v7 = vld [vmem:[%s1437_s29 + $0xfc] sm:$0xff] (%p51_p3) }
  0x15   : > { %240 = vst [vmem:[%s210_s30 + $0x30] sm:$0xff] %v239_v4  ;;  %242 = vst [vmem:[%s210_s30 + $0x3c] sm:$0xff] %v241_v5  ;;  %v243_v6 = vld [vmem:[%s1437_s29 + $0xd8] sm:$0xff]  ;;  %v1049_v8 = vld [vmem:[%s1437_s29 + $0x8] sm:$0xf] }
  0x16   : > { %244 = vst [vmem:[%s210_s30 + $0x48] sm:$0xff] %v243_v6  ;;  %246 = vst [vmem:[%s210_s30 + $0x54] sm:$0xff] %v245_v7  ;;  %v1051_v9 = vld [vmem:[%s1437_s29 + $0x2c] sm:$0xf]  ;;  %v1053_v10 = vld [vmem:[%s1437_s29 + $0x50] sm:$0xf] }
  0x17   : > { %1050 = vst [vmem:[%s210_s30 + $0x8] sm:$0xf] %v1049_v8  ;;  %v1055_v11 = vld [vmem:[%s1437_s29 + $0x74] sm:$0xf]  ;;  %1052 = vst [vmem:[%s210_s30 + $0x14] sm:$0xf] %v1051_v9 }
  0x18   : > { %1054 = vst [vmem:[%s210_s30 + $0x20] sm:$0xf] %v1053_v10  ;;  %1056 = vst [vmem:[%s210_s30 + $0x2c] sm:$0xf] %v1055_v11  ;;  %v1057_v12 = vld [vmem:[%s1437_s29 + $0x98] sm:$0xf] }
  0x19   : > { %v1059_v13 = vld [vmem:[%s1437_s29 + $0xbc] sm:$0xf]  ;;  %v1061_v14 = vld [vmem:[%s1437_s29 + $0xe0] sm:$0xf]  ;;  %1058 = vst [vmem:[%s210_s30 + $0x38] sm:$0xf] %v1057_v12 }
  0x1a   : > { %1060 = vst [vmem:[%s210_s30 + $0x44] sm:$0xf] %v1059_v13  ;;  %1062 = vst [vmem:[%s210_s30 + $0x50] sm:$0xf] %v1061_v14  ;;  %v1063_v15 = vld [vmem:[%s1437_s29 + $0x104] sm:$0xf] }
  0x1b   : > { %1064 = vst [vmem:[%s210_s30 + $0x5c] sm:$0xf] %v1063_v15 }
  0x1c PF: > { %p1065_p6 = scmp.ge.s32.totalorder %s1366_s19, 1  ;;  %p286_p7 = scmp.lt.s32.totalorder %s1366_s19, 4 }
  0x1e   : > { %p287_p8 = pnand %p1065_p6, %p286_p7 }
  0x1f   : > { %s293_s5 = sand.u32 (!%p287_p8), 1, %s1350_s15   ;;  %s342_s6 = smul.u32 (!%p287_p8), 48, %s1358_s17 }
  0x20   : > { %290 = sbr.rel (%p287_p8) target bundleno = 341 (0x155), region = 58  ;;  %p1067_p10 = scmp.ne.s32.totalorder (!%p287_p8), %s1358_s17, 0 }
  0x21   : > { %s1246_s7 = smul.u32 (!%p287_p8), 96, %s293_s5  ;;  %p343_p9 = scmp.lt.s32.totalorder (!%p287_p8), %s342_s6, 143 }
  0x23   : > { %s1464_s12 = scalar_lea.vmem (!%p287_p8), [#allocation3], %s1246_s7 }
  0x27   : > { %s1558_s6 = smov (!%p343_p9, %s342_s6), 143  ;;  %376 = sbr.rel (%p1067_p10) target bundleno = 46 (0x2e), region = 66 }
  0x28   : > { %s1066_s8 = sshll.u32 %s1558_s6, 2  ;;  %v1368_v16 = vmov (!%p1067_p10), 0.0  }
  0x29   : > { %s1462_s11 = scalar_lea.vmem %s1547_s1, %s1066_s8  ;;  %377 = vst [vmem:[#allocation2] sm:$0xff] (!%p1067_p10), %v1368_v16  ;;  %378 = vst [vmem:[#allocation2 + $0x8] sm:$0xff] (!%p1067_p10), %v1368_v16 }
  0x2a   : > { %379 = vst [vmem:[#allocation2 + $0x10] sm:$0xff] (!%p1067_p10), %v1368_v16  ;;  %380 = vst [vmem:[#allocation2 + $0x18] sm:$0xff] (!%p1067_p10), %v1368_v16 }
  0x2b   : > { %381 = vst [vmem:[#allocation2 + $0x20] sm:$0xff] (!%p1067_p10), %v1368_v16  ;;  %382 = vst [vmem:[#allocation2 + $0x28] sm:$0xff] (!%p1067_p10), %v1368_v16 }
  0x2c   : > { %383 = vst [vmem:[#allocation2 + $0x30] sm:$0xff] (!%p1067_p10), %v1368_v16  ;;  %384 = vst [vmem:[#allocation2 + $0x38] sm:$0xff] (!%p1067_p10), %v1368_v16 }
  0x2e PF: > { %v1288_v17 = vld [vmem:[%s1462_s11 + $0x40] sm:$0xff]   ;;  %v1291_v20 = vld [vmem:[%s1462_s11 + $0x48] sm:$0xff]   ;;  %v1294_v23 = vld [vmem:[%s1462_s11 + $0x50] sm:$0xff]   ;;  %p1104_p11 = scmp.ne.s32.totalorder %s1358_s17, 2 }
  0x2f   : > { %v1289_v18 = vld [vmem:[%s1462_s11] sm:$0xff]   ;;  %1169 = vmatprep.subr.bf16.mxu0 %v1288_v17  ;;  %v1292_v21 = vld [vmem:[%s1462_s11 + $0x8] sm:$0xff]   ;;  %v1295_v24 = vld [vmem:[%s1462_s11 + $0x10] sm:$0xff]  }
  0x30   : > { %v1290_v19 = vld [vmem:[%s1462_s11 + $0x80] sm:$0xff]   ;;  %1170 = vmatpush3.bf16.msra.mxu0 %v1289_v18  ;;  %v1293_v22 = vld [vmem:[%s1462_s11 + $0x88] sm:$0xff]   ;;  %v1296_v25 = vld [vmem:[%s1462_s11 + $0x90] sm:$0xff]  }
  0x31   : > { %1221 = vmatprep.subr.bf16.mxu1 %v1290_v19  ;;  %1171 = vmatprep.subr.bf16.mxu0 %v1291_v20  ;;  %v1297_v26 = vld [vmem:[%s1462_s11 + $0x58] sm:$0xff]   ;;  %v1300_v29 = vld [vmem:[%s1462_s11 + $0x60] sm:$0xff]   ;;  %v1303_v32 = vld [vmem:[%s1462_s11 + $0x68] sm:$0xff]  }
  0x32   : > { %1222 = vmatpush3.bf16.msra.mxu1 %v1290_v19  ;;  %v1298_v27 = vld [vmem:[%s1462_s11 + $0x18] sm:$0xff]   ;;  %v1302_v30 = vld [vmem:[%s1462_s11 + $0xa0] sm:$0xff]   ;;  %v1305_v33 = vld [vmem:[%s1462_s11 + $0xa8] sm:$0xff]  }
  0x33   : > { %1223 = vmatprep.subr.bf16.mxu1 %v1293_v22  ;;  %v1299_v28 = vld [vmem:[%s1462_s11 + $0x98] sm:$0xff]   ;;  %v1301_v31 = vld [vmem:[%s1462_s11 + $0x20] sm:$0xff]   ;;  %v1304_v34 = vld [vmem:[%s1462_s11 + $0x28] sm:$0xff]  }
  0x34   : > { %1172 = vmatpush3.bf16.msra.mxu0 %v1292_v21  ;;  %v1306_v35 = vld [vmem:[%s1462_s11 + $0x70] sm:$0xff]   ;;  %v1309_v38 = vld [vmem:[%s1462_s11 + $0x78] sm:$0xff]   ;;  %v1312_v43 = vld [vmem:[%s1464_s12] ss:$12 sps:$4 sm:$0xff]  }
  0x35   : > { %1173 = vmatprep.subr.bf16.mxu0 %v1294_v23  ;;  %v1307_v36 = vld [vmem:[%s1462_s11 + $0x30] sm:$0xff]   ;;  %v1311_v39 = vld [vmem:[%s1462_s11 + $0xb8] sm:$0xff]   ;;  %v1316_v45 = vld [vmem:[%s1464_s12 + $0x20] ss:$12 sps:$4 sm:$0xff]  }
  0x36   : > { %1224 = vmatpush3.bf16.msra.mxu1 %v1293_v22  ;;  %v1308_v37 = vld [vmem:[%s1462_s11 + $0xb0] sm:$0xff]   ;;  %v1310_v42 = vld [vmem:[%s1462_s11 + $0x38] sm:$0xff]   ;;  %v385_v59 = vld [vmem:[#allocation2] sm:$0xff] }
  0x37   : > { %1225 = vmatprep.subr.bf16.mxu1 %v1296_v25  ;;  %v1314_v40 = vld [vmem:[%s1464_s12 + $0x4] ss:$12 sps:$4 sm:$0xff]   ;;  %v1315_v41 = vld [vmem:[%s1464_s12 + $0x8] ss:$12 sps:$4 sm:$0xff]   ;;  %v1325_v51 = vld [vmem:[%s1464_s12 + $0x4c] ss:$12 sps:$4 sm:$0xff]  }
  0x38   : > { %1174 = vmatpush3.bf16.msra.mxu0 %v1295_v24  ;;  %697 = vmatprep.mubr.bf16.mxu0 %v1314_v40  ;;  %v1317_v44 = vld [vmem:[%s1464_s12 + $0x1c] ss:$12 sps:$4 sm:$0xff]   ;;  %v1323_v46 = vld [vmem:[%s1464_s12 + $0x38] ss:$12 sps:$4 sm:$0xff]   ;;  %v1320_v48 = vld [vmem:[%s1464_s12 + $0x34] ss:$12 sps:$4 sm:$0xff]  }
  0x39   : > { %1175 = vmatprep.subr.bf16.mxu0 %v1297_v26  ;;  %1237 = vmatprep.mubr.bf16.mxu1 %v1315_v41  ;;  %v1319_v47 = vld [vmem:[%s1464_s12 + $0x18] ss:$12 sps:$4 sm:$0xff]   ;;  %v1324_v49 = vld [vmem:[%s1464_s12 + $0x50] ss:$12 sps:$4 sm:$0xff]   ;;  %v1327_v52 = vld [vmem:[%s1464_s12 + $0x48] ss:$12 sps:$4 sm:$0xff]  }
  0x3a   : > { %1226 = vmatpush3.bf16.msra.mxu1 %v1296_v25  ;;  %v1322_v50 = vld [vmem:[%s1464_s12 + $0x30] ss:$12 sps:$4 sm:$0xff]   ;;  %v386_v0 = vld [vmem:[#allocation2 + $0x8] sm:$0xff]  ;;  %v389_v26 = vld [vmem:[#allocation2 + $0x20] sm:$0xff] }
  0x3b   : > { %1227 = vmatprep.subr.bf16.mxu1 %v1299_v28  ;;  %v387_v10 = vld [vmem:[#allocation2 + $0x10] sm:$0xff]  ;;  %v388_v16 = vld [vmem:[#allocation2 + $0x18] sm:$0xff] }
  0x3c   : > { %1176 = vmatpush3.bf16.msra.mxu0 %v1298_v27  ;;  %v392_v41 = vld [vmem:[#allocation2 + $0x38] sm:$0xff] }
  0x3d   : > { %1177 = vmatprep.subr.bf16.mxu0 %v1300_v29  ;;  %v390_v29 = vld [vmem:[#allocation2 + $0x28] sm:$0xff] }
  0x3e   : > { %1228 = vmatpush3.bf16.msra.mxu1 %v1299_v28 }
  0x3f   : > { %1229 = vmatprep.subr.bf16.mxu1 %v1302_v30 }
  0x40   : > { %1178 = vmatpush3.bf16.msra.mxu0 %v1301_v31 }
  0x41   : > { %1179 = vmatprep.subr.bf16.mxu0 %v1303_v32 }
  0x42   : > { %1230 = vmatpush3.bf16.msra.mxu1 %v1302_v30 }
  0x43   : > { %1231 = vmatprep.subr.bf16.mxu1 %v1305_v33 }
  0x44   : > { %1180 = vmatpush3.bf16.msra.mxu0 %v1304_v34 }
  0x45   : > { %1181 = vmatprep.subr.bf16.mxu0 %v1306_v35 }
  0x46   : > { %1232 = vmatpush3.bf16.msra.mxu1 %v1305_v33 }
  0x47   : > { %1233 = vmatprep.subr.bf16.mxu1 %v1308_v37 }
  0x48   : > { %1182 = vmatpush3.bf16.msra.mxu0 %v1307_v36 }
  0x49   : > { %1183 = vmatprep.subr.bf16.mxu0 %v1309_v38 }
  0x4a   : > { %1234 = vmatpush3.bf16.msra.mxu1 %v1308_v37  ;;  %v391_v37 = vld [vmem:[#allocation2 + $0x30] sm:$0xff] }
  0x4b   : > { %1235 = vmatprep.subr.bf16.mxu1 %v1311_v39 }
  0x4c   : > { %1184 = vmatpush3.bf16.msra.mxu0 %v1310_v42 }
  0x4e   : > { %1236 = vmatpush3.bf16.msra.mxu1 %v1311_v39 }
  0x4f   : > { %698 = vmatmul.mubr.bf16.vlgmr.msra.gmra.mrb[0].mxu0 %v1312_v43 }
  0x50   : > { %705 = vmatprep.mubr.bf16.mxu0 %v1317_v44 }
  0x51   : > { %1238 = vmatmul.mubr.bf16.vlgmr.msra.gmra.mrb[0].mxu1 %v1316_v45 }
  0x52   : > { %1241 = vmatprep.mubr.bf16.mxu1 %v1323_v46 }
  0x57   : > { %706 = vmatmul.mubr.bf16.gmra.mrb[4].mxu0 %v1319_v47  ;;  %v1105_v47 = vld [vmem:[%s1548_s2] ss:$0 sm:$0xff] (!%p1104_p11) }
  0x58   : > { %713 = vmatprep.mubr.bf16.mxu0 %v1320_v48 }
  0x59   : > { %1242 = vmatmul.mubr.bf16.gmra.mrb[4].mxu1 %v1324_v49 }
  0x5f   : > { %714 = vmatmul.mubr.bf16.gmra.mrb[8].mxu0 %v1322_v50  ;;  %v1128_v50 = vld [vmem:[%s1549_s3] sm:$0xff] (!%p1104_p11)  }
  0x60   : > { %721 = vmatprep.mubr.bf16.mxu0 %v1325_v51 }
  0x67   : > { %722 = vmatmul.mubr.bf16.gmra.mrb[12].mxu0 %v1327_v52 }
 0x122   : > { %v1185_v53 = vpop.f32.mrb[0].mxu0 }
 0x123   : > { %v1186_v54 = vpop.f32.mrb[1].mxu0 }
 0x124   : > { %v1187_v55 = vadd.f32 %v1186_v54, %v1185_v53  ;;  %v1188_v56 = vpop.f32.mrb[2].mxu0  ;;  %v1239_v57 = vpop.f32.mrb[0].mxu1  ;;  %v1129_v53 = vunpack.c.l.bf16 (!%p1104_p11), %v1128_v50  ;;  %v1130_v54 = vunpack.c.h.bf16 (!%p1104_p11), %v1128_v50 }
 0x125   : > { %v1189_v58 = vpop.f32.mrb[3].mxu0  ;;  %v764_v60 = vpop.f32.mrb[1].mxu1 }
 0x126   : > { %v1190_v61 = vadd.f32 %v1189_v58, %v1188_v56  ;;  %v765_v62 = vadd.f32 %v1187_v55, %v764_v60  ;;  %v1240_v63 = vpop.f32.mrb[2].mxu1 }
 0x127   : > { %v767_v1 = vpop.f32.mrb[3].mxu1 }
 0x128   : > { %v795_v2 = vadd.f32 %v765_v62, %v385_v59  ;;  %v768_v3 = vadd.f32 %v1190_v61, %v767_v1 }
 0x12a   : > { %803 = vst [vmem:[#allocation2] sm:$0xff] %v795_v2  ;;  %v796_v4 = vadd.f32 %v768_v3, %v386_v0  ;;  %v1191_v5 = vpop.f32.mrb[4].mxu0  ;;  %v1164_v0 = vld [vmem:[%s1549_s3 + $0x10] sm:$0xff] (!%p1104_p11)  }
 0x12b   : > { %v1192_v6 = vpop.f32.mrb[5].mxu0 }
 0x12c   : > { %804 = vst [vmem:[#allocation2 + $0x8] sm:$0xff] %v796_v4  ;;  %v1193_v7 = vadd.f32 %v1192_v6, %v1191_v5  ;;  %v1194_v8 = vpop.f32.mrb[6].mxu0  ;;  %v1243_v9 = vpop.f32.mrb[4].mxu1  ;;  %v1137_v5 = vunpack.c.l.bf16 (!%p1104_p11), %v1164_v0  ;;  %v1138_v6 = vunpack.c.h.bf16 (!%p1104_p11), %v1164_v0 }
 0x12d   : > { %v1195_v11 = vpop.f32.mrb[7].mxu0  ;;  %v780_v12 = vpop.f32.mrb[5].mxu1 }
 0x12e   : > { %v773_v13 = vadd.f32 %v1239_v57, %v1193_v7  ;;  %v1196_v14 = vadd.f32 %v1195_v11, %v1194_v8  ;;  %v1244_v15 = vpop.f32.mrb[6].mxu1  ;;  %v1163_v57 = vld [vmem:[%s1549_s3 + $0x8] sm:$0xff] (!%p1104_p11)   ;;  %v1165_v7 = vld [vmem:[%s1549_s3 + $0x18] sm:$0xff] (!%p1104_p11)  }
 0x12f   : > { %v783_v17 = vpop.f32.mrb[7].mxu1  ;;  %v1133_v60 = vunpack.c.l.bf16 (!%p1104_p11), %v1163_v57  ;;  %v1134_v61 = vunpack.c.h.bf16 (!%p1104_p11), %v1163_v57 }
 0x130   : > { %v797_v18 = vadd.f32 %v773_v13, %v387_v10  ;;  %v776_v19 = vadd.f32 %v1240_v63, %v1196_v14 }
 0x131   : > { %v815_v45 = vld [vmem:[#allocation2] sm:$0xff] (!%p1104_p11) }
 0x132   : > { %805 = vst [vmem:[#allocation2 + $0x10] sm:$0xff] %v797_v18  ;;  %v798_v20 = vadd.f32 %v776_v19, %v388_v16  ;;  %v1197_v21 = vpop.f32.mrb[8].mxu0  ;;  %v830_v48 = vadd.f32 (!%p1104_p11), %v1105_v47, %v815_v45  ;;  %v1141_v18 = vunpack.c.l.bf16 (!%p1104_p11), %v1165_v7  ;;  %v1142_v19 = vunpack.c.h.bf16 (!%p1104_p11), %v1165_v7 }
 0x133   : > { %v1198_v22 = vpop.f32.mrb[9].mxu0  ;;  %v816_v46 = vld [vmem:[#allocation2 + $0x8] sm:$0xff] (!%p1104_p11) }
 0x134   : > { %806 = vst [vmem:[#allocation2 + $0x18] sm:$0xff] %v798_v20  ;;  %v1199_v23 = vadd.f32 %v1198_v22, %v1197_v21  ;;  %v1200_v24 = vpop.f32.mrb[10].mxu0  ;;  %v831_v49 = vadd.f32 (!%p1104_p11), %v1105_v47, %v816_v46  ;;  %v854_v3 = vadd.f32 (!%p1104_p11), %v1129_v53, %v830_v48 }
 0x135   : > { %v1201_v25 = vpop.f32.mrb[11].mxu0 }
 0x136   : > { %v1202_v27 = vadd.f32 %v1201_v25, %v1200_v24  ;;  %v781_v28 = vadd.f32 %v1199_v23, %v780_v12  ;;  %v855_v4 = vadd.f32 (!%p1104_p11), %v1130_v54, %v831_v49  ;;  %v862_v12 = vmax.f32 (!%p1104_p11), %v854_v3, 0.0 }
 0x138   : > { %v799_v30 = vadd.f32 %v781_v28, %v389_v26  ;;  %v784_v31 = vadd.f32 %v1202_v27, %v783_v17  ;;  %v863_v13 = vmax.f32 (!%p1104_p11), %v855_v4, 0.0 }
 0x139   : > { %v817_v51 = vld [vmem:[#allocation2 + $0x10] sm:$0xff] (!%p1104_p11) }
 0x13a   : > { %807 = vst [vmem:[#allocation2 + $0x20] sm:$0xff] %v799_v30  ;;  %v800_v32 = vadd.f32 %v784_v31, %v390_v29  ;;  %v1203_v33 = vpop.f32.mrb[12].mxu0  ;;  %v832_v55 = vadd.f32 (!%p1104_p11), %v1105_v47, %v817_v51  ;;  %v1146_v20 = vpack.c.bf16 (!%p1104_p11), %v863_v13, %v862_v12 }
 0x13b   : > { %v1204_v34 = vpop.f32.mrb[13].mxu0  ;;  %v818_v52 = vld [vmem:[#allocation2 + $0x18] sm:$0xff] (!%p1104_p11) }
 0x13c   : > { %808 = vst [vmem:[#allocation2 + $0x28] sm:$0xff] %v800_v32  ;;  %v1205_v35 = vadd.f32 %v1204_v34, %v1203_v33  ;;  %v1206_v36 = vpop.f32.mrb[14].mxu0  ;;  %v833_v56 = vadd.f32 (!%p1104_p11), %v1105_v47, %v818_v52  ;;  %v856_v8 = vadd.f32 (!%p1104_p11), %v1133_v60, %v832_v55  ;;  %1147 = vst [vmem:[%s1550_s4] sm:$0xff] (!%p1104_p11), %v1146_v20  }
 0x13d   : > { %v1207_v38 = vpop.f32.mrb[15].mxu0 }
 0x13e   : > { %v789_v39 = vadd.f32 %v1243_v9, %v1205_v35  ;;  %v1208_v40 = vadd.f32 %v1207_v38, %v1206_v36  ;;  %814 = sbr.rel (%p1104_p11) target bundleno = 341 (0x155), region = 70  ;;  %v857_v9 = vadd.f32 (!%p1104_p11), %v1134_v61, %v833_v56  ;;  %v864_v16 = vmax.f32 (!%p1104_p11), %v856_v8, 0.0 }
 0x140   : > { %v801_v42 = vadd.f32 %v789_v39, %v391_v37  ;;  %v792_v43 = vadd.f32 %v1244_v15, %v1208_v40  ;;  %v865_v17 = vmax.f32 (!%p1104_p11), %v857_v9, 0.0 }
 0x141   : > { %v819_v58 = vld [vmem:[#allocation2 + $0x20] sm:$0xff] (!%p1104_p11) }
 0x142   : > { %809 = vst [vmem:[#allocation2 + $0x30] sm:$0xff] %v801_v42  ;;  %v802_v44 = vadd.f32 %v792_v43, %v392_v41  ;;  %v834_v62 = vadd.f32 (!%p1104_p11), %v1105_v47, %v819_v58  ;;  %v1151_v23 = vpack.c.bf16 (!%p1104_p11), %v865_v17, %v864_v16 }
 0x143   : > { %v820_v59 = vld [vmem:[#allocation2 + $0x28] sm:$0xff] (!%p1104_p11) }
 0x144   : > { %810 = vst [vmem:[#allocation2 + $0x38] sm:$0xff] %v802_v44  ;;  %v835_v63 = vadd.f32 (!%p1104_p11), %v1105_v47, %v820_v59  ;;  %v858_v14 = vadd.f32 (!%p1104_p11), %v1137_v5, %v834_v62  ;;  %1166 = vst [vmem:[%s1550_s4 + $0x8] sm:$0xff] (!%p1104_p11), %v1151_v23  }
 0x146   : > { %v859_v15 = vadd.f32 %v1138_v6, %v835_v63  ;;  %v866_v21 = vmax.f32 %v858_v14, 0.0 }
 0x148   : > { %v867_v22 = vmax.f32 %v859_v15, 0.0 }
 0x149   : > { %v821_v1 = vld [vmem:[#allocation2 + $0x30] sm:$0xff] }
 0x14a   : > { %v836_v10 = vadd.f32 %v1105_v47, %v821_v1  ;;  %v1156_v26 = vpack.c.bf16 %v867_v22, %v866_v21 }
 0x14b   : > { %v822_v2 = vld [vmem:[#allocation2 + $0x38] sm:$0xff] }
 0x14c   : > { %v837_v11 = vadd.f32 %v1105_v47, %v822_v2  ;;  %v860_v24 = vadd.f32 %v1141_v18, %v836_v10  ;;  %1167 = vst [vmem:[%s1550_s4 + $0x10] sm:$0xff] %v1156_v26  }
 0x14e   : > { %v861_v25 = vadd.f32 %v1142_v19, %v837_v11  ;;  %v868_v27 = vmax.f32 %v860_v24, 0.0 }
 0x150   : > { %v869_v28 = vmax.f32 %v861_v25, 0.0 }
 0x152   : > { %v1161_v29 = vpack.c.bf16 %v869_v28, %v868_v27 }
 0x154   : > { %1168 = vst [vmem:[%s1550_s4 + $0x18] sm:$0xff] %v1161_v29  }
 0x155 PF: > { %s14_s19 = sadd.s32 1, %s1366_s19   ;;  %s1551_s15 = smov %s1354_s16 }
 0x156   : > { %p11_p12 = scmp.ge.s32.totalorder %s14_s19, 5   ;;  %s1552_s16 = smov %s1429_s23 }
 0x157   : > { %s1553_s17 = smov %s1362_s18  ;;  %s1554_s18 = smov %s1556_s20 }
 0x158   :  { %13 = sbr.rel (!%p11_p12) target bundleno = 3 (0x3), region = 120 }

// kernel: modified_res18_forward.31
= control target key start
LH: loop header
LB: loop body
LE: loop exit
PB: predicated region body
PF: predicated region fallthrough
CT: control target
= control target key end

     0   :  { %s1151_s12 = smov 0   ;;  %s1153_s13 = smov 0   ;;  %s1282_s0 = inlined_call_operand.vmem [shape: bf16[16,1152], index: 0, kind: input, shape index: {}]   ;;  %s1283_s1 = inlined_call_operand.vmem [shape: bf16[1152,256], index: 1, kind: input, shape index: {}]   ;;  %s1284_s2 = inlined_call_operand.vmem [shape: f32[1,256], index: 2, kind: input, shape index: {}]   ;;  %s1285_s3 = inlined_call_operand.vmem [shape: bf16[16,256], index: 3, kind: output, shape index: {}]  }
   0x1   :  { %s1155_s14 = smov 0   ;;  %s1157_s15 = smov 0  }
   0x2   :  { %s1159_s16 = smov 0  }
   0x3 LB: > { %s25_s17 = sadd.s32 1, %s1123_s15  ;;  %p48_p1 = scmp.ne.s32.totalorder %s1115_s13, %s1111_s12  ;;  %s1127_s16 = sphi %s1159_s16, %s13_s16   ;;  %s1123_s15 = sphi %s1157_s15, %s1289_s15   ;;  %s1119_s14 = sphi %s1155_s14, %s1288_s14   ;;  %s1115_s13 = sphi %s1153_s13, %s1287_s13   ;;  %s1111_s12 = sphi %s1151_s12, %s1286_s12  }
   0x4   : > { %p26_p0 = scmp.ge.s32.totalorder %s25_s17, 3  ;;  %p49_p2 = scmp.eq.s32.totalorder %s1127_s16, 0 }
   0x5   : > { %s41_s19 = sadd.s32 1, %s1115_s13  ;;  %p893_p5 = scmp.ge.s32.totalorder %s1127_s16, 3 }
   0x6   : > { %s1291_s17 = smov (%p26_p0, %s25_s17), 0  ;;  %p50_p3 = por %p49_p2, %p48_p1 }
   0x7   : > { %s37_s18 = ssub.s32 %s1123_s15, %s1291_s17  ;;  %164 = sbr.rel (%p893_p5) target bundleno = 21 (0x15), region = 20 }
   0x8   : > { %p39_p4 = scmp.eq.s32.totalorder %s37_s18, 0 }
   0xa   : > { %s1186_s20 = scalar_select %p39_p4, %s1115_s13, %s41_s19  }
   0xe   : > { %167 = sbr.rel (!%p50_p3) target bundleno = 21 (0x15), region = 24  ;;  %s169_s21 = sand.u32 (%p50_p3), 1, %s1115_s13  }
   0xf   : > { %s961_s22 = smul.u32 (%p50_p3), 12, %s1123_s15 }
  0x10   : > { %s969_s23 = smul.u32 (%p50_p3), 24, %s169_s21 }
  0x11   : > { %s177_s26 = scalar_lea.vmem (%p50_p3), %s1282_s0, %s961_s22 }
  0x12   : > { %v192_v0 = vld [vmem:[%s177_s26] sm:$0xff] (%p50_p3)  ;;  %v895_v2 = vld [vmem:[%s177_s26 + $0x8] sm:$0xf] (%p50_p3)  ;;  %s171_s27 = scalar_lea.vmem (%p50_p3), [#allocation3], %s969_s23  ;;  %v897_v3 = vld [vmem:[%s177_s26 + $0x2c] sm:$0xf] (%p50_p3) }
  0x13   : > { %v194_v1 = vld [vmem:[%s177_s26 + $0x24] sm:$0xff] (%p50_p3)  ;;  %193 = vst [vmem:[%s171_s27] sm:$0xff] (%p50_p3), %v192_v0  ;;  %896 = vst [vmem:[%s171_s27 + $0x8] sm:$0xf] (%p50_p3), %v895_v2 }
  0x14   : > { %195 = vst [vmem:[%s171_s27 + $0xc] sm:$0xff] (%p50_p3), %v194_v1  ;;  %898 = vst [vmem:[%s171_s27 + $0x14] sm:$0xf] (%p50_p3), %v897_v3 }
  0x15 PF: > { %p899_p6 = scmp.ge.s32.totalorder %s1127_s16, 1  ;;  %p226_p7 = scmp.lt.s32.totalorder %s1127_s16, 4 }
  0x17   : > { %p227_p8 = pnand %p899_p6, %p226_p7 }
  0x18   : > { %s233_s28 = sand.u32 (!%p227_p8), 1, %s1111_s12   ;;  %s277_s29 = smul.u32 (!%p227_p8), 48, %s1119_s14 }
  0x19   : > { %230 = sbr.rel (%p227_p8) target bundleno = 338 (0x152), region = 54  ;;  %p902_p10 = scmp.ne.s32.totalorder (!%p227_p8), %s1119_s14, 0 }
  0x1a   : > { %s970_s30 = smul.u32 (!%p227_p8), 24, %s233_s28  ;;  %p279_p9 = scmp.lt.s32.totalorder (!%p227_p8), %s277_s29, 143 }
  0x1c   : > { %s1203_s8 = scalar_lea.vmem (!%p227_p8), [#allocation3], %s970_s30 }
  0x20   : > { %s1293_s29 = smov (!%p279_p9, %s277_s29), 143  ;;  %310 = sbr.rel (%p902_p10) target bundleno = 39 (0x27), region = 62 }
  0x21   : > { %s962_s4 = sshll.u32 %s1293_s29, 3  ;;  %v1129_v4 = vmov (!%p902_p10), 0.0  }
  0x22   : > { %s1201_s7 = scalar_lea.vmem %s1283_s1, %s962_s4  ;;  %311 = vst [vmem:[#allocation2] sm:$0xff] (!%p902_p10), %v1129_v4  ;;  %312 = vst [vmem:[#allocation2 + $0x8] sm:$0xff] (!%p902_p10), %v1129_v4 }
  0x23   : > { %313 = vst [vmem:[#allocation2 + $0x10] sm:$0xff] (!%p902_p10), %v1129_v4  ;;  %314 = vst [vmem:[#allocation2 + $0x18] sm:$0xff] (!%p902_p10), %v1129_v4 }
  0x27 PF: > { %v1013_v5 = vld [vmem:[%s1201_s7 + $0x4] ss:$8 sps:$4 sm:$0xff]   ;;  %v1015_v6 = vld [vmem:[%s1201_s7] ss:$8 sps:$4 sm:$0xff]   ;;  %v1130_v7 = vmov 0   ;;  %p954_p11 = scmp.ne.s32.totalorder %s1119_s14, 2 }
  0x28   : > { %702 = vmatprep.mubr.bf16.mxu0 %v1130_v7  ;;  %627 = vmatprep.subr.bf16.mxu1 %v1013_v5  ;;  %v1016_v8 = vld [vmem:[%s1201_s7 + $0x14] ss:$8 sps:$4 sm:$0xff]   ;;  %v1018_v9 = vld [vmem:[%s1201_s7 + $0x10] ss:$8 sps:$4 sm:$0xff]   ;;  %v1019_v10 = vld [vmem:[%s1201_s7 + $0x24] ss:$8 sps:$4 sm:$0xff]  }
  0x29   : > { %628 = vmatpush1.bf16.msra.mxu1 %v1015_v6  ;;  %v1021_v11 = vld [vmem:[%s1201_s7 + $0x20] ss:$8 sps:$4 sm:$0xff]   ;;  %v1022_v12 = vld [vmem:[%s1201_s7 + $0x34] ss:$8 sps:$4 sm:$0xff]   ;;  %v1024_v13 = vld [vmem:[%s1201_s7 + $0x30] ss:$8 sps:$4 sm:$0xff]  }
  0x2a   : > { %629 = vmatprep.subr.bf16.mxu1 %v1016_v8  ;;  %v1037_v14 = vld [vmem:[%s1201_s7 + $0x104] ss:$8 sps:$4 sm:$0xff]   ;;  %v1039_v15 = vld [vmem:[%s1201_s7 + $0x100] ss:$8 sps:$4 sm:$0xff]   ;;  %v1043_v17 = vld [vmem:[%s1201_s7 + $0x114] ss:$8 sps:$4 sm:$0xff]  }
  0x2b   : > { %v1025_v16 = vld [vmem:[%s1201_s7 + $0x44] ss:$8 sps:$4 sm:$0xff]   ;;  %670 = vmatprep.subr.bf16.mxu0 %v1037_v14  ;;  %v1045_v18 = vld [vmem:[%s1201_s7 + $0x110] ss:$8 sps:$4 sm:$0xff]   ;;  %v1027_v19 = vld [vmem:[%s1201_s7 + $0x40] ss:$8 sps:$4 sm:$0xff]  }
  0x2c   : > { %671 = vmatpush1.bf16.msra.mxu0 %v1039_v15  ;;  %v1028_v20 = vld [vmem:[%s1201_s7 + $0x54] ss:$8 sps:$4 sm:$0xff]   ;;  %v1049_v21 = vld [vmem:[%s1201_s7 + $0x124] ss:$8 sps:$4 sm:$0xff]   ;;  %v1051_v22 = vld [vmem:[%s1201_s7 + $0x120] ss:$8 sps:$4 sm:$0xff]  }
  0x2d   : > { %630 = vmatpush1.bf16.msra.mxu1 %v1018_v9  ;;  %672 = vmatprep.subr.bf16.mxu0 %v1043_v17  ;;  %v1030_v23 = vld [vmem:[%s1201_s7 + $0x50] ss:$8 sps:$4 sm:$0xff]   ;;  %v1055_v24 = vld [vmem:[%s1201_s7 + $0x134] ss:$8 sps:$4 sm:$0xff]   ;;  %v1031_v25 = vld [vmem:[%s1201_s7 + $0x64] ss:$8 sps:$4 sm:$0xff]  }
  0x2e   : > { %631 = vmatprep.subr.bf16.mxu1 %v1019_v10  ;;  %v1057_v26 = vld [vmem:[%s1201_s7 + $0x130] ss:$8 sps:$4 sm:$0xff]   ;;  %v1033_v27 = vld [vmem:[%s1201_s7 + $0x60] ss:$8 sps:$4 sm:$0xff]   ;;  %v1061_v28 = vld [vmem:[%s1201_s7 + $0x144] ss:$8 sps:$4 sm:$0xff]  }
  0x2f   : > { %v1034_v29 = vld [vmem:[%s1201_s7 + $0x74] ss:$8 sps:$4 sm:$0xff]   ;;  %v1063_v30 = vld [vmem:[%s1201_s7 + $0x140] ss:$8 sps:$4 sm:$0xff]   ;;  %v1036_v31 = vld [vmem:[%s1201_s7 + $0x70] ss:$8 sps:$4 sm:$0xff]  }
  0x30   : > { %673 = vmatpush1.bf16.msra.mxu0 %v1045_v18  ;;  %v1067_v32 = vld [vmem:[%s1201_s7 + $0x154] ss:$8 sps:$4 sm:$0xff]   ;;  %v1040_v33 = vld [vmem:[%s1201_s7 + $0x84] ss:$8 sps:$4 sm:$0xff]   ;;  %v1069_v34 = vld [vmem:[%s1201_s7 + $0x150] ss:$8 sps:$4 sm:$0xff]  }
  0x31   : > { %632 = vmatpush1.bf16.msra.mxu1 %v1021_v11  ;;  %674 = vmatprep.subr.bf16.mxu0 %v1049_v21  ;;  %v1042_v35 = vld [vmem:[%s1201_s7 + $0x80] ss:$8 sps:$4 sm:$0xff]   ;;  %v1073_v36 = vld [vmem:[%s1201_s7 + $0x164] ss:$8 sps:$4 sm:$0xff]   ;;  %v1046_v37 = vld [vmem:[%s1201_s7 + $0x94] ss:$8 sps:$4 sm:$0xff]  }
  0x32   : > { %633 = vmatprep.subr.bf16.mxu1 %v1022_v12  ;;  %v1075_v38 = vld [vmem:[%s1201_s7 + $0x160] ss:$8 sps:$4 sm:$0xff]   ;;  %v1048_v40 = vld [vmem:[%s1201_s7 + $0x90] ss:$8 sps:$4 sm:$0xff]   ;;  %v1079_v41 = vld [vmem:[%s1201_s7 + $0x174] ss:$8 sps:$4 sm:$0xff]  }
  0x33   : > { %v1088_v39 = vld [vmem:[%s1203_s8 + $0x4] ss:$12 sps:$4 sm:$0xff]   ;;  %v1085_v46 = vld [vmem:[%s1203_s8 + $0x8] ss:$12 sps:$4 sm:$0xff]   ;;  %v1086_v56 = vld [vmem:[%s1203_s8] ss:$12 sps:$4 sm:$0xff]  }
  0x34   : > { %675 = vmatpush1.bf16.msra.mxu0 %v1051_v22  ;;  %v1052_v42 = vld [vmem:[%s1201_s7 + $0xa4] ss:$8 sps:$4 sm:$0xff]   ;;  %659 = vmatprep.mubr.bf16.mxu1 %v1088_v39  ;;  %v1081_v43 = vld [vmem:[%s1201_s7 + $0x170] ss:$8 sps:$4 sm:$0xff]   ;;  %v1054_v44 = vld [vmem:[%s1201_s7 + $0xa0] ss:$8 sps:$4 sm:$0xff]  }
  0x35   : > { %634 = vmatpush1.bf16.msra.mxu1 %v1024_v13  ;;  %676 = vmatprep.subr.bf16.mxu0 %v1055_v24  ;;  %v1058_v45 = vld [vmem:[%s1201_s7 + $0xb4] ss:$8 sps:$4 sm:$0xff]   ;;  %v1060_v47 = vld [vmem:[%s1201_s7 + $0xb0] ss:$8 sps:$4 sm:$0xff]   ;;  %v1064_v48 = vld [vmem:[%s1201_s7 + $0xc4] ss:$8 sps:$4 sm:$0xff]   ;;  %v731_v13 = vlaneseq (!%p954_p11) }
  0x36   : > { %635 = vmatprep.subr.bf16.mxu1 %v1025_v16  ;;  %v1066_v49 = vld [vmem:[%s1201_s7 + $0xc0] ss:$8 sps:$4 sm:$0xff]   ;;  %v1070_v50 = vld [vmem:[%s1201_s7 + $0xd4] ss:$8 sps:$4 sm:$0xff]   ;;  %v1072_v51 = vld [vmem:[%s1201_s7 + $0xd0] ss:$8 sps:$4 sm:$0xff]  }
  0x37   : > { %v1076_v52 = vld [vmem:[%s1201_s7 + $0xe4] ss:$8 sps:$4 sm:$0xff]   ;;  %v1078_v53 = vld [vmem:[%s1201_s7 + $0xe0] ss:$8 sps:$4 sm:$0xff]   ;;  %v1082_v54 = vld [vmem:[%s1201_s7 + $0xf4] ss:$8 sps:$4 sm:$0xff]  }
  0x38   : > { %677 = vmatpush1.bf16.msra.mxu0 %v1057_v26  ;;  %v1084_v55 = vld [vmem:[%s1201_s7 + $0xf0] ss:$8 sps:$4 sm:$0xff]   ;;  %v315_v61 = vld [vmem:[#allocation2] sm:$0xff]  ;;  %v316_v0 = vld [vmem:[#allocation2 + $0x8] sm:$0xff]  ;;  %v732_v14 = vshrl.u32 (!%p954_p11), %v731_v13, 7 }
  0x39   : > { %636 = vmatpush1.bf16.msra.mxu1 %v1027_v19  ;;  %678 = vmatprep.subr.bf16.mxu0 %v1061_v28  ;;  %v317_v3 = vld [vmem:[#allocation2 + $0x10] sm:$0xff]  ;;  %v318_v7 = vld [vmem:[#allocation2 + $0x18] sm:$0xff]  ;;  %v729_v15 = vld [vmem:[%s1284_s2] sm:$0x3] (!%p954_p11) }
  0x3a   : > { %637 = vmatprep.subr.bf16.mxu1 %v1028_v20  ;;  %v733_v17 = vsub.s32 (!%p954_p11), 0, %v732_v14  ;;  %v737_v18 = vsub.s32 (!%p954_p11), 1, %v732_v14 }
  0x3c   : > { %679 = vmatpush1.bf16.msra.mxu0 %v1063_v30  ;;  %v734_v22 = vrot.slane (!%p954_p11), %v729_v15, %v733_v17 }
  0x3d   : > { %638 = vmatpush1.bf16.msra.mxu1 %v1030_v23  ;;  %680 = vmatprep.subr.bf16.mxu0 %v1067_v32  ;;  %v738_v23 = vrot.slane (!%p954_p11), %v729_v15, %v737_v18 }
  0x3e   : > { %639 = vmatprep.subr.bf16.mxu1 %v1031_v25 }
  0x40   : > { %681 = vmatpush1.bf16.msra.mxu0 %v1069_v34 }
  0x41   : > { %640 = vmatpush1.bf16.msra.mxu1 %v1033_v27  ;;  %682 = vmatprep.subr.bf16.mxu0 %v1073_v36 }
  0x42   : > { %641 = vmatprep.subr.bf16.mxu1 %v1034_v29 }
  0x44   : > { %683 = vmatpush1.bf16.msra.mxu0 %v1075_v38 }
  0x45   : > { %642 = vmatpush1.bf16.msra.mxu1 %v1036_v31  ;;  %684 = vmatprep.subr.bf16.mxu0 %v1079_v41 }
  0x46   : > { %643 = vmatprep.subr.bf16.mxu1 %v1040_v33 }
  0x48   : > { %685 = vmatpush1.bf16.msra.mxu0 %v1081_v43 }
  0x49   : > { %644 = vmatpush1.bf16.msra.mxu1 %v1042_v35 }
  0x4a   : > { %645 = vmatprep.subr.bf16.mxu1 %v1046_v37 }
  0x4b   : > { %703 = vmatmul.mubr.bf16.vlgmr.msra.gmra.mrb[0].mxu0 %v1085_v46 }
  0x4d   : > { %646 = vmatpush1.bf16.msra.mxu1 %v1048_v40 }
  0x4e   : > { %647 = vmatprep.subr.bf16.mxu1 %v1052_v42 }
  0x51   : > { %648 = vmatpush1.bf16.msra.mxu1 %v1054_v44 }
  0x52   : > { %649 = vmatprep.subr.bf16.mxu1 %v1058_v45 }
  0x55   : > { %650 = vmatpush1.bf16.msra.mxu1 %v1060_v47 }
  0x56   : > { %651 = vmatprep.subr.bf16.mxu1 %v1064_v48 }
  0x59   : > { %652 = vmatpush1.bf16.msra.mxu1 %v1066_v49 }
  0x5a   : > { %653 = vmatprep.subr.bf16.mxu1 %v1070_v50 }
  0x5d   : > { %654 = vmatpush1.bf16.msra.mxu1 %v1072_v51 }
  0x5e   : > { %655 = vmatprep.subr.bf16.mxu1 %v1076_v52 }
  0x61   : > { %656 = vmatpush1.bf16.msra.mxu1 %v1078_v53 }
  0x62   : > { %657 = vmatprep.subr.bf16.mxu1 %v1082_v54 }
  0x65   : > { %658 = vmatpush1.bf16.msra.mxu1 %v1084_v55 }
  0x68   : > { %660 = vmatmul.mubr.bf16.vlgmr.msra.gmra.mrb[0].mxu1 %v1086_v56 }
 0x11e   : > { %v704_v57 = vpop.f32.mrb[0].mxu0 }
 0x11f   : > { %v706_v58 = vpop.f32.mrb[1].mxu0 }
 0x120   : > { %v708_v59 = vpop.f32.mrb[2].mxu0 }
 0x121   : > { %v710_v60 = vpop.f32.mrb[3].mxu0 }
 0x13b   : > { %v661_v62 = vpop.f32.mrb[0].mxu1 }
 0x13c   : > { %v705_v63 = vadd.f32 %v704_v57, %v661_v62  ;;  %v663_v1 = vpop.f32.mrb[1].mxu1 }
 0x13d   : > { %v707_v2 = vadd.f32 %v706_v58, %v663_v1  ;;  %v665_v4 = vpop.f32.mrb[2].mxu1  ;;  %724 = sbr.rel (%p954_p11) target bundleno = 338 (0x152), region = 66 }
 0x13e   : > { %v713_v5 = vadd.f32 %v705_v63, %v315_v61  ;;  %v709_v6 = vadd.f32 %v708_v59, %v665_v4  ;;  %v667_v8 = vpop.f32.mrb[3].mxu1 }
 0x13f   : > { %v714_v9 = vadd.f32 %v707_v2, %v316_v0  ;;  %v711_v10 = vadd.f32 %v710_v60, %v667_v8 }
 0x140   : > { %717 = vst [vmem:[#allocation2] sm:$0xff] %v713_v5  ;;  %v715_v11 = vadd.f32 %v709_v6, %v317_v3 }
 0x141   : > { %718 = vst [vmem:[#allocation2 + $0x8] sm:$0xff] %v714_v9  ;;  %v716_v12 = vadd.f32 %v711_v10, %v318_v7 }
 0x142   : > { %719 = vst [vmem:[#allocation2 + $0x10] sm:$0xff] %v715_v11 }
 0x143   : > { %720 = vst [vmem:[#allocation2 + $0x18] sm:$0xff] %v716_v12 }
 0x147   : > { %v725_v16 = vld [vmem:[#allocation2] sm:$0xff] }
 0x148   : > { %v726_v19 = vld [vmem:[#allocation2 + $0x8] sm:$0xff]  ;;  %v741_v24 = vadd.f32 %v734_v22, %v725_v16 }
 0x149   : > { %v727_v20 = vld [vmem:[#allocation2 + $0x10] sm:$0xff]  ;;  %v742_v25 = vadd.f32 %v738_v23, %v726_v19 }
 0x14a   : > { %v728_v21 = vld [vmem:[#allocation2 + $0x18] sm:$0xff]  ;;  %v743_v26 = vadd.f32 %v734_v22, %v727_v20  ;;  %v745_v28 = vmax.f32 %v741_v24, 0.0 }
 0x14b   : > { %v744_v27 = vadd.f32 %v738_v23, %v728_v21  ;;  %v746_v29 = vmax.f32 %v742_v25, 0.0 }
 0x14c   : > { %v747_v30 = vmax.f32 %v743_v26, 0.0 }
 0x14d   : > { %v748_v31 = vmax.f32 %v744_v27, 0.0  ;;  %v963_v32 = vpack.c.bf16 %v746_v29, %v745_v28 }
 0x14f   : > { %v964_v33 = vpack.c.bf16 %v748_v31, %v747_v30  ;;  %761 = vst [vmem:[%s1285_s3] sm:$0xff] %v963_v32 }
 0x151   : > { %762 = vst [vmem:[%s1285_s3 + $0x8] sm:$0xff] %v964_v33 }
 0x152 PF: > { %s13_s16 = sadd.s32 1, %s1127_s16   ;;  %s1286_s12 = smov %s1115_s13 }
 0x153   : > { %p10_p12 = scmp.ge.s32.totalorder %s13_s16, 5   ;;  %s1287_s13 = smov %s1186_s20 }
 0x154   : > { %s1288_s14 = smov %s1123_s15  ;;  %s1289_s15 = smov %s1291_s17 }
 0x155   :  { %12 = sbr.rel (!%p10_p12) target bundleno = 3 (0x3), region = 113 }

// kernel: modified_res18_forward.32
= control target key start
LH: loop header
LB: loop body
LE: loop exit
PB: predicated region body
PF: predicated region fallthrough
CT: control target
= control target key end

     0   :  { %v270_v1 = vmov 0   ;;  %v191_v18 = vlaneseq  ;;  %s351_s1 = inlined_call_operand.vmem [shape: bf16[128,256], index: 1, kind: input, shape index: {}]   ;;  %s352_s0 = inlined_call_operand.vmem [shape: bf16[16,128], index: 0, kind: input, shape index: {}]   ;;  %s353_s2 = inlined_call_operand.vmem [shape: f32[1,256], index: 2, kind: input, shape index: {}]   ;;  %s354_s3 = inlined_call_operand.vmem [shape: bf16[16,256], index: 3, kind: output, shape index: {}]  }
   0x1   :  { %v245_v0 = vld [vmem:[%s351_s1 + $0x4] ss:$8 sps:$4 sm:$0xff]   ;;  %163 = vmatprep.mubr.bf16.mxu0 %v270_v1  ;;  %v247_v2 = vld [vmem:[%s351_s1] ss:$8 sps:$4 sm:$0xff]   ;;  %v248_v3 = vld [vmem:[%s351_s1 + $0x14] ss:$8 sps:$4 sm:$0xff]  }
   0x2   :  { %131 = vmatprep.subr.bf16.mxu0 %v245_v0  ;;  %v250_v4 = vld [vmem:[%s351_s1 + $0x10] ss:$8 sps:$4 sm:$0xff]   ;;  %v251_v5 = vld [vmem:[%s351_s1 + $0x24] ss:$8 sps:$4 sm:$0xff]   ;;  %v253_v6 = vld [vmem:[%s351_s1 + $0x20] ss:$8 sps:$4 sm:$0xff]  }
   0x3   :  { %132 = vmatpush1.bf16.msra.mxu0 %v247_v2  ;;  %v254_v7 = vld [vmem:[%s351_s1 + $0x34] ss:$8 sps:$4 sm:$0xff]   ;;  %v256_v8 = vld [vmem:[%s351_s1 + $0x30] ss:$8 sps:$4 sm:$0xff]   ;;  %v257_v9 = vld [vmem:[%s351_s1 + $0x44] ss:$8 sps:$4 sm:$0xff]  }
   0x4   :  { %133 = vmatprep.subr.bf16.mxu0 %v248_v3  ;;  %v259_v10 = vld [vmem:[%s351_s1 + $0x40] ss:$8 sps:$4 sm:$0xff]   ;;  %v260_v11 = vld [vmem:[%s351_s1 + $0x54] ss:$8 sps:$4 sm:$0xff]   ;;  %v262_v12 = vld [vmem:[%s351_s1 + $0x50] ss:$8 sps:$4 sm:$0xff]  }
   0x5   :  { %v263_v13 = vld [vmem:[%s351_s1 + $0x64] ss:$8 sps:$4 sm:$0xff]   ;;  %v265_v14 = vld [vmem:[%s351_s1 + $0x60] ss:$8 sps:$4 sm:$0xff]   ;;  %v266_v15 = vld [vmem:[%s351_s1 + $0x74] ss:$8 sps:$4 sm:$0xff]  }
   0x6   :  { %v268_v16 = vld [vmem:[%s351_s1 + $0x70] ss:$8 sps:$4 sm:$0xff]   ;;  %v269_v17 = vld [vmem:[%s352_s0] sm:$0xff]   ;;  %v192_v19 = vshrl.u32 %v191_v18, 7 }
   0x7   :  { %134 = vmatpush1.bf16.msra.mxu0 %v250_v4  ;;  %v189_v21 = vld [vmem:[%s353_s2] sm:$0x3] }
   0x8   :  { %135 = vmatprep.subr.bf16.mxu0 %v251_v5  ;;  %v193_v20 = vsub.s32 0, %v192_v19  ;;  %v197_v22 = vsub.s32 1, %v192_v19 }
   0xa   :  { %v194_v23 = vrot.slane %v189_v21, %v193_v20  ;;  %v198_v24 = vrot.slane %v189_v21, %v197_v22 }
   0xb   :  { %136 = vmatpush1.bf16.msra.mxu0 %v253_v6 }
   0xc   :  { %137 = vmatprep.subr.bf16.mxu0 %v254_v7 }
   0xf   :  { %138 = vmatpush1.bf16.msra.mxu0 %v256_v8 }
  0x10   :  { %139 = vmatprep.subr.bf16.mxu0 %v257_v9 }
  0x13   :  { %140 = vmatpush1.bf16.msra.mxu0 %v259_v10 }
  0x14   :  { %141 = vmatprep.subr.bf16.mxu0 %v260_v11 }
  0x17   :  { %142 = vmatpush1.bf16.msra.mxu0 %v262_v12 }
  0x18   :  { %143 = vmatprep.subr.bf16.mxu0 %v263_v13 }
  0x1b   :  { %144 = vmatpush1.bf16.msra.mxu0 %v265_v14 }
  0x1c   :  { %145 = vmatprep.subr.bf16.mxu0 %v266_v15 }
  0x1f   :  { %146 = vmatpush1.bf16.msra.mxu0 %v268_v16 }
  0x22   :  { %164 = vmatmul.mubr.bf16.vlgmr.msra.gmra.mrb[0].mxu0 %v269_v17 }
  0xf5   :  { %v165_v25 = vpop.f32.mrb[0].mxu0 }
  0xf6   :  { %v201_v26 = vadd.f32 %v194_v23, %v165_v25  ;;  %v167_v27 = vpop.f32.mrb[1].mxu0 }
  0xf7   :  { %v202_v28 = vadd.f32 %v198_v24, %v167_v27  ;;  %v169_v29 = vpop.f32.mrb[2].mxu0 }
  0xf8   :  { %v203_v30 = vadd.f32 %v194_v23, %v169_v29  ;;  %v171_v31 = vpop.f32.mrb[3].mxu0 }
  0xf9   :  { %v242_v32 = vpack.c.bf16 %v202_v28, %v201_v26  ;;  %v204_v33 = vadd.f32 %v198_v24, %v171_v31 }
  0xfb   :  { %217 = vst [vmem:[%s354_s3] sm:$0xff] %v242_v32  ;;  %v243_v34 = vpack.c.bf16 %v204_v33, %v203_v30 }
  0xfd   :  { %218 = vst [vmem:[%s354_s3 + $0x8] sm:$0xff] %v243_v34 }

// kernel: modified_res18_forward.33
= control target key start
LH: loop header
LB: loop body
LE: loop exit
PB: predicated region body
PF: predicated region fallthrough
CT: control target
= control target key end

     0   :  { %s1256_s15 = smov 0   ;;  %s1258_s16 = smov 0   ;;  %s1393_s0 = inlined_call_operand.vmem [shape: bf16[16,2304], index: 0, kind: input, shape index: {}]   ;;  %s1394_s1 = inlined_call_operand.vmem [shape: bf16[2304,256], index: 1, kind: input, shape index: {}]   ;;  %s1395_s2 = inlined_call_operand.vmem [shape: f32[1,256], index: 2, kind: input, shape index: {}]   ;;  %s1396_s3 = inlined_call_operand.vmem [shape: bf16[16,256], index: 3, kind: input, shape index: {}]   ;;  %s1397_s4 = inlined_call_operand.vmem [shape: bf16[16,256], index: 4, kind: output, shape index: {}]  }
   0x1   :  { %s1260_s17 = smov 0   ;;  %s1262_s18 = smov 0  }
   0x2   :  { %s1264_s19 = smov 0  }
   0x3 LB: > { %s26_s20 = sadd.s32 1, %s1223_s18  ;;  %p49_p1 = scmp.ne.s32.totalorder %s1215_s16, %s1211_s15  ;;  %s1227_s19 = sphi %s1264_s19, %s14_s19   ;;  %s1223_s18 = sphi %s1262_s18, %s1401_s18   ;;  %s1219_s17 = sphi %s1260_s17, %s1400_s17   ;;  %s1215_s16 = sphi %s1258_s16, %s1399_s16   ;;  %s1211_s15 = sphi %s1256_s15, %s1398_s15  }
   0x4   : > { %p27_p0 = scmp.ge.s32.totalorder %s26_s20, 6  ;;  %p50_p2 = scmp.eq.s32.totalorder %s1227_s19, 0 }
   0x5   : > { %s42_s22 = sadd.s32 1, %s1215_s16  ;;  %p993_p5 = scmp.ge.s32.totalorder %s1227_s19, 6 }
   0x6   : > { %s1403_s20 = smov (%p27_p0, %s26_s20), 0  ;;  %p51_p3 = por %p50_p2, %p49_p1 }
   0x7   : > { %s38_s21 = ssub.s32 %s1223_s18, %s1403_s20  ;;  %208 = sbr.rel (%p993_p5) target bundleno = 21 (0x15), region = 24 }
   0x8   : > { %p40_p4 = scmp.eq.s32.totalorder %s38_s21, 0 }
   0xa   : > { %s1291_s23 = scalar_select %p40_p4, %s1215_s16, %s42_s22  }
   0xe   : > { %211 = sbr.rel (!%p51_p3) target bundleno = 21 (0x15), region = 28  ;;  %s213_s24 = sand.u32 (%p51_p3), 1, %s1215_s16  }
   0xf   : > { %s1061_s25 = smul.u32 (%p51_p3), 12, %s1223_s18 }
  0x10   : > { %s1069_s26 = smul.u32 (%p51_p3), 24, %s213_s24 }
  0x11   : > { %s221_s29 = scalar_lea.vmem (%p51_p3), %s1393_s0, %s1061_s25 }
  0x12   : > { %v236_v0 = vld [vmem:[%s221_s29] sm:$0xff] (%p51_p3)  ;;  %v238_v1 = vld [vmem:[%s221_s29 + $0x48] sm:$0xff] (%p51_p3)  ;;  %s215_s30 = scalar_lea.vmem (%p51_p3), [#allocation3], %s1069_s26  ;;  %v997_v3 = vld [vmem:[%s221_s29 + $0x50] sm:$0xf] (%p51_p3) }
  0x13   : > { %v995_v2 = vld [vmem:[%s221_s29 + $0x8] sm:$0xf] (%p51_p3)  ;;  %237 = vst [vmem:[%s215_s30] sm:$0xff] (%p51_p3), %v236_v0  ;;  %239 = vst [vmem:[%s215_s30 + $0xc] sm:$0xff] (%p51_p3), %v238_v1 }
  0x14   : > { %996 = vst [vmem:[%s215_s30 + $0x8] sm:$0xf] (%p51_p3), %v995_v2  ;;  %998 = vst [vmem:[%s215_s30 + $0x14] sm:$0xf] (%p51_p3), %v997_v3 }
  0x15 PF: > { %p999_p6 = scmp.ge.s32.totalorder %s1227_s19, 1  ;;  %p270_p7 = scmp.lt.s32.totalorder %s1227_s19, 7 }
  0x17   : > { %p271_p8 = pnand %p999_p6, %p270_p7 }
  0x18   : > { %s277_s5 = sand.u32 (!%p271_p8), 1, %s1211_s15   ;;  %s333_s6 = smul.u32 (!%p271_p8), 48, %s1219_s17 }
  0x19   : > { %274 = sbr.rel (%p271_p8) target bundleno = 340 (0x154), region = 58  ;;  %p1002_p10 = scmp.ne.s32.totalorder (!%p271_p8), %s1219_s17, 0 }
  0x1a   : > { %s1070_s7 = smul.u32 (!%p271_p8), 24, %s277_s5  ;;  %p335_p9 = scmp.lt.s32.totalorder (!%p271_p8), %s333_s6, 287 }
  0x1c   : > { %s1308_s12 = scalar_lea.vmem (!%p271_p8), [#allocation3], %s1070_s7 }
  0x20   : > { %s1405_s6 = smov (!%p335_p9, %s333_s6), 287  ;;  %378 = sbr.rel (%p1002_p10) target bundleno = 39 (0x27), region = 66 }
  0x21   : > { %s1062_s8 = sshll.u32 %s1405_s6, 3  ;;  %v1229_v4 = vmov (!%p1002_p10), 0.0  }
  0x22   : > { %s1306_s11 = scalar_lea.vmem %s1394_s1, %s1062_s8  ;;  %379 = vst [vmem:[#allocation2] sm:$0xff] (!%p1002_p10), %v1229_v4  ;;  %380 = vst [vmem:[#allocation2 + $0x8] sm:$0xff] (!%p1002_p10), %v1229_v4 }
  0x23   : > { %381 = vst [vmem:[#allocation2 + $0x10] sm:$0xff] (!%p1002_p10), %v1229_v4  ;;  %382 = vst [vmem:[#allocation2 + $0x18] sm:$0xff] (!%p1002_p10), %v1229_v4 }
  0x27 PF: > { %v1113_v5 = vld [vmem:[%s1306_s11 + $0x4] ss:$8 sps:$4 sm:$0xff]   ;;  %v1115_v6 = vld [vmem:[%s1306_s11] ss:$8 sps:$4 sm:$0xff]   ;;  %v1230_v7 = vmov 0   ;;  %p1054_p11 = scmp.ne.s32.totalorder %s1219_s17, 5 }
  0x28   : > { %770 = vmatprep.mubr.bf16.mxu0 %v1230_v7  ;;  %695 = vmatprep.subr.bf16.mxu1 %v1113_v5  ;;  %v1116_v8 = vld [vmem:[%s1306_s11 + $0x14] ss:$8 sps:$4 sm:$0xff]   ;;  %v1118_v9 = vld [vmem:[%s1306_s11 + $0x10] ss:$8 sps:$4 sm:$0xff]   ;;  %v1119_v10 = vld [vmem:[%s1306_s11 + $0x24] ss:$8 sps:$4 sm:$0xff]  }
  0x29   : > { %696 = vmatpush1.bf16.msra.mxu1 %v1115_v6  ;;  %v1121_v11 = vld [vmem:[%s1306_s11 + $0x20] ss:$8 sps:$4 sm:$0xff]   ;;  %v1122_v12 = vld [vmem:[%s1306_s11 + $0x34] ss:$8 sps:$4 sm:$0xff]   ;;  %v1124_v13 = vld [vmem:[%s1306_s11 + $0x30] ss:$8 sps:$4 sm:$0xff]  }
  0x2a   : > { %697 = vmatprep.subr.bf16.mxu1 %v1116_v8  ;;  %v1137_v14 = vld [vmem:[%s1306_s11 + $0x104] ss:$8 sps:$4 sm:$0xff]   ;;  %v1139_v15 = vld [vmem:[%s1306_s11 + $0x100] ss:$8 sps:$4 sm:$0xff]   ;;  %v1143_v17 = vld [vmem:[%s1306_s11 + $0x114] ss:$8 sps:$4 sm:$0xff]  }
  0x2b   : > { %v1125_v16 = vld [vmem:[%s1306_s11 + $0x44] ss:$8 sps:$4 sm:$0xff]   ;;  %738 = vmatprep.subr.bf16.mxu0 %v1137_v14  ;;  %v1145_v18 = vld [vmem:[%s1306_s11 + $0x110] ss:$8 sps:$4 sm:$0xff]   ;;  %v1127_v19 = vld [vmem:[%s1306_s11 + $0x40] ss:$8 sps:$4 sm:$0xff]  }
  0x2c   : > { %739 = vmatpush1.bf16.msra.mxu0 %v1139_v15  ;;  %v1128_v20 = vld [vmem:[%s1306_s11 + $0x54] ss:$8 sps:$4 sm:$0xff]   ;;  %v1149_v21 = vld [vmem:[%s1306_s11 + $0x124] ss:$8 sps:$4 sm:$0xff]   ;;  %v1151_v22 = vld [vmem:[%s1306_s11 + $0x120] ss:$8 sps:$4 sm:$0xff]  }
  0x2d   : > { %698 = vmatpush1.bf16.msra.mxu1 %v1118_v9  ;;  %740 = vmatprep.subr.bf16.mxu0 %v1143_v17  ;;  %v1130_v23 = vld [vmem:[%s1306_s11 + $0x50] ss:$8 sps:$4 sm:$0xff]   ;;  %v1155_v24 = vld [vmem:[%s1306_s11 + $0x134] ss:$8 sps:$4 sm:$0xff]   ;;  %v1131_v25 = vld [vmem:[%s1306_s11 + $0x64] ss:$8 sps:$4 sm:$0xff]  }
  0x2e   : > { %699 = vmatprep.subr.bf16.mxu1 %v1119_v10  ;;  %v1157_v26 = vld [vmem:[%s1306_s11 + $0x130] ss:$8 sps:$4 sm:$0xff]   ;;  %v1133_v27 = vld [vmem:[%s1306_s11 + $0x60] ss:$8 sps:$4 sm:$0xff]   ;;  %v1161_v28 = vld [vmem:[%s1306_s11 + $0x144] ss:$8 sps:$4 sm:$0xff]  }
  0x2f   : > { %v1134_v29 = vld [vmem:[%s1306_s11 + $0x74] ss:$8 sps:$4 sm:$0xff]   ;;  %v1163_v30 = vld [vmem:[%s1306_s11 + $0x140] ss:$8 sps:$4 sm:$0xff]   ;;  %v1136_v31 = vld [vmem:[%s1306_s11 + $0x70] ss:$8 sps:$4 sm:$0xff]  }
  0x30   : > { %741 = vmatpush1.bf16.msra.mxu0 %v1145_v18  ;;  %v1167_v32 = vld [vmem:[%s1306_s11 + $0x154] ss:$8 sps:$4 sm:$0xff]   ;;  %v1140_v33 = vld [vmem:[%s1306_s11 + $0x84] ss:$8 sps:$4 sm:$0xff]   ;;  %v1169_v34 = vld [vmem:[%s1306_s11 + $0x150] ss:$8 sps:$4 sm:$0xff]  }
  0x31   : > { %700 = vmatpush1.bf16.msra.mxu1 %v1121_v11  ;;  %742 = vmatprep.subr.bf16.mxu0 %v1149_v21  ;;  %v1142_v35 = vld [vmem:[%s1306_s11 + $0x80] ss:$8 sps:$4 sm:$0xff]   ;;  %v1173_v36 = vld [vmem:[%s1306_s11 + $0x164] ss:$8 sps:$4 sm:$0xff]   ;;  %v1146_v37 = vld [vmem:[%s1306_s11 + $0x94] ss:$8 sps:$4 sm:$0xff]  }
  0x32   : > { %701 = vmatprep.subr.bf16.mxu1 %v1122_v12  ;;  %v1175_v38 = vld [vmem:[%s1306_s11 + $0x160] ss:$8 sps:$4 sm:$0xff]   ;;  %v1148_v40 = vld [vmem:[%s1306_s11 + $0x90] ss:$8 sps:$4 sm:$0xff]   ;;  %v1179_v41 = vld [vmem:[%s1306_s11 + $0x174] ss:$8 sps:$4 sm:$0xff]  }
  0x33   : > { %v1188_v39 = vld [vmem:[%s1308_s12 + $0x4] ss:$12 sps:$4 sm:$0xff]   ;;  %v1185_v46 = vld [vmem:[%s1308_s12 + $0x8] ss:$12 sps:$4 sm:$0xff]   ;;  %v1186_v56 = vld [vmem:[%s1308_s12] ss:$12 sps:$4 sm:$0xff]  }
  0x34   : > { %743 = vmatpush1.bf16.msra.mxu0 %v1151_v22  ;;  %v1152_v42 = vld [vmem:[%s1306_s11 + $0xa4] ss:$8 sps:$4 sm:$0xff]   ;;  %727 = vmatprep.mubr.bf16.mxu1 %v1188_v39  ;;  %v1181_v43 = vld [vmem:[%s1306_s11 + $0x170] ss:$8 sps:$4 sm:$0xff]   ;;  %v1154_v44 = vld [vmem:[%s1306_s11 + $0xa0] ss:$8 sps:$4 sm:$0xff]  }
  0x35   : > { %702 = vmatpush1.bf16.msra.mxu1 %v1124_v13  ;;  %744 = vmatprep.subr.bf16.mxu0 %v1155_v24  ;;  %v1158_v45 = vld [vmem:[%s1306_s11 + $0xb4] ss:$8 sps:$4 sm:$0xff]   ;;  %v1160_v47 = vld [vmem:[%s1306_s11 + $0xb0] ss:$8 sps:$4 sm:$0xff]   ;;  %v1164_v48 = vld [vmem:[%s1306_s11 + $0xc4] ss:$8 sps:$4 sm:$0xff]   ;;  %v799_v13 = vlaneseq (!%p1054_p11) }
  0x36   : > { %703 = vmatprep.subr.bf16.mxu1 %v1125_v16  ;;  %v1166_v49 = vld [vmem:[%s1306_s11 + $0xc0] ss:$8 sps:$4 sm:$0xff]   ;;  %v1170_v50 = vld [vmem:[%s1306_s11 + $0xd4] ss:$8 sps:$4 sm:$0xff]   ;;  %v1172_v51 = vld [vmem:[%s1306_s11 + $0xd0] ss:$8 sps:$4 sm:$0xff]  }
  0x37   : > { %v1176_v52 = vld [vmem:[%s1306_s11 + $0xe4] ss:$8 sps:$4 sm:$0xff]   ;;  %v1178_v53 = vld [vmem:[%s1306_s11 + $0xe0] ss:$8 sps:$4 sm:$0xff]   ;;  %v1182_v54 = vld [vmem:[%s1306_s11 + $0xf4] ss:$8 sps:$4 sm:$0xff]  }
  0x38   : > { %745 = vmatpush1.bf16.msra.mxu0 %v1157_v26  ;;  %v1184_v55 = vld [vmem:[%s1306_s11 + $0xf0] ss:$8 sps:$4 sm:$0xff]   ;;  %v383_v61 = vld [vmem:[#allocation2] sm:$0xff]  ;;  %v384_v0 = vld [vmem:[#allocation2 + $0x8] sm:$0xff]  ;;  %v800_v14 = vshrl.u32 (!%p1054_p11), %v799_v13, 7 }
  0x39   : > { %704 = vmatpush1.bf16.msra.mxu1 %v1127_v19  ;;  %746 = vmatprep.subr.bf16.mxu0 %v1161_v28  ;;  %v385_v3 = vld [vmem:[#allocation2 + $0x10] sm:$0xff]  ;;  %v386_v7 = vld [vmem:[#allocation2 + $0x18] sm:$0xff]  ;;  %v813_v15 = vld [vmem:[%s1396_s3] sm:$0xff] (!%p1054_p11) }
  0x3a   : > { %705 = vmatprep.subr.bf16.mxu1 %v1128_v20  ;;  %v797_v16 = vld [vmem:[%s1395_s2] sm:$0x3] (!%p1054_p11)  ;;  %v814_v17 = vld [vmem:[%s1396_s3 + $0x8] sm:$0xff] (!%p1054_p11)  ;;  %v801_v19 = vsub.s32 (!%p1054_p11), 0, %v800_v14  ;;  %v805_v20 = vsub.s32 (!%p1054_p11), 1, %v800_v14  ;;  %v815_v22 = vunpack.c.l.bf16 (!%p1054_p11), %v813_v15 }
  0x3b   : > { %v817_v28 = vunpack.c.l.bf16 (!%p1054_p11), %v814_v17 }
  0x3c   : > { %747 = vmatpush1.bf16.msra.mxu0 %v1163_v30  ;;  %v802_v26 = vrot.slane (!%p1054_p11), %v797_v16, %v801_v19 }
  0x3d   : > { %706 = vmatpush1.bf16.msra.mxu1 %v1130_v23  ;;  %748 = vmatprep.subr.bf16.mxu0 %v1167_v32  ;;  %v816_v23 = vunpack.c.h.bf16 (!%p1054_p11), %v813_v15 }
  0x3e   : > { %707 = vmatprep.subr.bf16.mxu1 %v1131_v25 }
  0x40   : > { %749 = vmatpush1.bf16.msra.mxu0 %v1169_v34 }
  0x41   : > { %708 = vmatpush1.bf16.msra.mxu1 %v1133_v27  ;;  %750 = vmatprep.subr.bf16.mxu0 %v1173_v36  ;;  %v806_v27 = vrot.slane (!%p1054_p11), %v797_v16, %v805_v20 }
  0x42   : > { %709 = vmatprep.subr.bf16.mxu1 %v1134_v29  ;;  %v818_v29 = vunpack.c.h.bf16 (!%p1054_p11), %v814_v17 }
  0x44   : > { %751 = vmatpush1.bf16.msra.mxu0 %v1175_v38 }
  0x45   : > { %710 = vmatpush1.bf16.msra.mxu1 %v1136_v31  ;;  %752 = vmatprep.subr.bf16.mxu0 %v1179_v41 }
  0x46   : > { %711 = vmatprep.subr.bf16.mxu1 %v1140_v33 }
  0x48   : > { %753 = vmatpush1.bf16.msra.mxu0 %v1181_v43 }
  0x49   : > { %712 = vmatpush1.bf16.msra.mxu1 %v1142_v35 }
  0x4a   : > { %713 = vmatprep.subr.bf16.mxu1 %v1146_v37 }
  0x4b   : > { %771 = vmatmul.mubr.bf16.vlgmr.msra.gmra.mrb[0].mxu0 %v1185_v46 }
  0x4d   : > { %714 = vmatpush1.bf16.msra.mxu1 %v1148_v40 }
  0x4e   : > { %715 = vmatprep.subr.bf16.mxu1 %v1152_v42 }
  0x51   : > { %716 = vmatpush1.bf16.msra.mxu1 %v1154_v44 }
  0x52   : > { %717 = vmatprep.subr.bf16.mxu1 %v1158_v45 }
  0x55   : > { %718 = vmatpush1.bf16.msra.mxu1 %v1160_v47 }
  0x56   : > { %719 = vmatprep.subr.bf16.mxu1 %v1164_v48 }
  0x59   : > { %720 = vmatpush1.bf16.msra.mxu1 %v1166_v49 }
  0x5a   : > { %721 = vmatprep.subr.bf16.mxu1 %v1170_v50 }
  0x5d   : > { %722 = vmatpush1.bf16.msra.mxu1 %v1172_v51 }
  0x5e   : > { %723 = vmatprep.subr.bf16.mxu1 %v1176_v52 }
  0x61   : > { %724 = vmatpush1.bf16.msra.mxu1 %v1178_v53 }
  0x62   : > { %725 = vmatprep.subr.bf16.mxu1 %v1182_v54 }
  0x65   : > { %726 = vmatpush1.bf16.msra.mxu1 %v1184_v55 }
  0x68   : > { %728 = vmatmul.mubr.bf16.vlgmr.msra.gmra.mrb[0].mxu1 %v1186_v56 }
 0x11e   : > { %v772_v57 = vpop.f32.mrb[0].mxu0 }
 0x11f   : > { %v774_v58 = vpop.f32.mrb[1].mxu0 }
 0x120   : > { %v776_v59 = vpop.f32.mrb[2].mxu0 }
 0x121   : > { %v778_v60 = vpop.f32.mrb[3].mxu0 }
 0x13b   : > { %v729_v62 = vpop.f32.mrb[0].mxu1 }
 0x13c   : > { %v773_v63 = vadd.f32 %v772_v57, %v729_v62  ;;  %v731_v1 = vpop.f32.mrb[1].mxu1 }
 0x13d   : > { %v775_v2 = vadd.f32 %v774_v58, %v731_v1  ;;  %v733_v4 = vpop.f32.mrb[2].mxu1  ;;  %792 = sbr.rel (%p1054_p11) target bundleno = 340 (0x154), region = 70 }
 0x13e   : > { %v781_v5 = vadd.f32 %v773_v63, %v383_v61  ;;  %v777_v6 = vadd.f32 %v776_v59, %v733_v4  ;;  %v735_v8 = vpop.f32.mrb[3].mxu1 }
 0x13f   : > { %v782_v9 = vadd.f32 %v775_v2, %v384_v0  ;;  %v779_v10 = vadd.f32 %v778_v60, %v735_v8 }
 0x140   : > { %785 = vst [vmem:[#allocation2] sm:$0xff] %v781_v5  ;;  %v783_v11 = vadd.f32 %v777_v6, %v385_v3 }
 0x141   : > { %786 = vst [vmem:[#allocation2 + $0x8] sm:$0xff] %v782_v9  ;;  %v784_v12 = vadd.f32 %v779_v10, %v386_v7 }
 0x142   : > { %787 = vst [vmem:[#allocation2 + $0x10] sm:$0xff] %v783_v11 }
 0x143   : > { %788 = vst [vmem:[#allocation2 + $0x18] sm:$0xff] %v784_v12 }
 0x147   : > { %v793_v18 = vld [vmem:[#allocation2] sm:$0xff] }
 0x148   : > { %v794_v21 = vld [vmem:[#allocation2 + $0x8] sm:$0xff]  ;;  %v809_v30 = vadd.f32 %v802_v26, %v793_v18 }
 0x149   : > { %v795_v24 = vld [vmem:[#allocation2 + $0x10] sm:$0xff]  ;;  %v810_v31 = vadd.f32 %v806_v27, %v794_v21 }
 0x14a   : > { %v796_v25 = vld [vmem:[#allocation2 + $0x18] sm:$0xff]  ;;  %v811_v32 = vadd.f32 %v802_v26, %v795_v24  ;;  %v819_v34 = vadd.f32 %v815_v22, %v809_v30 }
 0x14b   : > { %v812_v33 = vadd.f32 %v806_v27, %v796_v25  ;;  %v820_v35 = vadd.f32 %v816_v23, %v810_v31 }
 0x14c   : > { %v821_v36 = vadd.f32 %v817_v28, %v811_v32  ;;  %v823_v38 = vmax.f32 %v819_v34, 0.0 }
 0x14d   : > { %v822_v37 = vadd.f32 %v818_v29, %v812_v33  ;;  %v824_v39 = vmax.f32 %v820_v35, 0.0 }
 0x14e   : > { %v825_v40 = vmax.f32 %v821_v36, 0.0 }
 0x14f   : > { %v826_v41 = vmax.f32 %v822_v37, 0.0  ;;  %v1063_v42 = vpack.c.bf16 %v824_v39, %v823_v38 }
 0x151   : > { %v1064_v43 = vpack.c.bf16 %v826_v41, %v825_v40  ;;  %839 = vst [vmem:[%s1397_s4] sm:$0xff] %v1063_v42 }
 0x153   : > { %840 = vst [vmem:[%s1397_s4 + $0x8] sm:$0xff] %v1064_v43 }
 0x154 PF: > { %s14_s19 = sadd.s32 1, %s1227_s19   ;;  %s1398_s15 = smov %s1215_s16 }
 0x155   : > { %p11_p12 = scmp.ge.s32.totalorder %s14_s19, 8   ;;  %s1399_s16 = smov %s1291_s23 }
 0x156   : > { %s1400_s17 = smov %s1223_s18  ;;  %s1401_s18 = smov %s1403_s20 }
 0x157   :  { %13 = sbr.rel (!%p11_p12) target bundleno = 3 (0x3), region = 120 }

// kernel: modified_res18_forward.34
= control target key start
LH: loop header
LB: loop body
LE: loop exit
PB: predicated region body
PF: predicated region fallthrough
CT: control target
= control target key end

     0   :  { %s1151_s12 = smov 0   ;;  %s1153_s13 = smov 0   ;;  %s1282_s0 = inlined_call_operand.vmem [shape: bf16[16,2304], index: 0, kind: input, shape index: {}]   ;;  %s1283_s1 = inlined_call_operand.vmem [shape: bf16[2304,256], index: 1, kind: input, shape index: {}]   ;;  %s1284_s2 = inlined_call_operand.vmem [shape: f32[1,256], index: 2, kind: input, shape index: {}]   ;;  %s1285_s3 = inlined_call_operand.vmem [shape: bf16[16,256], index: 3, kind: output, shape index: {}]  }
   0x1   :  { %s1155_s14 = smov 0   ;;  %s1157_s15 = smov 0  }
   0x2   :  { %s1159_s16 = smov 0  }
   0x3 LB: > { %s25_s17 = sadd.s32 1, %s1123_s15  ;;  %p48_p1 = scmp.ne.s32.totalorder %s1115_s13, %s1111_s12  ;;  %s1127_s16 = sphi %s1159_s16, %s13_s16   ;;  %s1123_s15 = sphi %s1157_s15, %s1289_s15   ;;  %s1119_s14 = sphi %s1155_s14, %s1288_s14   ;;  %s1115_s13 = sphi %s1153_s13, %s1287_s13   ;;  %s1111_s12 = sphi %s1151_s12, %s1286_s12  }
   0x4   : > { %p26_p0 = scmp.ge.s32.totalorder %s25_s17, 6  ;;  %p49_p2 = scmp.eq.s32.totalorder %s1127_s16, 0 }
   0x5   : > { %s41_s19 = sadd.s32 1, %s1115_s13  ;;  %p893_p5 = scmp.ge.s32.totalorder %s1127_s16, 6 }
   0x6   : > { %s1291_s17 = smov (%p26_p0, %s25_s17), 0  ;;  %p50_p3 = por %p49_p2, %p48_p1 }
   0x7   : > { %s37_s18 = ssub.s32 %s1123_s15, %s1291_s17  ;;  %164 = sbr.rel (%p893_p5) target bundleno = 21 (0x15), region = 20 }
   0x8   : > { %p39_p4 = scmp.eq.s32.totalorder %s37_s18, 0 }
   0xa   : > { %s1186_s20 = scalar_select %p39_p4, %s1115_s13, %s41_s19  }
   0xe   : > { %167 = sbr.rel (!%p50_p3) target bundleno = 21 (0x15), region = 24  ;;  %s169_s21 = sand.u32 (%p50_p3), 1, %s1115_s13  }
   0xf   : > { %s961_s22 = smul.u32 (%p50_p3), 12, %s1123_s15 }
  0x10   : > { %s969_s23 = smul.u32 (%p50_p3), 24, %s169_s21 }
  0x11   : > { %s177_s26 = scalar_lea.vmem (%p50_p3), %s1282_s0, %s961_s22 }
  0x12   : > { %v192_v0 = vld [vmem:[%s177_s26] sm:$0xff] (%p50_p3)  ;;  %v194_v1 = vld [vmem:[%s177_s26 + $0x48] sm:$0xff] (%p50_p3)  ;;  %s171_s27 = scalar_lea.vmem (%p50_p3), [#allocation3], %s969_s23  ;;  %v897_v3 = vld [vmem:[%s177_s26 + $0x50] sm:$0xf] (%p50_p3) }
  0x13   : > { %v895_v2 = vld [vmem:[%s177_s26 + $0x8] sm:$0xf] (%p50_p3)  ;;  %193 = vst [vmem:[%s171_s27] sm:$0xff] (%p50_p3), %v192_v0  ;;  %195 = vst [vmem:[%s171_s27 + $0xc] sm:$0xff] (%p50_p3), %v194_v1 }
  0x14   : > { %896 = vst [vmem:[%s171_s27 + $0x8] sm:$0xf] (%p50_p3), %v895_v2  ;;  %898 = vst [vmem:[%s171_s27 + $0x14] sm:$0xf] (%p50_p3), %v897_v3 }
  0x15 PF: > { %p899_p6 = scmp.ge.s32.totalorder %s1127_s16, 1  ;;  %p226_p7 = scmp.lt.s32.totalorder %s1127_s16, 7 }
  0x17   : > { %p227_p8 = pnand %p899_p6, %p226_p7 }
  0x18   : > { %s233_s28 = sand.u32 (!%p227_p8), 1, %s1111_s12   ;;  %s277_s29 = smul.u32 (!%p227_p8), 48, %s1119_s14 }
  0x19   : > { %230 = sbr.rel (%p227_p8) target bundleno = 338 (0x152), region = 54  ;;  %p902_p10 = scmp.ne.s32.totalorder (!%p227_p8), %s1119_s14, 0 }
  0x1a   : > { %s970_s30 = smul.u32 (!%p227_p8), 24, %s233_s28  ;;  %p279_p9 = scmp.lt.s32.totalorder (!%p227_p8), %s277_s29, 287 }
  0x1c   : > { %s1203_s8 = scalar_lea.vmem (!%p227_p8), [#allocation3], %s970_s30 }
  0x20   : > { %s1293_s29 = smov (!%p279_p9, %s277_s29), 287  ;;  %310 = sbr.rel (%p902_p10) target bundleno = 39 (0x27), region = 62 }
  0x21   : > { %s962_s4 = sshll.u32 %s1293_s29, 3  ;;  %v1129_v4 = vmov (!%p902_p10), 0.0  }
  0x22   : > { %s1201_s7 = scalar_lea.vmem %s1283_s1, %s962_s4  ;;  %311 = vst [vmem:[#allocation2] sm:$0xff] (!%p902_p10), %v1129_v4  ;;  %312 = vst [vmem:[#allocation2 + $0x8] sm:$0xff] (!%p902_p10), %v1129_v4 }
  0x23   : > { %313 = vst [vmem:[#allocation2 + $0x10] sm:$0xff] (!%p902_p10), %v1129_v4  ;;  %314 = vst [vmem:[#allocation2 + $0x18] sm:$0xff] (!%p902_p10), %v1129_v4 }
  0x27 PF: > { %v1013_v5 = vld [vmem:[%s1201_s7 + $0x4] ss:$8 sps:$4 sm:$0xff]   ;;  %v1015_v6 = vld [vmem:[%s1201_s7] ss:$8 sps:$4 sm:$0xff]   ;;  %v1130_v7 = vmov 0   ;;  %p954_p11 = scmp.ne.s32.totalorder %s1119_s14, 5 }
  0x28   : > { %702 = vmatprep.mubr.bf16.mxu0 %v1130_v7  ;;  %627 = vmatprep.subr.bf16.mxu1 %v1013_v5  ;;  %v1016_v8 = vld [vmem:[%s1201_s7 + $0x14] ss:$8 sps:$4 sm:$0xff]   ;;  %v1018_v9 = vld [vmem:[%s1201_s7 + $0x10] ss:$8 sps:$4 sm:$0xff]   ;;  %v1019_v10 = vld [vmem:[%s1201_s7 + $0x24] ss:$8 sps:$4 sm:$0xff]  }
  0x29   : > { %628 = vmatpush1.bf16.msra.mxu1 %v1015_v6  ;;  %v1021_v11 = vld [vmem:[%s1201_s7 + $0x20] ss:$8 sps:$4 sm:$0xff]   ;;  %v1022_v12 = vld [vmem:[%s1201_s7 + $0x34] ss:$8 sps:$4 sm:$0xff]   ;;  %v1024_v13 = vld [vmem:[%s1201_s7 + $0x30] ss:$8 sps:$4 sm:$0xff]  }
  0x2a   : > { %629 = vmatprep.subr.bf16.mxu1 %v1016_v8  ;;  %v1037_v14 = vld [vmem:[%s1201_s7 + $0x104] ss:$8 sps:$4 sm:$0xff]   ;;  %v1039_v15 = vld [vmem:[%s1201_s7 + $0x100] ss:$8 sps:$4 sm:$0xff]   ;;  %v1043_v17 = vld [vmem:[%s1201_s7 + $0x114] ss:$8 sps:$4 sm:$0xff]  }
  0x2b   : > { %v1025_v16 = vld [vmem:[%s1201_s7 + $0x44] ss:$8 sps:$4 sm:$0xff]   ;;  %670 = vmatprep.subr.bf16.mxu0 %v1037_v14  ;;  %v1045_v18 = vld [vmem:[%s1201_s7 + $0x110] ss:$8 sps:$4 sm:$0xff]   ;;  %v1027_v19 = vld [vmem:[%s1201_s7 + $0x40] ss:$8 sps:$4 sm:$0xff]  }
  0x2c   : > { %671 = vmatpush1.bf16.msra.mxu0 %v1039_v15  ;;  %v1028_v20 = vld [vmem:[%s1201_s7 + $0x54] ss:$8 sps:$4 sm:$0xff]   ;;  %v1049_v21 = vld [vmem:[%s1201_s7 + $0x124] ss:$8 sps:$4 sm:$0xff]   ;;  %v1051_v22 = vld [vmem:[%s1201_s7 + $0x120] ss:$8 sps:$4 sm:$0xff]  }
  0x2d   : > { %630 = vmatpush1.bf16.msra.mxu1 %v1018_v9  ;;  %672 = vmatprep.subr.bf16.mxu0 %v1043_v17  ;;  %v1030_v23 = vld [vmem:[%s1201_s7 + $0x50] ss:$8 sps:$4 sm:$0xff]   ;;  %v1055_v24 = vld [vmem:[%s1201_s7 + $0x134] ss:$8 sps:$4 sm:$0xff]   ;;  %v1031_v25 = vld [vmem:[%s1201_s7 + $0x64] ss:$8 sps:$4 sm:$0xff]  }
  0x2e   : > { %631 = vmatprep.subr.bf16.mxu1 %v1019_v10  ;;  %v1057_v26 = vld [vmem:[%s1201_s7 + $0x130] ss:$8 sps:$4 sm:$0xff]   ;;  %v1033_v27 = vld [vmem:[%s1201_s7 + $0x60] ss:$8 sps:$4 sm:$0xff]   ;;  %v1061_v28 = vld [vmem:[%s1201_s7 + $0x144] ss:$8 sps:$4 sm:$0xff]  }
  0x2f   : > { %v1034_v29 = vld [vmem:[%s1201_s7 + $0x74] ss:$8 sps:$4 sm:$0xff]   ;;  %v1063_v30 = vld [vmem:[%s1201_s7 + $0x140] ss:$8 sps:$4 sm:$0xff]   ;;  %v1036_v31 = vld [vmem:[%s1201_s7 + $0x70] ss:$8 sps:$4 sm:$0xff]  }
  0x30   : > { %673 = vmatpush1.bf16.msra.mxu0 %v1045_v18  ;;  %v1067_v32 = vld [vmem:[%s1201_s7 + $0x154] ss:$8 sps:$4 sm:$0xff]   ;;  %v1040_v33 = vld [vmem:[%s1201_s7 + $0x84] ss:$8 sps:$4 sm:$0xff]   ;;  %v1069_v34 = vld [vmem:[%s1201_s7 + $0x150] ss:$8 sps:$4 sm:$0xff]  }
  0x31   : > { %632 = vmatpush1.bf16.msra.mxu1 %v1021_v11  ;;  %674 = vmatprep.subr.bf16.mxu0 %v1049_v21  ;;  %v1042_v35 = vld [vmem:[%s1201_s7 + $0x80] ss:$8 sps:$4 sm:$0xff]   ;;  %v1073_v36 = vld [vmem:[%s1201_s7 + $0x164] ss:$8 sps:$4 sm:$0xff]   ;;  %v1046_v37 = vld [vmem:[%s1201_s7 + $0x94] ss:$8 sps:$4 sm:$0xff]  }
  0x32   : > { %633 = vmatprep.subr.bf16.mxu1 %v1022_v12  ;;  %v1075_v38 = vld [vmem:[%s1201_s7 + $0x160] ss:$8 sps:$4 sm:$0xff]   ;;  %v1048_v40 = vld [vmem:[%s1201_s7 + $0x90] ss:$8 sps:$4 sm:$0xff]   ;;  %v1079_v41 = vld [vmem:[%s1201_s7 + $0x174] ss:$8 sps:$4 sm:$0xff]  }
  0x33   : > { %v1088_v39 = vld [vmem:[%s1203_s8 + $0x4] ss:$12 sps:$4 sm:$0xff]   ;;  %v1085_v46 = vld [vmem:[%s1203_s8 + $0x8] ss:$12 sps:$4 sm:$0xff]   ;;  %v1086_v56 = vld [vmem:[%s1203_s8] ss:$12 sps:$4 sm:$0xff]  }
  0x34   : > { %675 = vmatpush1.bf16.msra.mxu0 %v1051_v22  ;;  %v1052_v42 = vld [vmem:[%s1201_s7 + $0xa4] ss:$8 sps:$4 sm:$0xff]   ;;  %659 = vmatprep.mubr.bf16.mxu1 %v1088_v39  ;;  %v1081_v43 = vld [vmem:[%s1201_s7 + $0x170] ss:$8 sps:$4 sm:$0xff]   ;;  %v1054_v44 = vld [vmem:[%s1201_s7 + $0xa0] ss:$8 sps:$4 sm:$0xff]  }
  0x35   : > { %634 = vmatpush1.bf16.msra.mxu1 %v1024_v13  ;;  %676 = vmatprep.subr.bf16.mxu0 %v1055_v24  ;;  %v1058_v45 = vld [vmem:[%s1201_s7 + $0xb4] ss:$8 sps:$4 sm:$0xff]   ;;  %v1060_v47 = vld [vmem:[%s1201_s7 + $0xb0] ss:$8 sps:$4 sm:$0xff]   ;;  %v1064_v48 = vld [vmem:[%s1201_s7 + $0xc4] ss:$8 sps:$4 sm:$0xff]   ;;  %v731_v13 = vlaneseq (!%p954_p11) }
  0x36   : > { %635 = vmatprep.subr.bf16.mxu1 %v1025_v16  ;;  %v1066_v49 = vld [vmem:[%s1201_s7 + $0xc0] ss:$8 sps:$4 sm:$0xff]   ;;  %v1070_v50 = vld [vmem:[%s1201_s7 + $0xd4] ss:$8 sps:$4 sm:$0xff]   ;;  %v1072_v51 = vld [vmem:[%s1201_s7 + $0xd0] ss:$8 sps:$4 sm:$0xff]  }
  0x37   : > { %v1076_v52 = vld [vmem:[%s1201_s7 + $0xe4] ss:$8 sps:$4 sm:$0xff]   ;;  %v1078_v53 = vld [vmem:[%s1201_s7 + $0xe0] ss:$8 sps:$4 sm:$0xff]   ;;  %v1082_v54 = vld [vmem:[%s1201_s7 + $0xf4] ss:$8 sps:$4 sm:$0xff]  }
  0x38   : > { %677 = vmatpush1.bf16.msra.mxu0 %v1057_v26  ;;  %v1084_v55 = vld [vmem:[%s1201_s7 + $0xf0] ss:$8 sps:$4 sm:$0xff]   ;;  %v315_v61 = vld [vmem:[#allocation2] sm:$0xff]  ;;  %v316_v0 = vld [vmem:[#allocation2 + $0x8] sm:$0xff]  ;;  %v732_v14 = vshrl.u32 (!%p954_p11), %v731_v13, 7 }
  0x39   : > { %636 = vmatpush1.bf16.msra.mxu1 %v1027_v19  ;;  %678 = vmatprep.subr.bf16.mxu0 %v1061_v28  ;;  %v317_v3 = vld [vmem:[#allocation2 + $0x10] sm:$0xff]  ;;  %v318_v7 = vld [vmem:[#allocation2 + $0x18] sm:$0xff]  ;;  %v729_v15 = vld [vmem:[%s1284_s2] sm:$0x3] (!%p954_p11) }
  0x3a   : > { %637 = vmatprep.subr.bf16.mxu1 %v1028_v20  ;;  %v733_v17 = vsub.s32 (!%p954_p11), 0, %v732_v14  ;;  %v737_v18 = vsub.s32 (!%p954_p11), 1, %v732_v14 }
  0x3c   : > { %679 = vmatpush1.bf16.msra.mxu0 %v1063_v30  ;;  %v734_v22 = vrot.slane (!%p954_p11), %v729_v15, %v733_v17 }
  0x3d   : > { %638 = vmatpush1.bf16.msra.mxu1 %v1030_v23  ;;  %680 = vmatprep.subr.bf16.mxu0 %v1067_v32  ;;  %v738_v23 = vrot.slane (!%p954_p11), %v729_v15, %v737_v18 }
  0x3e   : > { %639 = vmatprep.subr.bf16.mxu1 %v1031_v25 }
  0x40   : > { %681 = vmatpush1.bf16.msra.mxu0 %v1069_v34 }
  0x41   : > { %640 = vmatpush1.bf16.msra.mxu1 %v1033_v27  ;;  %682 = vmatprep.subr.bf16.mxu0 %v1073_v36 }
  0x42   : > { %641 = vmatprep.subr.bf16.mxu1 %v1034_v29 }
  0x44   : > { %683 = vmatpush1.bf16.msra.mxu0 %v1075_v38 }
  0x45   : > { %642 = vmatpush1.bf16.msra.mxu1 %v1036_v31  ;;  %684 = vmatprep.subr.bf16.mxu0 %v1079_v41 }
  0x46   : > { %643 = vmatprep.subr.bf16.mxu1 %v1040_v33 }
  0x48   : > { %685 = vmatpush1.bf16.msra.mxu0 %v1081_v43 }
  0x49   : > { %644 = vmatpush1.bf16.msra.mxu1 %v1042_v35 }
  0x4a   : > { %645 = vmatprep.subr.bf16.mxu1 %v1046_v37 }
  0x4b   : > { %703 = vmatmul.mubr.bf16.vlgmr.msra.gmra.mrb[0].mxu0 %v1085_v46 }
  0x4d   : > { %646 = vmatpush1.bf16.msra.mxu1 %v1048_v40 }
  0x4e   : > { %647 = vmatprep.subr.bf16.mxu1 %v1052_v42 }
  0x51   : > { %648 = vmatpush1.bf16.msra.mxu1 %v1054_v44 }
  0x52   : > { %649 = vmatprep.subr.bf16.mxu1 %v1058_v45 }
  0x55   : > { %650 = vmatpush1.bf16.msra.mxu1 %v1060_v47 }
  0x56   : > { %651 = vmatprep.subr.bf16.mxu1 %v1064_v48 }
  0x59   : > { %652 = vmatpush1.bf16.msra.mxu1 %v1066_v49 }
  0x5a   : > { %653 = vmatprep.subr.bf16.mxu1 %v1070_v50 }
  0x5d   : > { %654 = vmatpush1.bf16.msra.mxu1 %v1072_v51 }
  0x5e   : > { %655 = vmatprep.subr.bf16.mxu1 %v1076_v52 }
  0x61   : > { %656 = vmatpush1.bf16.msra.mxu1 %v1078_v53 }
  0x62   : > { %657 = vmatprep.subr.bf16.mxu1 %v1082_v54 }
  0x65   : > { %658 = vmatpush1.bf16.msra.mxu1 %v1084_v55 }
  0x68   : > { %660 = vmatmul.mubr.bf16.vlgmr.msra.gmra.mrb[0].mxu1 %v1086_v56 }
 0x11e   : > { %v704_v57 = vpop.f32.mrb[0].mxu0 }
 0x11f   : > { %v706_v58 = vpop.f32.mrb[1].mxu0 }
 0x120   : > { %v708_v59 = vpop.f32.mrb[2].mxu0 }
 0x121   : > { %v710_v60 = vpop.f32.mrb[3].mxu0 }
 0x13b   : > { %v661_v62 = vpop.f32.mrb[0].mxu1 }
 0x13c   : > { %v705_v63 = vadd.f32 %v704_v57, %v661_v62  ;;  %v663_v1 = vpop.f32.mrb[1].mxu1 }
 0x13d   : > { %v707_v2 = vadd.f32 %v706_v58, %v663_v1  ;;  %v665_v4 = vpop.f32.mrb[2].mxu1  ;;  %724 = sbr.rel (%p954_p11) target bundleno = 338 (0x152), region = 66 }
 0x13e   : > { %v713_v5 = vadd.f32 %v705_v63, %v315_v61  ;;  %v709_v6 = vadd.f32 %v708_v59, %v665_v4  ;;  %v667_v8 = vpop.f32.mrb[3].mxu1 }
 0x13f   : > { %v714_v9 = vadd.f32 %v707_v2, %v316_v0  ;;  %v711_v10 = vadd.f32 %v710_v60, %v667_v8 }
 0x140   : > { %717 = vst [vmem:[#allocation2] sm:$0xff] %v713_v5  ;;  %v715_v11 = vadd.f32 %v709_v6, %v317_v3 }
 0x141   : > { %718 = vst [vmem:[#allocation2 + $0x8] sm:$0xff] %v714_v9  ;;  %v716_v12 = vadd.f32 %v711_v10, %v318_v7 }
 0x142   : > { %719 = vst [vmem:[#allocation2 + $0x10] sm:$0xff] %v715_v11 }
 0x143   : > { %720 = vst [vmem:[#allocation2 + $0x18] sm:$0xff] %v716_v12 }
 0x147   : > { %v725_v16 = vld [vmem:[#allocation2] sm:$0xff] }
 0x148   : > { %v726_v19 = vld [vmem:[#allocation2 + $0x8] sm:$0xff]  ;;  %v741_v24 = vadd.f32 %v734_v22, %v725_v16 }
 0x149   : > { %v727_v20 = vld [vmem:[#allocation2 + $0x10] sm:$0xff]  ;;  %v742_v25 = vadd.f32 %v738_v23, %v726_v19 }
 0x14a   : > { %v728_v21 = vld [vmem:[#allocation2 + $0x18] sm:$0xff]  ;;  %v743_v26 = vadd.f32 %v734_v22, %v727_v20  ;;  %v745_v28 = vmax.f32 %v741_v24, 0.0 }
 0x14b   : > { %v744_v27 = vadd.f32 %v738_v23, %v728_v21  ;;  %v746_v29 = vmax.f32 %v742_v25, 0.0 }
 0x14c   : > { %v747_v30 = vmax.f32 %v743_v26, 0.0 }
 0x14d   : > { %v748_v31 = vmax.f32 %v744_v27, 0.0  ;;  %v963_v32 = vpack.c.bf16 %v746_v29, %v745_v28 }
 0x14f   : > { %v964_v33 = vpack.c.bf16 %v748_v31, %v747_v30  ;;  %761 = vst [vmem:[%s1285_s3] sm:$0xff] %v963_v32 }
 0x151   : > { %762 = vst [vmem:[%s1285_s3 + $0x8] sm:$0xff] %v964_v33 }
 0x152 PF: > { %s13_s16 = sadd.s32 1, %s1127_s16   ;;  %s1286_s12 = smov %s1115_s13 }
 0x153   : > { %p10_p12 = scmp.ge.s32.totalorder %s13_s16, 8   ;;  %s1287_s13 = smov %s1186_s20 }
 0x154   : > { %s1288_s14 = smov %s1123_s15  ;;  %s1289_s15 = smov %s1291_s17 }
 0x155   :  { %12 = sbr.rel (!%p10_p12) target bundleno = 3 (0x3), region = 113 }

// kernel: modified_res18_forward.36
= control target key start
LH: loop header
LB: loop body
LE: loop exit
PB: predicated region body
PF: predicated region fallthrough
CT: control target
= control target key end

     0   :  { %s1705_s12 = smov 0   ;;  %s1707_s13 = smov 0   ;;  %s1890_s0 = inlined_call_operand.vmem [shape: bf16[16,2304], index: 0, kind: input, shape index: {}]   ;;  %s1891_s1 = inlined_call_operand.vmem [shape: bf16[2304,512], index: 1, kind: input, shape index: {}]   ;;  %s1892_s2 = inlined_call_operand.vmem [shape: f32[1,512], index: 2, kind: input, shape index: {}]   ;;  %s1893_s3 = inlined_call_operand.vmem [shape: bf16[16,512], index: 3, kind: output, shape index: {}]  }
   0x1   :  { %s1709_s14 = smov 0   ;;  %s1711_s15 = smov 0  }
   0x2   :  { %s1713_s16 = smov 0  }
   0x3 LB: > { %s25_s17 = sadd.s32 1, %s1677_s15  ;;  %p48_p1 = scmp.ne.s32.totalorder %s1669_s13, %s1665_s12  ;;  %s1681_s16 = sphi %s1713_s16, %s13_s16   ;;  %s1677_s15 = sphi %s1711_s15, %s1897_s15   ;;  %s1673_s14 = sphi %s1709_s14, %s1896_s14   ;;  %s1669_s13 = sphi %s1707_s13, %s1895_s13   ;;  %s1665_s12 = sphi %s1705_s12, %s1894_s12  }
   0x4   : > { %p26_p0 = scmp.ge.s32.totalorder %s25_s17, 6  ;;  %p49_p2 = scmp.eq.s32.totalorder %s1681_s16, 0 }
   0x5   : > { %s41_s19 = sadd.s32 1, %s1669_s13  ;;  %p1319_p5 = scmp.ge.s32.totalorder %s1681_s16, 6 }
   0x6   : > { %s1899_s17 = smov (%p26_p0, %s25_s17), 0  ;;  %p50_p3 = por %p49_p2, %p48_p1 }
   0x7   : > { %s37_s18 = ssub.s32 %s1677_s15, %s1899_s17  ;;  %164 = sbr.rel (%p1319_p5) target bundleno = 21 (0x15), region = 20 }
   0x8   : > { %p39_p4 = scmp.eq.s32.totalorder %s37_s18, 0 }
   0xa   : > { %s1740_s20 = scalar_select %p39_p4, %s1669_s13, %s41_s19  }
   0xe   : > { %167 = sbr.rel (!%p50_p3) target bundleno = 21 (0x15), region = 24  ;;  %s169_s21 = sand.u32 (%p50_p3), 1, %s1669_s13  }
   0xf   : > { %s1437_s22 = smul.u32 (%p50_p3), 12, %s1677_s15 }
  0x10   : > { %s1451_s23 = smul.u32 (%p50_p3), 24, %s169_s21 }
  0x11   : > { %s177_s26 = scalar_lea.vmem (%p50_p3), %s1890_s0, %s1437_s22 }
  0x12   : > { %v192_v0 = vld [vmem:[%s177_s26] sm:$0xff] (%p50_p3)  ;;  %v194_v1 = vld [vmem:[%s177_s26 + $0x48] sm:$0xff] (%p50_p3)  ;;  %s171_s27 = scalar_lea.vmem (%p50_p3), [#allocation3], %s1451_s23  ;;  %v1323_v3 = vld [vmem:[%s177_s26 + $0x50] sm:$0xf] (%p50_p3) }
  0x13   : > { %v1321_v2 = vld [vmem:[%s177_s26 + $0x8] sm:$0xf] (%p50_p3)  ;;  %193 = vst [vmem:[%s171_s27] sm:$0xff] (%p50_p3), %v192_v0  ;;  %195 = vst [vmem:[%s171_s27 + $0xc] sm:$0xff] (%p50_p3), %v194_v1 }
  0x14   : > { %1322 = vst [vmem:[%s171_s27 + $0x8] sm:$0xf] (%p50_p3), %v1321_v2  ;;  %1324 = vst [vmem:[%s171_s27 + $0x14] sm:$0xf] (%p50_p3), %v1323_v3 }
  0x15 PF: > { %p1325_p6 = scmp.ge.s32.totalorder %s1681_s16, 1  ;;  %p226_p7 = scmp.lt.s32.totalorder %s1681_s16, 7 }
  0x17   : > { %p227_p8 = pnand %p1325_p6, %p226_p7 }
  0x18   : > { %s233_s28 = sand.u32 (!%p227_p8), 1, %s1665_s12   ;;  %s277_s29 = smul.u32 (!%p227_p8), 48, %s1673_s14 }
  0x19   : > { %230 = sbr.rel (%p227_p8) target bundleno = 368 (0x170), region = 54  ;;  %p1328_p10 = scmp.ne.s32.totalorder (!%p227_p8), %s1673_s14, 0 }
  0x1a   : > { %s1452_s30 = smul.u32 (!%p227_p8), 24, %s233_s28  ;;  %p279_p9 = scmp.lt.s32.totalorder (!%p227_p8), %s277_s29, 287 }
  0x1c   : > { %s1757_s8 = scalar_lea.vmem (!%p227_p8), [#allocation3], %s1452_s30 }
  0x20   : > { %s1901_s29 = smov (!%p279_p9, %s277_s29), 287  ;;  %310 = sbr.rel (%p1328_p10) target bundleno = 39 (0x27), region = 62 }
  0x21   : > { %s1438_s4 = sshll.u32 %s1901_s29, 4  ;;  %v1683_v4 = vmov (!%p1328_p10), 0.0  }
  0x22   : > { %s1755_s7 = scalar_lea.vmem %s1891_s1, %s1438_s4  ;;  %311 = vst [vmem:[#allocation2] sm:$0xff] (!%p1328_p10), %v1683_v4  ;;  %312 = vst [vmem:[#allocation2 + $0x8] sm:$0xff] (!%p1328_p10), %v1683_v4 }
  0x23   : > { %313 = vst [vmem:[#allocation2 + $0x10] sm:$0xff] (!%p1328_p10), %v1683_v4  ;;  %314 = vst [vmem:[#allocation2 + $0x18] sm:$0xff] (!%p1328_p10), %v1683_v4 }
  0x24   : > { %315 = vst [vmem:[#allocation2 + $0x20] sm:$0xff] (!%p1328_p10), %v1683_v4  ;;  %316 = vst [vmem:[#allocation2 + $0x28] sm:$0xff] (!%p1328_p10), %v1683_v4 }
  0x25   : > { %317 = vst [vmem:[#allocation2 + $0x30] sm:$0xff] (!%p1328_p10), %v1683_v4  ;;  %318 = vst [vmem:[#allocation2 + $0x38] sm:$0xff] (!%p1328_p10), %v1683_v4 }
  0x27 PF: > { %v1495_v5 = vld [vmem:[%s1755_s7 + $0x4] ss:$16 sps:$4 sm:$0xff]   ;;  %v1497_v6 = vld [vmem:[%s1755_s7 + $0xc] ss:$16 sps:$4 sm:$0xff]   ;;  %v1499_v7 = vld [vmem:[%s1755_s7] ss:$16 sps:$4 sm:$0xff]  }
  0x28   : > { %923 = vmatprep.subr.bf16.mxu0 %v1495_v5  ;;  %v1500_v8 = vld [vmem:[%s1755_s7 + $0x8] ss:$16 sps:$4 sm:$0xff]   ;;  %1009 = vmatprep.subr.bf16.mxu1 %v1497_v6  ;;  %v1501_v9 = vld [vmem:[%s1755_s7 + $0x24] ss:$16 sps:$4 sm:$0xff]   ;;  %v1503_v10 = vld [vmem:[%s1755_s7 + $0x2c] ss:$16 sps:$4 sm:$0xff]  }
  0x29   : > { %924 = vmatpush1.bf16.msra.mxu0 %v1499_v7  ;;  %1010 = vmatpush1.bf16.msra.mxu1 %v1500_v8  ;;  %v1505_v11 = vld [vmem:[%s1755_s7 + $0x20] ss:$16 sps:$4 sm:$0xff]   ;;  %v1506_v12 = vld [vmem:[%s1755_s7 + $0x28] ss:$16 sps:$4 sm:$0xff]   ;;  %v1507_v13 = vld [vmem:[%s1755_s7 + $0x44] ss:$16 sps:$4 sm:$0xff]  }
  0x2a   : > { %925 = vmatprep.subr.bf16.mxu0 %v1501_v9  ;;  %1011 = vmatprep.subr.bf16.mxu1 %v1503_v10  ;;  %v1509_v14 = vld [vmem:[%s1755_s7 + $0x4c] ss:$16 sps:$4 sm:$0xff]   ;;  %v1511_v15 = vld [vmem:[%s1755_s7 + $0x40] ss:$16 sps:$4 sm:$0xff]   ;;  %v1512_v16 = vld [vmem:[%s1755_s7 + $0x48] ss:$16 sps:$4 sm:$0xff]  }
  0x2b   : > { %v1513_v17 = vld [vmem:[%s1755_s7 + $0x64] ss:$16 sps:$4 sm:$0xff]   ;;  %v1515_v18 = vld [vmem:[%s1755_s7 + $0x6c] ss:$16 sps:$4 sm:$0xff]   ;;  %v1517_v19 = vld [vmem:[%s1755_s7 + $0x60] ss:$16 sps:$4 sm:$0xff]  }
  0x2c   : > { %v1518_v20 = vld [vmem:[%s1755_s7 + $0x68] ss:$16 sps:$4 sm:$0xff]   ;;  %v1519_v21 = vld [vmem:[%s1755_s7 + $0x84] ss:$16 sps:$4 sm:$0xff]   ;;  %v1521_v22 = vld [vmem:[%s1755_s7 + $0x8c] ss:$16 sps:$4 sm:$0xff]  }
  0x2d   : > { %926 = vmatpush1.bf16.msra.mxu0 %v1505_v11  ;;  %1012 = vmatpush1.bf16.msra.mxu1 %v1506_v12  ;;  %v1523_v23 = vld [vmem:[%s1755_s7 + $0x80] ss:$16 sps:$4 sm:$0xff]   ;;  %v1524_v24 = vld [vmem:[%s1755_s7 + $0x88] ss:$16 sps:$4 sm:$0xff]   ;;  %v1525_v25 = vld [vmem:[%s1755_s7 + $0xa4] ss:$16 sps:$4 sm:$0xff]  }
  0x2e   : > { %927 = vmatprep.subr.bf16.mxu0 %v1507_v13  ;;  %1013 = vmatprep.subr.bf16.mxu1 %v1509_v14  ;;  %v1527_v26 = vld [vmem:[%s1755_s7 + $0xac] ss:$16 sps:$4 sm:$0xff]   ;;  %v1529_v27 = vld [vmem:[%s1755_s7 + $0xa0] ss:$16 sps:$4 sm:$0xff]   ;;  %v1530_v28 = vld [vmem:[%s1755_s7 + $0xa8] ss:$16 sps:$4 sm:$0xff]  }
  0x2f   : > { %v1531_v29 = vld [vmem:[%s1755_s7 + $0xc4] ss:$16 sps:$4 sm:$0xff]   ;;  %v1533_v30 = vld [vmem:[%s1755_s7 + $0xcc] ss:$16 sps:$4 sm:$0xff]   ;;  %v1535_v31 = vld [vmem:[%s1755_s7 + $0xc0] ss:$16 sps:$4 sm:$0xff]  }
  0x30   : > { %v1536_v32 = vld [vmem:[%s1755_s7 + $0xc8] ss:$16 sps:$4 sm:$0xff]   ;;  %v1537_v33 = vld [vmem:[%s1755_s7 + $0xe4] ss:$16 sps:$4 sm:$0xff]   ;;  %v1539_v34 = vld [vmem:[%s1755_s7 + $0xec] ss:$16 sps:$4 sm:$0xff]  }
  0x31   : > { %928 = vmatpush1.bf16.msra.mxu0 %v1511_v15  ;;  %1014 = vmatpush1.bf16.msra.mxu1 %v1512_v16  ;;  %v1541_v35 = vld [vmem:[%s1755_s7 + $0xe0] ss:$16 sps:$4 sm:$0xff]   ;;  %v1542_v36 = vld [vmem:[%s1755_s7 + $0xe8] ss:$16 sps:$4 sm:$0xff]   ;;  %v1543_v37 = vld [vmem:[%s1755_s7 + $0x104] ss:$16 sps:$4 sm:$0xff]  }
  0x32   : > { %929 = vmatprep.subr.bf16.mxu0 %v1513_v17  ;;  %1015 = vmatprep.subr.bf16.mxu1 %v1515_v18  ;;  %v1545_v38 = vld [vmem:[%s1755_s7 + $0x10c] ss:$16 sps:$4 sm:$0xff]   ;;  %v1547_v39 = vld [vmem:[%s1755_s7 + $0x100] ss:$16 sps:$4 sm:$0xff]   ;;  %v1548_v40 = vld [vmem:[%s1755_s7 + $0x108] ss:$16 sps:$4 sm:$0xff]  }
  0x33   : > { %v1549_v41 = vld [vmem:[%s1755_s7 + $0x124] ss:$16 sps:$4 sm:$0xff]   ;;  %v1551_v42 = vld [vmem:[%s1755_s7 + $0x12c] ss:$16 sps:$4 sm:$0xff]   ;;  %v1553_v43 = vld [vmem:[%s1755_s7 + $0x120] ss:$16 sps:$4 sm:$0xff]  }
  0x34   : > { %v1554_v44 = vld [vmem:[%s1755_s7 + $0x128] ss:$16 sps:$4 sm:$0xff]   ;;  %v1555_v45 = vld [vmem:[%s1755_s7 + $0x144] ss:$16 sps:$4 sm:$0xff]   ;;  %v1557_v46 = vld [vmem:[%s1755_s7 + $0x14c] ss:$16 sps:$4 sm:$0xff]  }
  0x35   : > { %930 = vmatpush1.bf16.msra.mxu0 %v1517_v19  ;;  %1016 = vmatpush1.bf16.msra.mxu1 %v1518_v20  ;;  %v1559_v47 = vld [vmem:[%s1755_s7 + $0x140] ss:$16 sps:$4 sm:$0xff]   ;;  %v1560_v48 = vld [vmem:[%s1755_s7 + $0x148] ss:$16 sps:$4 sm:$0xff]   ;;  %v1561_v49 = vld [vmem:[%s1755_s7 + $0x164] ss:$16 sps:$4 sm:$0xff]  }
  0x36   : > { %931 = vmatprep.subr.bf16.mxu0 %v1519_v21  ;;  %1017 = vmatprep.subr.bf16.mxu1 %v1521_v22  ;;  %v1563_v50 = vld [vmem:[%s1755_s7 + $0x16c] ss:$16 sps:$4 sm:$0xff]   ;;  %v1565_v51 = vld [vmem:[%s1755_s7 + $0x160] ss:$16 sps:$4 sm:$0xff]   ;;  %v1566_v52 = vld [vmem:[%s1755_s7 + $0x168] ss:$16 sps:$4 sm:$0xff]  }
  0x37   : > { %v1593_v53 = vld [vmem:[%s1757_s8 + $0x4] ss:$12 sps:$4 sm:$0xff]   ;;  %v1591_v8 = vld [vmem:[%s1757_s8] ss:$12 sps:$4 sm:$0xff]   ;;  %v1684_v17 = vmov 0   ;;  %p1428_p11 = scmp.ne.s32.totalorder %s1673_s14, 5 }
  0x38   : > { %v1567_v54 = vld [vmem:[%s1755_s7 + $0x184] ss:$16 sps:$4 sm:$0xff]   ;;  %v1569_v55 = vld [vmem:[%s1755_s7 + $0x18c] ss:$16 sps:$4 sm:$0xff]   ;;  %955 = vmatprep.mubr.bf16.mxu0 %v1593_v53  ;;  %1041 = vmatprep.mubr.bf16.mxu1 %v1593_v53  ;;  %v1571_v56 = vld [vmem:[%s1755_s7 + $0x180] ss:$16 sps:$4 sm:$0xff]  }
  0x39   : > { %932 = vmatpush1.bf16.msra.mxu0 %v1523_v23  ;;  %1018 = vmatpush1.bf16.msra.mxu1 %v1524_v24  ;;  %v1572_v57 = vld [vmem:[%s1755_s7 + $0x188] ss:$16 sps:$4 sm:$0xff]   ;;  %v1573_v58 = vld [vmem:[%s1755_s7 + $0x1a4] ss:$16 sps:$4 sm:$0xff]   ;;  %v1575_v59 = vld [vmem:[%s1755_s7 + $0x1ac] ss:$16 sps:$4 sm:$0xff]  }
  0x3a   : > { %933 = vmatprep.subr.bf16.mxu0 %v1525_v25  ;;  %1019 = vmatprep.subr.bf16.mxu1 %v1527_v26  ;;  %v1577_v60 = vld [vmem:[%s1755_s7 + $0x1a0] ss:$16 sps:$4 sm:$0xff]   ;;  %v1578_v61 = vld [vmem:[%s1755_s7 + $0x1a8] ss:$16 sps:$4 sm:$0xff]   ;;  %v1579_v62 = vld [vmem:[%s1755_s7 + $0x1c4] ss:$16 sps:$4 sm:$0xff]  }
  0x3b   : > { %v1581_v63 = vld [vmem:[%s1755_s7 + $0x1cc] ss:$16 sps:$4 sm:$0xff]   ;;  %v1583_v0 = vld [vmem:[%s1755_s7 + $0x1c0] ss:$16 sps:$4 sm:$0xff]   ;;  %v1584_v1 = vld [vmem:[%s1755_s7 + $0x1c8] ss:$16 sps:$4 sm:$0xff]  }
  0x3c   : > { %v1585_v2 = vld [vmem:[%s1755_s7 + $0x1e4] ss:$16 sps:$4 sm:$0xff]   ;;  %v1587_v3 = vld [vmem:[%s1755_s7 + $0x1ec] ss:$16 sps:$4 sm:$0xff]   ;;  %v1589_v4 = vld [vmem:[%s1755_s7 + $0x1e0] ss:$16 sps:$4 sm:$0xff]  }
  0x3d   : > { %934 = vmatpush1.bf16.msra.mxu0 %v1529_v27  ;;  %1020 = vmatpush1.bf16.msra.mxu1 %v1530_v28  ;;  %v1590_v5 = vld [vmem:[%s1755_s7 + $0x1e8] ss:$16 sps:$4 sm:$0xff]   ;;  %v1596_v6 = vld [vmem:[%s1755_s7 + $0x204] ss:$16 sps:$4 sm:$0xff]   ;;  %v1599_v7 = vld [vmem:[%s1755_s7 + $0x20c] ss:$16 sps:$4 sm:$0xff]  }
  0x3e   : > { %935 = vmatprep.subr.bf16.mxu0 %v1531_v29  ;;  %1021 = vmatprep.subr.bf16.mxu1 %v1533_v30  ;;  %v1594_v9 = vld [vmem:[%s1755_s7 + $0x200] ss:$16 sps:$4 sm:$0xff]   ;;  %v1597_v10 = vld [vmem:[%s1755_s7 + $0x208] ss:$16 sps:$4 sm:$0xff]   ;;  %v1602_v11 = vld [vmem:[%s1755_s7 + $0x224] ss:$16 sps:$4 sm:$0xff]  }
  0x3f   : > { %v1605_v12 = vld [vmem:[%s1755_s7 + $0x22c] ss:$16 sps:$4 sm:$0xff]   ;;  %v1600_v13 = vld [vmem:[%s1755_s7 + $0x220] ss:$16 sps:$4 sm:$0xff]   ;;  %v1603_v14 = vld [vmem:[%s1755_s7 + $0x228] ss:$16 sps:$4 sm:$0xff]  }
  0x40   : > { %v1608_v15 = vld [vmem:[%s1755_s7 + $0x244] ss:$16 sps:$4 sm:$0xff]   ;;  %v1611_v16 = vld [vmem:[%s1755_s7 + $0x24c] ss:$16 sps:$4 sm:$0xff]   ;;  %v1606_v18 = vld [vmem:[%s1755_s7 + $0x240] ss:$16 sps:$4 sm:$0xff]  }
  0x41   : > { %936 = vmatpush1.bf16.msra.mxu0 %v1535_v31  ;;  %1022 = vmatpush1.bf16.msra.mxu1 %v1536_v32  ;;  %v1609_v19 = vld [vmem:[%s1755_s7 + $0x248] ss:$16 sps:$4 sm:$0xff]   ;;  %v1614_v20 = vld [vmem:[%s1755_s7 + $0x264] ss:$16 sps:$4 sm:$0xff]   ;;  %v1617_v21 = vld [vmem:[%s1755_s7 + $0x26c] ss:$16 sps:$4 sm:$0xff]  }
  0x42   : > { %937 = vmatprep.subr.bf16.mxu0 %v1537_v33  ;;  %1023 = vmatprep.subr.bf16.mxu1 %v1539_v34  ;;  %v1612_v22 = vld [vmem:[%s1755_s7 + $0x260] ss:$16 sps:$4 sm:$0xff]   ;;  %v1615_v23 = vld [vmem:[%s1755_s7 + $0x268] ss:$16 sps:$4 sm:$0xff]   ;;  %v1620_v24 = vld [vmem:[%s1755_s7 + $0x284] ss:$16 sps:$4 sm:$0xff]  }
  0x43   : > { %v1623_v25 = vld [vmem:[%s1755_s7 + $0x28c] ss:$16 sps:$4 sm:$0xff]   ;;  %v1618_v26 = vld [vmem:[%s1755_s7 + $0x280] ss:$16 sps:$4 sm:$0xff]   ;;  %v1621_v27 = vld [vmem:[%s1755_s7 + $0x288] ss:$16 sps:$4 sm:$0xff]  }
  0x44   : > { %v1626_v28 = vld [vmem:[%s1755_s7 + $0x2a4] ss:$16 sps:$4 sm:$0xff]   ;;  %v1629_v29 = vld [vmem:[%s1755_s7 + $0x2ac] ss:$16 sps:$4 sm:$0xff]   ;;  %v1624_v30 = vld [vmem:[%s1755_s7 + $0x2a0] ss:$16 sps:$4 sm:$0xff]  }
  0x45   : > { %938 = vmatpush1.bf16.msra.mxu0 %v1541_v35  ;;  %1024 = vmatpush1.bf16.msra.mxu1 %v1542_v36  ;;  %v1627_v31 = vld [vmem:[%s1755_s7 + $0x2a8] ss:$16 sps:$4 sm:$0xff]   ;;  %v1632_v32 = vld [vmem:[%s1755_s7 + $0x2c4] ss:$16 sps:$4 sm:$0xff]   ;;  %v1635_v33 = vld [vmem:[%s1755_s7 + $0x2cc] ss:$16 sps:$4 sm:$0xff]  }
  0x46   : > { %939 = vmatprep.subr.bf16.mxu0 %v1543_v37  ;;  %1025 = vmatprep.subr.bf16.mxu1 %v1545_v38  ;;  %v1630_v34 = vld [vmem:[%s1755_s7 + $0x2c0] ss:$16 sps:$4 sm:$0xff]   ;;  %v1633_v35 = vld [vmem:[%s1755_s7 + $0x2c8] ss:$16 sps:$4 sm:$0xff]   ;;  %v1638_v36 = vld [vmem:[%s1755_s7 + $0x2e4] ss:$16 sps:$4 sm:$0xff]  }
  0x47   : > { %v1641_v37 = vld [vmem:[%s1755_s7 + $0x2ec] ss:$16 sps:$4 sm:$0xff]   ;;  %v1636_v38 = vld [vmem:[%s1755_s7 + $0x2e0] ss:$16 sps:$4 sm:$0xff]  }
  0x48   : > { %v324_v53 = vld [vmem:[#allocation2 + $0x28] sm:$0xff] }
  0x49   : > { %940 = vmatpush1.bf16.msra.mxu0 %v1547_v39  ;;  %1026 = vmatpush1.bf16.msra.mxu1 %v1548_v40  ;;  %v1639_v39 = vld [vmem:[%s1755_s7 + $0x2e8] ss:$16 sps:$4 sm:$0xff]  }
  0x4a   : > { %941 = vmatprep.subr.bf16.mxu0 %v1549_v41  ;;  %1027 = vmatprep.subr.bf16.mxu1 %v1551_v42  ;;  %v1642_v40 = vld [vmem:[%s1757_s8 + $0x8] ss:$12 sps:$4 sm:$0xff]  }
  0x4b   : > { %v319_v41 = vld [vmem:[#allocation2] sm:$0xff]  ;;  %v321_v42 = vld [vmem:[#allocation2 + $0x10] sm:$0xff] }
  0x4d   : > { %942 = vmatpush1.bf16.msra.mxu0 %v1553_v43  ;;  %1028 = vmatpush1.bf16.msra.mxu1 %v1554_v44  ;;  %v320_v43 = vld [vmem:[#allocation2 + $0x8] sm:$0xff]  ;;  %v322_v44 = vld [vmem:[#allocation2 + $0x18] sm:$0xff] }
  0x4e   : > { %943 = vmatprep.subr.bf16.mxu0 %v1555_v45  ;;  %1029 = vmatprep.subr.bf16.mxu1 %v1557_v46 }
  0x51   : > { %944 = vmatpush1.bf16.msra.mxu0 %v1559_v47  ;;  %1030 = vmatpush1.bf16.msra.mxu1 %v1560_v48  ;;  %v323_v47 = vld [vmem:[#allocation2 + $0x20] sm:$0xff]  ;;  %v325_v48 = vld [vmem:[#allocation2 + $0x30] sm:$0xff] }
  0x52   : > { %945 = vmatprep.subr.bf16.mxu0 %v1561_v49  ;;  %1031 = vmatprep.subr.bf16.mxu1 %v1563_v50 }
  0x55   : > { %946 = vmatpush1.bf16.msra.mxu0 %v1565_v51  ;;  %1032 = vmatpush1.bf16.msra.mxu1 %v1566_v52 }
  0x56   : > { %947 = vmatprep.subr.bf16.mxu0 %v1567_v54  ;;  %1033 = vmatprep.subr.bf16.mxu1 %v1569_v55  ;;  %v326_v54 = vld [vmem:[#allocation2 + $0x38] sm:$0xff] }
  0x59   : > { %948 = vmatpush1.bf16.msra.mxu0 %v1571_v56  ;;  %1034 = vmatpush1.bf16.msra.mxu1 %v1572_v57 }
  0x5a   : > { %949 = vmatprep.subr.bf16.mxu0 %v1573_v58  ;;  %1035 = vmatprep.subr.bf16.mxu1 %v1575_v59 }
  0x5d   : > { %950 = vmatpush1.bf16.msra.mxu0 %v1577_v60  ;;  %1036 = vmatpush1.bf16.msra.mxu1 %v1578_v61 }
  0x5e   : > { %951 = vmatprep.subr.bf16.mxu0 %v1579_v62  ;;  %1037 = vmatprep.subr.bf16.mxu1 %v1581_v63 }
  0x61   : > { %952 = vmatpush1.bf16.msra.mxu0 %v1583_v0  ;;  %1038 = vmatpush1.bf16.msra.mxu1 %v1584_v1  ;;  %v1125_v1 = vlaneseq (!%p1428_p11) }
  0x62   : > { %953 = vmatprep.subr.bf16.mxu0 %v1585_v2  ;;  %1039 = vmatprep.subr.bf16.mxu1 %v1587_v3  ;;  %v1123_v3 = vld [vmem:[%s1892_s2] sm:$0xf] (!%p1428_p11) }
  0x63   : > { %v1126_v2 = vshrl.u32 (!%p1428_p11), %v1125_v1, 7 }
  0x65   : > { %954 = vmatpush1.bf16.msra.mxu0 %v1589_v4  ;;  %1040 = vmatpush1.bf16.msra.mxu1 %v1590_v5 }
  0x66   : > { %966 = vmatprep.subr.bf16.mxu0 %v1596_v6  ;;  %1052 = vmatprep.subr.bf16.mxu1 %v1599_v7  ;;  %v1127_v6 = vsub.s32 (!%p1428_p11), 0, %v1126_v2  ;;  %v1131_v7 = vsub.s32 (!%p1428_p11), 1, %v1126_v2 }
  0x68   : > { %956 = vmatmul.mubr.bf16.vlgmr.msra.gmra.mrb[0].mxu0 %v1591_v8  ;;  %1042 = vmatmul.mubr.bf16.vlgmr.msra.gmra.mrb[0].mxu1 %v1591_v8  ;;  %v1135_v8 = vsub.s32 (!%p1428_p11), 2, %v1126_v2 }
  0x69   : > { %967 = vmatpush1.bf16.msra.mxu0 %v1594_v9  ;;  %1053 = vmatpush1.bf16.msra.mxu1 %v1597_v10  ;;  %v1139_v9 = vsub.s32 (!%p1428_p11), 3, %v1126_v2 }
  0x6a   : > { %968 = vmatprep.subr.bf16.mxu0 %v1602_v11  ;;  %1054 = vmatprep.subr.bf16.mxu1 %v1605_v12 }
  0x6b   : > { %998 = vmatprep.mubr.bf16.mxu0 %v1684_v17  ;;  %1084 = vmatprep.mubr.bf16.mxu1 %v1684_v17 }
  0x6d   : > { %969 = vmatpush1.bf16.msra.mxu0 %v1600_v13  ;;  %1055 = vmatpush1.bf16.msra.mxu1 %v1603_v14  ;;  %v1128_v13 = vrot.slane (!%p1428_p11), %v1123_v3, %v1127_v6  ;;  %v1132_v14 = vrot.slane (!%p1428_p11), %v1123_v3, %v1131_v7 }
  0x6e   : > { %970 = vmatprep.subr.bf16.mxu0 %v1608_v15  ;;  %1056 = vmatprep.subr.bf16.mxu1 %v1611_v16  ;;  %v1136_v15 = vrot.slane (!%p1428_p11), %v1123_v3, %v1135_v8  ;;  %v1140_v16 = vrot.slane (!%p1428_p11), %v1123_v3, %v1139_v9 }
  0x71   : > { %971 = vmatpush1.bf16.msra.mxu0 %v1606_v18  ;;  %1057 = vmatpush1.bf16.msra.mxu1 %v1609_v19 }
  0x72   : > { %972 = vmatprep.subr.bf16.mxu0 %v1614_v20  ;;  %1058 = vmatprep.subr.bf16.mxu1 %v1617_v21 }
  0x75   : > { %973 = vmatpush1.bf16.msra.mxu0 %v1612_v22  ;;  %1059 = vmatpush1.bf16.msra.mxu1 %v1615_v23 }
  0x76   : > { %974 = vmatprep.subr.bf16.mxu0 %v1620_v24  ;;  %1060 = vmatprep.subr.bf16.mxu1 %v1623_v25 }
  0x79   : > { %975 = vmatpush1.bf16.msra.mxu0 %v1618_v26  ;;  %1061 = vmatpush1.bf16.msra.mxu1 %v1621_v27 }
  0x7a   : > { %976 = vmatprep.subr.bf16.mxu0 %v1626_v28  ;;  %1062 = vmatprep.subr.bf16.mxu1 %v1629_v29 }
  0x7d   : > { %977 = vmatpush1.bf16.msra.mxu0 %v1624_v30  ;;  %1063 = vmatpush1.bf16.msra.mxu1 %v1627_v31 }
  0x7e   : > { %978 = vmatprep.subr.bf16.mxu0 %v1632_v32  ;;  %1064 = vmatprep.subr.bf16.mxu1 %v1635_v33 }
  0x81   : > { %979 = vmatpush1.bf16.msra.mxu0 %v1630_v34  ;;  %1065 = vmatpush1.bf16.msra.mxu1 %v1633_v35 }
  0x82   : > { %980 = vmatprep.subr.bf16.mxu0 %v1638_v36  ;;  %1066 = vmatprep.subr.bf16.mxu1 %v1641_v37 }
  0x85   : > { %981 = vmatpush1.bf16.msra.mxu0 %v1636_v38  ;;  %1067 = vmatpush1.bf16.msra.mxu1 %v1639_v39 }
  0x88   : > { %999 = vmatmul.mubr.bf16.vlgmr.msra.gmra.mrb[0].mxu0 %v1642_v40  ;;  %1085 = vmatmul.mubr.bf16.vlgmr.msra.gmra.mrb[0].mxu1 %v1642_v40 }
 0x15b   : > { %v1000_v45 = vpop.f32.mrb[0].mxu0  ;;  %v1086_v46 = vpop.f32.mrb[0].mxu1  ;;  %1114 = sbr.rel (%p1428_p11) target bundleno = 368 (0x170), region = 66 }
 0x15c   : > { %v1095_v49 = vadd.f32 %v1000_v45, %v319_v41  ;;  %v1097_v50 = vadd.f32 %v1086_v46, %v321_v42  ;;  %v1002_v51 = vpop.f32.mrb[1].mxu0  ;;  %v1088_v52 = vpop.f32.mrb[1].mxu1 }
 0x15d   : > { %v1096_v55 = vadd.f32 %v1002_v51, %v320_v43  ;;  %v1098_v56 = vadd.f32 %v1088_v52, %v322_v44  ;;  %v1004_v57 = vpop.f32.mrb[2].mxu0  ;;  %v1090_v58 = vpop.f32.mrb[2].mxu1 }
 0x15e   : > { %1103 = vst [vmem:[#allocation2] sm:$0xff] %v1095_v49  ;;  %1105 = vst [vmem:[#allocation2 + $0x10] sm:$0xff] %v1097_v50  ;;  %v1099_v59 = vadd.f32 %v1004_v57, %v323_v47  ;;  %v1101_v60 = vadd.f32 %v1090_v58, %v325_v48  ;;  %v1006_v61 = vpop.f32.mrb[3].mxu0  ;;  %v1092_v62 = vpop.f32.mrb[3].mxu1 }
 0x15f   : > { %1104 = vst [vmem:[#allocation2 + $0x8] sm:$0xff] %v1096_v55  ;;  %1106 = vst [vmem:[#allocation2 + $0x18] sm:$0xff] %v1098_v56  ;;  %v1100_v63 = vadd.f32 %v1006_v61, %v324_v53  ;;  %v1102_v0 = vadd.f32 %v1092_v62, %v326_v54 }
 0x160   : > { %1107 = vst [vmem:[#allocation2 + $0x20] sm:$0xff] %v1099_v59  ;;  %1109 = vst [vmem:[#allocation2 + $0x30] sm:$0xff] %v1101_v60 }
 0x161   : > { %1108 = vst [vmem:[#allocation2 + $0x28] sm:$0xff] %v1100_v63  ;;  %1110 = vst [vmem:[#allocation2 + $0x38] sm:$0xff] %v1102_v0 }
 0x165   : > { %v1115_v4 = vld [vmem:[#allocation2] sm:$0xff]  ;;  %v1117_v10 = vld [vmem:[#allocation2 + $0x10] sm:$0xff] }
 0x166   : > { %v1116_v5 = vld [vmem:[#allocation2 + $0x8] sm:$0xff]  ;;  %v1118_v11 = vld [vmem:[#allocation2 + $0x18] sm:$0xff]  ;;  %v1145_v20 = vadd.f32 %v1128_v13, %v1115_v4  ;;  %v1147_v22 = vadd.f32 %v1136_v15, %v1117_v10 }
 0x167   : > { %v1119_v12 = vld [vmem:[#allocation2 + $0x20] sm:$0xff]  ;;  %v1121_v18 = vld [vmem:[#allocation2 + $0x30] sm:$0xff]  ;;  %v1146_v21 = vadd.f32 %v1132_v14, %v1116_v5  ;;  %v1148_v23 = vadd.f32 %v1140_v16, %v1118_v11 }
 0x168   : > { %v1120_v17 = vld [vmem:[#allocation2 + $0x28] sm:$0xff]  ;;  %v1122_v19 = vld [vmem:[#allocation2 + $0x38] sm:$0xff]  ;;  %v1149_v24 = vadd.f32 %v1128_v13, %v1119_v12  ;;  %v1151_v26 = vadd.f32 %v1136_v15, %v1121_v18  ;;  %v1153_v28 = vmax.f32 %v1145_v20, 0.0  ;;  %v1155_v30 = vmax.f32 %v1147_v22, 0.0 }
 0x169   : > { %v1150_v25 = vadd.f32 %v1132_v14, %v1120_v17  ;;  %v1152_v27 = vadd.f32 %v1140_v16, %v1122_v19  ;;  %v1154_v29 = vmax.f32 %v1146_v21, 0.0  ;;  %v1156_v31 = vmax.f32 %v1148_v23, 0.0 }
 0x16a   : > { %v1157_v32 = vmax.f32 %v1149_v24, 0.0  ;;  %v1159_v34 = vmax.f32 %v1151_v26, 0.0 }
 0x16b   : > { %v1158_v33 = vmax.f32 %v1150_v25, 0.0  ;;  %v1160_v35 = vmax.f32 %v1152_v27, 0.0  ;;  %v1439_v36 = vpack.c.bf16 %v1154_v29, %v1153_v28  ;;  %v1440_v37 = vpack.c.bf16 %v1156_v31, %v1155_v30 }
 0x16d   : > { %v1441_v38 = vpack.c.bf16 %v1158_v33, %v1157_v32  ;;  %v1442_v39 = vpack.c.bf16 %v1160_v35, %v1159_v34  ;;  %1185 = vst [vmem:[%s1893_s3] sm:$0xff] %v1439_v36  ;;  %1186 = vst [vmem:[%s1893_s3 + $0x8] sm:$0xff] %v1440_v37 }
 0x16f   : > { %1187 = vst [vmem:[%s1893_s3 + $0x10] sm:$0xff] %v1441_v38  ;;  %1188 = vst [vmem:[%s1893_s3 + $0x18] sm:$0xff] %v1442_v39 }
 0x170 PF: > { %s13_s16 = sadd.s32 1, %s1681_s16   ;;  %s1894_s12 = smov %s1669_s13 }
 0x171   : > { %p10_p12 = scmp.ge.s32.totalorder %s13_s16, 8   ;;  %s1895_s13 = smov %s1740_s20 }
 0x172   : > { %s1896_s14 = smov %s1677_s15  ;;  %s1897_s15 = smov %s1899_s17 }
 0x173   :  { %12 = sbr.rel (!%p10_p12) target bundleno = 3 (0x3), region = 113 }

// kernel: modified_res18_forward.37
= control target key start
LH: loop header
LB: loop body
LE: loop exit
PB: predicated region body
PF: predicated region fallthrough
CT: control target
= control target key end

     0   :  { %s1011_s1 = inlined_call_operand.vmem [shape: bf16[256,512], index: 1, kind: input, shape index: {}]   ;;  %s1012_s0 = inlined_call_operand.vmem [shape: bf16[16,256], index: 0, kind: input, shape index: {}]   ;;  %s1013_s2 = inlined_call_operand.vmem [shape: f32[1,512], index: 2, kind: input, shape index: {}]   ;;  %s1014_s3 = inlined_call_operand.vmem [shape: bf16[16,512], index: 3, kind: output, shape index: {}]  }
   0x1   :  { %v679_v0 = vld [vmem:[%s1011_s1 + $0x4] ss:$16 sps:$4 sm:$0xff]   ;;  %v681_v1 = vld [vmem:[%s1011_s1 + $0xc] ss:$16 sps:$4 sm:$0xff]   ;;  %v683_v2 = vld [vmem:[%s1011_s1] ss:$16 sps:$4 sm:$0xff]  }
   0x2   :  { %430 = vmatprep.subr.bf16.mxu0 %v679_v0  ;;  %v684_v3 = vld [vmem:[%s1011_s1 + $0x8] ss:$16 sps:$4 sm:$0xff]   ;;  %473 = vmatprep.subr.bf16.mxu1 %v681_v1  ;;  %v685_v4 = vld [vmem:[%s1011_s1 + $0x24] ss:$16 sps:$4 sm:$0xff]   ;;  %v687_v5 = vld [vmem:[%s1011_s1 + $0x2c] ss:$16 sps:$4 sm:$0xff]  }
   0x3   :  { %431 = vmatpush1.bf16.msra.mxu0 %v683_v2  ;;  %474 = vmatpush1.bf16.msra.mxu1 %v684_v3  ;;  %v689_v6 = vld [vmem:[%s1011_s1 + $0x20] ss:$16 sps:$4 sm:$0xff]   ;;  %v690_v7 = vld [vmem:[%s1011_s1 + $0x28] ss:$16 sps:$4 sm:$0xff]   ;;  %v691_v8 = vld [vmem:[%s1011_s1 + $0x44] ss:$16 sps:$4 sm:$0xff]   ;;  %v545_v2 = vlaneseq }
   0x4   :  { %432 = vmatprep.subr.bf16.mxu0 %v685_v4  ;;  %475 = vmatprep.subr.bf16.mxu1 %v687_v5  ;;  %v693_v9 = vld [vmem:[%s1011_s1 + $0x4c] ss:$16 sps:$4 sm:$0xff]   ;;  %v695_v10 = vld [vmem:[%s1011_s1 + $0x40] ss:$16 sps:$4 sm:$0xff]   ;;  %v696_v11 = vld [vmem:[%s1011_s1 + $0x48] ss:$16 sps:$4 sm:$0xff]  }
   0x5   :  { %v697_v12 = vld [vmem:[%s1011_s1 + $0x64] ss:$16 sps:$4 sm:$0xff]   ;;  %v699_v13 = vld [vmem:[%s1011_s1 + $0x6c] ss:$16 sps:$4 sm:$0xff]   ;;  %v701_v14 = vld [vmem:[%s1011_s1 + $0x60] ss:$16 sps:$4 sm:$0xff]  }
   0x6   :  { %v702_v15 = vld [vmem:[%s1011_s1 + $0x68] ss:$16 sps:$4 sm:$0xff]   ;;  %v703_v16 = vld [vmem:[%s1011_s1 + $0x84] ss:$16 sps:$4 sm:$0xff]   ;;  %v705_v17 = vld [vmem:[%s1011_s1 + $0x8c] ss:$16 sps:$4 sm:$0xff]  }
   0x7   :  { %433 = vmatpush1.bf16.msra.mxu0 %v689_v6  ;;  %476 = vmatpush1.bf16.msra.mxu1 %v690_v7  ;;  %v707_v18 = vld [vmem:[%s1011_s1 + $0x80] ss:$16 sps:$4 sm:$0xff]   ;;  %v708_v19 = vld [vmem:[%s1011_s1 + $0x88] ss:$16 sps:$4 sm:$0xff]   ;;  %v709_v20 = vld [vmem:[%s1011_s1 + $0xa4] ss:$16 sps:$4 sm:$0xff]  }
   0x8   :  { %434 = vmatprep.subr.bf16.mxu0 %v691_v8  ;;  %477 = vmatprep.subr.bf16.mxu1 %v693_v9  ;;  %v711_v21 = vld [vmem:[%s1011_s1 + $0xac] ss:$16 sps:$4 sm:$0xff]   ;;  %v713_v22 = vld [vmem:[%s1011_s1 + $0xa0] ss:$16 sps:$4 sm:$0xff]   ;;  %v714_v23 = vld [vmem:[%s1011_s1 + $0xa8] ss:$16 sps:$4 sm:$0xff]  }
   0x9   :  { %v715_v24 = vld [vmem:[%s1011_s1 + $0xc4] ss:$16 sps:$4 sm:$0xff]   ;;  %v717_v25 = vld [vmem:[%s1011_s1 + $0xcc] ss:$16 sps:$4 sm:$0xff]   ;;  %v719_v26 = vld [vmem:[%s1011_s1 + $0xc0] ss:$16 sps:$4 sm:$0xff]  }
   0xa   :  { %v720_v27 = vld [vmem:[%s1011_s1 + $0xc8] ss:$16 sps:$4 sm:$0xff]   ;;  %v721_v28 = vld [vmem:[%s1011_s1 + $0xe4] ss:$16 sps:$4 sm:$0xff]   ;;  %v723_v29 = vld [vmem:[%s1011_s1 + $0xec] ss:$16 sps:$4 sm:$0xff]  }
   0xb   :  { %435 = vmatpush1.bf16.msra.mxu0 %v695_v10  ;;  %478 = vmatpush1.bf16.msra.mxu1 %v696_v11  ;;  %v725_v30 = vld [vmem:[%s1011_s1 + $0xe0] ss:$16 sps:$4 sm:$0xff]   ;;  %v726_v31 = vld [vmem:[%s1011_s1 + $0xe8] ss:$16 sps:$4 sm:$0xff]   ;;  %v727_v32 = vld [vmem:[%s1011_s1 + $0x104] ss:$16 sps:$4 sm:$0xff]  }
   0xc   :  { %436 = vmatprep.subr.bf16.mxu0 %v697_v12  ;;  %479 = vmatprep.subr.bf16.mxu1 %v699_v13  ;;  %v729_v33 = vld [vmem:[%s1011_s1 + $0x10c] ss:$16 sps:$4 sm:$0xff]   ;;  %v731_v34 = vld [vmem:[%s1011_s1 + $0x100] ss:$16 sps:$4 sm:$0xff]   ;;  %v732_v35 = vld [vmem:[%s1011_s1 + $0x108] ss:$16 sps:$4 sm:$0xff]  }
   0xd   :  { %v733_v36 = vld [vmem:[%s1011_s1 + $0x124] ss:$16 sps:$4 sm:$0xff]   ;;  %v735_v37 = vld [vmem:[%s1011_s1 + $0x12c] ss:$16 sps:$4 sm:$0xff]   ;;  %v737_v38 = vld [vmem:[%s1011_s1 + $0x120] ss:$16 sps:$4 sm:$0xff]  }
   0xe   :  { %v738_v39 = vld [vmem:[%s1011_s1 + $0x128] ss:$16 sps:$4 sm:$0xff]   ;;  %v739_v40 = vld [vmem:[%s1011_s1 + $0x144] ss:$16 sps:$4 sm:$0xff]   ;;  %v741_v41 = vld [vmem:[%s1011_s1 + $0x14c] ss:$16 sps:$4 sm:$0xff]  }
   0xf   :  { %437 = vmatpush1.bf16.msra.mxu0 %v701_v14  ;;  %480 = vmatpush1.bf16.msra.mxu1 %v702_v15  ;;  %v743_v42 = vld [vmem:[%s1011_s1 + $0x140] ss:$16 sps:$4 sm:$0xff]   ;;  %v744_v43 = vld [vmem:[%s1011_s1 + $0x148] ss:$16 sps:$4 sm:$0xff]   ;;  %v745_v44 = vld [vmem:[%s1011_s1 + $0x164] ss:$16 sps:$4 sm:$0xff]  }
  0x10   :  { %438 = vmatprep.subr.bf16.mxu0 %v703_v16  ;;  %481 = vmatprep.subr.bf16.mxu1 %v705_v17  ;;  %v747_v45 = vld [vmem:[%s1011_s1 + $0x16c] ss:$16 sps:$4 sm:$0xff]   ;;  %v749_v47 = vld [vmem:[%s1011_s1 + $0x160] ss:$16 sps:$4 sm:$0xff]   ;;  %v750_v48 = vld [vmem:[%s1011_s1 + $0x168] ss:$16 sps:$4 sm:$0xff]  }
  0x11   :  { %v777_v46 = vld [vmem:[%s1012_s0 + $0x4] ss:$8 sps:$4 sm:$0xff]   ;;  %v755_v51 = vld [vmem:[%s1011_s1 + $0x180] ss:$16 sps:$4 sm:$0xff]   ;;  %v756_v52 = vld [vmem:[%s1011_s1 + $0x188] ss:$16 sps:$4 sm:$0xff]  }
  0x12   :  { %v751_v49 = vld [vmem:[%s1011_s1 + $0x184] ss:$16 sps:$4 sm:$0xff]   ;;  %v753_v50 = vld [vmem:[%s1011_s1 + $0x18c] ss:$16 sps:$4 sm:$0xff]   ;;  %462 = vmatprep.mubr.bf16.mxu0 %v777_v46  ;;  %505 = vmatprep.mubr.bf16.mxu1 %v777_v46  ;;  %v761_v55 = vld [vmem:[%s1011_s1 + $0x1a0] ss:$16 sps:$4 sm:$0xff]  }
  0x13   :  { %439 = vmatpush1.bf16.msra.mxu0 %v707_v18  ;;  %482 = vmatpush1.bf16.msra.mxu1 %v708_v19  ;;  %v757_v53 = vld [vmem:[%s1011_s1 + $0x1a4] ss:$16 sps:$4 sm:$0xff]   ;;  %v759_v54 = vld [vmem:[%s1011_s1 + $0x1ac] ss:$16 sps:$4 sm:$0xff]   ;;  %v762_v56 = vld [vmem:[%s1011_s1 + $0x1a8] ss:$16 sps:$4 sm:$0xff]  }
  0x14   :  { %440 = vmatprep.subr.bf16.mxu0 %v709_v20  ;;  %483 = vmatprep.subr.bf16.mxu1 %v711_v21  ;;  %v763_v57 = vld [vmem:[%s1011_s1 + $0x1c4] ss:$16 sps:$4 sm:$0xff]   ;;  %v765_v58 = vld [vmem:[%s1011_s1 + $0x1cc] ss:$16 sps:$4 sm:$0xff]   ;;  %v767_v59 = vld [vmem:[%s1011_s1 + $0x1c0] ss:$16 sps:$4 sm:$0xff]  }
  0x15   :  { %v768_v60 = vld [vmem:[%s1011_s1 + $0x1c8] ss:$16 sps:$4 sm:$0xff]   ;;  %v769_v61 = vld [vmem:[%s1011_s1 + $0x1e4] ss:$16 sps:$4 sm:$0xff]   ;;  %v771_v62 = vld [vmem:[%s1011_s1 + $0x1ec] ss:$16 sps:$4 sm:$0xff]  }
  0x16   :  { %v773_v63 = vld [vmem:[%s1011_s1 + $0x1e0] ss:$16 sps:$4 sm:$0xff]   ;;  %v774_v0 = vld [vmem:[%s1011_s1 + $0x1e8] ss:$16 sps:$4 sm:$0xff]   ;;  %v546_v3 = vshrl.u32 %v545_v2, 7 }
  0x17   :  { %441 = vmatpush1.bf16.msra.mxu0 %v713_v22  ;;  %484 = vmatpush1.bf16.msra.mxu1 %v714_v23  ;;  %v775_v1 = vld [vmem:[%s1012_s0] ss:$8 sps:$4 sm:$0xff]  }
  0x18   :  { %442 = vmatprep.subr.bf16.mxu0 %v715_v24  ;;  %485 = vmatprep.subr.bf16.mxu1 %v717_v25  ;;  %v547_v4 = vsub.s32 0, %v546_v3  ;;  %v555_v5 = vsub.s32 2, %v546_v3  ;;  %v543_v6 = vld [vmem:[%s1013_s2] sm:$0xf]  ;;  %v551_v7 = vsub.s32 1, %v546_v3  ;;  %v559_v8 = vsub.s32 3, %v546_v3 }
  0x1a   :  { %v548_v9 = vrot.slane %v543_v6, %v547_v4  ;;  %v556_v10 = vrot.slane %v543_v6, %v555_v5  ;;  %v552_v11 = vrot.slane %v543_v6, %v551_v7  ;;  %v560_v12 = vrot.slane %v543_v6, %v559_v8 }
  0x1b   :  { %443 = vmatpush1.bf16.msra.mxu0 %v719_v26  ;;  %486 = vmatpush1.bf16.msra.mxu1 %v720_v27 }
  0x1c   :  { %444 = vmatprep.subr.bf16.mxu0 %v721_v28  ;;  %487 = vmatprep.subr.bf16.mxu1 %v723_v29 }
  0x1f   :  { %445 = vmatpush1.bf16.msra.mxu0 %v725_v30  ;;  %488 = vmatpush1.bf16.msra.mxu1 %v726_v31 }
  0x20   :  { %446 = vmatprep.subr.bf16.mxu0 %v727_v32  ;;  %489 = vmatprep.subr.bf16.mxu1 %v729_v33 }
  0x23   :  { %447 = vmatpush1.bf16.msra.mxu0 %v731_v34  ;;  %490 = vmatpush1.bf16.msra.mxu1 %v732_v35 }
  0x24   :  { %448 = vmatprep.subr.bf16.mxu0 %v733_v36  ;;  %491 = vmatprep.subr.bf16.mxu1 %v735_v37 }
  0x27   :  { %449 = vmatpush1.bf16.msra.mxu0 %v737_v38  ;;  %492 = vmatpush1.bf16.msra.mxu1 %v738_v39 }
  0x28   :  { %450 = vmatprep.subr.bf16.mxu0 %v739_v40  ;;  %493 = vmatprep.subr.bf16.mxu1 %v741_v41 }
  0x2b   :  { %451 = vmatpush1.bf16.msra.mxu0 %v743_v42  ;;  %494 = vmatpush1.bf16.msra.mxu1 %v744_v43 }
  0x2c   :  { %452 = vmatprep.subr.bf16.mxu0 %v745_v44  ;;  %495 = vmatprep.subr.bf16.mxu1 %v747_v45 }
  0x2f   :  { %453 = vmatpush1.bf16.msra.mxu0 %v749_v47  ;;  %496 = vmatpush1.bf16.msra.mxu1 %v750_v48 }
  0x30   :  { %454 = vmatprep.subr.bf16.mxu0 %v751_v49  ;;  %497 = vmatprep.subr.bf16.mxu1 %v753_v50 }
  0x33   :  { %455 = vmatpush1.bf16.msra.mxu0 %v755_v51  ;;  %498 = vmatpush1.bf16.msra.mxu1 %v756_v52 }
  0x34   :  { %456 = vmatprep.subr.bf16.mxu0 %v757_v53  ;;  %499 = vmatprep.subr.bf16.mxu1 %v759_v54 }
  0x37   :  { %457 = vmatpush1.bf16.msra.mxu0 %v761_v55  ;;  %500 = vmatpush1.bf16.msra.mxu1 %v762_v56 }
  0x38   :  { %458 = vmatprep.subr.bf16.mxu0 %v763_v57  ;;  %501 = vmatprep.subr.bf16.mxu1 %v765_v58 }
  0x3b   :  { %459 = vmatpush1.bf16.msra.mxu0 %v767_v59  ;;  %502 = vmatpush1.bf16.msra.mxu1 %v768_v60 }
  0x3c   :  { %460 = vmatprep.subr.bf16.mxu0 %v769_v61  ;;  %503 = vmatprep.subr.bf16.mxu1 %v771_v62 }
  0x3f   :  { %461 = vmatpush1.bf16.msra.mxu0 %v773_v63  ;;  %504 = vmatpush1.bf16.msra.mxu1 %v774_v0 }
  0x42   :  { %463 = vmatmul.mubr.bf16.vlgmr.msra.gmra.mrb[0].mxu0 %v775_v1  ;;  %506 = vmatmul.mubr.bf16.vlgmr.msra.gmra.mrb[0].mxu1 %v775_v1 }
 0x115   :  { %v464_v13 = vpop.f32.mrb[0].mxu0  ;;  %v507_v14 = vpop.f32.mrb[0].mxu1 }
 0x116   :  { %v565_v15 = vadd.f32 %v548_v9, %v464_v13  ;;  %v567_v16 = vadd.f32 %v556_v10, %v507_v14  ;;  %v466_v17 = vpop.f32.mrb[1].mxu0  ;;  %v509_v18 = vpop.f32.mrb[1].mxu1 }
 0x117   :  { %v566_v19 = vadd.f32 %v552_v11, %v466_v17  ;;  %v568_v20 = vadd.f32 %v560_v12, %v509_v18  ;;  %v468_v21 = vpop.f32.mrb[2].mxu0  ;;  %v511_v22 = vpop.f32.mrb[2].mxu1 }
 0x118   :  { %v569_v23 = vadd.f32 %v548_v9, %v468_v21  ;;  %v571_v24 = vadd.f32 %v556_v10, %v511_v22  ;;  %v470_v25 = vpop.f32.mrb[3].mxu0  ;;  %v513_v26 = vpop.f32.mrb[3].mxu1 }
 0x119   :  { %v675_v27 = vpack.c.bf16 %v566_v19, %v565_v15  ;;  %v676_v28 = vpack.c.bf16 %v568_v20, %v567_v16  ;;  %v570_v29 = vadd.f32 %v552_v11, %v470_v25  ;;  %v572_v30 = vadd.f32 %v560_v12, %v513_v26 }
 0x11b   :  { %597 = vst [vmem:[%s1014_s3] sm:$0xff] %v675_v27  ;;  %598 = vst [vmem:[%s1014_s3 + $0x8] sm:$0xff] %v676_v28  ;;  %v677_v31 = vpack.c.bf16 %v570_v29, %v569_v23  ;;  %v678_v32 = vpack.c.bf16 %v572_v30, %v571_v24 }
 0x11d   :  { %599 = vst [vmem:[%s1014_s3 + $0x10] sm:$0xff] %v677_v31  ;;  %600 = vst [vmem:[%s1014_s3 + $0x18] sm:$0xff] %v678_v32 }

// kernel: modified_res18_forward.38
= control target key start
LH: loop header
LB: loop body
LE: loop exit
PB: predicated region body
PF: predicated region fallthrough
CT: control target
= control target key end

     0   :  { %s2081_s15 = smov 0   ;;  %s2083_s16 = smov 0   ;;  %s2311_s0 = inlined_call_operand.vmem [shape: bf16[16,4608], index: 0, kind: input, shape index: {}]   ;;  %s2312_s1 = inlined_call_operand.vmem [shape: bf16[4608,512], index: 1, kind: input, shape index: {}]   ;;  %s2313_s2 = inlined_call_operand.vmem [shape: f32[1,512], index: 2, kind: input, shape index: {}]   ;;  %s2314_s3 = inlined_call_operand.vmem [shape: bf16[16,512], index: 3, kind: input, shape index: {}]   ;;  %s2315_s4 = inlined_call_operand.vmem [shape: bf16[16,512], index: 4, kind: output, shape index: {}]  }
   0x1   :  { %s2085_s17 = smov 0   ;;  %s2087_s18 = smov 0  }
   0x2   :  { %s2089_s19 = smov 0  }
   0x3 LB: > { %s26_s20 = sadd.s32 1, %s2049_s18  ;;  %p49_p1 = scmp.ne.s32.totalorder %s2041_s16, %s2037_s15  ;;  %s2053_s19 = sphi %s2089_s19, %s14_s19   ;;  %s2049_s18 = sphi %s2087_s18, %s2319_s18   ;;  %s2045_s17 = sphi %s2085_s17, %s2318_s17   ;;  %s2041_s16 = sphi %s2083_s16, %s2317_s16   ;;  %s2037_s15 = sphi %s2081_s15, %s2316_s15  }
   0x4   : > { %p27_p0 = scmp.ge.s32.totalorder %s26_s20, 9  ;;  %p50_p2 = scmp.eq.s32.totalorder %s2053_s19, 0 }
   0x5   : > { %s42_s22 = sadd.s32 1, %s2041_s16  ;;  %p1611_p5 = scmp.ge.s32.totalorder %s2053_s19, 9 }
   0x6   : > { %s2321_s20 = smov (%p27_p0, %s26_s20), 0  ;;  %p51_p3 = por %p50_p2, %p49_p1 }
   0x7   : > { %s38_s21 = ssub.s32 %s2049_s18, %s2321_s20  ;;  %208 = sbr.rel (%p1611_p5) target bundleno = 21 (0x15), region = 24 }
   0x8   : > { %p40_p4 = scmp.eq.s32.totalorder %s38_s21, 0 }
   0xa   : > { %s2116_s23 = scalar_select %p40_p4, %s2041_s16, %s42_s22  }
   0xe   : > { %211 = sbr.rel (!%p51_p3) target bundleno = 21 (0x15), region = 28  ;;  %s213_s24 = sand.u32 (%p51_p3), 1, %s2041_s16  }
   0xf   : > { %s1762_s25 = sshll.u32 (%p51_p3), %s2049_s18, 4  ;;  %s1612_s26 = sshll.u32 (%p51_p3), %s213_s24, 5 }
  0x10   : > { %s221_s29 = scalar_lea.vmem (%p51_p3), %s2311_s0, %s1762_s25  ;;  %s215_s30 = scalar_lea.vmem (%p51_p3), [#allocation3], %s1612_s26 }
  0x11   : > { %v234_v0 = vld [vmem:[%s221_s29] sm:$0xff] (%p51_p3)  ;;  %v236_v1 = vld [vmem:[%s221_s29 + $0x8] sm:$0xff] (%p51_p3)  ;;  %v238_v2 = vld [vmem:[%s221_s29 + $0x90] sm:$0xff] (%p51_p3) }
  0x12   : > { %235 = vst [vmem:[%s215_s30] sm:$0xff] (%p51_p3), %v234_v0  ;;  %237 = vst [vmem:[%s215_s30 + $0x8] sm:$0xff] (%p51_p3), %v236_v1  ;;  %v240_v3 = vld [vmem:[%s221_s29 + $0x98] sm:$0xff] (%p51_p3) }
  0x13   : > { %239 = vst [vmem:[%s215_s30 + $0x10] sm:$0xff] (%p51_p3), %v238_v2  ;;  %241 = vst [vmem:[%s215_s30 + $0x18] sm:$0xff] (%p51_p3), %v240_v3 }
  0x15 PF: > { %p1615_p6 = scmp.ge.s32.totalorder %s2053_s19, 1  ;;  %p261_p7 = scmp.lt.s32.totalorder %s2053_s19, 10 }
  0x17   : > { %p262_p8 = pnand %p1615_p6, %p261_p7 }
  0x18   : > { %s268_s5 = sand.u32 (!%p262_p8), 1, %s2037_s15   ;;  %s1617_s6 = sshll.u32 (!%p262_p8), %s2045_s17, 6 }
  0x19   : > { %265 = sbr.rel (%p262_p8) target bundleno = 402 (0x192), region = 55  ;;  %s1616_s7 = sshll.u32 (!%p262_p8), %s268_s5, 5 }
  0x1a   : > { %p326_p9 = scmp.lt.s32.totalorder (!%p262_p8), %s1617_s6, 575  ;;  %s2133_s12 = scalar_lea.vmem (!%p262_p8), [#allocation3], %s1616_s7 }
  0x1b   : > { %p1620_p10 = scmp.ne.s32.totalorder (!%p262_p8), %s2045_s17, 0 }
  0x20   : > { %s2323_s6 = smov (!%p326_p9, %s1617_s6), 575  ;;  %368 = sbr.rel (%p1620_p10) target bundleno = 39 (0x27), region = 63 }
  0x21   : > { %s1763_s8 = sshll.u32 %s2323_s6, 4  ;;  %v2055_v4 = vmov (!%p1620_p10), 0.0  }
  0x22   : > { %s2131_s11 = scalar_lea.vmem %s2312_s1, %s1763_s8  ;;  %369 = vst [vmem:[#allocation2] sm:$0xff] (!%p1620_p10), %v2055_v4  ;;  %370 = vst [vmem:[#allocation2 + $0x8] sm:$0xff] (!%p1620_p10), %v2055_v4 }
  0x23   : > { %371 = vst [vmem:[#allocation2 + $0x10] sm:$0xff] (!%p1620_p10), %v2055_v4  ;;  %372 = vst [vmem:[#allocation2 + $0x18] sm:$0xff] (!%p1620_p10), %v2055_v4 }
  0x24   : > { %373 = vst [vmem:[#allocation2 + $0x20] sm:$0xff] (!%p1620_p10), %v2055_v4  ;;  %374 = vst [vmem:[#allocation2 + $0x28] sm:$0xff] (!%p1620_p10), %v2055_v4 }
  0x25   : > { %375 = vst [vmem:[#allocation2 + $0x30] sm:$0xff] (!%p1620_p10), %v2055_v4  ;;  %376 = vst [vmem:[#allocation2 + $0x38] sm:$0xff] (!%p1620_p10), %v2055_v4 }
  0x27 PF: > { %v1817_v5 = vld [vmem:[%s2131_s11 + $0x4] ss:$16 sps:$4 sm:$0xff]   ;;  %v1819_v6 = vld [vmem:[%s2131_s11 + $0xc] ss:$16 sps:$4 sm:$0xff]   ;;  %v1821_v7 = vld [vmem:[%s2131_s11] ss:$16 sps:$4 sm:$0xff]  }
  0x28   : > { %1177 = vmatprep.subr.bf16.mxu0 %v1817_v5  ;;  %v1822_v8 = vld [vmem:[%s2131_s11 + $0x8] ss:$16 sps:$4 sm:$0xff]   ;;  %1263 = vmatprep.subr.bf16.mxu1 %v1819_v6  ;;  %v1823_v9 = vld [vmem:[%s2131_s11 + $0x24] ss:$16 sps:$4 sm:$0xff]   ;;  %v1825_v10 = vld [vmem:[%s2131_s11 + $0x2c] ss:$16 sps:$4 sm:$0xff]  }
  0x29   : > { %1178 = vmatpush1.bf16.msra.mxu0 %v1821_v7  ;;  %1264 = vmatpush1.bf16.msra.mxu1 %v1822_v8  ;;  %v1827_v11 = vld [vmem:[%s2131_s11 + $0x20] ss:$16 sps:$4 sm:$0xff]   ;;  %v1828_v12 = vld [vmem:[%s2131_s11 + $0x28] ss:$16 sps:$4 sm:$0xff]   ;;  %v1829_v13 = vld [vmem:[%s2131_s11 + $0x44] ss:$16 sps:$4 sm:$0xff]  }
  0x2a   : > { %1179 = vmatprep.subr.bf16.mxu0 %v1823_v9  ;;  %1265 = vmatprep.subr.bf16.mxu1 %v1825_v10  ;;  %v1831_v14 = vld [vmem:[%s2131_s11 + $0x4c] ss:$16 sps:$4 sm:$0xff]   ;;  %v1833_v15 = vld [vmem:[%s2131_s11 + $0x40] ss:$16 sps:$4 sm:$0xff]   ;;  %v1834_v16 = vld [vmem:[%s2131_s11 + $0x48] ss:$16 sps:$4 sm:$0xff]  }
  0x2b   : > { %v1835_v17 = vld [vmem:[%s2131_s11 + $0x64] ss:$16 sps:$4 sm:$0xff]   ;;  %v1837_v18 = vld [vmem:[%s2131_s11 + $0x6c] ss:$16 sps:$4 sm:$0xff]   ;;  %v1839_v19 = vld [vmem:[%s2131_s11 + $0x60] ss:$16 sps:$4 sm:$0xff]  }
  0x2c   : > { %v1840_v20 = vld [vmem:[%s2131_s11 + $0x68] ss:$16 sps:$4 sm:$0xff]   ;;  %v1841_v21 = vld [vmem:[%s2131_s11 + $0x84] ss:$16 sps:$4 sm:$0xff]   ;;  %v1843_v22 = vld [vmem:[%s2131_s11 + $0x8c] ss:$16 sps:$4 sm:$0xff]  }
  0x2d   : > { %1180 = vmatpush1.bf16.msra.mxu0 %v1827_v11  ;;  %1266 = vmatpush1.bf16.msra.mxu1 %v1828_v12  ;;  %v1845_v23 = vld [vmem:[%s2131_s11 + $0x80] ss:$16 sps:$4 sm:$0xff]   ;;  %v1846_v24 = vld [vmem:[%s2131_s11 + $0x88] ss:$16 sps:$4 sm:$0xff]   ;;  %v1847_v25 = vld [vmem:[%s2131_s11 + $0xa4] ss:$16 sps:$4 sm:$0xff]  }
  0x2e   : > { %1181 = vmatprep.subr.bf16.mxu0 %v1829_v13  ;;  %1267 = vmatprep.subr.bf16.mxu1 %v1831_v14  ;;  %v1849_v26 = vld [vmem:[%s2131_s11 + $0xac] ss:$16 sps:$4 sm:$0xff]   ;;  %v1851_v27 = vld [vmem:[%s2131_s11 + $0xa0] ss:$16 sps:$4 sm:$0xff]   ;;  %v1852_v28 = vld [vmem:[%s2131_s11 + $0xa8] ss:$16 sps:$4 sm:$0xff]  }
  0x2f   : > { %v1853_v29 = vld [vmem:[%s2131_s11 + $0xc4] ss:$16 sps:$4 sm:$0xff]   ;;  %v1855_v30 = vld [vmem:[%s2131_s11 + $0xcc] ss:$16 sps:$4 sm:$0xff]   ;;  %v1857_v31 = vld [vmem:[%s2131_s11 + $0xc0] ss:$16 sps:$4 sm:$0xff]  }
  0x30   : > { %v1858_v32 = vld [vmem:[%s2131_s11 + $0xc8] ss:$16 sps:$4 sm:$0xff]   ;;  %v1859_v33 = vld [vmem:[%s2131_s11 + $0xe4] ss:$16 sps:$4 sm:$0xff]   ;;  %v1861_v34 = vld [vmem:[%s2131_s11 + $0xec] ss:$16 sps:$4 sm:$0xff]  }
  0x31   : > { %1182 = vmatpush1.bf16.msra.mxu0 %v1833_v15  ;;  %1268 = vmatpush1.bf16.msra.mxu1 %v1834_v16  ;;  %v1863_v35 = vld [vmem:[%s2131_s11 + $0xe0] ss:$16 sps:$4 sm:$0xff]   ;;  %v1864_v36 = vld [vmem:[%s2131_s11 + $0xe8] ss:$16 sps:$4 sm:$0xff]   ;;  %v1865_v37 = vld [vmem:[%s2131_s11 + $0x104] ss:$16 sps:$4 sm:$0xff]  }
  0x32   : > { %1183 = vmatprep.subr.bf16.mxu0 %v1835_v17  ;;  %1269 = vmatprep.subr.bf16.mxu1 %v1837_v18  ;;  %v1867_v38 = vld [vmem:[%s2131_s11 + $0x10c] ss:$16 sps:$4 sm:$0xff]   ;;  %v1869_v39 = vld [vmem:[%s2131_s11 + $0x100] ss:$16 sps:$4 sm:$0xff]   ;;  %v1870_v40 = vld [vmem:[%s2131_s11 + $0x108] ss:$16 sps:$4 sm:$0xff]  }
  0x33   : > { %v1871_v41 = vld [vmem:[%s2131_s11 + $0x124] ss:$16 sps:$4 sm:$0xff]   ;;  %v1873_v42 = vld [vmem:[%s2131_s11 + $0x12c] ss:$16 sps:$4 sm:$0xff]   ;;  %v1875_v43 = vld [vmem:[%s2131_s11 + $0x120] ss:$16 sps:$4 sm:$0xff]  }
  0x34   : > { %v1876_v44 = vld [vmem:[%s2131_s11 + $0x128] ss:$16 sps:$4 sm:$0xff]   ;;  %v1877_v45 = vld [vmem:[%s2131_s11 + $0x144] ss:$16 sps:$4 sm:$0xff]   ;;  %v1879_v46 = vld [vmem:[%s2131_s11 + $0x14c] ss:$16 sps:$4 sm:$0xff]  }
  0x35   : > { %1184 = vmatpush1.bf16.msra.mxu0 %v1839_v19  ;;  %1270 = vmatpush1.bf16.msra.mxu1 %v1840_v20  ;;  %v1881_v47 = vld [vmem:[%s2131_s11 + $0x140] ss:$16 sps:$4 sm:$0xff]   ;;  %v1882_v48 = vld [vmem:[%s2131_s11 + $0x148] ss:$16 sps:$4 sm:$0xff]   ;;  %v1883_v49 = vld [vmem:[%s2131_s11 + $0x164] ss:$16 sps:$4 sm:$0xff]  }
  0x36   : > { %1185 = vmatprep.subr.bf16.mxu0 %v1841_v21  ;;  %1271 = vmatprep.subr.bf16.mxu1 %v1843_v22  ;;  %v1885_v50 = vld [vmem:[%s2131_s11 + $0x16c] ss:$16 sps:$4 sm:$0xff]   ;;  %v1887_v51 = vld [vmem:[%s2131_s11 + $0x160] ss:$16 sps:$4 sm:$0xff]   ;;  %v1888_v52 = vld [vmem:[%s2131_s11 + $0x168] ss:$16 sps:$4 sm:$0xff]  }
  0x37   : > { %v1915_v53 = vld [vmem:[%s2133_s12 + $0x4] ss:$16 sps:$4 sm:$0xff]   ;;  %v1891_v55 = vld [vmem:[%s2131_s11 + $0x18c] ss:$16 sps:$4 sm:$0xff]   ;;  %v1893_v56 = vld [vmem:[%s2131_s11 + $0x180] ss:$16 sps:$4 sm:$0xff]  }
  0x38   : > { %v1889_v54 = vld [vmem:[%s2131_s11 + $0x184] ss:$16 sps:$4 sm:$0xff]   ;;  %1209 = vmatprep.mubr.bf16.mxu0 %v1915_v53  ;;  %1295 = vmatprep.mubr.bf16.mxu1 %v1915_v53  ;;  %v1894_v57 = vld [vmem:[%s2131_s11 + $0x188] ss:$16 sps:$4 sm:$0xff]   ;;  %v1897_v59 = vld [vmem:[%s2131_s11 + $0x1ac] ss:$16 sps:$4 sm:$0xff]  }
  0x39   : > { %1186 = vmatpush1.bf16.msra.mxu0 %v1845_v23  ;;  %1272 = vmatpush1.bf16.msra.mxu1 %v1846_v24  ;;  %v1895_v58 = vld [vmem:[%s2131_s11 + $0x1a4] ss:$16 sps:$4 sm:$0xff]   ;;  %v1899_v60 = vld [vmem:[%s2131_s11 + $0x1a0] ss:$16 sps:$4 sm:$0xff]   ;;  %v1900_v61 = vld [vmem:[%s2131_s11 + $0x1a8] ss:$16 sps:$4 sm:$0xff]  }
  0x3a   : > { %1187 = vmatprep.subr.bf16.mxu0 %v1847_v25  ;;  %1273 = vmatprep.subr.bf16.mxu1 %v1849_v26  ;;  %v1901_v62 = vld [vmem:[%s2131_s11 + $0x1c4] ss:$16 sps:$4 sm:$0xff]   ;;  %v1903_v63 = vld [vmem:[%s2131_s11 + $0x1cc] ss:$16 sps:$4 sm:$0xff]   ;;  %v1905_v0 = vld [vmem:[%s2131_s11 + $0x1c0] ss:$16 sps:$4 sm:$0xff]  }
  0x3b   : > { %v1906_v1 = vld [vmem:[%s2131_s11 + $0x1c8] ss:$16 sps:$4 sm:$0xff]   ;;  %v1907_v2 = vld [vmem:[%s2131_s11 + $0x1e4] ss:$16 sps:$4 sm:$0xff]   ;;  %v1909_v3 = vld [vmem:[%s2131_s11 + $0x1ec] ss:$16 sps:$4 sm:$0xff]  }
  0x3c   : > { %v1911_v4 = vld [vmem:[%s2131_s11 + $0x1e0] ss:$16 sps:$4 sm:$0xff]   ;;  %v1912_v5 = vld [vmem:[%s2131_s11 + $0x1e8] ss:$16 sps:$4 sm:$0xff]   ;;  %v1918_v6 = vld [vmem:[%s2131_s11 + $0x204] ss:$16 sps:$4 sm:$0xff]  }
  0x3d   : > { %1188 = vmatpush1.bf16.msra.mxu0 %v1851_v27  ;;  %1274 = vmatpush1.bf16.msra.mxu1 %v1852_v28  ;;  %v1921_v7 = vld [vmem:[%s2131_s11 + $0x20c] ss:$16 sps:$4 sm:$0xff]   ;;  %v1913_v8 = vld [vmem:[%s2133_s12] ss:$16 sps:$4 sm:$0xff]   ;;  %v1919_v10 = vld [vmem:[%s2131_s11 + $0x208] ss:$16 sps:$4 sm:$0xff]  }
  0x3e   : > { %1189 = vmatprep.subr.bf16.mxu0 %v1853_v29  ;;  %1275 = vmatprep.subr.bf16.mxu1 %v1855_v30  ;;  %v1916_v9 = vld [vmem:[%s2131_s11 + $0x200] ss:$16 sps:$4 sm:$0xff]   ;;  %v1924_v11 = vld [vmem:[%s2131_s11 + $0x224] ss:$16 sps:$4 sm:$0xff]   ;;  %v1927_v12 = vld [vmem:[%s2131_s11 + $0x22c] ss:$16 sps:$4 sm:$0xff]  }
  0x3f   : > { %v1922_v13 = vld [vmem:[%s2131_s11 + $0x220] ss:$16 sps:$4 sm:$0xff]   ;;  %v1925_v14 = vld [vmem:[%s2131_s11 + $0x228] ss:$16 sps:$4 sm:$0xff]   ;;  %v1930_v15 = vld [vmem:[%s2131_s11 + $0x244] ss:$16 sps:$4 sm:$0xff]  }
  0x40   : > { %v1933_v16 = vld [vmem:[%s2131_s11 + $0x24c] ss:$16 sps:$4 sm:$0xff]   ;;  %v1928_v17 = vld [vmem:[%s2131_s11 + $0x240] ss:$16 sps:$4 sm:$0xff]   ;;  %v1931_v18 = vld [vmem:[%s2131_s11 + $0x248] ss:$16 sps:$4 sm:$0xff]  }
  0x41   : > { %1190 = vmatpush1.bf16.msra.mxu0 %v1857_v31  ;;  %1276 = vmatpush1.bf16.msra.mxu1 %v1858_v32  ;;  %v1936_v19 = vld [vmem:[%s2131_s11 + $0x264] ss:$16 sps:$4 sm:$0xff]   ;;  %v1939_v20 = vld [vmem:[%s2131_s11 + $0x26c] ss:$16 sps:$4 sm:$0xff]   ;;  %v1934_v21 = vld [vmem:[%s2131_s11 + $0x260] ss:$16 sps:$4 sm:$0xff]  }
  0x42   : > { %1191 = vmatprep.subr.bf16.mxu0 %v1859_v33  ;;  %1277 = vmatprep.subr.bf16.mxu1 %v1861_v34  ;;  %v1937_v22 = vld [vmem:[%s2131_s11 + $0x268] ss:$16 sps:$4 sm:$0xff]   ;;  %v1942_v23 = vld [vmem:[%s2131_s11 + $0x284] ss:$16 sps:$4 sm:$0xff]   ;;  %v1945_v24 = vld [vmem:[%s2131_s11 + $0x28c] ss:$16 sps:$4 sm:$0xff]  }
  0x43   : > { %v1940_v25 = vld [vmem:[%s2131_s11 + $0x280] ss:$16 sps:$4 sm:$0xff]   ;;  %v1943_v26 = vld [vmem:[%s2131_s11 + $0x288] ss:$16 sps:$4 sm:$0xff]   ;;  %v1948_v27 = vld [vmem:[%s2131_s11 + $0x2a4] ss:$16 sps:$4 sm:$0xff]  }
  0x44   : > { %v1951_v28 = vld [vmem:[%s2131_s11 + $0x2ac] ss:$16 sps:$4 sm:$0xff]   ;;  %v1946_v29 = vld [vmem:[%s2131_s11 + $0x2a0] ss:$16 sps:$4 sm:$0xff]   ;;  %v1949_v30 = vld [vmem:[%s2131_s11 + $0x2a8] ss:$16 sps:$4 sm:$0xff]  }
  0x45   : > { %1192 = vmatpush1.bf16.msra.mxu0 %v1863_v35  ;;  %1278 = vmatpush1.bf16.msra.mxu1 %v1864_v36  ;;  %v1954_v31 = vld [vmem:[%s2131_s11 + $0x2c4] ss:$16 sps:$4 sm:$0xff]   ;;  %v1957_v32 = vld [vmem:[%s2131_s11 + $0x2cc] ss:$16 sps:$4 sm:$0xff]   ;;  %v1952_v34 = vld [vmem:[%s2131_s11 + $0x2c0] ss:$16 sps:$4 sm:$0xff]  }
  0x46   : > { %1193 = vmatprep.subr.bf16.mxu0 %v1865_v37  ;;  %1279 = vmatprep.subr.bf16.mxu1 %v1867_v38  ;;  %v2014_v33 = vld [vmem:[%s2133_s12 + $0xc] ss:$16 sps:$4 sm:$0xff]   ;;  %v1955_v35 = vld [vmem:[%s2131_s11 + $0x2c8] ss:$16 sps:$4 sm:$0xff]   ;;  %v1960_v36 = vld [vmem:[%s2131_s11 + $0x2e4] ss:$16 sps:$4 sm:$0xff]  }
  0x47   : > { %v1963_v37 = vld [vmem:[%s2131_s11 + $0x2ec] ss:$16 sps:$4 sm:$0xff]   ;;  %v1958_v38 = vld [vmem:[%s2131_s11 + $0x2e0] ss:$16 sps:$4 sm:$0xff]   ;;  %p1753_p11 = scmp.ne.s32.totalorder %s2045_s17, 8 }
  0x48   : > { %v1987_v53 = vld [vmem:[%s2131_s11 + $0x36c] ss:$16 sps:$4 sm:$0xff]  }
  0x49   : > { %1194 = vmatpush1.bf16.msra.mxu0 %v1869_v39  ;;  %1280 = vmatpush1.bf16.msra.mxu1 %v1870_v40  ;;  %v1961_v39 = vld [vmem:[%s2131_s11 + $0x2e8] ss:$16 sps:$4 sm:$0xff]   ;;  %v1966_v40 = vld [vmem:[%s2131_s11 + $0x304] ss:$16 sps:$4 sm:$0xff]  }
  0x4a   : > { %1195 = vmatprep.subr.bf16.mxu0 %v1871_v41  ;;  %1281 = vmatprep.subr.bf16.mxu1 %v1873_v42  ;;  %v1969_v41 = vld [vmem:[%s2131_s11 + $0x30c] ss:$16 sps:$4 sm:$0xff]   ;;  %v1964_v42 = vld [vmem:[%s2131_s11 + $0x300] ss:$16 sps:$4 sm:$0xff]  }
  0x4d   : > { %1196 = vmatpush1.bf16.msra.mxu0 %v1875_v43  ;;  %1282 = vmatpush1.bf16.msra.mxu1 %v1876_v44  ;;  %v1967_v43 = vld [vmem:[%s2131_s11 + $0x308] ss:$16 sps:$4 sm:$0xff]   ;;  %v1972_v44 = vld [vmem:[%s2131_s11 + $0x324] ss:$16 sps:$4 sm:$0xff]  }
  0x4e   : > { %1197 = vmatprep.subr.bf16.mxu0 %v1877_v45  ;;  %1283 = vmatprep.subr.bf16.mxu1 %v1879_v46  ;;  %v1975_v45 = vld [vmem:[%s2131_s11 + $0x32c] ss:$16 sps:$4 sm:$0xff]   ;;  %v1970_v46 = vld [vmem:[%s2131_s11 + $0x320] ss:$16 sps:$4 sm:$0xff]  }
  0x51   : > { %1198 = vmatpush1.bf16.msra.mxu0 %v1881_v47  ;;  %1284 = vmatpush1.bf16.msra.mxu1 %v1882_v48  ;;  %v1973_v47 = vld [vmem:[%s2131_s11 + $0x328] ss:$16 sps:$4 sm:$0xff]   ;;  %v1978_v48 = vld [vmem:[%s2131_s11 + $0x344] ss:$16 sps:$4 sm:$0xff]  }
  0x52   : > { %1199 = vmatprep.subr.bf16.mxu0 %v1883_v49  ;;  %1285 = vmatprep.subr.bf16.mxu1 %v1885_v50  ;;  %v1981_v49 = vld [vmem:[%s2131_s11 + $0x34c] ss:$16 sps:$4 sm:$0xff]   ;;  %v1976_v50 = vld [vmem:[%s2131_s11 + $0x340] ss:$16 sps:$4 sm:$0xff]  }
  0x55   : > { %1200 = vmatpush1.bf16.msra.mxu0 %v1887_v51  ;;  %1286 = vmatpush1.bf16.msra.mxu1 %v1888_v52  ;;  %v1979_v51 = vld [vmem:[%s2131_s11 + $0x348] ss:$16 sps:$4 sm:$0xff]   ;;  %v1984_v52 = vld [vmem:[%s2131_s11 + $0x364] ss:$16 sps:$4 sm:$0xff]  }
  0x56   : > { %1201 = vmatprep.subr.bf16.mxu0 %v1889_v54  ;;  %1287 = vmatprep.subr.bf16.mxu1 %v1891_v55  ;;  %v1982_v54 = vld [vmem:[%s2131_s11 + $0x360] ss:$16 sps:$4 sm:$0xff]   ;;  %v1985_v55 = vld [vmem:[%s2131_s11 + $0x368] ss:$16 sps:$4 sm:$0xff]  }
  0x59   : > { %1202 = vmatpush1.bf16.msra.mxu0 %v1893_v56  ;;  %1288 = vmatpush1.bf16.msra.mxu1 %v1894_v57  ;;  %v1990_v56 = vld [vmem:[%s2131_s11 + $0x384] ss:$16 sps:$4 sm:$0xff]   ;;  %v1993_v57 = vld [vmem:[%s2131_s11 + $0x38c] ss:$16 sps:$4 sm:$0xff]  }
  0x5a   : > { %1203 = vmatprep.subr.bf16.mxu0 %v1895_v58  ;;  %1289 = vmatprep.subr.bf16.mxu1 %v1897_v59  ;;  %v1988_v58 = vld [vmem:[%s2131_s11 + $0x380] ss:$16 sps:$4 sm:$0xff]   ;;  %v1991_v59 = vld [vmem:[%s2131_s11 + $0x388] ss:$16 sps:$4 sm:$0xff]  }
  0x5d   : > { %1204 = vmatpush1.bf16.msra.mxu0 %v1899_v60  ;;  %1290 = vmatpush1.bf16.msra.mxu1 %v1900_v61  ;;  %v1996_v60 = vld [vmem:[%s2131_s11 + $0x3a4] ss:$16 sps:$4 sm:$0xff]   ;;  %v1999_v61 = vld [vmem:[%s2131_s11 + $0x3ac] ss:$16 sps:$4 sm:$0xff]  }
  0x5e   : > { %1205 = vmatprep.subr.bf16.mxu0 %v1901_v62  ;;  %1291 = vmatprep.subr.bf16.mxu1 %v1903_v63  ;;  %v1994_v62 = vld [vmem:[%s2131_s11 + $0x3a0] ss:$16 sps:$4 sm:$0xff]   ;;  %v1997_v63 = vld [vmem:[%s2131_s11 + $0x3a8] ss:$16 sps:$4 sm:$0xff]  }
  0x61   : > { %1206 = vmatpush1.bf16.msra.mxu0 %v1905_v0  ;;  %1292 = vmatpush1.bf16.msra.mxu1 %v1906_v1  ;;  %v2002_v0 = vld [vmem:[%s2131_s11 + $0x3c4] ss:$16 sps:$4 sm:$0xff]   ;;  %v2005_v1 = vld [vmem:[%s2131_s11 + $0x3cc] ss:$16 sps:$4 sm:$0xff]  }
  0x62   : > { %1207 = vmatprep.subr.bf16.mxu0 %v1907_v2  ;;  %1293 = vmatprep.subr.bf16.mxu1 %v1909_v3  ;;  %v2000_v2 = vld [vmem:[%s2131_s11 + $0x3c0] ss:$16 sps:$4 sm:$0xff]   ;;  %v2003_v3 = vld [vmem:[%s2131_s11 + $0x3c8] ss:$16 sps:$4 sm:$0xff]  }
  0x65   : > { %1208 = vmatpush1.bf16.msra.mxu0 %v1911_v4  ;;  %1294 = vmatpush1.bf16.msra.mxu1 %v1912_v5  ;;  %v2008_v4 = vld [vmem:[%s2131_s11 + $0x3e4] ss:$16 sps:$4 sm:$0xff]   ;;  %v2011_v5 = vld [vmem:[%s2131_s11 + $0x3ec] ss:$16 sps:$4 sm:$0xff]  }
  0x66   : > { %1220 = vmatprep.subr.bf16.mxu0 %v1918_v6  ;;  %1306 = vmatprep.subr.bf16.mxu1 %v1921_v7  ;;  %v2006_v6 = vld [vmem:[%s2131_s11 + $0x3e0] ss:$16 sps:$4 sm:$0xff]   ;;  %v2009_v7 = vld [vmem:[%s2131_s11 + $0x3e8] ss:$16 sps:$4 sm:$0xff]  }
  0x68   : > { %1210 = vmatmul.mubr.bf16.vlgmr.msra.gmra.mrb[0].mxu0 %v1913_v8  ;;  %1296 = vmatmul.mubr.bf16.vlgmr.msra.gmra.mrb[0].mxu1 %v1913_v8  ;;  %v2012_v8 = vld [vmem:[%s2133_s12 + $0x8] ss:$16 sps:$4 sm:$0xff]  }
  0x69   : > { %1221 = vmatpush1.bf16.msra.mxu0 %v1916_v9  ;;  %1307 = vmatpush1.bf16.msra.mxu1 %v1919_v10  ;;  %v377_v9 = vld [vmem:[#allocation2] sm:$0xff]  ;;  %v379_v10 = vld [vmem:[#allocation2 + $0x10] sm:$0xff] }
  0x6a   : > { %1222 = vmatprep.subr.bf16.mxu0 %v1924_v11  ;;  %1308 = vmatprep.subr.bf16.mxu1 %v1927_v12  ;;  %v378_v11 = vld [vmem:[#allocation2 + $0x8] sm:$0xff]  ;;  %v380_v12 = vld [vmem:[#allocation2 + $0x18] sm:$0xff] }
  0x6b   : > { %1252 = vmatprep.mubr.bf16.mxu0 %v2014_v33  ;;  %1338 = vmatprep.mubr.bf16.mxu1 %v2014_v33  ;;  %v1379_v33 = vlaneseq (!%p1753_p11) }
  0x6d   : > { %1223 = vmatpush1.bf16.msra.mxu0 %v1922_v13  ;;  %1309 = vmatpush1.bf16.msra.mxu1 %v1925_v14 }
  0x6e   : > { %1224 = vmatprep.subr.bf16.mxu0 %v1930_v15  ;;  %1310 = vmatprep.subr.bf16.mxu1 %v1933_v16  ;;  %v381_v15 = vld [vmem:[#allocation2 + $0x20] sm:$0xff]  ;;  %v383_v16 = vld [vmem:[#allocation2 + $0x30] sm:$0xff] }
  0x71   : > { %1225 = vmatpush1.bf16.msra.mxu0 %v1928_v17  ;;  %1311 = vmatpush1.bf16.msra.mxu1 %v1931_v18 }
  0x72   : > { %1226 = vmatprep.subr.bf16.mxu0 %v1936_v19  ;;  %1312 = vmatprep.subr.bf16.mxu1 %v1939_v20 }
  0x75   : > { %1227 = vmatpush1.bf16.msra.mxu0 %v1934_v21  ;;  %1313 = vmatpush1.bf16.msra.mxu1 %v1937_v22  ;;  %v382_v21 = vld [vmem:[#allocation2 + $0x28] sm:$0xff]  ;;  %v384_v22 = vld [vmem:[#allocation2 + $0x38] sm:$0xff] }
  0x76   : > { %1228 = vmatprep.subr.bf16.mxu0 %v1942_v23  ;;  %1314 = vmatprep.subr.bf16.mxu1 %v1945_v24 }
  0x79   : > { %1229 = vmatpush1.bf16.msra.mxu0 %v1940_v25  ;;  %1315 = vmatpush1.bf16.msra.mxu1 %v1943_v26 }
  0x7a   : > { %1230 = vmatprep.subr.bf16.mxu0 %v1948_v27  ;;  %1316 = vmatprep.subr.bf16.mxu1 %v1951_v28 }
  0x7d   : > { %1231 = vmatpush1.bf16.msra.mxu0 %v1946_v29  ;;  %1317 = vmatpush1.bf16.msra.mxu1 %v1949_v30 }
  0x7e   : > { %1232 = vmatprep.subr.bf16.mxu0 %v1954_v31  ;;  %1318 = vmatprep.subr.bf16.mxu1 %v1957_v32 }
  0x81   : > { %1233 = vmatpush1.bf16.msra.mxu0 %v1952_v34  ;;  %1319 = vmatpush1.bf16.msra.mxu1 %v1955_v35  ;;  %v1380_v34 = vshrl.u32 (!%p1753_p11), %v1379_v33, 7  ;;  %v1407_v35 = vld [vmem:[%s2314_s3] sm:$0xff] (!%p1753_p11) }
  0x82   : > { %1234 = vmatprep.subr.bf16.mxu0 %v1960_v36  ;;  %1320 = vmatprep.subr.bf16.mxu1 %v1963_v37  ;;  %v1408_v36 = vld [vmem:[%s2314_s3 + $0x8] sm:$0xff] (!%p1753_p11) }
  0x85   : > { %1235 = vmatpush1.bf16.msra.mxu0 %v1958_v38  ;;  %1321 = vmatpush1.bf16.msra.mxu1 %v1961_v39  ;;  %v1377_v39 = vld [vmem:[%s2313_s2] sm:$0xf] (!%p1753_p11) }
  0x86   : > { %1236 = vmatprep.subr.bf16.mxu0 %v1966_v40  ;;  %1322 = vmatprep.subr.bf16.mxu1 %v1969_v41  ;;  %v1381_v40 = vsub.s32 (!%p1753_p11), 0, %v1380_v34  ;;  %v1385_v41 = vsub.s32 (!%p1753_p11), 1, %v1380_v34 }
  0x89   : > { %1237 = vmatpush1.bf16.msra.mxu0 %v1964_v42  ;;  %1323 = vmatpush1.bf16.msra.mxu1 %v1967_v43  ;;  %v1389_v42 = vsub.s32 (!%p1753_p11), 2, %v1380_v34  ;;  %v1393_v43 = vsub.s32 (!%p1753_p11), 3, %v1380_v34 }
  0x8a   : > { %1238 = vmatprep.subr.bf16.mxu0 %v1972_v44  ;;  %1324 = vmatprep.subr.bf16.mxu1 %v1975_v45  ;;  %v1409_v44 = vld [vmem:[%s2314_s3 + $0x10] sm:$0xff] (!%p1753_p11)  ;;  %v1410_v45 = vld [vmem:[%s2314_s3 + $0x18] sm:$0xff] (!%p1753_p11) }
  0x8d   : > { %1239 = vmatpush1.bf16.msra.mxu0 %v1970_v46  ;;  %1325 = vmatpush1.bf16.msra.mxu1 %v1973_v47  ;;  %v1411_v46 = vunpack.c.l.bf16 (!%p1753_p11), %v1407_v35  ;;  %v1412_v47 = vunpack.c.h.bf16 (!%p1753_p11), %v1407_v35 }
  0x8e   : > { %1240 = vmatprep.subr.bf16.mxu0 %v1978_v48  ;;  %1326 = vmatprep.subr.bf16.mxu1 %v1981_v49 }
  0x91   : > { %1241 = vmatpush1.bf16.msra.mxu0 %v1976_v50  ;;  %1327 = vmatpush1.bf16.msra.mxu1 %v1979_v51  ;;  %v1413_v50 = vunpack.c.l.bf16 (!%p1753_p11), %v1408_v36  ;;  %v1414_v51 = vunpack.c.h.bf16 (!%p1753_p11), %v1408_v36 }
  0x92   : > { %1242 = vmatprep.subr.bf16.mxu0 %v1984_v52  ;;  %1328 = vmatprep.subr.bf16.mxu1 %v1987_v53  ;;  %v1382_v53 = vrot.slane (!%p1753_p11), %v1377_v39, %v1381_v40 }
  0x95   : > { %1243 = vmatpush1.bf16.msra.mxu0 %v1982_v54  ;;  %1329 = vmatpush1.bf16.msra.mxu1 %v1985_v55  ;;  %v1386_v54 = vrot.slane (!%p1753_p11), %v1377_v39, %v1385_v41  ;;  %v1390_v55 = vrot.slane (!%p1753_p11), %v1377_v39, %v1389_v42 }
  0x96   : > { %1244 = vmatprep.subr.bf16.mxu0 %v1990_v56  ;;  %1330 = vmatprep.subr.bf16.mxu1 %v1993_v57  ;;  %v1394_v56 = vrot.slane (!%p1753_p11), %v1377_v39, %v1393_v43 }
  0x99   : > { %1245 = vmatpush1.bf16.msra.mxu0 %v1988_v58  ;;  %1331 = vmatpush1.bf16.msra.mxu1 %v1991_v59 }
  0x9a   : > { %1246 = vmatprep.subr.bf16.mxu0 %v1996_v60  ;;  %1332 = vmatprep.subr.bf16.mxu1 %v1999_v61  ;;  %v1415_v60 = vunpack.c.l.bf16 (!%p1753_p11), %v1409_v44  ;;  %v1416_v61 = vunpack.c.h.bf16 (!%p1753_p11), %v1409_v44 }
  0x9d   : > { %1247 = vmatpush1.bf16.msra.mxu0 %v1994_v62  ;;  %1333 = vmatpush1.bf16.msra.mxu1 %v1997_v63  ;;  %v1417_v62 = vunpack.c.l.bf16 (!%p1753_p11), %v1410_v45  ;;  %v1418_v63 = vunpack.c.h.bf16 (!%p1753_p11), %v1410_v45 }
  0x9e   : > { %1248 = vmatprep.subr.bf16.mxu0 %v2002_v0  ;;  %1334 = vmatprep.subr.bf16.mxu1 %v2005_v1 }
  0xa1   : > { %1249 = vmatpush1.bf16.msra.mxu0 %v2000_v2  ;;  %1335 = vmatpush1.bf16.msra.mxu1 %v2003_v3 }
  0xa2   : > { %1250 = vmatprep.subr.bf16.mxu0 %v2008_v4  ;;  %1336 = vmatprep.subr.bf16.mxu1 %v2011_v5 }
  0xa5   : > { %1251 = vmatpush1.bf16.msra.mxu0 %v2006_v6  ;;  %1337 = vmatpush1.bf16.msra.mxu1 %v2009_v7 }
  0xa8   : > { %1253 = vmatmul.mubr.bf16.vlgmr.msra.gmra.mrb[0].mxu0 %v2012_v8  ;;  %1339 = vmatmul.mubr.bf16.vlgmr.msra.gmra.mrb[0].mxu1 %v2012_v8 }
 0x17b   : > { %v1254_v13 = vpop.f32.mrb[0].mxu0  ;;  %v1340_v14 = vpop.f32.mrb[0].mxu1  ;;  %1368 = sbr.rel (%p1753_p11) target bundleno = 402 (0x192), region = 67 }
 0x17c   : > { %v1349_v17 = vadd.f32 %v1254_v13, %v377_v9  ;;  %v1351_v18 = vadd.f32 %v1340_v14, %v379_v10  ;;  %v1256_v19 = vpop.f32.mrb[1].mxu0  ;;  %v1342_v20 = vpop.f32.mrb[1].mxu1 }
 0x17d   : > { %v1350_v23 = vadd.f32 %v1256_v19, %v378_v11  ;;  %v1352_v24 = vadd.f32 %v1342_v20, %v380_v12  ;;  %v1258_v25 = vpop.f32.mrb[2].mxu0  ;;  %v1344_v26 = vpop.f32.mrb[2].mxu1 }
 0x17e   : > { %1357 = vst [vmem:[#allocation2] sm:$0xff] %v1349_v17  ;;  %1359 = vst [vmem:[#allocation2 + $0x10] sm:$0xff] %v1351_v18  ;;  %v1353_v27 = vadd.f32 %v1258_v25, %v381_v15  ;;  %v1355_v28 = vadd.f32 %v1344_v26, %v383_v16  ;;  %v1260_v29 = vpop.f32.mrb[3].mxu0  ;;  %v1346_v30 = vpop.f32.mrb[3].mxu1 }
 0x17f   : > { %1358 = vst [vmem:[#allocation2 + $0x8] sm:$0xff] %v1350_v23  ;;  %1360 = vst [vmem:[#allocation2 + $0x18] sm:$0xff] %v1352_v24  ;;  %v1354_v31 = vadd.f32 %v1260_v29, %v382_v21  ;;  %v1356_v32 = vadd.f32 %v1346_v30, %v384_v22 }
 0x180   : > { %1361 = vst [vmem:[#allocation2 + $0x20] sm:$0xff] %v1353_v27  ;;  %1363 = vst [vmem:[#allocation2 + $0x30] sm:$0xff] %v1355_v28 }
 0x181   : > { %1362 = vst [vmem:[#allocation2 + $0x28] sm:$0xff] %v1354_v31  ;;  %1364 = vst [vmem:[#allocation2 + $0x38] sm:$0xff] %v1356_v32 }
 0x185   : > { %v1369_v37 = vld [vmem:[#allocation2] sm:$0xff]  ;;  %v1371_v48 = vld [vmem:[#allocation2 + $0x10] sm:$0xff] }
 0x186   : > { %v1370_v38 = vld [vmem:[#allocation2 + $0x8] sm:$0xff]  ;;  %v1372_v49 = vld [vmem:[#allocation2 + $0x18] sm:$0xff]  ;;  %v1399_v0 = vadd.f32 %v1382_v53, %v1369_v37  ;;  %v1401_v2 = vadd.f32 %v1390_v55, %v1371_v48 }
 0x187   : > { %v1373_v52 = vld [vmem:[#allocation2 + $0x20] sm:$0xff]  ;;  %v1375_v58 = vld [vmem:[#allocation2 + $0x30] sm:$0xff]  ;;  %v1400_v1 = vadd.f32 %v1386_v54, %v1370_v38  ;;  %v1402_v3 = vadd.f32 %v1394_v56, %v1372_v49 }
 0x188   : > { %v1374_v57 = vld [vmem:[#allocation2 + $0x28] sm:$0xff]  ;;  %v1376_v59 = vld [vmem:[#allocation2 + $0x38] sm:$0xff]  ;;  %v1403_v4 = vadd.f32 %v1382_v53, %v1373_v52  ;;  %v1405_v6 = vadd.f32 %v1390_v55, %v1375_v58  ;;  %v1419_v8 = vadd.f32 %v1411_v46, %v1399_v0  ;;  %v1421_v10 = vadd.f32 %v1413_v50, %v1401_v2 }
 0x189   : > { %v1404_v5 = vadd.f32 %v1386_v54, %v1374_v57  ;;  %v1406_v7 = vadd.f32 %v1394_v56, %v1376_v59  ;;  %v1420_v9 = vadd.f32 %v1412_v47, %v1400_v1  ;;  %v1422_v11 = vadd.f32 %v1414_v51, %v1402_v3 }
 0x18a   : > { %v1423_v12 = vadd.f32 %v1415_v60, %v1403_v4  ;;  %v1425_v14 = vadd.f32 %v1417_v62, %v1405_v6  ;;  %v1427_v16 = vmax.f32 %v1419_v8, 0.0  ;;  %v1429_v18 = vmax.f32 %v1421_v10, 0.0 }
 0x18b   : > { %v1424_v13 = vadd.f32 %v1416_v61, %v1404_v5  ;;  %v1426_v15 = vadd.f32 %v1418_v63, %v1406_v7  ;;  %v1428_v17 = vmax.f32 %v1420_v9, 0.0  ;;  %v1430_v19 = vmax.f32 %v1422_v11, 0.0 }
 0x18c   : > { %v1431_v20 = vmax.f32 %v1423_v12, 0.0  ;;  %v1433_v22 = vmax.f32 %v1425_v14, 0.0 }
 0x18d   : > { %v1432_v21 = vmax.f32 %v1424_v13, 0.0  ;;  %v1434_v23 = vmax.f32 %v1426_v15, 0.0  ;;  %v1764_v24 = vpack.c.bf16 %v1428_v17, %v1427_v16  ;;  %v1765_v25 = vpack.c.bf16 %v1430_v19, %v1429_v18 }
 0x18f   : > { %v1766_v26 = vpack.c.bf16 %v1432_v21, %v1431_v20  ;;  %v1767_v27 = vpack.c.bf16 %v1434_v23, %v1433_v22  ;;  %1459 = vst [vmem:[%s2315_s4] sm:$0xff] %v1764_v24  ;;  %1460 = vst [vmem:[%s2315_s4 + $0x8] sm:$0xff] %v1765_v25 }
 0x191   : > { %1461 = vst [vmem:[%s2315_s4 + $0x10] sm:$0xff] %v1766_v26  ;;  %1462 = vst [vmem:[%s2315_s4 + $0x18] sm:$0xff] %v1767_v27 }
 0x192 PF: > { %s14_s19 = sadd.s32 1, %s2053_s19   ;;  %s2316_s15 = smov %s2041_s16 }
 0x193   : > { %p11_p12 = scmp.ge.s32.totalorder %s14_s19, 11   ;;  %s2317_s16 = smov %s2116_s23 }
 0x194   : > { %s2318_s17 = smov %s2049_s18  ;;  %s2319_s18 = smov %s2321_s20 }
 0x195   :  { %13 = sbr.rel (!%p11_p12) target bundleno = 3 (0x3), region = 111 }

// kernel: modified_res18_forward.39
= control target key start
LH: loop header
LB: loop body
LE: loop exit
PB: predicated region body
PF: predicated region fallthrough
CT: control target
= control target key end

     0   :  { %s1966_s12 = smov 0   ;;  %s1968_s13 = smov 0   ;;  %s2184_s0 = inlined_call_operand.vmem [shape: bf16[16,4608], index: 0, kind: input, shape index: {}]   ;;  %s2185_s1 = inlined_call_operand.vmem [shape: bf16[4608,512], index: 1, kind: input, shape index: {}]   ;;  %s2186_s2 = inlined_call_operand.vmem [shape: f32[1,512], index: 2, kind: input, shape index: {}]   ;;  %s2187_s3 = inlined_call_operand.vmem [shape: bf16[16,512], index: 3, kind: output, shape index: {}]  }
   0x1   :  { %s1970_s14 = smov 0   ;;  %s1972_s15 = smov 0  }
   0x2   :  { %s1974_s16 = smov 0  }
   0x3 LB: > { %s25_s17 = sadd.s32 1, %s1939_s15  ;;  %p48_p1 = scmp.ne.s32.totalorder %s1931_s13, %s1927_s12  ;;  %s1943_s16 = sphi %s1974_s16, %s13_s16   ;;  %s1939_s15 = sphi %s1972_s15, %s2191_s15   ;;  %s1935_s14 = sphi %s1970_s14, %s2190_s14   ;;  %s1931_s13 = sphi %s1968_s13, %s2189_s13   ;;  %s1927_s12 = sphi %s1966_s12, %s2188_s12  }
   0x4   : > { %p26_p0 = scmp.ge.s32.totalorder %s25_s17, 9  ;;  %p49_p2 = scmp.eq.s32.totalorder %s1943_s16, 0 }
   0x5   : > { %s41_s19 = sadd.s32 1, %s1931_s13  ;;  %p1501_p5 = scmp.ge.s32.totalorder %s1943_s16, 9 }
   0x6   : > { %s2193_s17 = smov (%p26_p0, %s25_s17), 0  ;;  %p50_p3 = por %p49_p2, %p48_p1 }
   0x7   : > { %s37_s18 = ssub.s32 %s1939_s15, %s2193_s17  ;;  %164 = sbr.rel (%p1501_p5) target bundleno = 21 (0x15), region = 20 }
   0x8   : > { %p39_p4 = scmp.eq.s32.totalorder %s37_s18, 0 }
   0xa   : > { %s2001_s20 = scalar_select %p39_p4, %s1931_s13, %s41_s19  }
   0xe   : > { %167 = sbr.rel (!%p50_p3) target bundleno = 21 (0x15), region = 24  ;;  %s169_s21 = sand.u32 (%p50_p3), 1, %s1931_s13  }
   0xf   : > { %s1652_s22 = sshll.u32 (%p50_p3), %s1939_s15, 4  ;;  %s1502_s23 = sshll.u32 (%p50_p3), %s169_s21, 5 }
  0x10   : > { %s177_s26 = scalar_lea.vmem (%p50_p3), %s2184_s0, %s1652_s22  ;;  %s171_s27 = scalar_lea.vmem (%p50_p3), [#allocation3], %s1502_s23 }
  0x11   : > { %v190_v0 = vld [vmem:[%s177_s26] sm:$0xff] (%p50_p3)  ;;  %v192_v1 = vld [vmem:[%s177_s26 + $0x8] sm:$0xff] (%p50_p3)  ;;  %v194_v2 = vld [vmem:[%s177_s26 + $0x90] sm:$0xff] (%p50_p3) }
  0x12   : > { %191 = vst [vmem:[%s171_s27] sm:$0xff] (%p50_p3), %v190_v0  ;;  %193 = vst [vmem:[%s171_s27 + $0x8] sm:$0xff] (%p50_p3), %v192_v1  ;;  %v196_v3 = vld [vmem:[%s177_s26 + $0x98] sm:$0xff] (%p50_p3) }
  0x13   : > { %195 = vst [vmem:[%s171_s27 + $0x10] sm:$0xff] (%p50_p3), %v194_v2  ;;  %197 = vst [vmem:[%s171_s27 + $0x18] sm:$0xff] (%p50_p3), %v196_v3 }
  0x15 PF: > { %p1505_p6 = scmp.ge.s32.totalorder %s1943_s16, 1  ;;  %p217_p7 = scmp.lt.s32.totalorder %s1943_s16, 10 }
  0x17   : > { %p218_p8 = pnand %p1505_p6, %p217_p7 }
  0x18   : > { %s224_s28 = sand.u32 (!%p218_p8), 1, %s1927_s12   ;;  %s1507_s29 = sshll.u32 (!%p218_p8), %s1935_s14, 6 }
  0x19   : > { %221 = sbr.rel (%p218_p8) target bundleno = 400 (0x190), region = 51  ;;  %s1506_s30 = sshll.u32 (!%p218_p8), %s224_s28, 5 }
  0x1a   : > { %p270_p9 = scmp.lt.s32.totalorder (!%p218_p8), %s1507_s29, 575  ;;  %s2018_s8 = scalar_lea.vmem (!%p218_p8), [#allocation3], %s1506_s30 }
  0x1b   : > { %p1510_p10 = scmp.ne.s32.totalorder (!%p218_p8), %s1935_s14, 0 }
  0x20   : > { %s2195_s29 = smov (!%p270_p9, %s1507_s29), 575  ;;  %300 = sbr.rel (%p1510_p10) target bundleno = 39 (0x27), region = 59 }
  0x21   : > { %s1653_s4 = sshll.u32 %s2195_s29, 4  ;;  %v1945_v4 = vmov (!%p1510_p10), 0.0  }
  0x22   : > { %s2016_s7 = scalar_lea.vmem %s2185_s1, %s1653_s4  ;;  %301 = vst [vmem:[#allocation2] sm:$0xff] (!%p1510_p10), %v1945_v4  ;;  %302 = vst [vmem:[#allocation2 + $0x8] sm:$0xff] (!%p1510_p10), %v1945_v4 }
  0x23   : > { %303 = vst [vmem:[#allocation2 + $0x10] sm:$0xff] (!%p1510_p10), %v1945_v4  ;;  %304 = vst [vmem:[#allocation2 + $0x18] sm:$0xff] (!%p1510_p10), %v1945_v4 }
  0x24   : > { %305 = vst [vmem:[#allocation2 + $0x20] sm:$0xff] (!%p1510_p10), %v1945_v4  ;;  %306 = vst [vmem:[#allocation2 + $0x28] sm:$0xff] (!%p1510_p10), %v1945_v4 }
  0x25   : > { %307 = vst [vmem:[#allocation2 + $0x30] sm:$0xff] (!%p1510_p10), %v1945_v4  ;;  %308 = vst [vmem:[#allocation2 + $0x38] sm:$0xff] (!%p1510_p10), %v1945_v4 }
  0x27 PF: > { %v1707_v5 = vld [vmem:[%s2016_s7 + $0x4] ss:$16 sps:$4 sm:$0xff]   ;;  %v1709_v6 = vld [vmem:[%s2016_s7 + $0xc] ss:$16 sps:$4 sm:$0xff]   ;;  %v1711_v7 = vld [vmem:[%s2016_s7] ss:$16 sps:$4 sm:$0xff]  }
  0x28   : > { %1109 = vmatprep.subr.bf16.mxu0 %v1707_v5  ;;  %v1712_v8 = vld [vmem:[%s2016_s7 + $0x8] ss:$16 sps:$4 sm:$0xff]   ;;  %1195 = vmatprep.subr.bf16.mxu1 %v1709_v6  ;;  %v1713_v9 = vld [vmem:[%s2016_s7 + $0x24] ss:$16 sps:$4 sm:$0xff]   ;;  %v1715_v10 = vld [vmem:[%s2016_s7 + $0x2c] ss:$16 sps:$4 sm:$0xff]  }
  0x29   : > { %1110 = vmatpush1.bf16.msra.mxu0 %v1711_v7  ;;  %1196 = vmatpush1.bf16.msra.mxu1 %v1712_v8  ;;  %v1717_v11 = vld [vmem:[%s2016_s7 + $0x20] ss:$16 sps:$4 sm:$0xff]   ;;  %v1718_v12 = vld [vmem:[%s2016_s7 + $0x28] ss:$16 sps:$4 sm:$0xff]   ;;  %v1719_v13 = vld [vmem:[%s2016_s7 + $0x44] ss:$16 sps:$4 sm:$0xff]  }
  0x2a   : > { %1111 = vmatprep.subr.bf16.mxu0 %v1713_v9  ;;  %1197 = vmatprep.subr.bf16.mxu1 %v1715_v10  ;;  %v1721_v14 = vld [vmem:[%s2016_s7 + $0x4c] ss:$16 sps:$4 sm:$0xff]   ;;  %v1723_v15 = vld [vmem:[%s2016_s7 + $0x40] ss:$16 sps:$4 sm:$0xff]   ;;  %v1724_v16 = vld [vmem:[%s2016_s7 + $0x48] ss:$16 sps:$4 sm:$0xff]  }
  0x2b   : > { %v1725_v17 = vld [vmem:[%s2016_s7 + $0x64] ss:$16 sps:$4 sm:$0xff]   ;;  %v1727_v18 = vld [vmem:[%s2016_s7 + $0x6c] ss:$16 sps:$4 sm:$0xff]   ;;  %v1729_v19 = vld [vmem:[%s2016_s7 + $0x60] ss:$16 sps:$4 sm:$0xff]  }
  0x2c   : > { %v1730_v20 = vld [vmem:[%s2016_s7 + $0x68] ss:$16 sps:$4 sm:$0xff]   ;;  %v1731_v21 = vld [vmem:[%s2016_s7 + $0x84] ss:$16 sps:$4 sm:$0xff]   ;;  %v1733_v22 = vld [vmem:[%s2016_s7 + $0x8c] ss:$16 sps:$4 sm:$0xff]  }
  0x2d   : > { %1112 = vmatpush1.bf16.msra.mxu0 %v1717_v11  ;;  %1198 = vmatpush1.bf16.msra.mxu1 %v1718_v12  ;;  %v1735_v23 = vld [vmem:[%s2016_s7 + $0x80] ss:$16 sps:$4 sm:$0xff]   ;;  %v1736_v24 = vld [vmem:[%s2016_s7 + $0x88] ss:$16 sps:$4 sm:$0xff]   ;;  %v1737_v25 = vld [vmem:[%s2016_s7 + $0xa4] ss:$16 sps:$4 sm:$0xff]  }
  0x2e   : > { %1113 = vmatprep.subr.bf16.mxu0 %v1719_v13  ;;  %1199 = vmatprep.subr.bf16.mxu1 %v1721_v14  ;;  %v1739_v26 = vld [vmem:[%s2016_s7 + $0xac] ss:$16 sps:$4 sm:$0xff]   ;;  %v1741_v27 = vld [vmem:[%s2016_s7 + $0xa0] ss:$16 sps:$4 sm:$0xff]   ;;  %v1742_v28 = vld [vmem:[%s2016_s7 + $0xa8] ss:$16 sps:$4 sm:$0xff]  }
  0x2f   : > { %v1743_v29 = vld [vmem:[%s2016_s7 + $0xc4] ss:$16 sps:$4 sm:$0xff]   ;;  %v1745_v30 = vld [vmem:[%s2016_s7 + $0xcc] ss:$16 sps:$4 sm:$0xff]   ;;  %v1747_v31 = vld [vmem:[%s2016_s7 + $0xc0] ss:$16 sps:$4 sm:$0xff]  }
  0x30   : > { %v1748_v32 = vld [vmem:[%s2016_s7 + $0xc8] ss:$16 sps:$4 sm:$0xff]   ;;  %v1749_v33 = vld [vmem:[%s2016_s7 + $0xe4] ss:$16 sps:$4 sm:$0xff]   ;;  %v1751_v34 = vld [vmem:[%s2016_s7 + $0xec] ss:$16 sps:$4 sm:$0xff]  }
  0x31   : > { %1114 = vmatpush1.bf16.msra.mxu0 %v1723_v15  ;;  %1200 = vmatpush1.bf16.msra.mxu1 %v1724_v16  ;;  %v1753_v35 = vld [vmem:[%s2016_s7 + $0xe0] ss:$16 sps:$4 sm:$0xff]   ;;  %v1754_v36 = vld [vmem:[%s2016_s7 + $0xe8] ss:$16 sps:$4 sm:$0xff]   ;;  %v1755_v37 = vld [vmem:[%s2016_s7 + $0x104] ss:$16 sps:$4 sm:$0xff]  }
  0x32   : > { %1115 = vmatprep.subr.bf16.mxu0 %v1725_v17  ;;  %1201 = vmatprep.subr.bf16.mxu1 %v1727_v18  ;;  %v1757_v38 = vld [vmem:[%s2016_s7 + $0x10c] ss:$16 sps:$4 sm:$0xff]   ;;  %v1759_v39 = vld [vmem:[%s2016_s7 + $0x100] ss:$16 sps:$4 sm:$0xff]   ;;  %v1760_v40 = vld [vmem:[%s2016_s7 + $0x108] ss:$16 sps:$4 sm:$0xff]  }
  0x33   : > { %v1761_v41 = vld [vmem:[%s2016_s7 + $0x124] ss:$16 sps:$4 sm:$0xff]   ;;  %v1763_v42 = vld [vmem:[%s2016_s7 + $0x12c] ss:$16 sps:$4 sm:$0xff]   ;;  %v1765_v43 = vld [vmem:[%s2016_s7 + $0x120] ss:$16 sps:$4 sm:$0xff]  }
  0x34   : > { %v1766_v44 = vld [vmem:[%s2016_s7 + $0x128] ss:$16 sps:$4 sm:$0xff]   ;;  %v1767_v45 = vld [vmem:[%s2016_s7 + $0x144] ss:$16 sps:$4 sm:$0xff]   ;;  %v1769_v46 = vld [vmem:[%s2016_s7 + $0x14c] ss:$16 sps:$4 sm:$0xff]  }
  0x35   : > { %1116 = vmatpush1.bf16.msra.mxu0 %v1729_v19  ;;  %1202 = vmatpush1.bf16.msra.mxu1 %v1730_v20  ;;  %v1771_v47 = vld [vmem:[%s2016_s7 + $0x140] ss:$16 sps:$4 sm:$0xff]   ;;  %v1772_v48 = vld [vmem:[%s2016_s7 + $0x148] ss:$16 sps:$4 sm:$0xff]   ;;  %v1773_v49 = vld [vmem:[%s2016_s7 + $0x164] ss:$16 sps:$4 sm:$0xff]  }
  0x36   : > { %1117 = vmatprep.subr.bf16.mxu0 %v1731_v21  ;;  %1203 = vmatprep.subr.bf16.mxu1 %v1733_v22  ;;  %v1775_v50 = vld [vmem:[%s2016_s7 + $0x16c] ss:$16 sps:$4 sm:$0xff]   ;;  %v1777_v51 = vld [vmem:[%s2016_s7 + $0x160] ss:$16 sps:$4 sm:$0xff]   ;;  %v1778_v52 = vld [vmem:[%s2016_s7 + $0x168] ss:$16 sps:$4 sm:$0xff]  }
  0x37   : > { %v1805_v53 = vld [vmem:[%s2018_s8 + $0x4] ss:$16 sps:$4 sm:$0xff]   ;;  %v1781_v55 = vld [vmem:[%s2016_s7 + $0x18c] ss:$16 sps:$4 sm:$0xff]   ;;  %v1783_v56 = vld [vmem:[%s2016_s7 + $0x180] ss:$16 sps:$4 sm:$0xff]  }
  0x38   : > { %v1779_v54 = vld [vmem:[%s2016_s7 + $0x184] ss:$16 sps:$4 sm:$0xff]   ;;  %1141 = vmatprep.mubr.bf16.mxu0 %v1805_v53  ;;  %1227 = vmatprep.mubr.bf16.mxu1 %v1805_v53  ;;  %v1784_v57 = vld [vmem:[%s2016_s7 + $0x188] ss:$16 sps:$4 sm:$0xff]   ;;  %v1787_v59 = vld [vmem:[%s2016_s7 + $0x1ac] ss:$16 sps:$4 sm:$0xff]  }
  0x39   : > { %1118 = vmatpush1.bf16.msra.mxu0 %v1735_v23  ;;  %1204 = vmatpush1.bf16.msra.mxu1 %v1736_v24  ;;  %v1785_v58 = vld [vmem:[%s2016_s7 + $0x1a4] ss:$16 sps:$4 sm:$0xff]   ;;  %v1789_v60 = vld [vmem:[%s2016_s7 + $0x1a0] ss:$16 sps:$4 sm:$0xff]   ;;  %v1790_v61 = vld [vmem:[%s2016_s7 + $0x1a8] ss:$16 sps:$4 sm:$0xff]  }
  0x3a   : > { %1119 = vmatprep.subr.bf16.mxu0 %v1737_v25  ;;  %1205 = vmatprep.subr.bf16.mxu1 %v1739_v26  ;;  %v1791_v62 = vld [vmem:[%s2016_s7 + $0x1c4] ss:$16 sps:$4 sm:$0xff]   ;;  %v1793_v63 = vld [vmem:[%s2016_s7 + $0x1cc] ss:$16 sps:$4 sm:$0xff]   ;;  %v1795_v0 = vld [vmem:[%s2016_s7 + $0x1c0] ss:$16 sps:$4 sm:$0xff]  }
  0x3b   : > { %v1796_v1 = vld [vmem:[%s2016_s7 + $0x1c8] ss:$16 sps:$4 sm:$0xff]   ;;  %v1797_v2 = vld [vmem:[%s2016_s7 + $0x1e4] ss:$16 sps:$4 sm:$0xff]   ;;  %v1799_v3 = vld [vmem:[%s2016_s7 + $0x1ec] ss:$16 sps:$4 sm:$0xff]  }
  0x3c   : > { %v1801_v4 = vld [vmem:[%s2016_s7 + $0x1e0] ss:$16 sps:$4 sm:$0xff]   ;;  %v1802_v5 = vld [vmem:[%s2016_s7 + $0x1e8] ss:$16 sps:$4 sm:$0xff]   ;;  %v1808_v6 = vld [vmem:[%s2016_s7 + $0x204] ss:$16 sps:$4 sm:$0xff]  }
  0x3d   : > { %1120 = vmatpush1.bf16.msra.mxu0 %v1741_v27  ;;  %1206 = vmatpush1.bf16.msra.mxu1 %v1742_v28  ;;  %v1811_v7 = vld [vmem:[%s2016_s7 + $0x20c] ss:$16 sps:$4 sm:$0xff]   ;;  %v1803_v8 = vld [vmem:[%s2018_s8] ss:$16 sps:$4 sm:$0xff]   ;;  %v1809_v10 = vld [vmem:[%s2016_s7 + $0x208] ss:$16 sps:$4 sm:$0xff]  }
  0x3e   : > { %1121 = vmatprep.subr.bf16.mxu0 %v1743_v29  ;;  %1207 = vmatprep.subr.bf16.mxu1 %v1745_v30  ;;  %v1806_v9 = vld [vmem:[%s2016_s7 + $0x200] ss:$16 sps:$4 sm:$0xff]   ;;  %v1814_v11 = vld [vmem:[%s2016_s7 + $0x224] ss:$16 sps:$4 sm:$0xff]   ;;  %v1817_v12 = vld [vmem:[%s2016_s7 + $0x22c] ss:$16 sps:$4 sm:$0xff]  }
  0x3f   : > { %v1812_v13 = vld [vmem:[%s2016_s7 + $0x220] ss:$16 sps:$4 sm:$0xff]   ;;  %v1815_v14 = vld [vmem:[%s2016_s7 + $0x228] ss:$16 sps:$4 sm:$0xff]   ;;  %v1820_v15 = vld [vmem:[%s2016_s7 + $0x244] ss:$16 sps:$4 sm:$0xff]  }
  0x40   : > { %v1823_v16 = vld [vmem:[%s2016_s7 + $0x24c] ss:$16 sps:$4 sm:$0xff]   ;;  %v1818_v17 = vld [vmem:[%s2016_s7 + $0x240] ss:$16 sps:$4 sm:$0xff]   ;;  %v1821_v18 = vld [vmem:[%s2016_s7 + $0x248] ss:$16 sps:$4 sm:$0xff]  }
  0x41   : > { %1122 = vmatpush1.bf16.msra.mxu0 %v1747_v31  ;;  %1208 = vmatpush1.bf16.msra.mxu1 %v1748_v32  ;;  %v1826_v19 = vld [vmem:[%s2016_s7 + $0x264] ss:$16 sps:$4 sm:$0xff]   ;;  %v1829_v20 = vld [vmem:[%s2016_s7 + $0x26c] ss:$16 sps:$4 sm:$0xff]   ;;  %v1824_v21 = vld [vmem:[%s2016_s7 + $0x260] ss:$16 sps:$4 sm:$0xff]  }
  0x42   : > { %1123 = vmatprep.subr.bf16.mxu0 %v1749_v33  ;;  %1209 = vmatprep.subr.bf16.mxu1 %v1751_v34  ;;  %v1827_v22 = vld [vmem:[%s2016_s7 + $0x268] ss:$16 sps:$4 sm:$0xff]   ;;  %v1832_v23 = vld [vmem:[%s2016_s7 + $0x284] ss:$16 sps:$4 sm:$0xff]   ;;  %v1835_v24 = vld [vmem:[%s2016_s7 + $0x28c] ss:$16 sps:$4 sm:$0xff]  }
  0x43   : > { %v1830_v25 = vld [vmem:[%s2016_s7 + $0x280] ss:$16 sps:$4 sm:$0xff]   ;;  %v1833_v26 = vld [vmem:[%s2016_s7 + $0x288] ss:$16 sps:$4 sm:$0xff]   ;;  %v1838_v27 = vld [vmem:[%s2016_s7 + $0x2a4] ss:$16 sps:$4 sm:$0xff]  }
  0x44   : > { %v1841_v28 = vld [vmem:[%s2016_s7 + $0x2ac] ss:$16 sps:$4 sm:$0xff]   ;;  %v1836_v29 = vld [vmem:[%s2016_s7 + $0x2a0] ss:$16 sps:$4 sm:$0xff]   ;;  %v1839_v30 = vld [vmem:[%s2016_s7 + $0x2a8] ss:$16 sps:$4 sm:$0xff]  }
  0x45   : > { %1124 = vmatpush1.bf16.msra.mxu0 %v1753_v35  ;;  %1210 = vmatpush1.bf16.msra.mxu1 %v1754_v36  ;;  %v1844_v31 = vld [vmem:[%s2016_s7 + $0x2c4] ss:$16 sps:$4 sm:$0xff]   ;;  %v1847_v32 = vld [vmem:[%s2016_s7 + $0x2cc] ss:$16 sps:$4 sm:$0xff]   ;;  %v1842_v34 = vld [vmem:[%s2016_s7 + $0x2c0] ss:$16 sps:$4 sm:$0xff]  }
  0x46   : > { %1125 = vmatprep.subr.bf16.mxu0 %v1755_v37  ;;  %1211 = vmatprep.subr.bf16.mxu1 %v1757_v38  ;;  %v1904_v33 = vld [vmem:[%s2018_s8 + $0xc] ss:$16 sps:$4 sm:$0xff]   ;;  %v1845_v35 = vld [vmem:[%s2016_s7 + $0x2c8] ss:$16 sps:$4 sm:$0xff]   ;;  %v1850_v36 = vld [vmem:[%s2016_s7 + $0x2e4] ss:$16 sps:$4 sm:$0xff]  }
  0x47   : > { %v1853_v37 = vld [vmem:[%s2016_s7 + $0x2ec] ss:$16 sps:$4 sm:$0xff]   ;;  %v1848_v38 = vld [vmem:[%s2016_s7 + $0x2e0] ss:$16 sps:$4 sm:$0xff]   ;;  %p1643_p11 = scmp.ne.s32.totalorder %s1935_s14, 8 }
  0x48   : > { %v1877_v53 = vld [vmem:[%s2016_s7 + $0x36c] ss:$16 sps:$4 sm:$0xff]  }
  0x49   : > { %1126 = vmatpush1.bf16.msra.mxu0 %v1759_v39  ;;  %1212 = vmatpush1.bf16.msra.mxu1 %v1760_v40  ;;  %v1851_v39 = vld [vmem:[%s2016_s7 + $0x2e8] ss:$16 sps:$4 sm:$0xff]   ;;  %v1856_v40 = vld [vmem:[%s2016_s7 + $0x304] ss:$16 sps:$4 sm:$0xff]  }
  0x4a   : > { %1127 = vmatprep.subr.bf16.mxu0 %v1761_v41  ;;  %1213 = vmatprep.subr.bf16.mxu1 %v1763_v42  ;;  %v1859_v41 = vld [vmem:[%s2016_s7 + $0x30c] ss:$16 sps:$4 sm:$0xff]   ;;  %v1854_v42 = vld [vmem:[%s2016_s7 + $0x300] ss:$16 sps:$4 sm:$0xff]  }
  0x4d   : > { %1128 = vmatpush1.bf16.msra.mxu0 %v1765_v43  ;;  %1214 = vmatpush1.bf16.msra.mxu1 %v1766_v44  ;;  %v1857_v43 = vld [vmem:[%s2016_s7 + $0x308] ss:$16 sps:$4 sm:$0xff]   ;;  %v1862_v44 = vld [vmem:[%s2016_s7 + $0x324] ss:$16 sps:$4 sm:$0xff]  }
  0x4e   : > { %1129 = vmatprep.subr.bf16.mxu0 %v1767_v45  ;;  %1215 = vmatprep.subr.bf16.mxu1 %v1769_v46  ;;  %v1865_v45 = vld [vmem:[%s2016_s7 + $0x32c] ss:$16 sps:$4 sm:$0xff]   ;;  %v1860_v46 = vld [vmem:[%s2016_s7 + $0x320] ss:$16 sps:$4 sm:$0xff]  }
  0x51   : > { %1130 = vmatpush1.bf16.msra.mxu0 %v1771_v47  ;;  %1216 = vmatpush1.bf16.msra.mxu1 %v1772_v48  ;;  %v1863_v47 = vld [vmem:[%s2016_s7 + $0x328] ss:$16 sps:$4 sm:$0xff]   ;;  %v1868_v48 = vld [vmem:[%s2016_s7 + $0x344] ss:$16 sps:$4 sm:$0xff]  }
  0x52   : > { %1131 = vmatprep.subr.bf16.mxu0 %v1773_v49  ;;  %1217 = vmatprep.subr.bf16.mxu1 %v1775_v50  ;;  %v1871_v49 = vld [vmem:[%s2016_s7 + $0x34c] ss:$16 sps:$4 sm:$0xff]   ;;  %v1866_v50 = vld [vmem:[%s2016_s7 + $0x340] ss:$16 sps:$4 sm:$0xff]  }
  0x55   : > { %1132 = vmatpush1.bf16.msra.mxu0 %v1777_v51  ;;  %1218 = vmatpush1.bf16.msra.mxu1 %v1778_v52  ;;  %v1869_v51 = vld [vmem:[%s2016_s7 + $0x348] ss:$16 sps:$4 sm:$0xff]   ;;  %v1874_v52 = vld [vmem:[%s2016_s7 + $0x364] ss:$16 sps:$4 sm:$0xff]  }
  0x56   : > { %1133 = vmatprep.subr.bf16.mxu0 %v1779_v54  ;;  %1219 = vmatprep.subr.bf16.mxu1 %v1781_v55  ;;  %v1872_v54 = vld [vmem:[%s2016_s7 + $0x360] ss:$16 sps:$4 sm:$0xff]   ;;  %v1875_v55 = vld [vmem:[%s2016_s7 + $0x368] ss:$16 sps:$4 sm:$0xff]  }
  0x59   : > { %1134 = vmatpush1.bf16.msra.mxu0 %v1783_v56  ;;  %1220 = vmatpush1.bf16.msra.mxu1 %v1784_v57  ;;  %v1880_v56 = vld [vmem:[%s2016_s7 + $0x384] ss:$16 sps:$4 sm:$0xff]   ;;  %v1883_v57 = vld [vmem:[%s2016_s7 + $0x38c] ss:$16 sps:$4 sm:$0xff]  }
  0x5a   : > { %1135 = vmatprep.subr.bf16.mxu0 %v1785_v58  ;;  %1221 = vmatprep.subr.bf16.mxu1 %v1787_v59  ;;  %v1878_v58 = vld [vmem:[%s2016_s7 + $0x380] ss:$16 sps:$4 sm:$0xff]   ;;  %v1881_v59 = vld [vmem:[%s2016_s7 + $0x388] ss:$16 sps:$4 sm:$0xff]  }
  0x5d   : > { %1136 = vmatpush1.bf16.msra.mxu0 %v1789_v60  ;;  %1222 = vmatpush1.bf16.msra.mxu1 %v1790_v61  ;;  %v1886_v60 = vld [vmem:[%s2016_s7 + $0x3a4] ss:$16 sps:$4 sm:$0xff]   ;;  %v1889_v61 = vld [vmem:[%s2016_s7 + $0x3ac] ss:$16 sps:$4 sm:$0xff]  }
  0x5e   : > { %1137 = vmatprep.subr.bf16.mxu0 %v1791_v62  ;;  %1223 = vmatprep.subr.bf16.mxu1 %v1793_v63  ;;  %v1884_v62 = vld [vmem:[%s2016_s7 + $0x3a0] ss:$16 sps:$4 sm:$0xff]   ;;  %v1887_v63 = vld [vmem:[%s2016_s7 + $0x3a8] ss:$16 sps:$4 sm:$0xff]  }
  0x61   : > { %1138 = vmatpush1.bf16.msra.mxu0 %v1795_v0  ;;  %1224 = vmatpush1.bf16.msra.mxu1 %v1796_v1  ;;  %v1892_v0 = vld [vmem:[%s2016_s7 + $0x3c4] ss:$16 sps:$4 sm:$0xff]   ;;  %v1895_v1 = vld [vmem:[%s2016_s7 + $0x3cc] ss:$16 sps:$4 sm:$0xff]  }
  0x62   : > { %1139 = vmatprep.subr.bf16.mxu0 %v1797_v2  ;;  %1225 = vmatprep.subr.bf16.mxu1 %v1799_v3  ;;  %v1890_v2 = vld [vmem:[%s2016_s7 + $0x3c0] ss:$16 sps:$4 sm:$0xff]   ;;  %v1893_v3 = vld [vmem:[%s2016_s7 + $0x3c8] ss:$16 sps:$4 sm:$0xff]  }
  0x65   : > { %1140 = vmatpush1.bf16.msra.mxu0 %v1801_v4  ;;  %1226 = vmatpush1.bf16.msra.mxu1 %v1802_v5  ;;  %v1898_v4 = vld [vmem:[%s2016_s7 + $0x3e4] ss:$16 sps:$4 sm:$0xff]   ;;  %v1901_v5 = vld [vmem:[%s2016_s7 + $0x3ec] ss:$16 sps:$4 sm:$0xff]  }
  0x66   : > { %1152 = vmatprep.subr.bf16.mxu0 %v1808_v6  ;;  %1238 = vmatprep.subr.bf16.mxu1 %v1811_v7  ;;  %v1896_v6 = vld [vmem:[%s2016_s7 + $0x3e0] ss:$16 sps:$4 sm:$0xff]   ;;  %v1899_v7 = vld [vmem:[%s2016_s7 + $0x3e8] ss:$16 sps:$4 sm:$0xff]  }
  0x68   : > { %1142 = vmatmul.mubr.bf16.vlgmr.msra.gmra.mrb[0].mxu0 %v1803_v8  ;;  %1228 = vmatmul.mubr.bf16.vlgmr.msra.gmra.mrb[0].mxu1 %v1803_v8  ;;  %v1902_v8 = vld [vmem:[%s2018_s8 + $0x8] ss:$16 sps:$4 sm:$0xff]  }
  0x69   : > { %1153 = vmatpush1.bf16.msra.mxu0 %v1806_v9  ;;  %1239 = vmatpush1.bf16.msra.mxu1 %v1809_v10  ;;  %v309_v9 = vld [vmem:[#allocation2] sm:$0xff]  ;;  %v311_v10 = vld [vmem:[#allocation2 + $0x10] sm:$0xff] }
  0x6a   : > { %1154 = vmatprep.subr.bf16.mxu0 %v1814_v11  ;;  %1240 = vmatprep.subr.bf16.mxu1 %v1817_v12  ;;  %v310_v11 = vld [vmem:[#allocation2 + $0x8] sm:$0xff]  ;;  %v312_v12 = vld [vmem:[#allocation2 + $0x18] sm:$0xff] }
  0x6b   : > { %1184 = vmatprep.mubr.bf16.mxu0 %v1904_v33  ;;  %1270 = vmatprep.mubr.bf16.mxu1 %v1904_v33  ;;  %v1311_v33 = vlaneseq (!%p1643_p11) }
  0x6d   : > { %1155 = vmatpush1.bf16.msra.mxu0 %v1812_v13  ;;  %1241 = vmatpush1.bf16.msra.mxu1 %v1815_v14 }
  0x6e   : > { %1156 = vmatprep.subr.bf16.mxu0 %v1820_v15  ;;  %1242 = vmatprep.subr.bf16.mxu1 %v1823_v16  ;;  %v313_v15 = vld [vmem:[#allocation2 + $0x20] sm:$0xff]  ;;  %v315_v16 = vld [vmem:[#allocation2 + $0x30] sm:$0xff] }
  0x71   : > { %1157 = vmatpush1.bf16.msra.mxu0 %v1818_v17  ;;  %1243 = vmatpush1.bf16.msra.mxu1 %v1821_v18 }
  0x72   : > { %1158 = vmatprep.subr.bf16.mxu0 %v1826_v19  ;;  %1244 = vmatprep.subr.bf16.mxu1 %v1829_v20 }
  0x75   : > { %1159 = vmatpush1.bf16.msra.mxu0 %v1824_v21  ;;  %1245 = vmatpush1.bf16.msra.mxu1 %v1827_v22  ;;  %v314_v21 = vld [vmem:[#allocation2 + $0x28] sm:$0xff]  ;;  %v316_v22 = vld [vmem:[#allocation2 + $0x38] sm:$0xff] }
  0x76   : > { %1160 = vmatprep.subr.bf16.mxu0 %v1832_v23  ;;  %1246 = vmatprep.subr.bf16.mxu1 %v1835_v24 }
  0x79   : > { %1161 = vmatpush1.bf16.msra.mxu0 %v1830_v25  ;;  %1247 = vmatpush1.bf16.msra.mxu1 %v1833_v26 }
  0x7a   : > { %1162 = vmatprep.subr.bf16.mxu0 %v1838_v27  ;;  %1248 = vmatprep.subr.bf16.mxu1 %v1841_v28 }
  0x7d   : > { %1163 = vmatpush1.bf16.msra.mxu0 %v1836_v29  ;;  %1249 = vmatpush1.bf16.msra.mxu1 %v1839_v30 }
  0x7e   : > { %1164 = vmatprep.subr.bf16.mxu0 %v1844_v31  ;;  %1250 = vmatprep.subr.bf16.mxu1 %v1847_v32 }
  0x81   : > { %1165 = vmatpush1.bf16.msra.mxu0 %v1842_v34  ;;  %1251 = vmatpush1.bf16.msra.mxu1 %v1845_v35  ;;  %v1312_v34 = vshrl.u32 (!%p1643_p11), %v1311_v33, 7  ;;  %v1309_v35 = vld [vmem:[%s2186_s2] sm:$0xf] (!%p1643_p11) }
  0x82   : > { %1166 = vmatprep.subr.bf16.mxu0 %v1850_v36  ;;  %1252 = vmatprep.subr.bf16.mxu1 %v1853_v37 }
  0x85   : > { %1167 = vmatpush1.bf16.msra.mxu0 %v1848_v38  ;;  %1253 = vmatpush1.bf16.msra.mxu1 %v1851_v39  ;;  %v1313_v38 = vsub.s32 (!%p1643_p11), 0, %v1312_v34  ;;  %v1317_v39 = vsub.s32 (!%p1643_p11), 1, %v1312_v34 }
  0x86   : > { %1168 = vmatprep.subr.bf16.mxu0 %v1856_v40  ;;  %1254 = vmatprep.subr.bf16.mxu1 %v1859_v41  ;;  %v1321_v40 = vsub.s32 (!%p1643_p11), 2, %v1312_v34  ;;  %v1325_v41 = vsub.s32 (!%p1643_p11), 3, %v1312_v34 }
  0x89   : > { %1169 = vmatpush1.bf16.msra.mxu0 %v1854_v42  ;;  %1255 = vmatpush1.bf16.msra.mxu1 %v1857_v43 }
  0x8a   : > { %1170 = vmatprep.subr.bf16.mxu0 %v1862_v44  ;;  %1256 = vmatprep.subr.bf16.mxu1 %v1865_v45  ;;  %v1314_v45 = vrot.slane (!%p1643_p11), %v1309_v35, %v1313_v38 }
  0x8d   : > { %1171 = vmatpush1.bf16.msra.mxu0 %v1860_v46  ;;  %1257 = vmatpush1.bf16.msra.mxu1 %v1863_v47  ;;  %v1318_v46 = vrot.slane (!%p1643_p11), %v1309_v35, %v1317_v39  ;;  %v1322_v47 = vrot.slane (!%p1643_p11), %v1309_v35, %v1321_v40 }
  0x8e   : > { %1172 = vmatprep.subr.bf16.mxu0 %v1868_v48  ;;  %1258 = vmatprep.subr.bf16.mxu1 %v1871_v49  ;;  %v1326_v48 = vrot.slane (!%p1643_p11), %v1309_v35, %v1325_v41 }
  0x91   : > { %1173 = vmatpush1.bf16.msra.mxu0 %v1866_v50  ;;  %1259 = vmatpush1.bf16.msra.mxu1 %v1869_v51 }
  0x92   : > { %1174 = vmatprep.subr.bf16.mxu0 %v1874_v52  ;;  %1260 = vmatprep.subr.bf16.mxu1 %v1877_v53 }
  0x95   : > { %1175 = vmatpush1.bf16.msra.mxu0 %v1872_v54  ;;  %1261 = vmatpush1.bf16.msra.mxu1 %v1875_v55 }
  0x96   : > { %1176 = vmatprep.subr.bf16.mxu0 %v1880_v56  ;;  %1262 = vmatprep.subr.bf16.mxu1 %v1883_v57 }
  0x99   : > { %1177 = vmatpush1.bf16.msra.mxu0 %v1878_v58  ;;  %1263 = vmatpush1.bf16.msra.mxu1 %v1881_v59 }
  0x9a   : > { %1178 = vmatprep.subr.bf16.mxu0 %v1886_v60  ;;  %1264 = vmatprep.subr.bf16.mxu1 %v1889_v61 }
  0x9d   : > { %1179 = vmatpush1.bf16.msra.mxu0 %v1884_v62  ;;  %1265 = vmatpush1.bf16.msra.mxu1 %v1887_v63 }
  0x9e   : > { %1180 = vmatprep.subr.bf16.mxu0 %v1892_v0  ;;  %1266 = vmatprep.subr.bf16.mxu1 %v1895_v1 }
  0xa1   : > { %1181 = vmatpush1.bf16.msra.mxu0 %v1890_v2  ;;  %1267 = vmatpush1.bf16.msra.mxu1 %v1893_v3 }
  0xa2   : > { %1182 = vmatprep.subr.bf16.mxu0 %v1898_v4  ;;  %1268 = vmatprep.subr.bf16.mxu1 %v1901_v5 }
  0xa5   : > { %1183 = vmatpush1.bf16.msra.mxu0 %v1896_v6  ;;  %1269 = vmatpush1.bf16.msra.mxu1 %v1899_v7 }
  0xa8   : > { %1185 = vmatmul.mubr.bf16.vlgmr.msra.gmra.mrb[0].mxu0 %v1902_v8  ;;  %1271 = vmatmul.mubr.bf16.vlgmr.msra.gmra.mrb[0].mxu1 %v1902_v8 }
 0x17b   : > { %v1186_v13 = vpop.f32.mrb[0].mxu0  ;;  %v1272_v14 = vpop.f32.mrb[0].mxu1  ;;  %1300 = sbr.rel (%p1643_p11) target bundleno = 400 (0x190), region = 63 }
 0x17c   : > { %v1281_v17 = vadd.f32 %v1186_v13, %v309_v9  ;;  %v1283_v18 = vadd.f32 %v1272_v14, %v311_v10  ;;  %v1188_v19 = vpop.f32.mrb[1].mxu0  ;;  %v1274_v20 = vpop.f32.mrb[1].mxu1 }
 0x17d   : > { %v1282_v23 = vadd.f32 %v1188_v19, %v310_v11  ;;  %v1284_v24 = vadd.f32 %v1274_v20, %v312_v12  ;;  %v1190_v25 = vpop.f32.mrb[2].mxu0  ;;  %v1276_v26 = vpop.f32.mrb[2].mxu1 }
 0x17e   : > { %1289 = vst [vmem:[#allocation2] sm:$0xff] %v1281_v17  ;;  %1291 = vst [vmem:[#allocation2 + $0x10] sm:$0xff] %v1283_v18  ;;  %v1285_v27 = vadd.f32 %v1190_v25, %v313_v15  ;;  %v1287_v28 = vadd.f32 %v1276_v26, %v315_v16  ;;  %v1192_v29 = vpop.f32.mrb[3].mxu0  ;;  %v1278_v30 = vpop.f32.mrb[3].mxu1 }
 0x17f   : > { %1290 = vst [vmem:[#allocation2 + $0x8] sm:$0xff] %v1282_v23  ;;  %1292 = vst [vmem:[#allocation2 + $0x18] sm:$0xff] %v1284_v24  ;;  %v1286_v31 = vadd.f32 %v1192_v29, %v314_v21  ;;  %v1288_v32 = vadd.f32 %v1278_v30, %v316_v22 }
 0x180   : > { %1293 = vst [vmem:[#allocation2 + $0x20] sm:$0xff] %v1285_v27  ;;  %1295 = vst [vmem:[#allocation2 + $0x30] sm:$0xff] %v1287_v28 }
 0x181   : > { %1294 = vst [vmem:[#allocation2 + $0x28] sm:$0xff] %v1286_v31  ;;  %1296 = vst [vmem:[#allocation2 + $0x38] sm:$0xff] %v1288_v32 }
 0x185   : > { %v1301_v36 = vld [vmem:[#allocation2] sm:$0xff]  ;;  %v1303_v42 = vld [vmem:[#allocation2 + $0x10] sm:$0xff] }
 0x186   : > { %v1302_v37 = vld [vmem:[#allocation2 + $0x8] sm:$0xff]  ;;  %v1304_v43 = vld [vmem:[#allocation2 + $0x18] sm:$0xff]  ;;  %v1331_v52 = vadd.f32 %v1314_v45, %v1301_v36  ;;  %v1333_v54 = vadd.f32 %v1322_v47, %v1303_v42 }
 0x187   : > { %v1305_v44 = vld [vmem:[#allocation2 + $0x20] sm:$0xff]  ;;  %v1307_v50 = vld [vmem:[#allocation2 + $0x30] sm:$0xff]  ;;  %v1332_v53 = vadd.f32 %v1318_v46, %v1302_v37  ;;  %v1334_v55 = vadd.f32 %v1326_v48, %v1304_v43 }
 0x188   : > { %v1306_v49 = vld [vmem:[#allocation2 + $0x28] sm:$0xff]  ;;  %v1308_v51 = vld [vmem:[#allocation2 + $0x38] sm:$0xff]  ;;  %v1335_v56 = vadd.f32 %v1314_v45, %v1305_v44  ;;  %v1337_v58 = vadd.f32 %v1322_v47, %v1307_v50  ;;  %v1339_v60 = vmax.f32 %v1331_v52, 0.0  ;;  %v1341_v62 = vmax.f32 %v1333_v54, 0.0 }
 0x189   : > { %v1336_v57 = vadd.f32 %v1318_v46, %v1306_v49  ;;  %v1338_v59 = vadd.f32 %v1326_v48, %v1308_v51  ;;  %v1340_v61 = vmax.f32 %v1332_v53, 0.0  ;;  %v1342_v63 = vmax.f32 %v1334_v55, 0.0 }
 0x18a   : > { %v1343_v0 = vmax.f32 %v1335_v56, 0.0  ;;  %v1345_v2 = vmax.f32 %v1337_v58, 0.0 }
 0x18b   : > { %v1344_v1 = vmax.f32 %v1336_v57, 0.0  ;;  %v1346_v3 = vmax.f32 %v1338_v59, 0.0  ;;  %v1654_v4 = vpack.c.bf16 %v1340_v61, %v1339_v60  ;;  %v1655_v5 = vpack.c.bf16 %v1342_v63, %v1341_v62 }
 0x18d   : > { %v1656_v6 = vpack.c.bf16 %v1344_v1, %v1343_v0  ;;  %v1657_v7 = vpack.c.bf16 %v1346_v3, %v1345_v2  ;;  %1371 = vst [vmem:[%s2187_s3] sm:$0xff] %v1654_v4  ;;  %1372 = vst [vmem:[%s2187_s3 + $0x8] sm:$0xff] %v1655_v5 }
 0x18f   : > { %1373 = vst [vmem:[%s2187_s3 + $0x10] sm:$0xff] %v1656_v6  ;;  %1374 = vst [vmem:[%s2187_s3 + $0x18] sm:$0xff] %v1657_v7 }
 0x190 PF: > { %s13_s16 = sadd.s32 1, %s1943_s16   ;;  %s2188_s12 = smov %s1931_s13 }
 0x191   : > { %p10_p12 = scmp.ge.s32.totalorder %s13_s16, 11   ;;  %s2189_s13 = smov %s2001_s20 }
 0x192   : > { %s2190_s14 = smov %s1939_s15  ;;  %s2191_s15 = smov %s2193_s17 }
 0x193   :  { %12 = sbr.rel (!%p10_p12) target bundleno = 3 (0x3), region = 104 }

// kernel: modified_res18_forward.41
= control target key start
LH: loop header
LB: loop body
LE: loop exit
PB: predicated region body
PF: predicated region fallthrough
CT: control target
= control target key end

     0   :  { %vm241_vm0 = vcmask 1041409   ;;  %vm243_vm1 = vcmask 1042434   ;;  %vm245_vm2 = vcmask 1043459   ;;  %s1358_s0 = inlined_call_operand.vmem [shape: bf16[4,1,512], index: 0, kind: input, shape index: {}]   ;;  %s1359_s1 = inlined_call_operand.vmem [shape: f32[512,256], index: 1, kind: input, shape index: {}]   ;;  %s1360_s2 = inlined_call_operand.vmem [shape: f32[1,256], index: 2, kind: input, shape index: {}]   ;;  %s1361_s3 = inlined_call_operand.vmem [shape: f32[256,128], index: 3, kind: input, shape index: {}]   ;;  %s1362_s4 = inlined_call_operand.vmem [shape: f32[1,128], index: 4, kind: input, shape index: {}]   ;;  %s1363_s5 = inlined_call_operand.hbm [shape: f32[1,128], index: 5, kind: output, shape index: {}]  }
   0x1   :  { %v34_v0 = vld [vmem:[%s1359_s1 + $0x8] sm:$0xff]  ;;  %v36_v1 = vld [vmem:[%s1359_s1 + $0x18] sm:$0xff]  ;;  %v33_v2 = vld [vmem:[%s1359_s1] sm:$0xff] }
   0x2   :  { %v584_v3 = vpack.c.bf16 %v36_v1, %v34_v0  ;;  %v35_v4 = vld [vmem:[%s1359_s1 + $0x10] sm:$0xff]  ;;  %v98_v5 = vld [vmem:[%s1359_s1 + $0x208] sm:$0xff]  ;;  %v100_v6 = vld [vmem:[%s1359_s1 + $0x218] sm:$0xff] }
   0x3   :  { %v586_v7 = vpack.c.bf16 %v35_v4, %v33_v2  ;;  %v648_v8 = vpack.c.bf16 %v100_v6, %v98_v5  ;;  %v97_v9 = vld [vmem:[%s1359_s1 + $0x200] sm:$0xff]  ;;  %v99_v10 = vld [vmem:[%s1359_s1 + $0x210] sm:$0xff]  ;;  %v38_v11 = vld [vmem:[%s1359_s1 + $0x28] sm:$0xff] }
   0x4   :  { %585 = vmatprep.subr.bf16.mxu1 %v584_v3  ;;  %v650_v12 = vpack.c.bf16 %v99_v10, %v97_v9  ;;  %v40_v13 = vld [vmem:[%s1359_s1 + $0x38] sm:$0xff]  ;;  %v37_v14 = vld [vmem:[%s1359_s1 + $0x20] sm:$0xff]  ;;  %v39_v15 = vld [vmem:[%s1359_s1 + $0x30] sm:$0xff] }
   0x5   :  { %587 = vmatpush1.bf16.msra.mxu1 %v586_v7  ;;  %649 = vmatprep.subr.bf16.mxu0 %v648_v8  ;;  %v588_v16 = vpack.c.bf16 %v40_v13, %v38_v11  ;;  %v590_v17 = vpack.c.bf16 %v39_v15, %v37_v14  ;;  %v102_v18 = vld [vmem:[%s1359_s1 + $0x228] sm:$0xff]  ;;  %v104_v19 = vld [vmem:[%s1359_s1 + $0x238] sm:$0xff]  ;;  %v101_v20 = vld [vmem:[%s1359_s1 + $0x220] sm:$0xff] }
   0x6   :  { %651 = vmatpush1.bf16.msra.mxu0 %v650_v12  ;;  %v652_v21 = vpack.c.bf16 %v104_v19, %v102_v18  ;;  %v103_v22 = vld [vmem:[%s1359_s1 + $0x230] sm:$0xff]  ;;  %v42_v23 = vld [vmem:[%s1359_s1 + $0x48] sm:$0xff]  ;;  %v44_v24 = vld [vmem:[%s1359_s1 + $0x58] sm:$0xff] }
   0x7   :  { %589 = vmatprep.subr.bf16.mxu1 %v588_v16  ;;  %v654_v25 = vpack.c.bf16 %v103_v22, %v101_v20  ;;  %v592_v26 = vpack.c.bf16 %v44_v24, %v42_v23  ;;  %v41_v27 = vld [vmem:[%s1359_s1 + $0x40] sm:$0xff]  ;;  %v43_v28 = vld [vmem:[%s1359_s1 + $0x50] sm:$0xff]  ;;  %v106_v29 = vld [vmem:[%s1359_s1 + $0x248] sm:$0xff] }
   0x8   :  { %653 = vmatprep.subr.bf16.mxu0 %v652_v21  ;;  %v108_v30 = vld [vmem:[%s1359_s1 + $0x258] sm:$0xff]  ;;  %v105_v31 = vld [vmem:[%s1359_s1 + $0x240] sm:$0xff]  ;;  %v107_v32 = vld [vmem:[%s1359_s1 + $0x250] sm:$0xff]  ;;  %v594_v33 = vpack.c.bf16 %v43_v28, %v41_v27 }
   0x9   :  { %591 = vmatpush1.bf16.msra.mxu1 %v590_v17  ;;  %v656_v34 = vpack.c.bf16 %v108_v30, %v106_v29  ;;  %v46_v35 = vld [vmem:[%s1359_s1 + $0x68] sm:$0xff]  ;;  %v48_v36 = vld [vmem:[%s1359_s1 + $0x78] sm:$0xff]  ;;  %v45_v37 = vld [vmem:[%s1359_s1 + $0x60] sm:$0xff]  ;;  %v658_v38 = vpack.c.bf16 %v107_v32, %v105_v31 }
   0xa   :  { %655 = vmatpush1.bf16.msra.mxu0 %v654_v25  ;;  %593 = vmatprep.subr.bf16.mxu1 %v592_v26  ;;  %v596_v39 = vpack.c.bf16 %v48_v36, %v46_v35  ;;  %v47_v40 = vld [vmem:[%s1359_s1 + $0x70] sm:$0xff]  ;;  %v110_v41 = vld [vmem:[%s1359_s1 + $0x268] sm:$0xff]  ;;  %v112_v42 = vld [vmem:[%s1359_s1 + $0x278] sm:$0xff] }
   0xb   :  { %657 = vmatprep.subr.bf16.mxu0 %v656_v34  ;;  %v660_v43 = vpack.c.bf16 %v112_v42, %v110_v41  ;;  %v109_v44 = vld [vmem:[%s1359_s1 + $0x260] sm:$0xff]  ;;  %v111_v45 = vld [vmem:[%s1359_s1 + $0x270] sm:$0xff]  ;;  %v50_v46 = vld [vmem:[%s1359_s1 + $0x88] sm:$0xff]  ;;  %v598_v48 = vpack.c.bf16 %v47_v40, %v45_v37 }
   0xc   :  { %v52_v47 = vld [vmem:[%s1359_s1 + $0x98] sm:$0xff]  ;;  %v114_v49 = vld [vmem:[%s1359_s1 + $0x288] sm:$0xff]  ;;  %v662_v51 = vpack.c.bf16 %v111_v45, %v109_v44  ;;  %v49_v53 = vld [vmem:[%s1359_s1 + $0x80] sm:$0xff] }
   0xd   :  { %595 = vmatpush1.bf16.msra.mxu1 %v594_v33  ;;  %v116_v50 = vld [vmem:[%s1359_s1 + $0x298] sm:$0xff]  ;;  %v600_v52 = vpack.c.bf16 %v52_v47, %v50_v46  ;;  %v51_v54 = vld [vmem:[%s1359_s1 + $0x90] sm:$0xff]  ;;  %v113_v55 = vld [vmem:[%s1359_s1 + $0x280] sm:$0xff] }
   0xe   :  { %659 = vmatpush1.bf16.msra.mxu0 %v658_v38  ;;  %597 = vmatprep.subr.bf16.mxu1 %v596_v39  ;;  %v664_v56 = vpack.c.bf16 %v116_v50, %v114_v49  ;;  %v115_v57 = vld [vmem:[%s1359_s1 + $0x290] sm:$0xff]  ;;  %v54_v58 = vld [vmem:[%s1359_s1 + $0xa8] sm:$0xff]  ;;  %v56_v59 = vld [vmem:[%s1359_s1 + $0xb8] sm:$0xff]  ;;  %v602_v62 = vpack.c.bf16 %v51_v54, %v49_v53 }
   0xf   :  { %661 = vmatprep.subr.bf16.mxu0 %v660_v43  ;;  %v118_v60 = vld [vmem:[%s1359_s1 + $0x2a8] sm:$0xff]  ;;  %v120_v61 = vld [vmem:[%s1359_s1 + $0x2b8] sm:$0xff]  ;;  %v666_v63 = vpack.c.bf16 %v115_v57, %v113_v55  ;;  %v604_v0 = vpack.c.bf16 %v56_v59, %v54_v58  ;;  %v53_v1 = vld [vmem:[%s1359_s1 + $0xa0] sm:$0xff] }
  0x10   :  { %v55_v2 = vld [vmem:[%s1359_s1 + $0xb0] sm:$0xff]  ;;  %v117_v3 = vld [vmem:[%s1359_s1 + $0x2a0] sm:$0xff]  ;;  %v668_v4 = vpack.c.bf16 %v120_v61, %v118_v60  ;;  %v58_v6 = vld [vmem:[%s1359_s1 + $0xc8] sm:$0xff] }
  0x11   :  { %599 = vmatpush1.bf16.msra.mxu1 %v598_v48  ;;  %v119_v5 = vld [vmem:[%s1359_s1 + $0x2b0] sm:$0xff]  ;;  %v60_v7 = vld [vmem:[%s1359_s1 + $0xd8] sm:$0xff]  ;;  %v122_v8 = vld [vmem:[%s1359_s1 + $0x2c8] sm:$0xff]  ;;  %v606_v10 = vpack.c.bf16 %v55_v2, %v53_v1 }
  0x12   :  { %663 = vmatpush1.bf16.msra.mxu0 %v662_v51  ;;  %601 = vmatprep.subr.bf16.mxu1 %v600_v52  ;;  %v124_v9 = vld [vmem:[%s1359_s1 + $0x2d8] sm:$0xff]  ;;  %v670_v11 = vpack.c.bf16 %v119_v5, %v117_v3  ;;  %v608_v12 = vpack.c.bf16 %v60_v7, %v58_v6  ;;  %v57_v13 = vld [vmem:[%s1359_s1 + $0xc0] sm:$0xff]  ;;  %v59_v14 = vld [vmem:[%s1359_s1 + $0xd0] sm:$0xff]  ;;  %v163_v52 = vlaneseq }
  0x13   :  { %665 = vmatprep.subr.bf16.mxu0 %v664_v56  ;;  %v121_v15 = vld [vmem:[%s1359_s1 + $0x2c0] sm:$0xff]  ;;  %v672_v16 = vpack.c.bf16 %v124_v9, %v122_v8  ;;  %v123_v17 = vld [vmem:[%s1359_s1 + $0x2d0] sm:$0xff]  ;;  %v62_v18 = vld [vmem:[%s1359_s1 + $0xe8] sm:$0xff]  ;;  %v610_v22 = vpack.c.bf16 %v59_v14, %v57_v13 }
  0x14   :  { %v64_v19 = vld [vmem:[%s1359_s1 + $0xf8] sm:$0xff]  ;;  %v126_v20 = vld [vmem:[%s1359_s1 + $0x2e8] sm:$0xff]  ;;  %v674_v23 = vpack.c.bf16 %v123_v17, %v121_v15  ;;  %v61_v25 = vld [vmem:[%s1359_s1 + $0xe0] sm:$0xff]  ;;  %v1065_v1 = vshrl.u32 %v163_v52, 7 }
  0x15   :  { %603 = vmatpush1.bf16.msra.mxu1 %v602_v62  ;;  %v128_v21 = vld [vmem:[%s1359_s1 + $0x2f8] sm:$0xff]  ;;  %v612_v24 = vpack.c.bf16 %v64_v19, %v62_v18  ;;  %v63_v26 = vld [vmem:[%s1359_s1 + $0xf0] sm:$0xff]  ;;  %v125_v27 = vld [vmem:[%s1359_s1 + $0x2e0] sm:$0xff] }
  0x16   :  { %667 = vmatpush1.bf16.msra.mxu0 %v666_v63  ;;  %605 = vmatprep.subr.bf16.mxu1 %v604_v0  ;;  %v676_v28 = vpack.c.bf16 %v128_v21, %v126_v20  ;;  %v127_v29 = vld [vmem:[%s1359_s1 + $0x2f0] sm:$0xff]  ;;  %v66_v30 = vld [vmem:[%s1359_s1 + $0x108] sm:$0xff]  ;;  %v68_v31 = vld [vmem:[%s1359_s1 + $0x118] sm:$0xff]  ;;  %v614_v34 = vpack.c.bf16 %v63_v26, %v61_v25  ;;  %v183_v15 = vsub.s32 2, %v1065_v1  ;;  %v191_v25 = vsub.s32 6, %v1065_v1 }
  0x17   :  { %669 = vmatprep.subr.bf16.mxu0 %v668_v4  ;;  %v130_v32 = vld [vmem:[%s1359_s1 + $0x308] sm:$0xff]  ;;  %v132_v33 = vld [vmem:[%s1359_s1 + $0x318] sm:$0xff]  ;;  %v678_v35 = vpack.c.bf16 %v127_v29, %v125_v27  ;;  %v616_v36 = vpack.c.bf16 %v68_v31, %v66_v30  ;;  %v65_v37 = vld [vmem:[%s1359_s1 + $0x100] sm:$0xff] }
  0x18   :  { %v67_v38 = vld [vmem:[%s1359_s1 + $0x110] sm:$0xff]  ;;  %v129_v39 = vld [vmem:[%s1359_s1 + $0x300] sm:$0xff]  ;;  %v680_v40 = vpack.c.bf16 %v132_v33, %v130_v32  ;;  %v70_v42 = vld [vmem:[%s1359_s1 + $0x128] sm:$0xff] }
  0x19   :  { %607 = vmatpush1.bf16.msra.mxu1 %v606_v10  ;;  %v131_v41 = vld [vmem:[%s1359_s1 + $0x310] sm:$0xff]  ;;  %v72_v43 = vld [vmem:[%s1359_s1 + $0x138] sm:$0xff]  ;;  %v134_v44 = vld [vmem:[%s1359_s1 + $0x328] sm:$0xff]  ;;  %v618_v46 = vpack.c.bf16 %v67_v38, %v65_v37 }
  0x1a   :  { %671 = vmatpush1.bf16.msra.mxu0 %v670_v11  ;;  %609 = vmatprep.subr.bf16.mxu1 %v608_v12  ;;  %v136_v45 = vld [vmem:[%s1359_s1 + $0x338] sm:$0xff]  ;;  %v682_v47 = vpack.c.bf16 %v131_v41, %v129_v39  ;;  %v620_v48 = vpack.c.bf16 %v72_v43, %v70_v42  ;;  %v69_v49 = vld [vmem:[%s1359_s1 + $0x120] sm:$0xff]  ;;  %v71_v50 = vld [vmem:[%s1359_s1 + $0x130] sm:$0xff] }
  0x1b   :  { %673 = vmatprep.subr.bf16.mxu0 %v672_v16  ;;  %v133_v51 = vld [vmem:[%s1359_s1 + $0x320] sm:$0xff]  ;;  %v684_v53 = vpack.c.bf16 %v136_v45, %v134_v44  ;;  %v135_v54 = vld [vmem:[%s1359_s1 + $0x330] sm:$0xff]  ;;  %v74_v55 = vld [vmem:[%s1359_s1 + $0x148] sm:$0xff]  ;;  %v622_v59 = vpack.c.bf16 %v71_v50, %v69_v49 }
  0x1c   :  { %v76_v56 = vld [vmem:[%s1359_s1 + $0x158] sm:$0xff]  ;;  %v138_v57 = vld [vmem:[%s1359_s1 + $0x348] sm:$0xff]  ;;  %v686_v60 = vpack.c.bf16 %v135_v54, %v133_v51  ;;  %v73_v62 = vld [vmem:[%s1359_s1 + $0x140] sm:$0xff] }
  0x1d   :  { %611 = vmatpush1.bf16.msra.mxu1 %v610_v22  ;;  %v140_v58 = vld [vmem:[%s1359_s1 + $0x358] sm:$0xff]  ;;  %v624_v61 = vpack.c.bf16 %v76_v56, %v74_v55  ;;  %v75_v63 = vld [vmem:[%s1359_s1 + $0x150] sm:$0xff]  ;;  %v137_v0 = vld [vmem:[%s1359_s1 + $0x340] sm:$0xff] }
  0x1e   :  { %675 = vmatpush1.bf16.msra.mxu0 %v674_v23  ;;  %613 = vmatprep.subr.bf16.mxu1 %v612_v24  ;;  %v688_v2 = vpack.c.bf16 %v140_v58, %v138_v57  ;;  %v139_v3 = vld [vmem:[%s1359_s1 + $0x350] sm:$0xff]  ;;  %v78_v4 = vld [vmem:[%s1359_s1 + $0x168] sm:$0xff]  ;;  %v80_v5 = vld [vmem:[%s1359_s1 + $0x178] sm:$0xff]  ;;  %v626_v8 = vpack.c.bf16 %v75_v63, %v73_v62  ;;  %v1177_v62 = vsub.s32 0, %v1065_v1 }
  0x1f   :  { %677 = vmatprep.subr.bf16.mxu0 %v676_v28  ;;  %v142_v6 = vld [vmem:[%s1359_s1 + $0x368] sm:$0xff]  ;;  %v144_v7 = vld [vmem:[%s1359_s1 + $0x378] sm:$0xff]  ;;  %v77_v9 = vld [vmem:[%s1359_s1 + $0x160] sm:$0xff]  ;;  %v690_v10 = vpack.c.bf16 %v139_v3, %v137_v0  ;;  %v628_v11 = vpack.c.bf16 %v80_v5, %v78_v4  ;;  %v187_v4 = vsub.s32 4, %v1065_v1 }
  0x20   :  { %v79_v12 = vld [vmem:[%s1359_s1 + $0x170] sm:$0xff]  ;;  %v141_v13 = vld [vmem:[%s1359_s1 + $0x360] sm:$0xff]  ;;  %v692_v16 = vpack.c.bf16 %v144_v7, %v142_v6  ;;  %v82_v17 = vld [vmem:[%s1359_s1 + $0x188] sm:$0xff] }
  0x21   :  { %615 = vmatpush1.bf16.msra.mxu1 %v614_v34  ;;  %v143_v14 = vld [vmem:[%s1359_s1 + $0x370] sm:$0xff]  ;;  %v84_v18 = vld [vmem:[%s1359_s1 + $0x198] sm:$0xff]  ;;  %v541_v19 = vld [vmem:[%s1358_s0] sm:$0xff]   ;;  %v630_v26 = vpack.c.bf16 %v79_v12, %v77_v9 }
  0x22   :  { %679 = vmatpush1.bf16.msra.mxu0 %v678_v35  ;;  %617 = vmatprep.subr.bf16.mxu1 %v616_v36  ;;  %v146_v20 = vld [vmem:[%s1359_s1 + $0x388] sm:$0xff]  ;;  %v148_v21 = vld [vmem:[%s1359_s1 + $0x398] sm:$0xff]  ;;  %v1110_v22 = vunpack.c.l.bf16 %v541_v19  ;;  %v1112_v23 = vunpack.c.h.bf16 %v541_v19  ;;  %v694_v27 = vpack.c.bf16 %v143_v14, %v141_v13  ;;  %v81_v28 = vld [vmem:[%s1359_s1 + $0x180] sm:$0xff]  ;;  %v632_v32 = vpack.c.bf16 %v84_v18, %v82_v17 }
  0x23   :  { %681 = vmatprep.subr.bf16.mxu0 %v680_v40  ;;  %v548_v24 = vld [vmem:[%s1358_s0 + $0x8] sm:$0xff]   ;;  %v83_v29 = vld [vmem:[%s1359_s1 + $0x190] sm:$0xff]  ;;  %v145_v33 = vld [vmem:[%s1359_s1 + $0x380] sm:$0xff]  ;;  %v696_v37 = vpack.c.bf16 %v148_v21, %v146_v20 }
  0x24   :  { %v1124_v30 = vunpack.c.l.bf16 %v548_v24  ;;  %v1126_v31 = vunpack.c.h.bf16 %v548_v24  ;;  %v147_v34 = vld [vmem:[%s1359_s1 + $0x390] sm:$0xff]  ;;  %v184_v35 = vrot.slane %v1110_v22, %v183_v15  ;;  %v200_v36 = vrot.slane %v1112_v23, %v183_v15  ;;  %v86_v38 = vld [vmem:[%s1359_s1 + $0x1a8] sm:$0xff]  ;;  %v88_v39 = vld [vmem:[%s1359_s1 + $0x1b8] sm:$0xff] }
  0x25   :  { %619 = vmatpush1.bf16.msra.mxu1 %v618_v46  ;;  %v634_v42 = vpack.c.bf16 %v83_v29, %v81_v28  ;;  %v150_v43 = vld [vmem:[%s1359_s1 + $0x3a8] sm:$0xff]  ;;  %v152_v44 = vld [vmem:[%s1359_s1 + $0x3b8] sm:$0xff]  ;;  %v192_v46 = vrot.slane %v1110_v22, %v191_v25  ;;  %v636_v52 = vpack.c.bf16 %v88_v39, %v86_v38  ;;  %v87_v54 = vld [vmem:[%s1359_s1 + $0x1b0] sm:$0xff] }
  0x26   :  { %683 = vmatpush1.bf16.msra.mxu0 %v682_v47  ;;  %621 = vmatprep.subr.bf16.mxu1 %v620_v48  ;;  %v216_v40 = vrot.slane %v1124_v30, %v183_v15  ;;  %v232_v41 = vrot.slane %v1126_v31, %v183_v15  ;;  %v247_v45 = vsel %vm241_vm0, %v200_v36, %v184_v35  ;;  %v149_v55 = vld [vmem:[%s1359_s1 + $0x3a0] sm:$0xff]  ;;  %v154_v0 = vld [vmem:[%s1359_s1 + $0x3c8] sm:$0xff] }
  0x27   :  { %685 = vmatprep.subr.bf16.mxu0 %v684_v53  ;;  %v208_v47 = vrot.slane %v1112_v23, %v191_v25  ;;  %v698_v48 = vpack.c.bf16 %v147_v34, %v145_v33  ;;  %v224_v50 = vrot.slane %v1124_v30, %v191_v25  ;;  %v240_v51 = vrot.slane %v1126_v31, %v191_v25  ;;  %v85_v53 = vld [vmem:[%s1359_s1 + $0x1a0] sm:$0xff] }
  0x28   :  { %v248_v49 = vsel %vm243_vm1, %v216_v40, %v247_v45  ;;  %v700_v58 = vpack.c.bf16 %v152_v44, %v150_v43 }
  0x29   :  { %623 = vmatpush1.bf16.msra.mxu1 %v622_v59  ;;  %v249_v56 = vsel %vm245_vm2, %v232_v41, %v248_v49  ;;  %v253_v57 = vsel %vm241_vm0, %v208_v47, %v192_v46  ;;  %v151_v59 = vld [vmem:[%s1359_s1 + $0x3b0] sm:$0xff] }
  0x2a   :  { %687 = vmatpush1.bf16.msra.mxu0 %v686_v60  ;;  %625 = vmatprep.subr.bf16.mxu1 %v624_v61  ;;  %v90_v60 = vld [vmem:[%s1359_s1 + $0x1c8] sm:$0xff]  ;;  %v92_v61 = vld [vmem:[%s1359_s1 + $0x1d8] sm:$0xff]  ;;  %v254_v63 = vsel %vm243_vm1, %v224_v50, %v253_v57 }
  0x2b   :  { %689 = vmatprep.subr.bf16.mxu0 %v688_v2  ;;  %324 = vmatprep.mubr.f32.mxu1 %v249_v56  ;;  %v156_v2 = vld [vmem:[%s1359_s1 + $0x3d8] sm:$0xff]  ;;  %v255_v3 = vsel %vm245_vm2, %v240_v51, %v254_v63 }
  0x2d   :  { %627 = vmatpush1.bf16.msra.mxu1 %v626_v8 }
  0x2e   :  { %691 = vmatpush1.bf16.msra.mxu0 %v690_v10  ;;  %629 = vmatprep.subr.bf16.mxu1 %v628_v11 }
  0x2f   :  { %693 = vmatprep.subr.bf16.mxu0 %v692_v16 }
  0x31   :  { %631 = vmatpush1.bf16.msra.mxu1 %v630_v26 }
  0x32   :  { %695 = vmatpush1.bf16.msra.mxu0 %v694_v27  ;;  %633 = vmatprep.subr.bf16.mxu1 %v632_v32 }
  0x33   :  { %697 = vmatprep.subr.bf16.mxu0 %v696_v37 }
  0x34   :  { %10 = vsyncpa [#allocation3], 0  ;;  %v638_v5 = vpack.c.bf16 %v87_v54, %v85_v53  ;;  %395 = vmatprep.mubr.f32.mxu0 %v255_v3  ;;  %v702_v6 = vpack.c.bf16 %v151_v59, %v149_v55  ;;  %v640_v7 = vpack.c.bf16 %v92_v61, %v90_v60  ;;  %v89_v8 = vld [vmem:[%s1359_s1 + $0x1c0] sm:$0xff]  ;;  %v91_v9 = vld [vmem:[%s1359_s1 + $0x1d0] sm:$0xff]  ;;  %v704_v11 = vpack.c.bf16 %v156_v2, %v154_v0  ;;  %s773_s11 = smov [#allocation2]  }
  0x35   :  { %635 = vmatpush1.bf16.msra.mxu1 %v634_v42  ;;  %v153_v10 = vld [vmem:[%s1359_s1 + $0x3c0] sm:$0xff]  ;;  %v155_v12 = vld [vmem:[%s1359_s1 + $0x3d0] sm:$0xff]  ;;  %v94_v13 = vld [vmem:[%s1359_s1 + $0x1e8] sm:$0xff]  ;;  %v180_v15 = vrot.slane %v1110_v22, %v1177_v62  ;;  %v196_v16 = vrot.slane %v1112_v23, %v1177_v62  ;;  %v188_v19 = vrot.slane %v1110_v22, %v187_v4  ;;  %v204_v20 = vrot.slane %v1112_v23, %v187_v4  ;;  %s531_s12 = sshll.u32 %s773_s11, 4  ;;  %s532_s12 = int_to_ptr.vmem [resolvable:$true] %s531_s12 }
  0x36   :  { %699 = vmatpush1.bf16.msra.mxu0 %v698_v48  ;;  %637 = vmatprep.subr.bf16.mxu1 %v636_v52  ;;  %v96_v14 = vld [vmem:[%s1359_s1 + $0x1f8] sm:$0xff]  ;;  %v158_v17 = vld [vmem:[%s1359_s1 + $0x3e8] sm:$0xff]  ;;  %v642_v21 = vpack.c.bf16 %v91_v9, %v89_v8  ;;  %v93_v24 = vld [vmem:[%s1359_s1 + $0x1e0] sm:$0xff]  ;;  %v706_v25 = vpack.c.bf16 %v155_v12, %v153_v10  ;;  %v212_v28 = vrot.slane %v1124_v30, %v1177_v62  ;;  %vm514_vm3 = vcmask 1043456   ;;  %s749_s13 = scalar_lea.vmem %s532_s12, 16  ;;  %p754_p1 = scmp.lt.s32.totalorder %s532_s12, %s532_s12 }
  0x37   :  { %701 = vmatprep.subr.bf16.mxu0 %v700_v58  ;;  %v160_v18 = vld [vmem:[%s1359_s1 + $0x3f8] sm:$0xff]  ;;  %v644_v26 = vpack.c.bf16 %v96_v14, %v94_v13  ;;  %v95_v27 = vld [vmem:[%s1359_s1 + $0x1f0] sm:$0xff]  ;;  %v157_v22 = vld [vmem:[%s1359_s1 + $0x3e0] sm:$0xff]  ;;  %v242_v32 = vsel %vm241_vm0, %v196_v16, %v180_v15  ;;  %v220_v33 = vrot.slane %v1124_v30, %v187_v4  ;;  %v250_v36 = vsel %vm241_vm0, %v204_v20, %v188_v19  ;;  %p750_p0 = scmp.ne.s32.totalorder %s532_s12, %s749_s13 }
  0x38   :  { %v159_v23 = vld [vmem:[%s1359_s1 + $0x3f0] sm:$0xff]  ;;  %v708_v29 = vpack.c.bf16 %v160_v18, %v158_v17  ;;  %v420_v34 = vld [vmem:[%s1361_s3 + $0x80] sm:$0xff]  ;;  %v421_v35 = vld [vmem:[%s1361_s3 + $0x88] sm:$0xff]  ;;  %v646_v37 = vpack.c.bf16 %v95_v27, %v93_v24  ;;  %v228_v39 = vrot.slane %v1126_v31, %v1177_v62  ;;  %v244_v30 = vsel %vm243_vm1, %v212_v28, %v242_v32 }
  0x39   :  { %639 = vmatpush1.bf16.msra.mxu1 %v638_v5  ;;  %v710_v38 = vpack.c.bf16 %v159_v23, %v157_v22  ;;  %v236_v40 = vrot.slane %v1126_v31, %v187_v4  ;;  %v712_v41 = vpack.c.bf16 %v421_v35, %v420_v34  ;;  %v404_v42 = vld [vmem:[%s1361_s3] sm:$0xff]  ;;  %v405_v43 = vld [vmem:[%s1361_s3 + $0x8] sm:$0xff]  ;;  %v251_v44 = vsel %vm243_vm1, %v220_v33, %v250_v36  ;;  %v422_v45 = vld [vmem:[%s1361_s3 + $0x90] sm:$0xff] }
  0x3a   :  { %703 = vmatpush1.bf16.msra.mxu0 %v702_v6  ;;  %641 = vmatprep.subr.bf16.mxu1 %v640_v7  ;;  %v423_v31 = vld [vmem:[%s1361_s3 + $0x98] sm:$0xff]  ;;  %v246_v46 = vsel %vm245_vm2, %v228_v39, %v244_v30  ;;  %v714_v47 = vpack.c.bf16 %v405_v43, %v404_v42  ;;  %v406_v50 = vld [vmem:[%s1361_s3 + $0x10] sm:$0xff]  ;;  %v424_v52 = vld [vmem:[%s1361_s3 + $0xa0] sm:$0xff]  ;;  %v169_v28 = vsub.s32 1, %v1065_v1 }
  0x3b   :  { %705 = vmatprep.subr.bf16.mxu0 %v704_v11  ;;  %v252_v48 = vsel %vm245_vm2, %v236_v40, %v251_v44  ;;  %v716_v49 = vpack.c.bf16 %v423_v31, %v422_v45  ;;  %v407_v51 = vld [vmem:[%s1361_s3 + $0x18] sm:$0xff]  ;;  %v425_v53 = vld [vmem:[%s1361_s3 + $0xa8] sm:$0xff]  ;;  %v408_v56 = vld [vmem:[%s1361_s3 + $0x20] sm:$0xff] }
  0x3c   :  { %v718_v54 = vpack.c.bf16 %v407_v51, %v406_v50  ;;  %v720_v55 = vpack.c.bf16 %v425_v53, %v424_v52  ;;  %v409_v57 = vld [vmem:[%s1361_s3 + $0x28] sm:$0xff]  ;;  %v426_v58 = vld [vmem:[%s1361_s3 + $0xb0] sm:$0xff]  ;;  %v427_v59 = vld [vmem:[%s1361_s3 + $0xb8] sm:$0xff] }
  0x3d   :  { %643 = vmatpush1.bf16.msra.mxu1 %v642_v21  ;;  %v722_v60 = vpack.c.bf16 %v409_v57, %v408_v56  ;;  %v724_v61 = vpack.c.bf16 %v427_v59, %v426_v58  ;;  %v410_v63 = vld [vmem:[%s1361_s3 + $0x30] sm:$0xff]  ;;  %v411_v0 = vld [vmem:[%s1361_s3 + $0x38] sm:$0xff]  ;;  %v428_v2 = vld [vmem:[%s1361_s3 + $0xc0] sm:$0xff] }
  0x3e   :  { %707 = vmatpush1.bf16.msra.mxu0 %v706_v25  ;;  %645 = vmatprep.subr.bf16.mxu1 %v644_v26  ;;  %v429_v3 = vld [vmem:[%s1361_s3 + $0xc8] sm:$0xff]  ;;  %v726_v4 = vpack.c.bf16 %v411_v0, %v410_v63  ;;  %v412_v6 = vld [vmem:[%s1361_s3 + $0x40] sm:$0xff]  ;;  %v430_v8 = vld [vmem:[%s1361_s3 + $0xd0] sm:$0xff] }
  0x3f   :  { %709 = vmatprep.subr.bf16.mxu0 %v708_v29  ;;  %v728_v5 = vpack.c.bf16 %v429_v3, %v428_v2  ;;  %v413_v7 = vld [vmem:[%s1361_s3 + $0x48] sm:$0xff]  ;;  %v431_v9 = vld [vmem:[%s1361_s3 + $0xd8] sm:$0xff]  ;;  %v414_v12 = vld [vmem:[%s1361_s3 + $0x50] sm:$0xff] }
  0x40   :  { %v730_v10 = vpack.c.bf16 %v413_v7, %v412_v6  ;;  %v732_v11 = vpack.c.bf16 %v431_v9, %v430_v8  ;;  %v415_v13 = vld [vmem:[%s1361_s3 + $0x58] sm:$0xff]  ;;  %v432_v15 = vld [vmem:[%s1361_s3 + $0xe0] sm:$0xff]  ;;  %v433_v16 = vld [vmem:[%s1361_s3 + $0xe8] sm:$0xff] }
  0x41   :  { %647 = vmatpush1.bf16.msra.mxu1 %v646_v37  ;;  %v734_v14 = vpack.c.bf16 %v415_v13, %v414_v12  ;;  %v736_v17 = vpack.c.bf16 %v433_v16, %v432_v15  ;;  %v416_v18 = vld [vmem:[%s1361_s3 + $0x60] sm:$0xff]  ;;  %v417_v19 = vld [vmem:[%s1361_s3 + $0x68] sm:$0xff]  ;;  %v434_v21 = vld [vmem:[%s1361_s3 + $0xf0] sm:$0xff] }
  0x42   :  { %711 = vmatpush1.bf16.msra.mxu0 %v710_v38  ;;  %713 = vmatprep.subr.bf16.mxu1 %v712_v41  ;;  %v738_v20 = vpack.c.bf16 %v417_v19, %v416_v18  ;;  %v435_v24 = vld [vmem:[%s1361_s3 + $0xf8] sm:$0xff]  ;;  %v418_v26 = vld [vmem:[%s1361_s3 + $0x70] sm:$0xff]  ;;  %v161_v23 = vld [vmem:[%s1360_s2] sm:$0x3] }
  0x43   :  { %v740_v25 = vpack.c.bf16 %v435_v24, %v434_v21  ;;  %v419_v27 = vld [vmem:[%s1361_s3 + $0x78] sm:$0xff]  ;;  %v166_v29 = vrot.slane %v161_v23, %v1177_v62  ;;  %v170_v32 = vrot.slane %v161_v23, %v169_v28  ;;  %v539_v1 = vld [vmem:[%s1362_s4] ss:$0 sm:$0xff]  ;;  %s753_s4 = scalar_lea.vmem %s532_s12, 32 }
  0x44   :  { %325 = vmatmul.mubr.f32.vlgmr.msra.gmra.mrb[0].mxu1 %v246_v46  ;;  %v742_v22 = vpack.c.bf16 %v419_v27, %v418_v26  ;;  %p755_p2 = scmp.lt.s32.totalorder %s753_s4, %s749_s13 }
  0x45   :  { %396 = vmatmul.mubr.f32.vlgmr.msra.gmra.mrb[0].mxu0 %v252_v48  ;;  %715 = vmatpush3.bf16.msra.mxu1 %v714_v47 }
  0x46   :  { %717 = vmatprep.subr.bf16.mxu1 %v716_v49  ;;  %p756_p3 = por %p755_p2, %p754_p1 }
  0x48   :  { %p757_p4 = pnand %p756_p3, %p750_p0 }
  0x49   :  { %719 = vmatpush3.bf16.msra.mxu1 %v718_v54 }
  0x4a   :  { %721 = vmatprep.subr.bf16.mxu1 %v720_v55 }
  0x4d   :  { %723 = vmatpush3.bf16.msra.mxu1 %v722_v60 }
  0x4e   :  { %725 = vmatprep.subr.bf16.mxu1 %v724_v61 }
  0x51   :  { %727 = vmatpush3.bf16.msra.mxu1 %v726_v4 }
  0x52   :  { %729 = vmatprep.subr.bf16.mxu1 %v728_v5 }
  0x55   :  { %731 = vmatpush3.bf16.msra.mxu1 %v730_v10 }
  0x56   :  { %733 = vmatprep.subr.bf16.mxu1 %v732_v11 }
  0x59   :  { %735 = vmatpush3.bf16.msra.mxu1 %v734_v14 }
  0x5a   :  { %737 = vmatprep.subr.bf16.mxu1 %v736_v17 }
  0x5d   :  { %739 = vmatpush3.bf16.msra.mxu1 %v738_v20 }
  0x5e   :  { %741 = vmatprep.subr.bf16.mxu1 %v740_v25 }
  0x61   :  { %743 = vmatpush3.bf16.msra.mxu1 %v742_v22 }
 0x117   :  { %v326_v33 = vpop.f32.mrb[0].mxu1 }
 0x118   :  { %v327_v34 = vadd.f32 %v326_v33, %v166_v29  ;;  %v328_v35 = vpop.f32.mrb[1].mxu1  ;;  %v397_v36 = vpop.f32.mrb[0].mxu0 }
 0x119   :  { %v329_v37 = vadd.f32 %v328_v35, %v170_v32  ;;  %v399_v38 = vpop.f32.mrb[1].mxu0 }
 0x11a   :  { %v398_v39 = vadd.f32 %v397_v36, %v327_v34 }
 0x11b   :  { %v400_v30 = vadd.f32 %v399_v38, %v329_v37 }
 0x11c   :  { %v402_v41 = vmax.f32 %v398_v39, 0.0 }
 0x11d   :  { %v403_v40 = vmax.f32 %v400_v30, 0.0 }
 0x11f   :  { %507 = vmatprep.mubr.f32.mxu1 %v403_v40 }
 0x120   :  { %508 = vmatmul.mubr.f32.vlgmr.msra.gmra.mrb[2].mxu1 %v402_v41 }
 0x1f3   :  { %v581_v42 = vpop.f32.mrb[2].mxu1 }
 0x1f4   :  { %v582_v43 = vpop.f32.mrb[3].mxu1 }
 0x1f5   :  { %v583_v62 = vadd.f32 %v582_v43, %v581_v42 }
 0x1f7   :  { %v510_v44 = vadd.f32 %v583_v62, %v539_v1 }
 0x1f9   :  { %v513_v45 = vmax.f32 %v510_v44, 0.0 }
 0x1fb   :  { %v515_v31 = vsel %vm514_vm3, %v513_v45, 0.0 }
 0x1fc   :  { %v516_v46 = vrot.slane %v515_v31, 4 }
 0x1fe   :  { %v517_v47 = vadd.f32 %v516_v46, %v515_v31 }
 0x200   :  { %v518_v48 = vrot.slane %v517_v47, 2 }
 0x202   :  { %v519_v49 = vadd.f32 %v518_v48, %v517_v47 }
 0x204   :  { %v520_v50 = vrot.slane %v519_v49, 1 }
 0x206   :  { %v521_v51 = vadd.f32 %v520_v50, %v519_v49 }
 0x208   :  { %v523_v52 = vmul.f32 0.25, %v521_v51 }
 0x20a   :  { %524 = vst [vmem:[#allocation2] sm:$0x1] %v523_v52 }
 0x20b   :  { %760 = shalt.err (!%p757_p4)
}
 0x20c   :  { %s761_s16 = scalar_lea.hbm %s1363_s5, 16 }
 0x20d   :  { %p762_p5 = scmp.ne.s32.totalorder %s1363_s5, %s761_s16  ;;  %p765_p6 = scmp.lt.u32.totalorder %s761_s16, %s1363_s5 }
 0x20f   :  { %p767_p7 = pnand %p765_p6, %p762_p5 }
 0x211   :  { %770 = shalt.err (!%p767_p7)
}
 0x212   :  { %534 = dma.vmem_to_hbm [thread:$0]  %s532_s12, 16, %s1363_s5, [#allocation3]  }
 0x213   :  { %771 = dma.done.wait [#allocation3], 16  }
 0x214   :  { %772 = vsyncadd [#allocation3], 4294967280 }
 0x215   :  { %538 = vsyncpa [#allocation3], 1 }

</bundles_post_ra>
